<compile_context>
chip_gen: v7x
topology: tpu7x:2x2x1
jax: 0.10.0
libtpu: 0.0.40
codegen_flags: <defaults>
</compile_context>

<pallas_src>
from functools import lru_cache

import numpy as np
import jax
import jax.numpy as jnp
from jax import lax
from jax.experimental import pallas as pl
from jax.experimental.pallas import tpu as pltpu

DTYPE = jnp.float32
BN_EPS = 1e-5

# ---------------------------------------------------------------------------
# Architecture spec (single source of truth for the Pallas kernel & reference)
# ---------------------------------------------------------------------------
# conv layers: name -> (kind, Cin, Cout, K, stride, padding, output_padding)
CONVS = {
    # enc1 is Conv2d(1, 8, (3, 9), padding=(0, 4)) on x.unsqueeze(1) + squeeze,
    # which is mathematically Conv1d(3, 8, 9, padding=4).
    'enc1':  ('conv',    3,  8, 9, 1, 4, 0),
    'enc2':  ('conv',    8,  8, 9, 2, 4, 0),
    'enc3c': ('conv',    8, 16, 7, 1, 3, 0),
    'enc4':  ('conv',   16, 16, 7, 2, 3, 0),
    'enc5c': ('conv',   16, 32, 5, 1, 2, 0),
    'enc6':  ('conv',   32, 32, 5, 2, 2, 0),
    'enc7c': ('conv',   32, 64, 3, 1, 1, 0),
    'dec2':  ('deconv', 64, 32, 3, 1, 1, 0),
    'dec3c': ('deconv', 32, 32, 5, 2, 2, 1),
    'dec4':  ('deconv', 32, 16, 5, 1, 2, 0),
    'dec5c': ('deconv', 16, 16, 7, 2, 3, 1),
    'dec6':  ('deconv', 16,  8, 7, 1, 3, 0),
    'dec7':  ('deconv',  8,  8, 9, 2, 4, 1),
    'dec8':  ('deconv',  8,  3, 9, 1, 4, 0),
}
# enc8 / dec1c / bottleneck are never used by forward() when bottleneck=None.

BNS = {'bn1': 8, 'bn2': 8, 'bn3': 16, 'bn4': 16, 'bn5': 32, 'bn6': 32, 'bn7': 64,
       'bn8': 64, 'bn9': 32, 'bn10': 32, 'bn11': 16, 'bn12': 16, 'bn13': 8,
       'bn14': 8, 'bn15': 3}

# forward steps: (conv, save_tag, add_tag, bn, relu).
# Order inside a step: conv -> save raw conv output -> residual add -> BN (+ReLU).
STEPS = [
    ('enc1',  None, None, 'bn1',  True),
    ('enc2',  None, None, 'bn2',  True),
    ('enc3c', 'x1', None, 'bn3',  True),
    ('enc4',  None, None, 'bn4',  True),
    ('enc5c', 'x2', None, 'bn5',  True),
    ('enc6',  None, None, 'bn6',  True),
    ('enc7c', 'x3', None, 'bn7',  True),
    (None,    None, 'x3', 'bn8',  True),    # bottleneck=None -> identity
    ('dec2',  None, None, 'bn9',  True),
    ('dec3c', None, 'x2', 'bn10', True),
    ('dec4',  None, None, 'bn11', True),
    ('dec5c', None, 'x1', 'bn12', True),
    ('dec6',  None, None, 'bn13', True),
    ('dec7',  None, None, 'bn14', True),
    ('dec8',  None, None, 'bn15', False),
]
CONV_ORDER = [s[0] for s in STEPS if s[0] is not None]


def _pad8(v):
    return ((v + 7) // 8) * 8


# ---------------------------------------------------------------------------
# Packed-slab layouts (shape-independent: weights & BN params)
# ---------------------------------------------------------------------------
def _weight_layout():
    offs, row, kc_max = {}, 0, 0
    for name in CONV_ORDER:
        _kind, cin, cout, k, _s, _p, _op = CONVS[name]
        offs[name] = row
        row += _pad8(cout)
        kc_max = max(kc_max, k * _pad8(cin))
    return offs, row, kc_max


W_OFFS, W_ROWS, KC_MAX = _weight_layout()


def _bn_layout():
    offs, row = {}, 0
    for name, c in BNS.items():
        offs[name] = row
        row += _pad8(c)
    return offs, row


BN_OFFS, BN_ROWS = _bn_layout()


# ---------------------------------------------------------------------------
# Static per-call plan: layer geometry + stride-2 selection-matrix slab layout
# ---------------------------------------------------------------------------
@lru_cache(maxsize=None)
def _make_plan(n, l0):
    geoms, du_offs = {}, {}
    l, du_rows, du_cols = l0, 0, 0
    for conv, _save, _add, _bn, _relu in STEPS:
        if conv is None:
            continue
        kind, cin, cout, k, stride, pad, opad = CONVS[conv]
        if kind == 'conv':
            l_out = (l + 2 * pad - k) // stride + 1
            pad_eff, l_tap = pad, l
        else:
            l_out = (l - 1) * stride - 2 * pad + k + opad
            pad_eff = k - 1 - pad
            l_tap = l_out if stride > 1 else l
        # The in-kernel tap loop assumes a 'same'-geometry stride-1 conv; the
        # stride-2 down-sampling / zero-insertion is a separate selection matmul.
        assert 2 * pad_eff == k - 1, conv
        if kind == 'conv' and stride == 2:
            assert l % 2 == 0 and l_out == l // 2, conv
        elif kind == 'deconv' and stride == 2:
            assert l_out == 2 * l, conv
        else:
            assert l_out == l, conv
        geoms[conv] = dict(kind=kind, cin=_pad8(cin), cout=cout, K=k, stride=stride,
                           pad_eff=pad_eff, l_in=l, l_tap=l_tap, l_out=l_out)
        if stride == 2:
            rows = n * (l_tap if kind == 'conv' else l)
            du_offs[conv] = du_rows
            du_rows += _pad8(rows)
            du_cols = max(du_cols, n * l_out)
        l = l_out
    return geoms, du_offs, du_rows, du_cols, l


@lru_cache(maxsize=None)
def _build_du_slab(n, l0):
    """Host-side precompute of the per-layer stride-2 selection matrices
    (down-sample for convs, zero-insertion up-sample for deconvs), packed into one
    f32 slab so the kernel does no per-layer iota/compare work for them."""
    geoms, du_offs, du_rows, du_cols, _ = _make_plan(n, l0)
    slab = np.zeros((max(du_rows, 8), max(du_cols, 128)), np.float32)
    for name, off in du_offs.items():
        g = geoms[name]
        li = g['l_tap'] if g['kind'] == 'conv' else g['l_in']
        lo = g['l_out']
        i = np.arange(n * li)
        t = np.arange(n * lo)
        bi, pi = i // li, i % li
        bt, pt = t // lo, t % lo
        same = bi[:, None] == bt[None, :]
        if g['kind'] == 'conv':        # out[:, t] = full[:, 2*pos_t]   (same sample block)
            sel = same & (pi[:, None] == 2 * pt[None, :])
        else:                          # up[:, 2*pos_i] = x[:, i]       (zeros elsewhere)
            sel = same & (pt[None, :] == 2 * pi[:, None])
        slab[off:off + n * li, :n * lo] = sel.astype(np.float32)
    return slab


# ---------------------------------------------------------------------------
# In-kernel building blocks (traced once inside the fused kernel)
# ---------------------------------------------------------------------------
def _pos_in_block(nl, l, n):
    """Within-sample-block position for every folded lane index, shape (1, nl)."""
    idx = lax.broadcasted_iota(jnp.int32, (1, nl), 1)
    pos = idx
    for b in range(1, n):
        pos = jnp.where(idx >= b * l, idx - b * l, pos)
    return pos


def _block_pos(shape, dim, l, n):
    """(sample-block id, within-block position) from a 1-D iota along `dim`."""
    idx = lax.broadcasted_iota(jnp.int32, shape, dim)
    blk = jnp.zeros_like(idx)
    pos = idx
    for b in range(1, n):
        hit = idx >= b * l
        blk = jnp.where(hit, b, blk)
        pos = jnp.where(hit, idx - b * l, pos)
    return blk, pos


def _conv_layer(a, g, w_ref, du_ref, w_off, du_off, n):
    """One Conv1d / ConvTranspose1d on a lane-folded activation a: (Cin, n*L)."""
    k_taps, cin, cout = g['K'], g['cin'], g['cout']
    pad_eff, l_tap = g['pad_eff'], g['l_tap']
    nl = n * l_tap

    # Stride-2 ConvTranspose: zero-insertion up-sample via ONE selection matmul,
    # applied once per layer (not per tap), then a plain stride-1 tap loop.
    if g['kind'] == 'deconv' and g['stride'] == 2:
        u = du_ref[du_off:du_off + n * g['l_in'], 0:nl]
        a = jnp.dot(a, u, preferred_element_type=jnp.float32)

    use_roll = (nl % 128 == 0)
    if use_roll:
        pos = _pos_in_block(nl, l_tap, n)                       # (1, nl)
    else:
        # Narrow layers (N*L in {32, 64}): keep a tiny per-tap 0/1 shift matrix
        # (<= 64x64), built from 1-D iota broadcasts (no full-matrix temporaries).
        jb, jp = _block_pos((nl, 1), 0, l_tap, n)
        tb, tp = _block_pos((1, nl), 1, l_tap, n)
        same_blk = jb == tb

    # 'same' stride-1 tap loop: per-tap lane shift (XLU roll) + boundary mask,
    # taps stacked along the contraction axis so a single MXU matmul accumulates
    # across all K taps:  y = W_flat (Cout, K*Cin) @ stacked (K*Cin, N*L).
    slabs = []
    for k in range(k_taps):
        s = k - pad_eff                                         # out[:, t] uses a[:, t+s]
        if s == 0:
            slabs.append(a)
        elif use_roll:
            rolled = pltpu.roll(a, shift=(-s) % nl, axis=1)
            m = (pos < l_tap - s) if s > 0 else (pos >= -s)
            slabs.append(rolled * m.astype(a.dtype))
        else:
            sel = (same_blk & (jp == tp + s)).astype(a.dtype)
            slabs.append(jnp.dot(a, sel, preferred_element_type=jnp.float32))
    stacked = jnp.concatenate(slabs, axis=0)                    # (K*Cin, nl)

    w = w_ref[w_off:w_off + cout, 0:k_taps * cin]               # (Cout, K*Cin)
    y = jnp.dot(w, stacked, preferred_element_type=jnp.float32)

    # Stride-2 Conv: keep every 2nd output position -- ONE selection matmul.
    if g['kind'] == 'conv' and g['stride'] == 2:
        d = du_ref[du_off:du_off + nl, 0:n * g['l_out']]
        y = jnp.dot(y, d, preferred_element_type=jnp.float32)
    return y


def _bn_act(a, gamma, beta, relu):
    """Training-mode BatchNorm1d over the folded (N*L) lane axis.  Single-pass
    moments (sum and sum-of-squares issued together), fused affine + ReLU.
    Conv biases are folded away: a per-channel constant cancels exactly through
    the mean subtraction of the training-mode BN that follows every conv /
    residual sum in this network (NOT valid for eval-mode running stats)."""
    inv_m = 1.0 / a.shape[-1]
    s1 = jnp.sum(a, axis=-1, keepdims=True)
    s2 = jnp.sum(a * a, axis=-1, keepdims=True)
    mean = s1 * inv_m
    var = s2 * inv_m - mean * mean
    scale = gamma * lax.rsqrt(var + BN_EPS)
    shift = beta - mean * scale
    y = a * scale + shift
    return jnp.maximum(y, 0.0) if relu else y


def _make_fused_kernel(n, l0):
    geoms, du_offs, _dr, _dc, _lf = _make_plan(n, l0)

    def kernel(x_ref, w_ref, bn_ref, du_ref, o_ref):
        a = x_ref[...]                                          # (C0_pad, n*L0)
        saved = {}
        for conv, save, add, bn, relu in STEPS:
            if conv is not None:
                a = _conv_layer(a, geoms[conv], w_ref, du_ref,
                                W_OFFS[conv], du_offs.get(conv), n)
            if save is not None:
                saved[save] = a                                 # raw pre-BN conv output
            if add is not None:
                a = a + saved[add]
            r, c = BN_OFFS[bn], BNS[bn]
            gamma = bn_ref[r:r + c, 0:1]
            beta = bn_ref[r:r + c, 1:2]
            a = _bn_act(a, gamma, beta, relu)
        o_ref[...] = a.astype(o_ref.dtype)

    return kernel


# ---------------------------------------------------------------------------
# Wrapper: one fused pallas_call for the whole network
# ---------------------------------------------------------------------------
def autoencoder_forward(x, prepared):
    n, c0, l0 = x.shape
    geoms, _du_offs, _dr, _dc, l_final = _make_plan(n, l0)
    c_first = geoms[CONV_ORDER[0]]['cin']          # input channels padded to 8
    c_last = geoms[CONV_ORDER[-1]]['cout']         # 3

    # Fold the batch into the lane axis (layout plumbing only): (N,C,L) -> (C, N*L).
    # Zero-pad the 3 input channels to 8 so every tap-stack concat is 8-aligned;
    # enc1's packed weight is zero on the padded channels.
    x_folded = jnp.transpose(x, (1, 0, 2)).reshape(c0, n * l0)
    if c_first > c0:
        x_folded = jnp.concatenate(
            [x_folded, jnp.zeros((c_first - c0, n * l0), x.dtype)], axis=0)

    du_slab = jnp.asarray(_build_du_slab(n, l0))

    out_folded = pl.pallas_call(
        _make_fused_kernel(n, l0),
        out_shape=jax.ShapeDtypeStruct((c_last, n * l_final), x.dtype),
        in_specs=[pl.BlockSpec(memory_space=pltpu.MemorySpace.VMEM)] * 4,
        out_specs=pl.BlockSpec(memory_space=pltpu.MemorySpace.VMEM),
        compiler_params=pltpu.CompilerParams(vmem_limit_bytes=32 * 1024 * 1024),
    )(x_folded, prepared['w'], prepared['bn'], du_slab)

    return jnp.transpose(out_folded.reshape(c_last, n, l_final), (1, 0, 2))


# ---------------------------------------------------------------------------
# Parameter handling
# ---------------------------------------------------------------------------
def prepare_params(params):
    """One-time repack of all weights / BN params into two dense VMEM slabs
    (one DMA each instead of ~30 tiny, lane-padded transfers)."""
    wslab = np.zeros((W_ROWS, KC_MAX), np.float32)
    for name in CONV_ORDER:
        kind, cin, cout, k, _s, _p, _op = CONVS[name]
        w = np.asarray(params[name + '_w'], np.float32)
        if kind == 'deconv':
            # ConvTranspose1d (Cin,Cout,K) -> equivalent conv weight (Cout,Cin,K), taps flipped.
            w = np.flip(np.transpose(w, (1, 0, 2)), axis=-1)
        cin_eff = _pad8(cin)
        if cin_eff != cin:
            w = np.concatenate([w, np.zeros((cout, cin_eff - cin, k), np.float32)], axis=1)
        # (Cout, K, Cin) flattened k-major to match the in-kernel tap stacking order.
        wflat = np.transpose(w, (0, 2, 1)).reshape(cout, k * cin_eff)
        r = W_OFFS[name]
        wslab[r:r + cout, :k * cin_eff] = wflat
        # Conv biases are intentionally dropped: every conv output in this network
        # feeds (possibly via a residual sum) a training-mode BatchNorm, through
        # which a per-channel constant cancels exactly.
    bnslab = np.zeros((BN_ROWS, 2), np.float32)
    for name, c in BNS.items():
        r = BN_OFFS[name]
        bnslab[r:r + c, 0] = np.asarray(params[name + '_g'], np.float32)
        bnslab[r:r + c, 1] = np.asarray(params[name + '_b'], np.float32)
    return {'w': jnp.asarray(wslab), 'bn': jnp.asarray(bnslab)}


def init_params(key):
    """Deterministic init with the shapes of Autoencoder_Conv2D.__init__ (f32)."""
    def u(k, shape, bound):
        return jax.random.uniform(k, shape, DTYPE, minval=-bound, maxval=bound)

    p = {}
    for i, (name, (kind, cin, cout, k, _s, _p, _op)) in enumerate(CONVS.items()):
        kk = jax.random.fold_in(key, i)
        w_shape = (cout, cin, k) if kind == 'conv' else (cin, cout, k)
        bound = 1.0 / float(cin * k) ** 0.5
        p[name + '_w'] = u(jax.random.fold_in(kk, 0), w_shape, bound)
        p[name + '_b'] = u(jax.random.fold_in(kk, 1), (cout,), bound)
    for j, (name, c) in enumerate(BNS.items()):
        kk = jax.random.fold_in(key, 1000 + j)
        # Non-trivial gamma/beta so the packed-slab slicing is actually exercised.
        p[name + '_g'] = 1.0 + 0.5 * u(jax.random.fold_in(kk, 0), (c,), 1.0)
        p[name + '_b'] = u(jax.random.fold_in(kk, 1), (c,), 0.5)
    return p


# ---------------------------------------------------------------------------
# Pure-JAX reference (PyTorch semantics, with biases) -- correctness check only
# ---------------------------------------------------------------------------
def _ref_conv1d(x, w, b, stride, padding):
    y = lax.conv_general_dilated(
        x, w, window_strides=(stride,), padding=[(padding, padding)],
        dimension_numbers=('NCH', 'OIH', 'NCH'), precision=lax.Precision.HIGHEST)
    return y + b[None, :, None]


def _ref_convt1d(x, w, b, stride, padding, output_padding):
    k = w.shape[-1]
    w_conv = jnp.flip(jnp.transpose(w, (1, 0, 2)), axis=-1)
    y = lax.conv_general_dilated(
        x, w_conv, window_strides=(1,),
        padding=[(k - 1 - padding, k - 1 - padding + output_padding)],
        lhs_dilation=(stride,), dimension_numbers=('NCH', 'OIH', 'NCH'),
        precision=lax.Precision.HIGHEST)
    return y + b[None, :, None]


def _ref_bn(x, gamma, beta, relu):
    mean = jnp.mean(x, axis=(0, 2), keepdims=True)
    var = jnp.var(x, axis=(0, 2), keepdims=True)      # biased variance (training-mode BN)
    y = (x - mean) * lax.rsqrt(var + BN_EPS) * gamma[None, :, None] + beta[None, :, None]
    return jnp.maximum(y, 0.0) if relu else y


def reference_forward(x, params):
    a = x
    saved = {}
    for conv, save, add, bn, relu in STEPS:
        if conv is not None:
            kind, _cin, _cout, _k, stride, pad, opad = CONVS[conv]
            w, b = params[conv + '_w'], params[conv + '_b']
            a = (_ref_conv1d(a, w, b, stride, pad) if kind == 'conv'
                 else _ref_convt1d(a, w, b, stride, pad, opad))
        if save is not None:
            saved[save] = a
        if add is not None:
            a = a + saved[add]
        a = _ref_bn(a, params[bn + '_g'], params[bn + '_b'], relu)
    return a


# ---------------------------------------------------------------------------
if __name__ == "__main__":
    key = jax.random.PRNGKey(0)
    params = init_params(jax.random.fold_in(key, 1))
    prepared = prepare_params(params)

    # Input matching the module: 3-component waveform, length divisible by 8.
    n, c, t = 2, 3, 128
    x = jax.random.normal(jax.random.fold_in(key, 2), (n, c, t), DTYPE)

    fwd = jax.jit(autoencoder_forward)
    out = jax.block_until_ready(fwd(x, prepared))
    assert out.shape == (n, c, t), out.shape

    ref = jax.block_until_ready(jax.jit(reference_forward)(x, params))
    # Slack covers reduced-precision f32 MXU contraction passes compounded across
    # 15 conv+BN layers; with full-f32 contraction the error is far smaller.
    if not bool(jnp.allclose(out, ref, rtol=2e-2, atol=2e-2)):
        max_err = float(jnp.max(jnp.abs(out - ref)))
        raise AssertionError(f"Pallas output mismatch vs reference, max abs err = {max_err}")

    print("KERNEL_OK")
</pallas_src>

<mosaic_0001>
module attributes {stable_mosaic.version = 11 : i64} {
  func.func @kernel(%arg0: memref<8x256xf32, #tpu.memory_space<vmem>>, %arg1: memref<296x192xf32, #tpu.memory_space<vmem>>, %arg2: memref<360x2xf32, #tpu.memory_space<vmem>>, %arg3: memref<672x256xf32, #tpu.memory_space<vmem>>, %arg4: memref<3x256xf32, #tpu.memory_space<vmem>>) attributes {dimension_semantics = [], scalar_prefetch = 0 : i64, scratch_operands = 0 : i64, tpu.core_type = #tpu.core_type<tc>} {
    %c0 = arith.constant 0 : index
    %c0_0 = arith.constant 0 : index
    %0 = vector.load %arg0[%c0, %c0_0] : memref<8x256xf32, #tpu.memory_space<vmem>>, vector<8x256xf32>
    %1 = tpu.iota {dimensions = array<i32: 1>} : vector<1x256xi32>
    %c128_i32 = arith.constant 128 : i32
    %2 = vector.broadcast %c128_i32 : i32 to vector<1x256xi32>
    %3 = arith.cmpi sge, %1, %2 : vector<1x256xi32>
    %c128_i32_1 = arith.constant 128 : i32
    %4 = vector.broadcast %c128_i32_1 : i32 to vector<1x256xi32>
    %5 = arith.subi %1, %4 : vector<1x256xi32>
    %6 = arith.select %3, %5, %1 : vector<1x256xi1>, vector<1x256xi32>
    %c4_i32 = arith.constant 4 : i32
    %7 = tpu.dynamic_rotate %0 by %c4_i32 dim 1 : vector<8x256xf32>, i32 -> vector<8x256xf32>
    %c4_i32_2 = arith.constant 4 : i32
    %8 = vector.broadcast %c4_i32_2 : i32 to vector<1x256xi32>
    %9 = arith.cmpi sge, %6, %8 : vector<1x256xi32>
    %10 = arith.extui %9 : vector<1x256xi1> to vector<1x256xi32>
    %11 = arith.sitofp %10 : vector<1x256xi32> to vector<1x256xf32>
    %12 = vector.broadcast %11 : vector<1x256xf32> to vector<8x256xf32>
    %13 = arith.mulf %7, %12 : vector<8x256xf32>
    %c3_i32 = arith.constant 3 : i32
    %14 = tpu.dynamic_rotate %0 by %c3_i32 dim 1 : vector<8x256xf32>, i32 -> vector<8x256xf32>
    %c3_i32_3 = arith.constant 3 : i32
    %15 = vector.broadcast %c3_i32_3 : i32 to vector<1x256xi32>
    %16 = arith.cmpi sge, %6, %15 : vector<1x256xi32>
    %17 = arith.extui %16 : vector<1x256xi1> to vector<1x256xi32>
    %18 = arith.sitofp %17 : vector<1x256xi32> to vector<1x256xf32>
    %19 = vector.broadcast %18 : vector<1x256xf32> to vector<8x256xf32>
    %20 = arith.mulf %14, %19 : vector<8x256xf32>
    %c2_i32 = arith.constant 2 : i32
    %21 = tpu.dynamic_rotate %0 by %c2_i32 dim 1 : vector<8x256xf32>, i32 -> vector<8x256xf32>
    %c2_i32_4 = arith.constant 2 : i32
    %22 = vector.broadcast %c2_i32_4 : i32 to vector<1x256xi32>
    %23 = arith.cmpi sge, %6, %22 : vector<1x256xi32>
    %24 = arith.extui %23 : vector<1x256xi1> to vector<1x256xi32>
    %25 = arith.sitofp %24 : vector<1x256xi32> to vector<1x256xf32>
    %26 = vector.broadcast %25 : vector<1x256xf32> to vector<8x256xf32>
    %27 = arith.mulf %21, %26 : vector<8x256xf32>
    %c1_i32 = arith.constant 1 : i32
    %28 = tpu.dynamic_rotate %0 by %c1_i32 dim 1 : vector<8x256xf32>, i32 -> vector<8x256xf32>
    %c1_i32_5 = arith.constant 1 : i32
    %29 = vector.broadcast %c1_i32_5 : i32 to vector<1x256xi32>
    %30 = arith.cmpi sge, %6, %29 : vector<1x256xi32>
    %31 = arith.extui %30 : vector<1x256xi1> to vector<1x256xi32>
    %32 = arith.sitofp %31 : vector<1x256xi32> to vector<1x256xf32>
    %33 = vector.broadcast %32 : vector<1x256xf32> to vector<8x256xf32>
    %34 = arith.mulf %28, %33 : vector<8x256xf32>
    %c255_i32 = arith.constant 255 : i32
    %35 = tpu.dynamic_rotate %0 by %c255_i32 dim 1 : vector<8x256xf32>, i32 -> vector<8x256xf32>
    %c127_i32 = arith.constant 127 : i32
    %36 = vector.broadcast %c127_i32 : i32 to vector<1x256xi32>
    %37 = arith.cmpi slt, %6, %36 : vector<1x256xi32>
    %38 = arith.extui %37 : vector<1x256xi1> to vector<1x256xi32>
    %39 = arith.sitofp %38 : vector<1x256xi32> to vector<1x256xf32>
    %40 = vector.broadcast %39 : vector<1x256xf32> to vector<8x256xf32>
    %41 = arith.mulf %35, %40 : vector<8x256xf32>
    %c254_i32 = arith.constant 254 : i32
    %42 = tpu.dynamic_rotate %0 by %c254_i32 dim 1 : vector<8x256xf32>, i32 -> vector<8x256xf32>
    %c126_i32 = arith.constant 126 : i32
    %43 = vector.broadcast %c126_i32 : i32 to vector<1x256xi32>
    %44 = arith.cmpi slt, %6, %43 : vector<1x256xi32>
    %45 = arith.extui %44 : vector<1x256xi1> to vector<1x256xi32>
    %46 = arith.sitofp %45 : vector<1x256xi32> to vector<1x256xf32>
    %47 = vector.broadcast %46 : vector<1x256xf32> to vector<8x256xf32>
    %48 = arith.mulf %42, %47 : vector<8x256xf32>
    %c253_i32 = arith.constant 253 : i32
    %49 = tpu.dynamic_rotate %0 by %c253_i32 dim 1 : vector<8x256xf32>, i32 -> vector<8x256xf32>
    %c125_i32 = arith.constant 125 : i32
    %50 = vector.broadcast %c125_i32 : i32 to vector<1x256xi32>
    %51 = arith.cmpi slt, %6, %50 : vector<1x256xi32>
    %52 = arith.extui %51 : vector<1x256xi1> to vector<1x256xi32>
    %53 = arith.sitofp %52 : vector<1x256xi32> to vector<1x256xf32>
    %54 = vector.broadcast %53 : vector<1x256xf32> to vector<8x256xf32>
    %55 = arith.mulf %49, %54 : vector<8x256xf32>
    %c252_i32 = arith.constant 252 : i32
    %56 = tpu.dynamic_rotate %0 by %c252_i32 dim 1 : vector<8x256xf32>, i32 -> vector<8x256xf32>
    %c124_i32 = arith.constant 124 : i32
    %57 = vector.broadcast %c124_i32 : i32 to vector<1x256xi32>
    %58 = arith.cmpi slt, %6, %57 : vector<1x256xi32>
    %59 = arith.extui %58 : vector<1x256xi1> to vector<1x256xi32>
    %60 = arith.sitofp %59 : vector<1x256xi32> to vector<1x256xf32>
    %61 = vector.broadcast %60 : vector<1x256xf32> to vector<8x256xf32>
    %62 = arith.mulf %56, %61 : vector<8x256xf32>
    %63 = tpu.concatenate %13, %20, %27, %34, %0, %41, %48, %55, %62 in 0 : vector<8x256xf32>, vector<8x256xf32>, vector<8x256xf32>, vector<8x256xf32>, vector<8x256xf32>, vector<8x256xf32>, vector<8x256xf32>, vector<8x256xf32>, vector<8x256xf32> -> vector<72x256xf32>
    %c0_6 = arith.constant 0 : index
    %c0_7 = arith.constant 0 : index
    %64 = vector.load %arg1[%c0_6, %c0_7] : memref<296x192xf32, #tpu.memory_space<vmem>>, vector<8x72xf32>
    %cst = arith.constant dense<0.000000e+00> : vector<8x256xf32>
    %65 = tpu.matmul %64, %63, %cst {dimension_numbers = #tpu.dot_dimension_numbers<[1], [0], [0], [1], [0, 0, 1, 1], [], []>} : vector<8x72xf32>, vector<72x256xf32>, vector<8x256xf32> -> vector<8x256xf32>
    %c0_8 = arith.constant 0 : index
    %c0_9 = arith.constant 0 : index
    %66 = vector.load %arg2[%c0_8, %c0_9] : memref<360x2xf32, #tpu.memory_space<vmem>>, vector<8x1xf32>
    %c0_10 = arith.constant 0 : index
    %c1 = arith.constant 1 : index
    %67 = vector.load %arg2[%c0_10, %c1] : memref<360x2xf32, #tpu.memory_space<vmem>>, vector<8x1xf32>
    %cst_11 = arith.constant dense<0.000000e+00> : vector<8xf32>
    %68 = vector.multi_reduction <add>, %65, %cst_11 [1] : vector<8x256xf32> to vector<8xf32>
    %69 = vector.shape_cast %68 : vector<8xf32> to vector<8x1xf32>
    %70 = arith.mulf %65, %65 : vector<8x256xf32>
    %cst_12 = arith.constant dense<0.000000e+00> : vector<8xf32>
    %71 = vector.multi_reduction <add>, %70, %cst_12 [1] : vector<8x256xf32> to vector<8xf32>
    %72 = vector.shape_cast %71 : vector<8xf32> to vector<8x1xf32>
    %cst_13 = arith.constant 3.906250e-03 : f32
    %73 = vector.broadcast %cst_13 : f32 to vector<8x1xf32>
    %74 = arith.mulf %69, %73 : vector<8x1xf32>
    %cst_14 = arith.constant 3.906250e-03 : f32
    %75 = vector.broadcast %cst_14 : f32 to vector<8x1xf32>
    %76 = arith.mulf %72, %75 : vector<8x1xf32>
    %77 = arith.mulf %74, %74 : vector<8x1xf32>
    %78 = arith.subf %76, %77 : vector<8x1xf32>
    %cst_15 = arith.constant 9.99999974E-6 : f32
    %79 = vector.broadcast %cst_15 : f32 to vector<8x1xf32>
    %80 = arith.addf %78, %79 : vector<8x1xf32>
    %81 = math.rsqrt %80 : vector<8x1xf32>
    %82 = arith.mulf %66, %81 : vector<8x1xf32>
    %83 = arith.mulf %74, %82 : vector<8x1xf32>
    %84 = arith.subf %67, %83 : vector<8x1xf32>
    %85 = vector.broadcast %82 : vector<8x1xf32> to vector<8x256xf32>
    %86 = arith.mulf %65, %85 : vector<8x256xf32>
    %87 = vector.broadcast %84 : vector<8x1xf32> to vector<8x256xf32>
    %88 = arith.addf %86, %87 : vector<8x256xf32>
    %cst_16 = arith.constant 0.000000e+00 : f32
    %89 = vector.broadcast %cst_16 : f32 to vector<8x256xf32>
    %90 = arith.maximumf %88, %89 : vector<8x256xf32>
    %91 = tpu.iota {dimensions = array<i32: 1>} : vector<1x256xi32>
    %c128_i32_17 = arith.constant 128 : i32
    %92 = vector.broadcast %c128_i32_17 : i32 to vector<1x256xi32>
    %93 = arith.cmpi sge, %91, %92 : vector<1x256xi32>
    %c128_i32_18 = arith.constant 128 : i32
    %94 = vector.broadcast %c128_i32_18 : i32 to vector<1x256xi32>
    %95 = arith.subi %91, %94 : vector<1x256xi32>
    %96 = arith.select %93, %95, %91 : vector<1x256xi1>, vector<1x256xi32>
    %c4_i32_19 = arith.constant 4 : i32
    %97 = tpu.dynamic_rotate %90 by %c4_i32_19 dim 1 : vector<8x256xf32>, i32 -> vector<8x256xf32>
    %c4_i32_20 = arith.constant 4 : i32
    %98 = vector.broadcast %c4_i32_20 : i32 to vector<1x256xi32>
    %99 = arith.cmpi sge, %96, %98 : vector<1x256xi32>
    %100 = arith.extui %99 : vector<1x256xi1> to vector<1x256xi32>
    %101 = arith.sitofp %100 : vector<1x256xi32> to vector<1x256xf32>
    %102 = vector.broadcast %101 : vector<1x256xf32> to vector<8x256xf32>
    %103 = arith.mulf %97, %102 : vector<8x256xf32>
    %c3_i32_21 = arith.constant 3 : i32
    %104 = tpu.dynamic_rotate %90 by %c3_i32_21 dim 1 : vector<8x256xf32>, i32 -> vector<8x256xf32>
    %c3_i32_22 = arith.constant 3 : i32
    %105 = vector.broadcast %c3_i32_22 : i32 to vector<1x256xi32>
    %106 = arith.cmpi sge, %96, %105 : vector<1x256xi32>
    %107 = arith.extui %106 : vector<1x256xi1> to vector<1x256xi32>
    %108 = arith.sitofp %107 : vector<1x256xi32> to vector<1x256xf32>
    %109 = vector.broadcast %108 : vector<1x256xf32> to vector<8x256xf32>
    %110 = arith.mulf %104, %109 : vector<8x256xf32>
    %c2_i32_23 = arith.constant 2 : i32
    %111 = tpu.dynamic_rotate %90 by %c2_i32_23 dim 1 : vector<8x256xf32>, i32 -> vector<8x256xf32>
    %c2_i32_24 = arith.constant 2 : i32
    %112 = vector.broadcast %c2_i32_24 : i32 to vector<1x256xi32>
    %113 = arith.cmpi sge, %96, %112 : vector<1x256xi32>
    %114 = arith.extui %113 : vector<1x256xi1> to vector<1x256xi32>
    %115 = arith.sitofp %114 : vector<1x256xi32> to vector<1x256xf32>
    %116 = vector.broadcast %115 : vector<1x256xf32> to vector<8x256xf32>
    %117 = arith.mulf %111, %116 : vector<8x256xf32>
    %c1_i32_25 = arith.constant 1 : i32
    %118 = tpu.dynamic_rotate %90 by %c1_i32_25 dim 1 : vector<8x256xf32>, i32 -> vector<8x256xf32>
    %c1_i32_26 = arith.constant 1 : i32
    %119 = vector.broadcast %c1_i32_26 : i32 to vector<1x256xi32>
    %120 = arith.cmpi sge, %96, %119 : vector<1x256xi32>
    %121 = arith.extui %120 : vector<1x256xi1> to vector<1x256xi32>
    %122 = arith.sitofp %121 : vector<1x256xi32> to vector<1x256xf32>
    %123 = vector.broadcast %122 : vector<1x256xf32> to vector<8x256xf32>
    %124 = arith.mulf %118, %123 : vector<8x256xf32>
    %c255_i32_27 = arith.constant 255 : i32
    %125 = tpu.dynamic_rotate %90 by %c255_i32_27 dim 1 : vector<8x256xf32>, i32 -> vector<8x256xf32>
    %c127_i32_28 = arith.constant 127 : i32
    %126 = vector.broadcast %c127_i32_28 : i32 to vector<1x256xi32>
    %127 = arith.cmpi slt, %96, %126 : vector<1x256xi32>
    %128 = arith.extui %127 : vector<1x256xi1> to vector<1x256xi32>
    %129 = arith.sitofp %128 : vector<1x256xi32> to vector<1x256xf32>
    %130 = vector.broadcast %129 : vector<1x256xf32> to vector<8x256xf32>
    %131 = arith.mulf %125, %130 : vector<8x256xf32>
    %c254_i32_29 = arith.constant 254 : i32
    %132 = tpu.dynamic_rotate %90 by %c254_i32_29 dim 1 : vector<8x256xf32>, i32 -> vector<8x256xf32>
    %c126_i32_30 = arith.constant 126 : i32
    %133 = vector.broadcast %c126_i32_30 : i32 to vector<1x256xi32>
    %134 = arith.cmpi slt, %96, %133 : vector<1x256xi32>
    %135 = arith.extui %134 : vector<1x256xi1> to vector<1x256xi32>
    %136 = arith.sitofp %135 : vector<1x256xi32> to vector<1x256xf32>
    %137 = vector.broadcast %136 : vector<1x256xf32> to vector<8x256xf32>
    %138 = arith.mulf %132, %137 : vector<8x256xf32>
    %c253_i32_31 = arith.constant 253 : i32
    %139 = tpu.dynamic_rotate %90 by %c253_i32_31 dim 1 : vector<8x256xf32>, i32 -> vector<8x256xf32>
    %c125_i32_32 = arith.constant 125 : i32
    %140 = vector.broadcast %c125_i32_32 : i32 to vector<1x256xi32>
    %141 = arith.cmpi slt, %96, %140 : vector<1x256xi32>
    %142 = arith.extui %141 : vector<1x256xi1> to vector<1x256xi32>
    %143 = arith.sitofp %142 : vector<1x256xi32> to vector<1x256xf32>
    %144 = vector.broadcast %143 : vector<1x256xf32> to vector<8x256xf32>
    %145 = arith.mulf %139, %144 : vector<8x256xf32>
    %c252_i32_33 = arith.constant 252 : i32
    %146 = tpu.dynamic_rotate %90 by %c252_i32_33 dim 1 : vector<8x256xf32>, i32 -> vector<8x256xf32>
    %c124_i32_34 = arith.constant 124 : i32
    %147 = vector.broadcast %c124_i32_34 : i32 to vector<1x256xi32>
    %148 = arith.cmpi slt, %96, %147 : vector<1x256xi32>
    %149 = arith.extui %148 : vector<1x256xi1> to vector<1x256xi32>
    %150 = arith.sitofp %149 : vector<1x256xi32> to vector<1x256xf32>
    %151 = vector.broadcast %150 : vector<1x256xf32> to vector<8x256xf32>
    %152 = arith.mulf %146, %151 : vector<8x256xf32>
    %153 = tpu.concatenate %103, %110, %117, %124, %90, %131, %138, %145, %152 in 0 : vector<8x256xf32>, vector<8x256xf32>, vector<8x256xf32>, vector<8x256xf32>, vector<8x256xf32>, vector<8x256xf32>, vector<8x256xf32>, vector<8x256xf32>, vector<8x256xf32> -> vector<72x256xf32>
    %c8 = arith.constant 8 : index
    %c0_35 = arith.constant 0 : index
    %154 = vector.load %arg1[%c8, %c0_35] : memref<296x192xf32, #tpu.memory_space<vmem>>, vector<8x72xf32>
    %cst_36 = arith.constant dense<0.000000e+00> : vector<8x256xf32>
    %155 = tpu.matmul %154, %153, %cst_36 {dimension_numbers = #tpu.dot_dimension_numbers<[1], [0], [0], [1], [0, 0, 1, 1], [], []>} : vector<8x72xf32>, vector<72x256xf32>, vector<8x256xf32> -> vector<8x256xf32>
    %c0_37 = arith.constant 0 : index
    %c0_38 = arith.constant 0 : index
    %156 = vector.load %arg3[%c0_37, %c0_38] : memref<672x256xf32, #tpu.memory_space<vmem>>, vector<256x128xf32>
    %cst_39 = arith.constant dense<0.000000e+00> : vector<8x128xf32>
    %157 = tpu.matmul %155, %156, %cst_39 {dimension_numbers = #tpu.dot_dimension_numbers<[1], [0], [0], [1], [0, 0, 1, 1], [], []>} : vector<8x256xf32>, vector<256x128xf32>, vector<8x128xf32> -> vector<8x128xf32>
    %c8_40 = arith.constant 8 : index
    %c0_41 = arith.constant 0 : index
    %158 = vector.load %arg2[%c8_40, %c0_41] : memref<360x2xf32, #tpu.memory_space<vmem>>, vector<8x1xf32>
    %c8_42 = arith.constant 8 : index
    %c1_43 = arith.constant 1 : index
    %159 = vector.load %arg2[%c8_42, %c1_43] : memref<360x2xf32, #tpu.memory_space<vmem>>, vector<8x1xf32>
    %cst_44 = arith.constant dense<0.000000e+00> : vector<8xf32>
    %160 = vector.multi_reduction <add>, %157, %cst_44 [1] : vector<8x128xf32> to vector<8xf32>
    %161 = vector.shape_cast %160 : vector<8xf32> to vector<8x1xf32>
    %162 = arith.mulf %157, %157 : vector<8x128xf32>
    %cst_45 = arith.constant dense<0.000000e+00> : vector<8xf32>
    %163 = vector.multi_reduction <add>, %162, %cst_45 [1] : vector<8x128xf32> to vector<8xf32>
    %164 = vector.shape_cast %163 : vector<8xf32> to vector<8x1xf32>
    %cst_46 = arith.constant 7.812500e-03 : f32
    %165 = vector.broadcast %cst_46 : f32 to vector<8x1xf32>
    %166 = arith.mulf %161, %165 : vector<8x1xf32>
    %cst_47 = arith.constant 7.812500e-03 : f32
    %167 = vector.broadcast %cst_47 : f32 to vector<8x1xf32>
    %168 = arith.mulf %164, %167 : vector<8x1xf32>
    %169 = arith.mulf %166, %166 : vector<8x1xf32>
    %170 = arith.subf %168, %169 : vector<8x1xf32>
    %cst_48 = arith.constant 9.99999974E-6 : f32
    %171 = vector.broadcast %cst_48 : f32 to vector<8x1xf32>
    %172 = arith.addf %170, %171 : vector<8x1xf32>
    %173 = math.rsqrt %172 : vector<8x1xf32>
    %174 = arith.mulf %158, %173 : vector<8x1xf32>
    %175 = arith.mulf %166, %174 : vector<8x1xf32>
    %176 = arith.subf %159, %175 : vector<8x1xf32>
    %177 = vector.broadcast %174 : vector<8x1xf32> to vector<8x128xf32>
    %178 = arith.mulf %157, %177 : vector<8x128xf32>
    %179 = vector.broadcast %176 : vector<8x1xf32> to vector<8x128xf32>
    %180 = arith.addf %178, %179 : vector<8x128xf32>
    %cst_49 = arith.constant 0.000000e+00 : f32
    %181 = vector.broadcast %cst_49 : f32 to vector<8x128xf32>
    %182 = arith.maximumf %180, %181 : vector<8x128xf32>
    %183 = tpu.iota {dimensions = array<i32: 1>} : vector<1x128xi32>
    %c64_i32 = arith.constant 64 : i32
    %184 = vector.broadcast %c64_i32 : i32 to vector<1x128xi32>
    %185 = arith.cmpi sge, %183, %184 : vector<1x128xi32>
    %c64_i32_50 = arith.constant 64 : i32
    %186 = vector.broadcast %c64_i32_50 : i32 to vector<1x128xi32>
    %187 = arith.subi %183, %186 : vector<1x128xi32>
    %188 = arith.select %185, %187, %183 : vector<1x128xi1>, vector<1x128xi32>
    %c3_i32_51 = arith.constant 3 : i32
    %189 = tpu.dynamic_rotate %182 by %c3_i32_51 dim 1 : vector<8x128xf32>, i32 -> vector<8x128xf32>
    %c3_i32_52 = arith.constant 3 : i32
    %190 = vector.broadcast %c3_i32_52 : i32 to vector<1x128xi32>
    %191 = arith.cmpi sge, %188, %190 : vector<1x128xi32>
    %192 = arith.extui %191 : vector<1x128xi1> to vector<1x128xi32>
    %193 = arith.sitofp %192 : vector<1x128xi32> to vector<1x128xf32>
    %194 = vector.broadcast %193 : vector<1x128xf32> to vector<8x128xf32>
    %195 = arith.mulf %189, %194 : vector<8x128xf32>
    %c2_i32_53 = arith.constant 2 : i32
    %196 = tpu.dynamic_rotate %182 by %c2_i32_53 dim 1 : vector<8x128xf32>, i32 -> vector<8x128xf32>
    %c2_i32_54 = arith.constant 2 : i32
    %197 = vector.broadcast %c2_i32_54 : i32 to vector<1x128xi32>
    %198 = arith.cmpi sge, %188, %197 : vector<1x128xi32>
    %199 = arith.extui %198 : vector<1x128xi1> to vector<1x128xi32>
    %200 = arith.sitofp %199 : vector<1x128xi32> to vector<1x128xf32>
    %201 = vector.broadcast %200 : vector<1x128xf32> to vector<8x128xf32>
    %202 = arith.mulf %196, %201 : vector<8x128xf32>
    %c1_i32_55 = arith.constant 1 : i32
    %203 = tpu.dynamic_rotate %182 by %c1_i32_55 dim 1 : vector<8x128xf32>, i32 -> vector<8x128xf32>
    %c1_i32_56 = arith.constant 1 : i32
    %204 = vector.broadcast %c1_i32_56 : i32 to vector<1x128xi32>
    %205 = arith.cmpi sge, %188, %204 : vector<1x128xi32>
    %206 = arith.extui %205 : vector<1x128xi1> to vector<1x128xi32>
    %207 = arith.sitofp %206 : vector<1x128xi32> to vector<1x128xf32>
    %208 = vector.broadcast %207 : vector<1x128xf32> to vector<8x128xf32>
    %209 = arith.mulf %203, %208 : vector<8x128xf32>
    %c127_i32_57 = arith.constant 127 : i32
    %210 = tpu.dynamic_rotate %182 by %c127_i32_57 dim 1 : vector<8x128xf32>, i32 -> vector<8x128xf32>
    %c63_i32 = arith.constant 63 : i32
    %211 = vector.broadcast %c63_i32 : i32 to vector<1x128xi32>
    %212 = arith.cmpi slt, %188, %211 : vector<1x128xi32>
    %213 = arith.extui %212 : vector<1x128xi1> to vector<1x128xi32>
    %214 = arith.sitofp %213 : vector<1x128xi32> to vector<1x128xf32>
    %215 = vector.broadcast %214 : vector<1x128xf32> to vector<8x128xf32>
    %216 = arith.mulf %210, %215 : vector<8x128xf32>
    %c126_i32_58 = arith.constant 126 : i32
    %217 = tpu.dynamic_rotate %182 by %c126_i32_58 dim 1 : vector<8x128xf32>, i32 -> vector<8x128xf32>
    %c62_i32 = arith.constant 62 : i32
    %218 = vector.broadcast %c62_i32 : i32 to vector<1x128xi32>
    %219 = arith.cmpi slt, %188, %218 : vector<1x128xi32>
    %220 = arith.extui %219 : vector<1x128xi1> to vector<1x128xi32>
    %221 = arith.sitofp %220 : vector<1x128xi32> to vector<1x128xf32>
    %222 = vector.broadcast %221 : vector<1x128xf32> to vector<8x128xf32>
    %223 = arith.mulf %217, %222 : vector<8x128xf32>
    %c125_i32_59 = arith.constant 125 : i32
    %224 = tpu.dynamic_rotate %182 by %c125_i32_59 dim 1 : vector<8x128xf32>, i32 -> vector<8x128xf32>
    %c61_i32 = arith.constant 61 : i32
    %225 = vector.broadcast %c61_i32 : i32 to vector<1x128xi32>
    %226 = arith.cmpi slt, %188, %225 : vector<1x128xi32>
    %227 = arith.extui %226 : vector<1x128xi1> to vector<1x128xi32>
    %228 = arith.sitofp %227 : vector<1x128xi32> to vector<1x128xf32>
    %229 = vector.broadcast %228 : vector<1x128xf32> to vector<8x128xf32>
    %230 = arith.mulf %224, %229 : vector<8x128xf32>
    %231 = tpu.concatenate %195, %202, %209, %182, %216, %223, %230 in 0 : vector<8x128xf32>, vector<8x128xf32>, vector<8x128xf32>, vector<8x128xf32>, vector<8x128xf32>, vector<8x128xf32>, vector<8x128xf32> -> vector<56x128xf32>
    %c16 = arith.constant 16 : index
    %c0_60 = arith.constant 0 : index
    %232 = vector.load %arg1[%c16, %c0_60] : memref<296x192xf32, #tpu.memory_space<vmem>>, vector<16x56xf32>
    %cst_61 = arith.constant dense<0.000000e+00> : vector<16x128xf32>
    %233 = tpu.matmul %232, %231, %cst_61 {dimension_numbers = #tpu.dot_dimension_numbers<[1], [0], [0], [1], [0, 0, 1, 1], [], []>} : vector<16x56xf32>, vector<56x128xf32>, vector<16x128xf32> -> vector<16x128xf32>
    %c16_62 = arith.constant 16 : index
    %c0_63 = arith.constant 0 : index
    %234 = vector.load %arg2[%c16_62, %c0_63] : memref<360x2xf32, #tpu.memory_space<vmem>>, vector<16x1xf32>
    %c16_64 = arith.constant 16 : index
    %c1_65 = arith.constant 1 : index
    %235 = vector.load %arg2[%c16_64, %c1_65] : memref<360x2xf32, #tpu.memory_space<vmem>>, vector<16x1xf32>
    %cst_66 = arith.constant dense<0.000000e+00> : vector<16xf32>
    %236 = vector.multi_reduction <add>, %233, %cst_66 [1] : vector<16x128xf32> to vector<16xf32>
    %237 = vector.shape_cast %236 : vector<16xf32> to vector<16x1xf32>
    %238 = arith.mulf %233, %233 : vector<16x128xf32>
    %cst_67 = arith.constant dense<0.000000e+00> : vector<16xf32>
    %239 = vector.multi_reduction <add>, %238, %cst_67 [1] : vector<16x128xf32> to vector<16xf32>
    %240 = vector.shape_cast %239 : vector<16xf32> to vector<16x1xf32>
    %cst_68 = arith.constant 7.812500e-03 : f32
    %241 = vector.broadcast %cst_68 : f32 to vector<16x1xf32>
    %242 = arith.mulf %237, %241 : vector<16x1xf32>
    %cst_69 = arith.constant 7.812500e-03 : f32
    %243 = vector.broadcast %cst_69 : f32 to vector<16x1xf32>
    %244 = arith.mulf %240, %243 : vector<16x1xf32>
    %245 = arith.mulf %242, %242 : vector<16x1xf32>
    %246 = arith.subf %244, %245 : vector<16x1xf32>
    %cst_70 = arith.constant 9.99999974E-6 : f32
    %247 = vector.broadcast %cst_70 : f32 to vector<16x1xf32>
    %248 = arith.addf %246, %247 : vector<16x1xf32>
    %249 = math.rsqrt %248 : vector<16x1xf32>
    %250 = arith.mulf %234, %249 : vector<16x1xf32>
    %251 = arith.mulf %242, %250 : vector<16x1xf32>
    %252 = arith.subf %235, %251 : vector<16x1xf32>
    %253 = vector.broadcast %250 : vector<16x1xf32> to vector<16x128xf32>
    %254 = arith.mulf %233, %253 : vector<16x128xf32>
    %255 = vector.broadcast %252 : vector<16x1xf32> to vector<16x128xf32>
    %256 = arith.addf %254, %255 : vector<16x128xf32>
    %cst_71 = arith.constant 0.000000e+00 : f32
    %257 = vector.broadcast %cst_71 : f32 to vector<16x128xf32>
    %258 = arith.maximumf %256, %257 : vector<16x128xf32>
    %259 = tpu.iota {dimensions = array<i32: 1>} : vector<1x128xi32>
    %c64_i32_72 = arith.constant 64 : i32
    %260 = vector.broadcast %c64_i32_72 : i32 to vector<1x128xi32>
    %261 = arith.cmpi sge, %259, %260 : vector<1x128xi32>
    %c64_i32_73 = arith.constant 64 : i32
    %262 = vector.broadcast %c64_i32_73 : i32 to vector<1x128xi32>
    %263 = arith.subi %259, %262 : vector<1x128xi32>
    %264 = arith.select %261, %263, %259 : vector<1x128xi1>, vector<1x128xi32>
    %c3_i32_74 = arith.constant 3 : i32
    %265 = tpu.dynamic_rotate %258 by %c3_i32_74 dim 1 : vector<16x128xf32>, i32 -> vector<16x128xf32>
    %c3_i32_75 = arith.constant 3 : i32
    %266 = vector.broadcast %c3_i32_75 : i32 to vector<1x128xi32>
    %267 = arith.cmpi sge, %264, %266 : vector<1x128xi32>
    %268 = arith.extui %267 : vector<1x128xi1> to vector<1x128xi32>
    %269 = arith.sitofp %268 : vector<1x128xi32> to vector<1x128xf32>
    %270 = vector.broadcast %269 : vector<1x128xf32> to vector<16x128xf32>
    %271 = arith.mulf %265, %270 : vector<16x128xf32>
    %c2_i32_76 = arith.constant 2 : i32
    %272 = tpu.dynamic_rotate %258 by %c2_i32_76 dim 1 : vector<16x128xf32>, i32 -> vector<16x128xf32>
    %c2_i32_77 = arith.constant 2 : i32
    %273 = vector.broadcast %c2_i32_77 : i32 to vector<1x128xi32>
    %274 = arith.cmpi sge, %264, %273 : vector<1x128xi32>
    %275 = arith.extui %274 : vector<1x128xi1> to vector<1x128xi32>
    %276 = arith.sitofp %275 : vector<1x128xi32> to vector<1x128xf32>
    %277 = vector.broadcast %276 : vector<1x128xf32> to vector<16x128xf32>
    %278 = arith.mulf %272, %277 : vector<16x128xf32>
    %c1_i32_78 = arith.constant 1 : i32
    %279 = tpu.dynamic_rotate %258 by %c1_i32_78 dim 1 : vector<16x128xf32>, i32 -> vector<16x128xf32>
    %c1_i32_79 = arith.constant 1 : i32
    %280 = vector.broadcast %c1_i32_79 : i32 to vector<1x128xi32>
    %281 = arith.cmpi sge, %264, %280 : vector<1x128xi32>
    %282 = arith.extui %281 : vector<1x128xi1> to vector<1x128xi32>
    %283 = arith.sitofp %282 : vector<1x128xi32> to vector<1x128xf32>
    %284 = vector.broadcast %283 : vector<1x128xf32> to vector<16x128xf32>
    %285 = arith.mulf %279, %284 : vector<16x128xf32>
    %c127_i32_80 = arith.constant 127 : i32
    %286 = tpu.dynamic_rotate %258 by %c127_i32_80 dim 1 : vector<16x128xf32>, i32 -> vector<16x128xf32>
    %c63_i32_81 = arith.constant 63 : i32
    %287 = vector.broadcast %c63_i32_81 : i32 to vector<1x128xi32>
    %288 = arith.cmpi slt, %264, %287 : vector<1x128xi32>
    %289 = arith.extui %288 : vector<1x128xi1> to vector<1x128xi32>
    %290 = arith.sitofp %289 : vector<1x128xi32> to vector<1x128xf32>
    %291 = vector.broadcast %290 : vector<1x128xf32> to vector<16x128xf32>
    %292 = arith.mulf %286, %291 : vector<16x128xf32>
    %c126_i32_82 = arith.constant 126 : i32
    %293 = tpu.dynamic_rotate %258 by %c126_i32_82 dim 1 : vector<16x128xf32>, i32 -> vector<16x128xf32>
    %c62_i32_83 = arith.constant 62 : i32
    %294 = vector.broadcast %c62_i32_83 : i32 to vector<1x128xi32>
    %295 = arith.cmpi slt, %264, %294 : vector<1x128xi32>
    %296 = arith.extui %295 : vector<1x128xi1> to vector<1x128xi32>
    %297 = arith.sitofp %296 : vector<1x128xi32> to vector<1x128xf32>
    %298 = vector.broadcast %297 : vector<1x128xf32> to vector<16x128xf32>
    %299 = arith.mulf %293, %298 : vector<16x128xf32>
    %c125_i32_84 = arith.constant 125 : i32
    %300 = tpu.dynamic_rotate %258 by %c125_i32_84 dim 1 : vector<16x128xf32>, i32 -> vector<16x128xf32>
    %c61_i32_85 = arith.constant 61 : i32
    %301 = vector.broadcast %c61_i32_85 : i32 to vector<1x128xi32>
    %302 = arith.cmpi slt, %264, %301 : vector<1x128xi32>
    %303 = arith.extui %302 : vector<1x128xi1> to vector<1x128xi32>
    %304 = arith.sitofp %303 : vector<1x128xi32> to vector<1x128xf32>
    %305 = vector.broadcast %304 : vector<1x128xf32> to vector<16x128xf32>
    %306 = arith.mulf %300, %305 : vector<16x128xf32>
    %307 = tpu.concatenate %271, %278, %285, %258, %292, %299, %306 in 0 : vector<16x128xf32>, vector<16x128xf32>, vector<16x128xf32>, vector<16x128xf32>, vector<16x128xf32>, vector<16x128xf32>, vector<16x128xf32> -> vector<112x128xf32>
    %c32 = arith.constant 32 : index
    %c0_86 = arith.constant 0 : index
    %308 = vector.load %arg1[%c32, %c0_86] : memref<296x192xf32, #tpu.memory_space<vmem>>, vector<16x112xf32>
    %cst_87 = arith.constant dense<0.000000e+00> : vector<16x128xf32>
    %309 = tpu.matmul %308, %307, %cst_87 {dimension_numbers = #tpu.dot_dimension_numbers<[1], [0], [0], [1], [0, 0, 1, 1], [], []>} : vector<16x112xf32>, vector<112x128xf32>, vector<16x128xf32> -> vector<16x128xf32>
    %c256 = arith.constant 256 : index
    %c0_88 = arith.constant 0 : index
    %310 = vector.load %arg3[%c256, %c0_88] : memref<672x256xf32, #tpu.memory_space<vmem>>, vector<128x64xf32>
    %cst_89 = arith.constant dense<0.000000e+00> : vector<16x64xf32>
    %311 = tpu.matmul %309, %310, %cst_89 {dimension_numbers = #tpu.dot_dimension_numbers<[1], [0], [0], [1], [0, 0, 1, 1], [], []>} : vector<16x128xf32>, vector<128x64xf32>, vector<16x64xf32> -> vector<16x64xf32>
    %c32_90 = arith.constant 32 : index
    %c0_91 = arith.constant 0 : index
    %312 = vector.load %arg2[%c32_90, %c0_91] : memref<360x2xf32, #tpu.memory_space<vmem>>, vector<16x1xf32>
    %c32_92 = arith.constant 32 : index
    %c1_93 = arith.constant 1 : index
    %313 = vector.load %arg2[%c32_92, %c1_93] : memref<360x2xf32, #tpu.memory_space<vmem>>, vector<16x1xf32>
    %cst_94 = arith.constant dense<0.000000e+00> : vector<16xf32>
    %314 = vector.multi_reduction <add>, %311, %cst_94 [1] : vector<16x64xf32> to vector<16xf32>
    %315 = vector.shape_cast %314 : vector<16xf32> to vector<16x1xf32>
    %316 = arith.mulf %311, %311 : vector<16x64xf32>
    %cst_95 = arith.constant dense<0.000000e+00> : vector<16xf32>
    %317 = vector.multi_reduction <add>, %316, %cst_95 [1] : vector<16x64xf32> to vector<16xf32>
    %318 = vector.shape_cast %317 : vector<16xf32> to vector<16x1xf32>
    %cst_96 = arith.constant 1.562500e-02 : f32
    %319 = vector.broadcast %cst_96 : f32 to vector<16x1xf32>
    %320 = arith.mulf %315, %319 : vector<16x1xf32>
    %cst_97 = arith.constant 1.562500e-02 : f32
    %321 = vector.broadcast %cst_97 : f32 to vector<16x1xf32>
    %322 = arith.mulf %318, %321 : vector<16x1xf32>
    %323 = arith.mulf %320, %320 : vector<16x1xf32>
    %324 = arith.subf %322, %323 : vector<16x1xf32>
    %cst_98 = arith.constant 9.99999974E-6 : f32
    %325 = vector.broadcast %cst_98 : f32 to vector<16x1xf32>
    %326 = arith.addf %324, %325 : vector<16x1xf32>
    %327 = math.rsqrt %326 : vector<16x1xf32>
    %328 = arith.mulf %312, %327 : vector<16x1xf32>
    %329 = arith.mulf %320, %328 : vector<16x1xf32>
    %330 = arith.subf %313, %329 : vector<16x1xf32>
    %331 = vector.broadcast %328 : vector<16x1xf32> to vector<16x64xf32>
    %332 = arith.mulf %311, %331 : vector<16x64xf32>
    %333 = vector.broadcast %330 : vector<16x1xf32> to vector<16x64xf32>
    %334 = arith.addf %332, %333 : vector<16x64xf32>
    %cst_99 = arith.constant 0.000000e+00 : f32
    %335 = vector.broadcast %cst_99 : f32 to vector<16x64xf32>
    %336 = arith.maximumf %334, %335 : vector<16x64xf32>
    %337 = tpu.iota {dimensions = array<i32: 0>} : vector<64x1xi32>
    %c0_i32 = arith.constant 0 : i32
    %338 = vector.broadcast %c0_i32 : i32 to vector<64x1xi32>
    %c32_i32 = arith.constant 32 : i32
    %339 = vector.broadcast %c32_i32 : i32 to vector<64x1xi32>
    %340 = arith.cmpi sge, %337, %339 : vector<64x1xi32>
    %c1_i32_100 = arith.constant 1 : i32
    %341 = vector.broadcast %c1_i32_100 : i32 to vector<64x1xi32>
    %342 = arith.select %340, %341, %338 : vector<64x1xi1>, vector<64x1xi32>
    %c32_i32_101 = arith.constant 32 : i32
    %343 = vector.broadcast %c32_i32_101 : i32 to vector<64x1xi32>
    %344 = arith.subi %337, %343 : vector<64x1xi32>
    %345 = arith.select %340, %344, %337 : vector<64x1xi1>, vector<64x1xi32>
    %346 = tpu.iota {dimensions = array<i32: 1>} : vector<1x64xi32>
    %c0_i32_102 = arith.constant 0 : i32
    %347 = vector.broadcast %c0_i32_102 : i32 to vector<1x64xi32>
    %c32_i32_103 = arith.constant 32 : i32
    %348 = vector.broadcast %c32_i32_103 : i32 to vector<1x64xi32>
    %349 = arith.cmpi sge, %346, %348 : vector<1x64xi32>
    %c1_i32_104 = arith.constant 1 : i32
    %350 = vector.broadcast %c1_i32_104 : i32 to vector<1x64xi32>
    %351 = arith.select %349, %350, %347 : vector<1x64xi1>, vector<1x64xi32>
    %c32_i32_105 = arith.constant 32 : i32
    %352 = vector.broadcast %c32_i32_105 : i32 to vector<1x64xi32>
    %353 = arith.subi %346, %352 : vector<1x64xi32>
    %354 = arith.select %349, %353, %346 : vector<1x64xi1>, vector<1x64xi32>
    %355 = vector.broadcast %342 : vector<64x1xi32> to vector<64x64xi32>
    %356 = vector.broadcast %351 : vector<1x64xi32> to vector<64x64xi32>
    %357 = arith.cmpi eq, %355, %356 : vector<64x64xi32>
    %c-2_i32 = arith.constant -2 : i32
    %358 = vector.broadcast %c-2_i32 : i32 to vector<1x64xi32>
    %359 = arith.addi %354, %358 : vector<1x64xi32>
    %360 = vector.broadcast %345 : vector<64x1xi32> to vector<64x64xi32>
    %361 = vector.broadcast %359 : vector<1x64xi32> to vector<64x64xi32>
    %362 = arith.cmpi eq, %360, %361 : vector<64x64xi32>
    %363 = arith.andi %357, %362 : vector<64x64xi1>
    %364 = arith.extui %363 : vector<64x64xi1> to vector<64x64xi32>
    %365 = arith.sitofp %364 : vector<64x64xi32> to vector<64x64xf32>
    %cst_106 = arith.constant dense<0.000000e+00> : vector<16x64xf32>
    %366 = tpu.matmul %336, %365, %cst_106 {dimension_numbers = #tpu.dot_dimension_numbers<[1], [0], [0], [1], [0, 0, 1, 1], [], []>} : vector<16x64xf32>, vector<64x64xf32>, vector<16x64xf32> -> vector<16x64xf32>
    %c-1_i32 = arith.constant -1 : i32
    %367 = vector.broadcast %c-1_i32 : i32 to vector<1x64xi32>
    %368 = arith.addi %354, %367 : vector<1x64xi32>
    %369 = vector.broadcast %345 : vector<64x1xi32> to vector<64x64xi32>
    %370 = vector.broadcast %368 : vector<1x64xi32> to vector<64x64xi32>
    %371 = arith.cmpi eq, %369, %370 : vector<64x64xi32>
    %372 = arith.andi %357, %371 : vector<64x64xi1>
    %373 = arith.extui %372 : vector<64x64xi1> to vector<64x64xi32>
    %374 = arith.sitofp %373 : vector<64x64xi32> to vector<64x64xf32>
    %cst_107 = arith.constant dense<0.000000e+00> : vector<16x64xf32>
    %375 = tpu.matmul %336, %374, %cst_107 {dimension_numbers = #tpu.dot_dimension_numbers<[1], [0], [0], [1], [0, 0, 1, 1], [], []>} : vector<16x64xf32>, vector<64x64xf32>, vector<16x64xf32> -> vector<16x64xf32>
    %c1_i32_108 = arith.constant 1 : i32
    %376 = vector.broadcast %c1_i32_108 : i32 to vector<1x64xi32>
    %377 = arith.addi %354, %376 : vector<1x64xi32>
    %378 = vector.broadcast %345 : vector<64x1xi32> to vector<64x64xi32>
    %379 = vector.broadcast %377 : vector<1x64xi32> to vector<64x64xi32>
    %380 = arith.cmpi eq, %378, %379 : vector<64x64xi32>
    %381 = arith.andi %357, %380 : vector<64x64xi1>
    %382 = arith.extui %381 : vector<64x64xi1> to vector<64x64xi32>
    %383 = arith.sitofp %382 : vector<64x64xi32> to vector<64x64xf32>
    %cst_109 = arith.constant dense<0.000000e+00> : vector<16x64xf32>
    %384 = tpu.matmul %336, %383, %cst_109 {dimension_numbers = #tpu.dot_dimension_numbers<[1], [0], [0], [1], [0, 0, 1, 1], [], []>} : vector<16x64xf32>, vector<64x64xf32>, vector<16x64xf32> -> vector<16x64xf32>
    %c2_i32_110 = arith.constant 2 : i32
    %385 = vector.broadcast %c2_i32_110 : i32 to vector<1x64xi32>
    %386 = arith.addi %354, %385 : vector<1x64xi32>
    %387 = vector.broadcast %345 : vector<64x1xi32> to vector<64x64xi32>
    %388 = vector.broadcast %386 : vector<1x64xi32> to vector<64x64xi32>
    %389 = arith.cmpi eq, %387, %388 : vector<64x64xi32>
    %390 = arith.andi %357, %389 : vector<64x64xi1>
    %391 = arith.extui %390 : vector<64x64xi1> to vector<64x64xi32>
    %392 = arith.sitofp %391 : vector<64x64xi32> to vector<64x64xf32>
    %cst_111 = arith.constant dense<0.000000e+00> : vector<16x64xf32>
    %393 = tpu.matmul %336, %392, %cst_111 {dimension_numbers = #tpu.dot_dimension_numbers<[1], [0], [0], [1], [0, 0, 1, 1], [], []>} : vector<16x64xf32>, vector<64x64xf32>, vector<16x64xf32> -> vector<16x64xf32>
    %394 = tpu.concatenate %366, %375, %336, %384, %393 in 0 : vector<16x64xf32>, vector<16x64xf32>, vector<16x64xf32>, vector<16x64xf32>, vector<16x64xf32> -> vector<80x64xf32>
    %c48 = arith.constant 48 : index
    %c0_112 = arith.constant 0 : index
    %395 = vector.load %arg1[%c48, %c0_112] : memref<296x192xf32, #tpu.memory_space<vmem>>, vector<32x80xf32>
    %cst_113 = arith.constant dense<0.000000e+00> : vector<32x64xf32>
    %396 = tpu.matmul %395, %394, %cst_113 {dimension_numbers = #tpu.dot_dimension_numbers<[1], [0], [0], [1], [0, 0, 1, 1], [], []>} : vector<32x80xf32>, vector<80x64xf32>, vector<32x64xf32> -> vector<32x64xf32>
    %c48_114 = arith.constant 48 : index
    %c0_115 = arith.constant 0 : index
    %397 = vector.load %arg2[%c48_114, %c0_115] : memref<360x2xf32, #tpu.memory_space<vmem>>, vector<32x1xf32>
    %c48_116 = arith.constant 48 : index
    %c1_117 = arith.constant 1 : index
    %398 = vector.load %arg2[%c48_116, %c1_117] : memref<360x2xf32, #tpu.memory_space<vmem>>, vector<32x1xf32>
    %cst_118 = arith.constant dense<0.000000e+00> : vector<32xf32>
    %399 = vector.multi_reduction <add>, %396, %cst_118 [1] : vector<32x64xf32> to vector<32xf32>
    %400 = vector.shape_cast %399 : vector<32xf32> to vector<32x1xf32>
    %401 = arith.mulf %396, %396 : vector<32x64xf32>
    %cst_119 = arith.constant dense<0.000000e+00> : vector<32xf32>
    %402 = vector.multi_reduction <add>, %401, %cst_119 [1] : vector<32x64xf32> to vector<32xf32>
    %403 = vector.shape_cast %402 : vector<32xf32> to vector<32x1xf32>
    %cst_120 = arith.constant 1.562500e-02 : f32
    %404 = vector.broadcast %cst_120 : f32 to vector<32x1xf32>
    %405 = arith.mulf %400, %404 : vector<32x1xf32>
    %cst_121 = arith.constant 1.562500e-02 : f32
    %406 = vector.broadcast %cst_121 : f32 to vector<32x1xf32>
    %407 = arith.mulf %403, %406 : vector<32x1xf32>
    %408 = arith.mulf %405, %405 : vector<32x1xf32>
    %409 = arith.subf %407, %408 : vector<32x1xf32>
    %cst_122 = arith.constant 9.99999974E-6 : f32
    %410 = vector.broadcast %cst_122 : f32 to vector<32x1xf32>
    %411 = arith.addf %409, %410 : vector<32x1xf32>
    %412 = math.rsqrt %411 : vector<32x1xf32>
    %413 = arith.mulf %397, %412 : vector<32x1xf32>
    %414 = arith.mulf %405, %413 : vector<32x1xf32>
    %415 = arith.subf %398, %414 : vector<32x1xf32>
    %416 = vector.broadcast %413 : vector<32x1xf32> to vector<32x64xf32>
    %417 = arith.mulf %396, %416 : vector<32x64xf32>
    %418 = vector.broadcast %415 : vector<32x1xf32> to vector<32x64xf32>
    %419 = arith.addf %417, %418 : vector<32x64xf32>
    %cst_123 = arith.constant 0.000000e+00 : f32
    %420 = vector.broadcast %cst_123 : f32 to vector<32x64xf32>
    %421 = arith.maximumf %419, %420 : vector<32x64xf32>
    %422 = tpu.iota {dimensions = array<i32: 0>} : vector<64x1xi32>
    %c0_i32_124 = arith.constant 0 : i32
    %423 = vector.broadcast %c0_i32_124 : i32 to vector<64x1xi32>
    %c32_i32_125 = arith.constant 32 : i32
    %424 = vector.broadcast %c32_i32_125 : i32 to vector<64x1xi32>
    %425 = arith.cmpi sge, %422, %424 : vector<64x1xi32>
    %c1_i32_126 = arith.constant 1 : i32
    %426 = vector.broadcast %c1_i32_126 : i32 to vector<64x1xi32>
    %427 = arith.select %425, %426, %423 : vector<64x1xi1>, vector<64x1xi32>
    %c32_i32_127 = arith.constant 32 : i32
    %428 = vector.broadcast %c32_i32_127 : i32 to vector<64x1xi32>
    %429 = arith.subi %422, %428 : vector<64x1xi32>
    %430 = arith.select %425, %429, %422 : vector<64x1xi1>, vector<64x1xi32>
    %431 = tpu.iota {dimensions = array<i32: 1>} : vector<1x64xi32>
    %c0_i32_128 = arith.constant 0 : i32
    %432 = vector.broadcast %c0_i32_128 : i32 to vector<1x64xi32>
    %c32_i32_129 = arith.constant 32 : i32
    %433 = vector.broadcast %c32_i32_129 : i32 to vector<1x64xi32>
    %434 = arith.cmpi sge, %431, %433 : vector<1x64xi32>
    %c1_i32_130 = arith.constant 1 : i32
    %435 = vector.broadcast %c1_i32_130 : i32 to vector<1x64xi32>
    %436 = arith.select %434, %435, %432 : vector<1x64xi1>, vector<1x64xi32>
    %c32_i32_131 = arith.constant 32 : i32
    %437 = vector.broadcast %c32_i32_131 : i32 to vector<1x64xi32>
    %438 = arith.subi %431, %437 : vector<1x64xi32>
    %439 = arith.select %434, %438, %431 : vector<1x64xi1>, vector<1x64xi32>
    %440 = vector.broadcast %427 : vector<64x1xi32> to vector<64x64xi32>
    %441 = vector.broadcast %436 : vector<1x64xi32> to vector<64x64xi32>
    %442 = arith.cmpi eq, %440, %441 : vector<64x64xi32>
    %c-2_i32_132 = arith.constant -2 : i32
    %443 = vector.broadcast %c-2_i32_132 : i32 to vector<1x64xi32>
    %444 = arith.addi %439, %443 : vector<1x64xi32>
    %445 = vector.broadcast %430 : vector<64x1xi32> to vector<64x64xi32>
    %446 = vector.broadcast %444 : vector<1x64xi32> to vector<64x64xi32>
    %447 = arith.cmpi eq, %445, %446 : vector<64x64xi32>
    %448 = arith.andi %442, %447 : vector<64x64xi1>
    %449 = arith.extui %448 : vector<64x64xi1> to vector<64x64xi32>
    %450 = arith.sitofp %449 : vector<64x64xi32> to vector<64x64xf32>
    %cst_133 = arith.constant dense<0.000000e+00> : vector<32x64xf32>
    %451 = tpu.matmul %421, %450, %cst_133 {dimension_numbers = #tpu.dot_dimension_numbers<[1], [0], [0], [1], [0, 0, 1, 1], [], []>} : vector<32x64xf32>, vector<64x64xf32>, vector<32x64xf32> -> vector<32x64xf32>
    %c-1_i32_134 = arith.constant -1 : i32
    %452 = vector.broadcast %c-1_i32_134 : i32 to vector<1x64xi32>
    %453 = arith.addi %439, %452 : vector<1x64xi32>
    %454 = vector.broadcast %430 : vector<64x1xi32> to vector<64x64xi32>
    %455 = vector.broadcast %453 : vector<1x64xi32> to vector<64x64xi32>
    %456 = arith.cmpi eq, %454, %455 : vector<64x64xi32>
    %457 = arith.andi %442, %456 : vector<64x64xi1>
    %458 = arith.extui %457 : vector<64x64xi1> to vector<64x64xi32>
    %459 = arith.sitofp %458 : vector<64x64xi32> to vector<64x64xf32>
    %cst_135 = arith.constant dense<0.000000e+00> : vector<32x64xf32>
    %460 = tpu.matmul %421, %459, %cst_135 {dimension_numbers = #tpu.dot_dimension_numbers<[1], [0], [0], [1], [0, 0, 1, 1], [], []>} : vector<32x64xf32>, vector<64x64xf32>, vector<32x64xf32> -> vector<32x64xf32>
    %c1_i32_136 = arith.constant 1 : i32
    %461 = vector.broadcast %c1_i32_136 : i32 to vector<1x64xi32>
    %462 = arith.addi %439, %461 : vector<1x64xi32>
    %463 = vector.broadcast %430 : vector<64x1xi32> to vector<64x64xi32>
    %464 = vector.broadcast %462 : vector<1x64xi32> to vector<64x64xi32>
    %465 = arith.cmpi eq, %463, %464 : vector<64x64xi32>
    %466 = arith.andi %442, %465 : vector<64x64xi1>
    %467 = arith.extui %466 : vector<64x64xi1> to vector<64x64xi32>
    %468 = arith.sitofp %467 : vector<64x64xi32> to vector<64x64xf32>
    %cst_137 = arith.constant dense<0.000000e+00> : vector<32x64xf32>
    %469 = tpu.matmul %421, %468, %cst_137 {dimension_numbers = #tpu.dot_dimension_numbers<[1], [0], [0], [1], [0, 0, 1, 1], [], []>} : vector<32x64xf32>, vector<64x64xf32>, vector<32x64xf32> -> vector<32x64xf32>
    %c2_i32_138 = arith.constant 2 : i32
    %470 = vector.broadcast %c2_i32_138 : i32 to vector<1x64xi32>
    %471 = arith.addi %439, %470 : vector<1x64xi32>
    %472 = vector.broadcast %430 : vector<64x1xi32> to vector<64x64xi32>
    %473 = vector.broadcast %471 : vector<1x64xi32> to vector<64x64xi32>
    %474 = arith.cmpi eq, %472, %473 : vector<64x64xi32>
    %475 = arith.andi %442, %474 : vector<64x64xi1>
    %476 = arith.extui %475 : vector<64x64xi1> to vector<64x64xi32>
    %477 = arith.sitofp %476 : vector<64x64xi32> to vector<64x64xf32>
    %cst_139 = arith.constant dense<0.000000e+00> : vector<32x64xf32>
    %478 = tpu.matmul %421, %477, %cst_139 {dimension_numbers = #tpu.dot_dimension_numbers<[1], [0], [0], [1], [0, 0, 1, 1], [], []>} : vector<32x64xf32>, vector<64x64xf32>, vector<32x64xf32> -> vector<32x64xf32>
    %479 = tpu.concatenate %451, %460, %421, %469, %478 in 0 : vector<32x64xf32>, vector<32x64xf32>, vector<32x64xf32>, vector<32x64xf32>, vector<32x64xf32> -> vector<160x64xf32>
    %c80 = arith.constant 80 : index
    %c0_140 = arith.constant 0 : index
    %480 = vector.load %arg1[%c80, %c0_140] : memref<296x192xf32, #tpu.memory_space<vmem>>, vector<32x160xf32>
    %cst_141 = arith.constant dense<0.000000e+00> : vector<32x64xf32>
    %481 = tpu.matmul %480, %479, %cst_141 {dimension_numbers = #tpu.dot_dimension_numbers<[1], [0], [0], [1], [0, 0, 1, 1], [], []>} : vector<32x160xf32>, vector<160x64xf32>, vector<32x64xf32> -> vector<32x64xf32>
    %c384 = arith.constant 384 : index
    %c0_142 = arith.constant 0 : index
    %482 = vector.load %arg3[%c384, %c0_142] : memref<672x256xf32, #tpu.memory_space<vmem>>, vector<64x32xf32>
    %cst_143 = arith.constant dense<0.000000e+00> : vector<32x32xf32>
    %483 = tpu.matmul %481, %482, %cst_143 {dimension_numbers = #tpu.dot_dimension_numbers<[1], [0], [0], [1], [0, 0, 1, 1], [], []>} : vector<32x64xf32>, vector<64x32xf32>, vector<32x32xf32> -> vector<32x32xf32>
    %c80_144 = arith.constant 80 : index
    %c0_145 = arith.constant 0 : index
    %484 = vector.load %arg2[%c80_144, %c0_145] : memref<360x2xf32, #tpu.memory_space<vmem>>, vector<32x1xf32>
    %c80_146 = arith.constant 80 : index
    %c1_147 = arith.constant 1 : index
    %485 = vector.load %arg2[%c80_146, %c1_147] : memref<360x2xf32, #tpu.memory_space<vmem>>, vector<32x1xf32>
    %cst_148 = arith.constant dense<0.000000e+00> : vector<32xf32>
    %486 = vector.multi_reduction <add>, %483, %cst_148 [1] : vector<32x32xf32> to vector<32xf32>
    %487 = vector.shape_cast %486 : vector<32xf32> to vector<32x1xf32>
    %488 = arith.mulf %483, %483 : vector<32x32xf32>
    %cst_149 = arith.constant dense<0.000000e+00> : vector<32xf32>
    %489 = vector.multi_reduction <add>, %488, %cst_149 [1] : vector<32x32xf32> to vector<32xf32>
    %490 = vector.shape_cast %489 : vector<32xf32> to vector<32x1xf32>
    %cst_150 = arith.constant 3.125000e-02 : f32
    %491 = vector.broadcast %cst_150 : f32 to vector<32x1xf32>
    %492 = arith.mulf %487, %491 : vector<32x1xf32>
    %cst_151 = arith.constant 3.125000e-02 : f32
    %493 = vector.broadcast %cst_151 : f32 to vector<32x1xf32>
    %494 = arith.mulf %490, %493 : vector<32x1xf32>
    %495 = arith.mulf %492, %492 : vector<32x1xf32>
    %496 = arith.subf %494, %495 : vector<32x1xf32>
    %cst_152 = arith.constant 9.99999974E-6 : f32
    %497 = vector.broadcast %cst_152 : f32 to vector<32x1xf32>
    %498 = arith.addf %496, %497 : vector<32x1xf32>
    %499 = math.rsqrt %498 : vector<32x1xf32>
    %500 = arith.mulf %484, %499 : vector<32x1xf32>
    %501 = arith.mulf %492, %500 : vector<32x1xf32>
    %502 = arith.subf %485, %501 : vector<32x1xf32>
    %503 = vector.broadcast %500 : vector<32x1xf32> to vector<32x32xf32>
    %504 = arith.mulf %483, %503 : vector<32x32xf32>
    %505 = vector.broadcast %502 : vector<32x1xf32> to vector<32x32xf32>
    %506 = arith.addf %504, %505 : vector<32x32xf32>
    %cst_153 = arith.constant 0.000000e+00 : f32
    %507 = vector.broadcast %cst_153 : f32 to vector<32x32xf32>
    %508 = arith.maximumf %506, %507 : vector<32x32xf32>
    %509 = tpu.iota {dimensions = array<i32: 0>} : vector<32x1xi32>
    %c0_i32_154 = arith.constant 0 : i32
    %510 = vector.broadcast %c0_i32_154 : i32 to vector<32x1xi32>
    %c16_i32 = arith.constant 16 : i32
    %511 = vector.broadcast %c16_i32 : i32 to vector<32x1xi32>
    %512 = arith.cmpi sge, %509, %511 : vector<32x1xi32>
    %c1_i32_155 = arith.constant 1 : i32
    %513 = vector.broadcast %c1_i32_155 : i32 to vector<32x1xi32>
    %514 = arith.select %512, %513, %510 : vector<32x1xi1>, vector<32x1xi32>
    %c16_i32_156 = arith.constant 16 : i32
    %515 = vector.broadcast %c16_i32_156 : i32 to vector<32x1xi32>
    %516 = arith.subi %509, %515 : vector<32x1xi32>
    %517 = arith.select %512, %516, %509 : vector<32x1xi1>, vector<32x1xi32>
    %518 = tpu.iota {dimensions = array<i32: 1>} : vector<1x32xi32>
    %c0_i32_157 = arith.constant 0 : i32
    %519 = vector.broadcast %c0_i32_157 : i32 to vector<1x32xi32>
    %c16_i32_158 = arith.constant 16 : i32
    %520 = vector.broadcast %c16_i32_158 : i32 to vector<1x32xi32>
    %521 = arith.cmpi sge, %518, %520 : vector<1x32xi32>
    %c1_i32_159 = arith.constant 1 : i32
    %522 = vector.broadcast %c1_i32_159 : i32 to vector<1x32xi32>
    %523 = arith.select %521, %522, %519 : vector<1x32xi1>, vector<1x32xi32>
    %c16_i32_160 = arith.constant 16 : i32
    %524 = vector.broadcast %c16_i32_160 : i32 to vector<1x32xi32>
    %525 = arith.subi %518, %524 : vector<1x32xi32>
    %526 = arith.select %521, %525, %518 : vector<1x32xi1>, vector<1x32xi32>
    %527 = vector.broadcast %514 : vector<32x1xi32> to vector<32x32xi32>
    %528 = vector.broadcast %523 : vector<1x32xi32> to vector<32x32xi32>
    %529 = arith.cmpi eq, %527, %528 : vector<32x32xi32>
    %c-1_i32_161 = arith.constant -1 : i32
    %530 = vector.broadcast %c-1_i32_161 : i32 to vector<1x32xi32>
    %531 = arith.addi %526, %530 : vector<1x32xi32>
    %532 = vector.broadcast %517 : vector<32x1xi32> to vector<32x32xi32>
    %533 = vector.broadcast %531 : vector<1x32xi32> to vector<32x32xi32>
    %534 = arith.cmpi eq, %532, %533 : vector<32x32xi32>
    %535 = arith.andi %529, %534 : vector<32x32xi1>
    %536 = arith.extui %535 : vector<32x32xi1> to vector<32x32xi32>
    %537 = arith.sitofp %536 : vector<32x32xi32> to vector<32x32xf32>
    %cst_162 = arith.constant dense<0.000000e+00> : vector<32x32xf32>
    %538 = tpu.matmul %508, %537, %cst_162 {dimension_numbers = #tpu.dot_dimension_numbers<[1], [0], [0], [1], [0, 0, 1, 1], [], []>} : vector<32x32xf32>, vector<32x32xf32>, vector<32x32xf32> -> vector<32x32xf32>
    %c1_i32_163 = arith.constant 1 : i32
    %539 = vector.broadcast %c1_i32_163 : i32 to vector<1x32xi32>
    %540 = arith.addi %526, %539 : vector<1x32xi32>
    %541 = vector.broadcast %517 : vector<32x1xi32> to vector<32x32xi32>
    %542 = vector.broadcast %540 : vector<1x32xi32> to vector<32x32xi32>
    %543 = arith.cmpi eq, %541, %542 : vector<32x32xi32>
    %544 = arith.andi %529, %543 : vector<32x32xi1>
    %545 = arith.extui %544 : vector<32x32xi1> to vector<32x32xi32>
    %546 = arith.sitofp %545 : vector<32x32xi32> to vector<32x32xf32>
    %cst_164 = arith.constant dense<0.000000e+00> : vector<32x32xf32>
    %547 = tpu.matmul %508, %546, %cst_164 {dimension_numbers = #tpu.dot_dimension_numbers<[1], [0], [0], [1], [0, 0, 1, 1], [], []>} : vector<32x32xf32>, vector<32x32xf32>, vector<32x32xf32> -> vector<32x32xf32>
    %548 = tpu.concatenate %538, %508, %547 in 0 : vector<32x32xf32>, vector<32x32xf32>, vector<32x32xf32> -> vector<96x32xf32>
    %c112 = arith.constant 112 : index
    %c0_165 = arith.constant 0 : index
    %549 = vector.load %arg1[%c112, %c0_165] : memref<296x192xf32, #tpu.memory_space<vmem>>, vector<64x96xf32>
    %cst_166 = arith.constant dense<0.000000e+00> : vector<64x32xf32>
    %550 = tpu.matmul %549, %548, %cst_166 {dimension_numbers = #tpu.dot_dimension_numbers<[1], [0], [0], [1], [0, 0, 1, 1], [], []>} : vector<64x96xf32>, vector<96x32xf32>, vector<64x32xf32> -> vector<64x32xf32>
    %c112_167 = arith.constant 112 : index
    %c0_168 = arith.constant 0 : index
    %551 = vector.load %arg2[%c112_167, %c0_168] : memref<360x2xf32, #tpu.memory_space<vmem>>, vector<64x1xf32>
    %c112_169 = arith.constant 112 : index
    %c1_170 = arith.constant 1 : index
    %552 = vector.load %arg2[%c112_169, %c1_170] : memref<360x2xf32, #tpu.memory_space<vmem>>, vector<64x1xf32>
    %cst_171 = arith.constant dense<0.000000e+00> : vector<64xf32>
    %553 = vector.multi_reduction <add>, %550, %cst_171 [1] : vector<64x32xf32> to vector<64xf32>
    %554 = vector.shape_cast %553 : vector<64xf32> to vector<64x1xf32>
    %555 = arith.mulf %550, %550 : vector<64x32xf32>
    %cst_172 = arith.constant dense<0.000000e+00> : vector<64xf32>
    %556 = vector.multi_reduction <add>, %555, %cst_172 [1] : vector<64x32xf32> to vector<64xf32>
    %557 = vector.shape_cast %556 : vector<64xf32> to vector<64x1xf32>
    %cst_173 = arith.constant 3.125000e-02 : f32
    %558 = vector.broadcast %cst_173 : f32 to vector<64x1xf32>
    %559 = arith.mulf %554, %558 : vector<64x1xf32>
    %cst_174 = arith.constant 3.125000e-02 : f32
    %560 = vector.broadcast %cst_174 : f32 to vector<64x1xf32>
    %561 = arith.mulf %557, %560 : vector<64x1xf32>
    %562 = arith.mulf %559, %559 : vector<64x1xf32>
    %563 = arith.subf %561, %562 : vector<64x1xf32>
    %cst_175 = arith.constant 9.99999974E-6 : f32
    %564 = vector.broadcast %cst_175 : f32 to vector<64x1xf32>
    %565 = arith.addf %563, %564 : vector<64x1xf32>
    %566 = math.rsqrt %565 : vector<64x1xf32>
    %567 = arith.mulf %551, %566 : vector<64x1xf32>
    %568 = arith.mulf %559, %567 : vector<64x1xf32>
    %569 = arith.subf %552, %568 : vector<64x1xf32>
    %570 = vector.broadcast %567 : vector<64x1xf32> to vector<64x32xf32>
    %571 = arith.mulf %550, %570 : vector<64x32xf32>
    %572 = vector.broadcast %569 : vector<64x1xf32> to vector<64x32xf32>
    %573 = arith.addf %571, %572 : vector<64x32xf32>
    %cst_176 = arith.constant 0.000000e+00 : f32
    %574 = vector.broadcast %cst_176 : f32 to vector<64x32xf32>
    %575 = arith.maximumf %573, %574 : vector<64x32xf32>
    %576 = arith.addf %575, %550 : vector<64x32xf32>
    %c176 = arith.constant 176 : index
    %c0_177 = arith.constant 0 : index
    %577 = vector.load %arg2[%c176, %c0_177] : memref<360x2xf32, #tpu.memory_space<vmem>>, vector<64x1xf32>
    %c176_178 = arith.constant 176 : index
    %c1_179 = arith.constant 1 : index
    %578 = vector.load %arg2[%c176_178, %c1_179] : memref<360x2xf32, #tpu.memory_space<vmem>>, vector<64x1xf32>
    %cst_180 = arith.constant dense<0.000000e+00> : vector<64xf32>
    %579 = vector.multi_reduction <add>, %576, %cst_180 [1] : vector<64x32xf32> to vector<64xf32>
    %580 = vector.shape_cast %579 : vector<64xf32> to vector<64x1xf32>
    %581 = arith.mulf %576, %576 : vector<64x32xf32>
    %cst_181 = arith.constant dense<0.000000e+00> : vector<64xf32>
    %582 = vector.multi_reduction <add>, %581, %cst_181 [1] : vector<64x32xf32> to vector<64xf32>
    %583 = vector.shape_cast %582 : vector<64xf32> to vector<64x1xf32>
    %cst_182 = arith.constant 3.125000e-02 : f32
    %584 = vector.broadcast %cst_182 : f32 to vector<64x1xf32>
    %585 = arith.mulf %580, %584 : vector<64x1xf32>
    %cst_183 = arith.constant 3.125000e-02 : f32
    %586 = vector.broadcast %cst_183 : f32 to vector<64x1xf32>
    %587 = arith.mulf %583, %586 : vector<64x1xf32>
    %588 = arith.mulf %585, %585 : vector<64x1xf32>
    %589 = arith.subf %587, %588 : vector<64x1xf32>
    %cst_184 = arith.constant 9.99999974E-6 : f32
    %590 = vector.broadcast %cst_184 : f32 to vector<64x1xf32>
    %591 = arith.addf %589, %590 : vector<64x1xf32>
    %592 = math.rsqrt %591 : vector<64x1xf32>
    %593 = arith.mulf %577, %592 : vector<64x1xf32>
    %594 = arith.mulf %585, %593 : vector<64x1xf32>
    %595 = arith.subf %578, %594 : vector<64x1xf32>
    %596 = vector.broadcast %593 : vector<64x1xf32> to vector<64x32xf32>
    %597 = arith.mulf %576, %596 : vector<64x32xf32>
    %598 = vector.broadcast %595 : vector<64x1xf32> to vector<64x32xf32>
    %599 = arith.addf %597, %598 : vector<64x32xf32>
    %cst_185 = arith.constant 0.000000e+00 : f32
    %600 = vector.broadcast %cst_185 : f32 to vector<64x32xf32>
    %601 = arith.maximumf %599, %600 : vector<64x32xf32>
    %602 = tpu.iota {dimensions = array<i32: 0>} : vector<32x1xi32>
    %c0_i32_186 = arith.constant 0 : i32
    %603 = vector.broadcast %c0_i32_186 : i32 to vector<32x1xi32>
    %c16_i32_187 = arith.constant 16 : i32
    %604 = vector.broadcast %c16_i32_187 : i32 to vector<32x1xi32>
    %605 = arith.cmpi sge, %602, %604 : vector<32x1xi32>
    %c1_i32_188 = arith.constant 1 : i32
    %606 = vector.broadcast %c1_i32_188 : i32 to vector<32x1xi32>
    %607 = arith.select %605, %606, %603 : vector<32x1xi1>, vector<32x1xi32>
    %c16_i32_189 = arith.constant 16 : i32
    %608 = vector.broadcast %c16_i32_189 : i32 to vector<32x1xi32>
    %609 = arith.subi %602, %608 : vector<32x1xi32>
    %610 = arith.select %605, %609, %602 : vector<32x1xi1>, vector<32x1xi32>
    %611 = tpu.iota {dimensions = array<i32: 1>} : vector<1x32xi32>
    %c0_i32_190 = arith.constant 0 : i32
    %612 = vector.broadcast %c0_i32_190 : i32 to vector<1x32xi32>
    %c16_i32_191 = arith.constant 16 : i32
    %613 = vector.broadcast %c16_i32_191 : i32 to vector<1x32xi32>
    %614 = arith.cmpi sge, %611, %613 : vector<1x32xi32>
    %c1_i32_192 = arith.constant 1 : i32
    %615 = vector.broadcast %c1_i32_192 : i32 to vector<1x32xi32>
    %616 = arith.select %614, %615, %612 : vector<1x32xi1>, vector<1x32xi32>
    %c16_i32_193 = arith.constant 16 : i32
    %617 = vector.broadcast %c16_i32_193 : i32 to vector<1x32xi32>
    %618 = arith.subi %611, %617 : vector<1x32xi32>
    %619 = arith.select %614, %618, %611 : vector<1x32xi1>, vector<1x32xi32>
    %620 = vector.broadcast %607 : vector<32x1xi32> to vector<32x32xi32>
    %621 = vector.broadcast %616 : vector<1x32xi32> to vector<32x32xi32>
    %622 = arith.cmpi eq, %620, %621 : vector<32x32xi32>
    %c-1_i32_194 = arith.constant -1 : i32
    %623 = vector.broadcast %c-1_i32_194 : i32 to vector<1x32xi32>
    %624 = arith.addi %619, %623 : vector<1x32xi32>
    %625 = vector.broadcast %610 : vector<32x1xi32> to vector<32x32xi32>
    %626 = vector.broadcast %624 : vector<1x32xi32> to vector<32x32xi32>
    %627 = arith.cmpi eq, %625, %626 : vector<32x32xi32>
    %628 = arith.andi %622, %627 : vector<32x32xi1>
    %629 = arith.extui %628 : vector<32x32xi1> to vector<32x32xi32>
    %630 = arith.sitofp %629 : vector<32x32xi32> to vector<32x32xf32>
    %cst_195 = arith.constant dense<0.000000e+00> : vector<64x32xf32>
    %631 = tpu.matmul %601, %630, %cst_195 {dimension_numbers = #tpu.dot_dimension_numbers<[1], [0], [0], [1], [0, 0, 1, 1], [], []>} : vector<64x32xf32>, vector<32x32xf32>, vector<64x32xf32> -> vector<64x32xf32>
    %c1_i32_196 = arith.constant 1 : i32
    %632 = vector.broadcast %c1_i32_196 : i32 to vector<1x32xi32>
    %633 = arith.addi %619, %632 : vector<1x32xi32>
    %634 = vector.broadcast %610 : vector<32x1xi32> to vector<32x32xi32>
    %635 = vector.broadcast %633 : vector<1x32xi32> to vector<32x32xi32>
    %636 = arith.cmpi eq, %634, %635 : vector<32x32xi32>
    %637 = arith.andi %622, %636 : vector<32x32xi1>
    %638 = arith.extui %637 : vector<32x32xi1> to vector<32x32xi32>
    %639 = arith.sitofp %638 : vector<32x32xi32> to vector<32x32xf32>
    %cst_197 = arith.constant dense<0.000000e+00> : vector<64x32xf32>
    %640 = tpu.matmul %601, %639, %cst_197 {dimension_numbers = #tpu.dot_dimension_numbers<[1], [0], [0], [1], [0, 0, 1, 1], [], []>} : vector<64x32xf32>, vector<32x32xf32>, vector<64x32xf32> -> vector<64x32xf32>
    %641 = tpu.concatenate %631, %601, %640 in 0 : vector<64x32xf32>, vector<64x32xf32>, vector<64x32xf32> -> vector<192x32xf32>
    %c176_198 = arith.constant 176 : index
    %c0_199 = arith.constant 0 : index
    %642 = vector.load %arg1[%c176_198, %c0_199] : memref<296x192xf32, #tpu.memory_space<vmem>>, vector<32x192xf32>
    %cst_200 = arith.constant dense<0.000000e+00> : vector<32x32xf32>
    %643 = tpu.matmul %642, %641, %cst_200 {dimension_numbers = #tpu.dot_dimension_numbers<[1], [0], [0], [1], [0, 0, 1, 1], [], []>} : vector<32x192xf32>, vector<192x32xf32>, vector<32x32xf32> -> vector<32x32xf32>
    %c240 = arith.constant 240 : index
    %c0_201 = arith.constant 0 : index
    %644 = vector.load %arg2[%c240, %c0_201] : memref<360x2xf32, #tpu.memory_space<vmem>>, vector<32x1xf32>
    %c240_202 = arith.constant 240 : index
    %c1_203 = arith.constant 1 : index
    %645 = vector.load %arg2[%c240_202, %c1_203] : memref<360x2xf32, #tpu.memory_space<vmem>>, vector<32x1xf32>
    %cst_204 = arith.constant dense<0.000000e+00> : vector<32xf32>
    %646 = vector.multi_reduction <add>, %643, %cst_204 [1] : vector<32x32xf32> to vector<32xf32>
    %647 = vector.shape_cast %646 : vector<32xf32> to vector<32x1xf32>
    %648 = arith.mulf %643, %643 : vector<32x32xf32>
    %cst_205 = arith.constant dense<0.000000e+00> : vector<32xf32>
    %649 = vector.multi_reduction <add>, %648, %cst_205 [1] : vector<32x32xf32> to vector<32xf32>
    %650 = vector.shape_cast %649 : vector<32xf32> to vector<32x1xf32>
    %cst_206 = arith.constant 3.125000e-02 : f32
    %651 = vector.broadcast %cst_206 : f32 to vector<32x1xf32>
    %652 = arith.mulf %647, %651 : vector<32x1xf32>
    %cst_207 = arith.constant 3.125000e-02 : f32
    %653 = vector.broadcast %cst_207 : f32 to vector<32x1xf32>
    %654 = arith.mulf %650, %653 : vector<32x1xf32>
    %655 = arith.mulf %652, %652 : vector<32x1xf32>
    %656 = arith.subf %654, %655 : vector<32x1xf32>
    %cst_208 = arith.constant 9.99999974E-6 : f32
    %657 = vector.broadcast %cst_208 : f32 to vector<32x1xf32>
    %658 = arith.addf %656, %657 : vector<32x1xf32>
    %659 = math.rsqrt %658 : vector<32x1xf32>
    %660 = arith.mulf %644, %659 : vector<32x1xf32>
    %661 = arith.mulf %652, %660 : vector<32x1xf32>
    %662 = arith.subf %645, %661 : vector<32x1xf32>
    %663 = vector.broadcast %660 : vector<32x1xf32> to vector<32x32xf32>
    %664 = arith.mulf %643, %663 : vector<32x32xf32>
    %665 = vector.broadcast %662 : vector<32x1xf32> to vector<32x32xf32>
    %666 = arith.addf %664, %665 : vector<32x32xf32>
    %cst_209 = arith.constant 0.000000e+00 : f32
    %667 = vector.broadcast %cst_209 : f32 to vector<32x32xf32>
    %668 = arith.maximumf %666, %667 : vector<32x32xf32>
    %c448 = arith.constant 448 : index
    %c0_210 = arith.constant 0 : index
    %669 = vector.load %arg3[%c448, %c0_210] : memref<672x256xf32, #tpu.memory_space<vmem>>, vector<32x64xf32>
    %cst_211 = arith.constant dense<0.000000e+00> : vector<32x64xf32>
    %670 = tpu.matmul %668, %669, %cst_211 {dimension_numbers = #tpu.dot_dimension_numbers<[1], [0], [0], [1], [0, 0, 1, 1], [], []>} : vector<32x32xf32>, vector<32x64xf32>, vector<32x64xf32> -> vector<32x64xf32>
    %671 = tpu.iota {dimensions = array<i32: 0>} : vector<64x1xi32>
    %c0_i32_212 = arith.constant 0 : i32
    %672 = vector.broadcast %c0_i32_212 : i32 to vector<64x1xi32>
    %c32_i32_213 = arith.constant 32 : i32
    %673 = vector.broadcast %c32_i32_213 : i32 to vector<64x1xi32>
    %674 = arith.cmpi sge, %671, %673 : vector<64x1xi32>
    %c1_i32_214 = arith.constant 1 : i32
    %675 = vector.broadcast %c1_i32_214 : i32 to vector<64x1xi32>
    %676 = arith.select %674, %675, %672 : vector<64x1xi1>, vector<64x1xi32>
    %c32_i32_215 = arith.constant 32 : i32
    %677 = vector.broadcast %c32_i32_215 : i32 to vector<64x1xi32>
    %678 = arith.subi %671, %677 : vector<64x1xi32>
    %679 = arith.select %674, %678, %671 : vector<64x1xi1>, vector<64x1xi32>
    %680 = tpu.iota {dimensions = array<i32: 1>} : vector<1x64xi32>
    %c0_i32_216 = arith.constant 0 : i32
    %681 = vector.broadcast %c0_i32_216 : i32 to vector<1x64xi32>
    %c32_i32_217 = arith.constant 32 : i32
    %682 = vector.broadcast %c32_i32_217 : i32 to vector<1x64xi32>
    %683 = arith.cmpi sge, %680, %682 : vector<1x64xi32>
    %c1_i32_218 = arith.constant 1 : i32
    %684 = vector.broadcast %c1_i32_218 : i32 to vector<1x64xi32>
    %685 = arith.select %683, %684, %681 : vector<1x64xi1>, vector<1x64xi32>
    %c32_i32_219 = arith.constant 32 : i32
    %686 = vector.broadcast %c32_i32_219 : i32 to vector<1x64xi32>
    %687 = arith.subi %680, %686 : vector<1x64xi32>
    %688 = arith.select %683, %687, %680 : vector<1x64xi1>, vector<1x64xi32>
    %689 = vector.broadcast %676 : vector<64x1xi32> to vector<64x64xi32>
    %690 = vector.broadcast %685 : vector<1x64xi32> to vector<64x64xi32>
    %691 = arith.cmpi eq, %689, %690 : vector<64x64xi32>
    %c-2_i32_220 = arith.constant -2 : i32
    %692 = vector.broadcast %c-2_i32_220 : i32 to vector<1x64xi32>
    %693 = arith.addi %688, %692 : vector<1x64xi32>
    %694 = vector.broadcast %679 : vector<64x1xi32> to vector<64x64xi32>
    %695 = vector.broadcast %693 : vector<1x64xi32> to vector<64x64xi32>
    %696 = arith.cmpi eq, %694, %695 : vector<64x64xi32>
    %697 = arith.andi %691, %696 : vector<64x64xi1>
    %698 = arith.extui %697 : vector<64x64xi1> to vector<64x64xi32>
    %699 = arith.sitofp %698 : vector<64x64xi32> to vector<64x64xf32>
    %cst_221 = arith.constant dense<0.000000e+00> : vector<32x64xf32>
    %700 = tpu.matmul %670, %699, %cst_221 {dimension_numbers = #tpu.dot_dimension_numbers<[1], [0], [0], [1], [0, 0, 1, 1], [], []>} : vector<32x64xf32>, vector<64x64xf32>, vector<32x64xf32> -> vector<32x64xf32>
    %c-1_i32_222 = arith.constant -1 : i32
    %701 = vector.broadcast %c-1_i32_222 : i32 to vector<1x64xi32>
    %702 = arith.addi %688, %701 : vector<1x64xi32>
    %703 = vector.broadcast %679 : vector<64x1xi32> to vector<64x64xi32>
    %704 = vector.broadcast %702 : vector<1x64xi32> to vector<64x64xi32>
    %705 = arith.cmpi eq, %703, %704 : vector<64x64xi32>
    %706 = arith.andi %691, %705 : vector<64x64xi1>
    %707 = arith.extui %706 : vector<64x64xi1> to vector<64x64xi32>
    %708 = arith.sitofp %707 : vector<64x64xi32> to vector<64x64xf32>
    %cst_223 = arith.constant dense<0.000000e+00> : vector<32x64xf32>
    %709 = tpu.matmul %670, %708, %cst_223 {dimension_numbers = #tpu.dot_dimension_numbers<[1], [0], [0], [1], [0, 0, 1, 1], [], []>} : vector<32x64xf32>, vector<64x64xf32>, vector<32x64xf32> -> vector<32x64xf32>
    %c1_i32_224 = arith.constant 1 : i32
    %710 = vector.broadcast %c1_i32_224 : i32 to vector<1x64xi32>
    %711 = arith.addi %688, %710 : vector<1x64xi32>
    %712 = vector.broadcast %679 : vector<64x1xi32> to vector<64x64xi32>
    %713 = vector.broadcast %711 : vector<1x64xi32> to vector<64x64xi32>
    %714 = arith.cmpi eq, %712, %713 : vector<64x64xi32>
    %715 = arith.andi %691, %714 : vector<64x64xi1>
    %716 = arith.extui %715 : vector<64x64xi1> to vector<64x64xi32>
    %717 = arith.sitofp %716 : vector<64x64xi32> to vector<64x64xf32>
    %cst_225 = arith.constant dense<0.000000e+00> : vector<32x64xf32>
    %718 = tpu.matmul %670, %717, %cst_225 {dimension_numbers = #tpu.dot_dimension_numbers<[1], [0], [0], [1], [0, 0, 1, 1], [], []>} : vector<32x64xf32>, vector<64x64xf32>, vector<32x64xf32> -> vector<32x64xf32>
    %c2_i32_226 = arith.constant 2 : i32
    %719 = vector.broadcast %c2_i32_226 : i32 to vector<1x64xi32>
    %720 = arith.addi %688, %719 : vector<1x64xi32>
    %721 = vector.broadcast %679 : vector<64x1xi32> to vector<64x64xi32>
    %722 = vector.broadcast %720 : vector<1x64xi32> to vector<64x64xi32>
    %723 = arith.cmpi eq, %721, %722 : vector<64x64xi32>
    %724 = arith.andi %691, %723 : vector<64x64xi1>
    %725 = arith.extui %724 : vector<64x64xi1> to vector<64x64xi32>
    %726 = arith.sitofp %725 : vector<64x64xi32> to vector<64x64xf32>
    %cst_227 = arith.constant dense<0.000000e+00> : vector<32x64xf32>
    %727 = tpu.matmul %670, %726, %cst_227 {dimension_numbers = #tpu.dot_dimension_numbers<[1], [0], [0], [1], [0, 0, 1, 1], [], []>} : vector<32x64xf32>, vector<64x64xf32>, vector<32x64xf32> -> vector<32x64xf32>
    %728 = tpu.concatenate %700, %709, %670, %718, %727 in 0 : vector<32x64xf32>, vector<32x64xf32>, vector<32x64xf32>, vector<32x64xf32>, vector<32x64xf32> -> vector<160x64xf32>
    %c208 = arith.constant 208 : index
    %c0_228 = arith.constant 0 : index
    %729 = vector.load %arg1[%c208, %c0_228] : memref<296x192xf32, #tpu.memory_space<vmem>>, vector<32x160xf32>
    %cst_229 = arith.constant dense<0.000000e+00> : vector<32x64xf32>
    %730 = tpu.matmul %729, %728, %cst_229 {dimension_numbers = #tpu.dot_dimension_numbers<[1], [0], [0], [1], [0, 0, 1, 1], [], []>} : vector<32x160xf32>, vector<160x64xf32>, vector<32x64xf32> -> vector<32x64xf32>
    %731 = arith.addf %730, %396 : vector<32x64xf32>
    %c272 = arith.constant 272 : index
    %c0_230 = arith.constant 0 : index
    %732 = vector.load %arg2[%c272, %c0_230] : memref<360x2xf32, #tpu.memory_space<vmem>>, vector<32x1xf32>
    %c272_231 = arith.constant 272 : index
    %c1_232 = arith.constant 1 : index
    %733 = vector.load %arg2[%c272_231, %c1_232] : memref<360x2xf32, #tpu.memory_space<vmem>>, vector<32x1xf32>
    %cst_233 = arith.constant dense<0.000000e+00> : vector<32xf32>
    %734 = vector.multi_reduction <add>, %731, %cst_233 [1] : vector<32x64xf32> to vector<32xf32>
    %735 = vector.shape_cast %734 : vector<32xf32> to vector<32x1xf32>
    %736 = arith.mulf %731, %731 : vector<32x64xf32>
    %cst_234 = arith.constant dense<0.000000e+00> : vector<32xf32>
    %737 = vector.multi_reduction <add>, %736, %cst_234 [1] : vector<32x64xf32> to vector<32xf32>
    %738 = vector.shape_cast %737 : vector<32xf32> to vector<32x1xf32>
    %cst_235 = arith.constant 1.562500e-02 : f32
    %739 = vector.broadcast %cst_235 : f32 to vector<32x1xf32>
    %740 = arith.mulf %735, %739 : vector<32x1xf32>
    %cst_236 = arith.constant 1.562500e-02 : f32
    %741 = vector.broadcast %cst_236 : f32 to vector<32x1xf32>
    %742 = arith.mulf %738, %741 : vector<32x1xf32>
    %743 = arith.mulf %740, %740 : vector<32x1xf32>
    %744 = arith.subf %742, %743 : vector<32x1xf32>
    %cst_237 = arith.constant 9.99999974E-6 : f32
    %745 = vector.broadcast %cst_237 : f32 to vector<32x1xf32>
    %746 = arith.addf %744, %745 : vector<32x1xf32>
    %747 = math.rsqrt %746 : vector<32x1xf32>
    %748 = arith.mulf %732, %747 : vector<32x1xf32>
    %749 = arith.mulf %740, %748 : vector<32x1xf32>
    %750 = arith.subf %733, %749 : vector<32x1xf32>
    %751 = vector.broadcast %748 : vector<32x1xf32> to vector<32x64xf32>
    %752 = arith.mulf %731, %751 : vector<32x64xf32>
    %753 = vector.broadcast %750 : vector<32x1xf32> to vector<32x64xf32>
    %754 = arith.addf %752, %753 : vector<32x64xf32>
    %cst_238 = arith.constant 0.000000e+00 : f32
    %755 = vector.broadcast %cst_238 : f32 to vector<32x64xf32>
    %756 = arith.maximumf %754, %755 : vector<32x64xf32>
    %757 = tpu.iota {dimensions = array<i32: 0>} : vector<64x1xi32>
    %c0_i32_239 = arith.constant 0 : i32
    %758 = vector.broadcast %c0_i32_239 : i32 to vector<64x1xi32>
    %c32_i32_240 = arith.constant 32 : i32
    %759 = vector.broadcast %c32_i32_240 : i32 to vector<64x1xi32>
    %760 = arith.cmpi sge, %757, %759 : vector<64x1xi32>
    %c1_i32_241 = arith.constant 1 : i32
    %761 = vector.broadcast %c1_i32_241 : i32 to vector<64x1xi32>
    %762 = arith.select %760, %761, %758 : vector<64x1xi1>, vector<64x1xi32>
    %c32_i32_242 = arith.constant 32 : i32
    %763 = vector.broadcast %c32_i32_242 : i32 to vector<64x1xi32>
    %764 = arith.subi %757, %763 : vector<64x1xi32>
    %765 = arith.select %760, %764, %757 : vector<64x1xi1>, vector<64x1xi32>
    %766 = tpu.iota {dimensions = array<i32: 1>} : vector<1x64xi32>
    %c0_i32_243 = arith.constant 0 : i32
    %767 = vector.broadcast %c0_i32_243 : i32 to vector<1x64xi32>
    %c32_i32_244 = arith.constant 32 : i32
    %768 = vector.broadcast %c32_i32_244 : i32 to vector<1x64xi32>
    %769 = arith.cmpi sge, %766, %768 : vector<1x64xi32>
    %c1_i32_245 = arith.constant 1 : i32
    %770 = vector.broadcast %c1_i32_245 : i32 to vector<1x64xi32>
    %771 = arith.select %769, %770, %767 : vector<1x64xi1>, vector<1x64xi32>
    %c32_i32_246 = arith.constant 32 : i32
    %772 = vector.broadcast %c32_i32_246 : i32 to vector<1x64xi32>
    %773 = arith.subi %766, %772 : vector<1x64xi32>
    %774 = arith.select %769, %773, %766 : vector<1x64xi1>, vector<1x64xi32>
    %775 = vector.broadcast %762 : vector<64x1xi32> to vector<64x64xi32>
    %776 = vector.broadcast %771 : vector<1x64xi32> to vector<64x64xi32>
    %777 = arith.cmpi eq, %775, %776 : vector<64x64xi32>
    %c-2_i32_247 = arith.constant -2 : i32
    %778 = vector.broadcast %c-2_i32_247 : i32 to vector<1x64xi32>
    %779 = arith.addi %774, %778 : vector<1x64xi32>
    %780 = vector.broadcast %765 : vector<64x1xi32> to vector<64x64xi32>
    %781 = vector.broadcast %779 : vector<1x64xi32> to vector<64x64xi32>
    %782 = arith.cmpi eq, %780, %781 : vector<64x64xi32>
    %783 = arith.andi %777, %782 : vector<64x64xi1>
    %784 = arith.extui %783 : vector<64x64xi1> to vector<64x64xi32>
    %785 = arith.sitofp %784 : vector<64x64xi32> to vector<64x64xf32>
    %cst_248 = arith.constant dense<0.000000e+00> : vector<32x64xf32>
    %786 = tpu.matmul %756, %785, %cst_248 {dimension_numbers = #tpu.dot_dimension_numbers<[1], [0], [0], [1], [0, 0, 1, 1], [], []>} : vector<32x64xf32>, vector<64x64xf32>, vector<32x64xf32> -> vector<32x64xf32>
    %c-1_i32_249 = arith.constant -1 : i32
    %787 = vector.broadcast %c-1_i32_249 : i32 to vector<1x64xi32>
    %788 = arith.addi %774, %787 : vector<1x64xi32>
    %789 = vector.broadcast %765 : vector<64x1xi32> to vector<64x64xi32>
    %790 = vector.broadcast %788 : vector<1x64xi32> to vector<64x64xi32>
    %791 = arith.cmpi eq, %789, %790 : vector<64x64xi32>
    %792 = arith.andi %777, %791 : vector<64x64xi1>
    %793 = arith.extui %792 : vector<64x64xi1> to vector<64x64xi32>
    %794 = arith.sitofp %793 : vector<64x64xi32> to vector<64x64xf32>
    %cst_250 = arith.constant dense<0.000000e+00> : vector<32x64xf32>
    %795 = tpu.matmul %756, %794, %cst_250 {dimension_numbers = #tpu.dot_dimension_numbers<[1], [0], [0], [1], [0, 0, 1, 1], [], []>} : vector<32x64xf32>, vector<64x64xf32>, vector<32x64xf32> -> vector<32x64xf32>
    %c1_i32_251 = arith.constant 1 : i32
    %796 = vector.broadcast %c1_i32_251 : i32 to vector<1x64xi32>
    %797 = arith.addi %774, %796 : vector<1x64xi32>
    %798 = vector.broadcast %765 : vector<64x1xi32> to vector<64x64xi32>
    %799 = vector.broadcast %797 : vector<1x64xi32> to vector<64x64xi32>
    %800 = arith.cmpi eq, %798, %799 : vector<64x64xi32>
    %801 = arith.andi %777, %800 : vector<64x64xi1>
    %802 = arith.extui %801 : vector<64x64xi1> to vector<64x64xi32>
    %803 = arith.sitofp %802 : vector<64x64xi32> to vector<64x64xf32>
    %cst_252 = arith.constant dense<0.000000e+00> : vector<32x64xf32>
    %804 = tpu.matmul %756, %803, %cst_252 {dimension_numbers = #tpu.dot_dimension_numbers<[1], [0], [0], [1], [0, 0, 1, 1], [], []>} : vector<32x64xf32>, vector<64x64xf32>, vector<32x64xf32> -> vector<32x64xf32>
    %c2_i32_253 = arith.constant 2 : i32
    %805 = vector.broadcast %c2_i32_253 : i32 to vector<1x64xi32>
    %806 = arith.addi %774, %805 : vector<1x64xi32>
    %807 = vector.broadcast %765 : vector<64x1xi32> to vector<64x64xi32>
    %808 = vector.broadcast %806 : vector<1x64xi32> to vector<64x64xi32>
    %809 = arith.cmpi eq, %807, %808 : vector<64x64xi32>
    %810 = arith.andi %777, %809 : vector<64x64xi1>
    %811 = arith.extui %810 : vector<64x64xi1> to vector<64x64xi32>
    %812 = arith.sitofp %811 : vector<64x64xi32> to vector<64x64xf32>
    %cst_254 = arith.constant dense<0.000000e+00> : vector<32x64xf32>
    %813 = tpu.matmul %756, %812, %cst_254 {dimension_numbers = #tpu.dot_dimension_numbers<[1], [0], [0], [1], [0, 0, 1, 1], [], []>} : vector<32x64xf32>, vector<64x64xf32>, vector<32x64xf32> -> vector<32x64xf32>
    %814 = tpu.concatenate %786, %795, %756, %804, %813 in 0 : vector<32x64xf32>, vector<32x64xf32>, vector<32x64xf32>, vector<32x64xf32>, vector<32x64xf32> -> vector<160x64xf32>
    %c240_255 = arith.constant 240 : index
    %c0_256 = arith.constant 0 : index
    %815 = vector.load %arg1[%c240_255, %c0_256] : memref<296x192xf32, #tpu.memory_space<vmem>>, vector<16x160xf32>
    %cst_257 = arith.constant dense<0.000000e+00> : vector<16x64xf32>
    %816 = tpu.matmul %815, %814, %cst_257 {dimension_numbers = #tpu.dot_dimension_numbers<[1], [0], [0], [1], [0, 0, 1, 1], [], []>} : vector<16x160xf32>, vector<160x64xf32>, vector<16x64xf32> -> vector<16x64xf32>
    %c304 = arith.constant 304 : index
    %c0_258 = arith.constant 0 : index
    %817 = vector.load %arg2[%c304, %c0_258] : memref<360x2xf32, #tpu.memory_space<vmem>>, vector<16x1xf32>
    %c304_259 = arith.constant 304 : index
    %c1_260 = arith.constant 1 : index
    %818 = vector.load %arg2[%c304_259, %c1_260] : memref<360x2xf32, #tpu.memory_space<vmem>>, vector<16x1xf32>
    %cst_261 = arith.constant dense<0.000000e+00> : vector<16xf32>
    %819 = vector.multi_reduction <add>, %816, %cst_261 [1] : vector<16x64xf32> to vector<16xf32>
    %820 = vector.shape_cast %819 : vector<16xf32> to vector<16x1xf32>
    %821 = arith.mulf %816, %816 : vector<16x64xf32>
    %cst_262 = arith.constant dense<0.000000e+00> : vector<16xf32>
    %822 = vector.multi_reduction <add>, %821, %cst_262 [1] : vector<16x64xf32> to vector<16xf32>
    %823 = vector.shape_cast %822 : vector<16xf32> to vector<16x1xf32>
    %cst_263 = arith.constant 1.562500e-02 : f32
    %824 = vector.broadcast %cst_263 : f32 to vector<16x1xf32>
    %825 = arith.mulf %820, %824 : vector<16x1xf32>
    %cst_264 = arith.constant 1.562500e-02 : f32
    %826 = vector.broadcast %cst_264 : f32 to vector<16x1xf32>
    %827 = arith.mulf %823, %826 : vector<16x1xf32>
    %828 = arith.mulf %825, %825 : vector<16x1xf32>
    %829 = arith.subf %827, %828 : vector<16x1xf32>
    %cst_265 = arith.constant 9.99999974E-6 : f32
    %830 = vector.broadcast %cst_265 : f32 to vector<16x1xf32>
    %831 = arith.addf %829, %830 : vector<16x1xf32>
    %832 = math.rsqrt %831 : vector<16x1xf32>
    %833 = arith.mulf %817, %832 : vector<16x1xf32>
    %834 = arith.mulf %825, %833 : vector<16x1xf32>
    %835 = arith.subf %818, %834 : vector<16x1xf32>
    %836 = vector.broadcast %833 : vector<16x1xf32> to vector<16x64xf32>
    %837 = arith.mulf %816, %836 : vector<16x64xf32>
    %838 = vector.broadcast %835 : vector<16x1xf32> to vector<16x64xf32>
    %839 = arith.addf %837, %838 : vector<16x64xf32>
    %cst_266 = arith.constant 0.000000e+00 : f32
    %840 = vector.broadcast %cst_266 : f32 to vector<16x64xf32>
    %841 = arith.maximumf %839, %840 : vector<16x64xf32>
    %c480 = arith.constant 480 : index
    %c0_267 = arith.constant 0 : index
    %842 = vector.load %arg3[%c480, %c0_267] : memref<672x256xf32, #tpu.memory_space<vmem>>, vector<64x128xf32>
    %cst_268 = arith.constant dense<0.000000e+00> : vector<16x128xf32>
    %843 = tpu.matmul %841, %842, %cst_268 {dimension_numbers = #tpu.dot_dimension_numbers<[1], [0], [0], [1], [0, 0, 1, 1], [], []>} : vector<16x64xf32>, vector<64x128xf32>, vector<16x128xf32> -> vector<16x128xf32>
    %844 = tpu.iota {dimensions = array<i32: 1>} : vector<1x128xi32>
    %c64_i32_269 = arith.constant 64 : i32
    %845 = vector.broadcast %c64_i32_269 : i32 to vector<1x128xi32>
    %846 = arith.cmpi sge, %844, %845 : vector<1x128xi32>
    %c64_i32_270 = arith.constant 64 : i32
    %847 = vector.broadcast %c64_i32_270 : i32 to vector<1x128xi32>
    %848 = arith.subi %844, %847 : vector<1x128xi32>
    %849 = arith.select %846, %848, %844 : vector<1x128xi1>, vector<1x128xi32>
    %c3_i32_271 = arith.constant 3 : i32
    %850 = tpu.dynamic_rotate %843 by %c3_i32_271 dim 1 : vector<16x128xf32>, i32 -> vector<16x128xf32>
    %c3_i32_272 = arith.constant 3 : i32
    %851 = vector.broadcast %c3_i32_272 : i32 to vector<1x128xi32>
    %852 = arith.cmpi sge, %849, %851 : vector<1x128xi32>
    %853 = arith.extui %852 : vector<1x128xi1> to vector<1x128xi32>
    %854 = arith.sitofp %853 : vector<1x128xi32> to vector<1x128xf32>
    %855 = vector.broadcast %854 : vector<1x128xf32> to vector<16x128xf32>
    %856 = arith.mulf %850, %855 : vector<16x128xf32>
    %c2_i32_273 = arith.constant 2 : i32
    %857 = tpu.dynamic_rotate %843 by %c2_i32_273 dim 1 : vector<16x128xf32>, i32 -> vector<16x128xf32>
    %c2_i32_274 = arith.constant 2 : i32
    %858 = vector.broadcast %c2_i32_274 : i32 to vector<1x128xi32>
    %859 = arith.cmpi sge, %849, %858 : vector<1x128xi32>
    %860 = arith.extui %859 : vector<1x128xi1> to vector<1x128xi32>
    %861 = arith.sitofp %860 : vector<1x128xi32> to vector<1x128xf32>
    %862 = vector.broadcast %861 : vector<1x128xf32> to vector<16x128xf32>
    %863 = arith.mulf %857, %862 : vector<16x128xf32>
    %c1_i32_275 = arith.constant 1 : i32
    %864 = tpu.dynamic_rotate %843 by %c1_i32_275 dim 1 : vector<16x128xf32>, i32 -> vector<16x128xf32>
    %c1_i32_276 = arith.constant 1 : i32
    %865 = vector.broadcast %c1_i32_276 : i32 to vector<1x128xi32>
    %866 = arith.cmpi sge, %849, %865 : vector<1x128xi32>
    %867 = arith.extui %866 : vector<1x128xi1> to vector<1x128xi32>
    %868 = arith.sitofp %867 : vector<1x128xi32> to vector<1x128xf32>
    %869 = vector.broadcast %868 : vector<1x128xf32> to vector<16x128xf32>
    %870 = arith.mulf %864, %869 : vector<16x128xf32>
    %c127_i32_277 = arith.constant 127 : i32
    %871 = tpu.dynamic_rotate %843 by %c127_i32_277 dim 1 : vector<16x128xf32>, i32 -> vector<16x128xf32>
    %c63_i32_278 = arith.constant 63 : i32
    %872 = vector.broadcast %c63_i32_278 : i32 to vector<1x128xi32>
    %873 = arith.cmpi slt, %849, %872 : vector<1x128xi32>
    %874 = arith.extui %873 : vector<1x128xi1> to vector<1x128xi32>
    %875 = arith.sitofp %874 : vector<1x128xi32> to vector<1x128xf32>
    %876 = vector.broadcast %875 : vector<1x128xf32> to vector<16x128xf32>
    %877 = arith.mulf %871, %876 : vector<16x128xf32>
    %c126_i32_279 = arith.constant 126 : i32
    %878 = tpu.dynamic_rotate %843 by %c126_i32_279 dim 1 : vector<16x128xf32>, i32 -> vector<16x128xf32>
    %c62_i32_280 = arith.constant 62 : i32
    %879 = vector.broadcast %c62_i32_280 : i32 to vector<1x128xi32>
    %880 = arith.cmpi slt, %849, %879 : vector<1x128xi32>
    %881 = arith.extui %880 : vector<1x128xi1> to vector<1x128xi32>
    %882 = arith.sitofp %881 : vector<1x128xi32> to vector<1x128xf32>
    %883 = vector.broadcast %882 : vector<1x128xf32> to vector<16x128xf32>
    %884 = arith.mulf %878, %883 : vector<16x128xf32>
    %c125_i32_281 = arith.constant 125 : i32
    %885 = tpu.dynamic_rotate %843 by %c125_i32_281 dim 1 : vector<16x128xf32>, i32 -> vector<16x128xf32>
    %c61_i32_282 = arith.constant 61 : i32
    %886 = vector.broadcast %c61_i32_282 : i32 to vector<1x128xi32>
    %887 = arith.cmpi slt, %849, %886 : vector<1x128xi32>
    %888 = arith.extui %887 : vector<1x128xi1> to vector<1x128xi32>
    %889 = arith.sitofp %888 : vector<1x128xi32> to vector<1x128xf32>
    %890 = vector.broadcast %889 : vector<1x128xf32> to vector<16x128xf32>
    %891 = arith.mulf %885, %890 : vector<16x128xf32>
    %892 = tpu.concatenate %856, %863, %870, %843, %877, %884, %891 in 0 : vector<16x128xf32>, vector<16x128xf32>, vector<16x128xf32>, vector<16x128xf32>, vector<16x128xf32>, vector<16x128xf32>, vector<16x128xf32> -> vector<112x128xf32>
    %c256_283 = arith.constant 256 : index
    %c0_284 = arith.constant 0 : index
    %893 = vector.load %arg1[%c256_283, %c0_284] : memref<296x192xf32, #tpu.memory_space<vmem>>, vector<16x112xf32>
    %cst_285 = arith.constant dense<0.000000e+00> : vector<16x128xf32>
    %894 = tpu.matmul %893, %892, %cst_285 {dimension_numbers = #tpu.dot_dimension_numbers<[1], [0], [0], [1], [0, 0, 1, 1], [], []>} : vector<16x112xf32>, vector<112x128xf32>, vector<16x128xf32> -> vector<16x128xf32>
    %895 = arith.addf %894, %233 : vector<16x128xf32>
    %c320 = arith.constant 320 : index
    %c0_286 = arith.constant 0 : index
    %896 = vector.load %arg2[%c320, %c0_286] : memref<360x2xf32, #tpu.memory_space<vmem>>, vector<16x1xf32>
    %c320_287 = arith.constant 320 : index
    %c1_288 = arith.constant 1 : index
    %897 = vector.load %arg2[%c320_287, %c1_288] : memref<360x2xf32, #tpu.memory_space<vmem>>, vector<16x1xf32>
    %cst_289 = arith.constant dense<0.000000e+00> : vector<16xf32>
    %898 = vector.multi_reduction <add>, %895, %cst_289 [1] : vector<16x128xf32> to vector<16xf32>
    %899 = vector.shape_cast %898 : vector<16xf32> to vector<16x1xf32>
    %900 = arith.mulf %895, %895 : vector<16x128xf32>
    %cst_290 = arith.constant dense<0.000000e+00> : vector<16xf32>
    %901 = vector.multi_reduction <add>, %900, %cst_290 [1] : vector<16x128xf32> to vector<16xf32>
    %902 = vector.shape_cast %901 : vector<16xf32> to vector<16x1xf32>
    %cst_291 = arith.constant 7.812500e-03 : f32
    %903 = vector.broadcast %cst_291 : f32 to vector<16x1xf32>
    %904 = arith.mulf %899, %903 : vector<16x1xf32>
    %cst_292 = arith.constant 7.812500e-03 : f32
    %905 = vector.broadcast %cst_292 : f32 to vector<16x1xf32>
    %906 = arith.mulf %902, %905 : vector<16x1xf32>
    %907 = arith.mulf %904, %904 : vector<16x1xf32>
    %908 = arith.subf %906, %907 : vector<16x1xf32>
    %cst_293 = arith.constant 9.99999974E-6 : f32
    %909 = vector.broadcast %cst_293 : f32 to vector<16x1xf32>
    %910 = arith.addf %908, %909 : vector<16x1xf32>
    %911 = math.rsqrt %910 : vector<16x1xf32>
    %912 = arith.mulf %896, %911 : vector<16x1xf32>
    %913 = arith.mulf %904, %912 : vector<16x1xf32>
    %914 = arith.subf %897, %913 : vector<16x1xf32>
    %915 = vector.broadcast %912 : vector<16x1xf32> to vector<16x128xf32>
    %916 = arith.mulf %895, %915 : vector<16x128xf32>
    %917 = vector.broadcast %914 : vector<16x1xf32> to vector<16x128xf32>
    %918 = arith.addf %916, %917 : vector<16x128xf32>
    %cst_294 = arith.constant 0.000000e+00 : f32
    %919 = vector.broadcast %cst_294 : f32 to vector<16x128xf32>
    %920 = arith.maximumf %918, %919 : vector<16x128xf32>
    %921 = tpu.iota {dimensions = array<i32: 1>} : vector<1x128xi32>
    %c64_i32_295 = arith.constant 64 : i32
    %922 = vector.broadcast %c64_i32_295 : i32 to vector<1x128xi32>
    %923 = arith.cmpi sge, %921, %922 : vector<1x128xi32>
    %c64_i32_296 = arith.constant 64 : i32
    %924 = vector.broadcast %c64_i32_296 : i32 to vector<1x128xi32>
    %925 = arith.subi %921, %924 : vector<1x128xi32>
    %926 = arith.select %923, %925, %921 : vector<1x128xi1>, vector<1x128xi32>
    %c3_i32_297 = arith.constant 3 : i32
    %927 = tpu.dynamic_rotate %920 by %c3_i32_297 dim 1 : vector<16x128xf32>, i32 -> vector<16x128xf32>
    %c3_i32_298 = arith.constant 3 : i32
    %928 = vector.broadcast %c3_i32_298 : i32 to vector<1x128xi32>
    %929 = arith.cmpi sge, %926, %928 : vector<1x128xi32>
    %930 = arith.extui %929 : vector<1x128xi1> to vector<1x128xi32>
    %931 = arith.sitofp %930 : vector<1x128xi32> to vector<1x128xf32>
    %932 = vector.broadcast %931 : vector<1x128xf32> to vector<16x128xf32>
    %933 = arith.mulf %927, %932 : vector<16x128xf32>
    %c2_i32_299 = arith.constant 2 : i32
    %934 = tpu.dynamic_rotate %920 by %c2_i32_299 dim 1 : vector<16x128xf32>, i32 -> vector<16x128xf32>
    %c2_i32_300 = arith.constant 2 : i32
    %935 = vector.broadcast %c2_i32_300 : i32 to vector<1x128xi32>
    %936 = arith.cmpi sge, %926, %935 : vector<1x128xi32>
    %937 = arith.extui %936 : vector<1x128xi1> to vector<1x128xi32>
    %938 = arith.sitofp %937 : vector<1x128xi32> to vector<1x128xf32>
    %939 = vector.broadcast %938 : vector<1x128xf32> to vector<16x128xf32>
    %940 = arith.mulf %934, %939 : vector<16x128xf32>
    %c1_i32_301 = arith.constant 1 : i32
    %941 = tpu.dynamic_rotate %920 by %c1_i32_301 dim 1 : vector<16x128xf32>, i32 -> vector<16x128xf32>
    %c1_i32_302 = arith.constant 1 : i32
    %942 = vector.broadcast %c1_i32_302 : i32 to vector<1x128xi32>
    %943 = arith.cmpi sge, %926, %942 : vector<1x128xi32>
    %944 = arith.extui %943 : vector<1x128xi1> to vector<1x128xi32>
    %945 = arith.sitofp %944 : vector<1x128xi32> to vector<1x128xf32>
    %946 = vector.broadcast %945 : vector<1x128xf32> to vector<16x128xf32>
    %947 = arith.mulf %941, %946 : vector<16x128xf32>
    %c127_i32_303 = arith.constant 127 : i32
    %948 = tpu.dynamic_rotate %920 by %c127_i32_303 dim 1 : vector<16x128xf32>, i32 -> vector<16x128xf32>
    %c63_i32_304 = arith.constant 63 : i32
    %949 = vector.broadcast %c63_i32_304 : i32 to vector<1x128xi32>
    %950 = arith.cmpi slt, %926, %949 : vector<1x128xi32>
    %951 = arith.extui %950 : vector<1x128xi1> to vector<1x128xi32>
    %952 = arith.sitofp %951 : vector<1x128xi32> to vector<1x128xf32>
    %953 = vector.broadcast %952 : vector<1x128xf32> to vector<16x128xf32>
    %954 = arith.mulf %948, %953 : vector<16x128xf32>
    %c126_i32_305 = arith.constant 126 : i32
    %955 = tpu.dynamic_rotate %920 by %c126_i32_305 dim 1 : vector<16x128xf32>, i32 -> vector<16x128xf32>
    %c62_i32_306 = arith.constant 62 : i32
    %956 = vector.broadcast %c62_i32_306 : i32 to vector<1x128xi32>
    %957 = arith.cmpi slt, %926, %956 : vector<1x128xi32>
    %958 = arith.extui %957 : vector<1x128xi1> to vector<1x128xi32>
    %959 = arith.sitofp %958 : vector<1x128xi32> to vector<1x128xf32>
    %960 = vector.broadcast %959 : vector<1x128xf32> to vector<16x128xf32>
    %961 = arith.mulf %955, %960 : vector<16x128xf32>
    %c125_i32_307 = arith.constant 125 : i32
    %962 = tpu.dynamic_rotate %920 by %c125_i32_307 dim 1 : vector<16x128xf32>, i32 -> vector<16x128xf32>
    %c61_i32_308 = arith.constant 61 : i32
    %963 = vector.broadcast %c61_i32_308 : i32 to vector<1x128xi32>
    %964 = arith.cmpi slt, %926, %963 : vector<1x128xi32>
    %965 = arith.extui %964 : vector<1x128xi1> to vector<1x128xi32>
    %966 = arith.sitofp %965 : vector<1x128xi32> to vector<1x128xf32>
    %967 = vector.broadcast %966 : vector<1x128xf32> to vector<16x128xf32>
    %968 = arith.mulf %962, %967 : vector<16x128xf32>
    %969 = tpu.concatenate %933, %940, %947, %920, %954, %961, %968 in 0 : vector<16x128xf32>, vector<16x128xf32>, vector<16x128xf32>, vector<16x128xf32>, vector<16x128xf32>, vector<16x128xf32>, vector<16x128xf32> -> vector<112x128xf32>
    %c272_309 = arith.constant 272 : index
    %c0_310 = arith.constant 0 : index
    %970 = vector.load %arg1[%c272_309, %c0_310] : memref<296x192xf32, #tpu.memory_space<vmem>>, vector<8x112xf32>
    %cst_311 = arith.constant dense<0.000000e+00> : vector<8x128xf32>
    %971 = tpu.matmul %970, %969, %cst_311 {dimension_numbers = #tpu.dot_dimension_numbers<[1], [0], [0], [1], [0, 0, 1, 1], [], []>} : vector<8x112xf32>, vector<112x128xf32>, vector<8x128xf32> -> vector<8x128xf32>
    %c336 = arith.constant 336 : index
    %c0_312 = arith.constant 0 : index
    %972 = vector.load %arg2[%c336, %c0_312] : memref<360x2xf32, #tpu.memory_space<vmem>>, vector<8x1xf32>
    %c336_313 = arith.constant 336 : index
    %c1_314 = arith.constant 1 : index
    %973 = vector.load %arg2[%c336_313, %c1_314] : memref<360x2xf32, #tpu.memory_space<vmem>>, vector<8x1xf32>
    %cst_315 = arith.constant dense<0.000000e+00> : vector<8xf32>
    %974 = vector.multi_reduction <add>, %971, %cst_315 [1] : vector<8x128xf32> to vector<8xf32>
    %975 = vector.shape_cast %974 : vector<8xf32> to vector<8x1xf32>
    %976 = arith.mulf %971, %971 : vector<8x128xf32>
    %cst_316 = arith.constant dense<0.000000e+00> : vector<8xf32>
    %977 = vector.multi_reduction <add>, %976, %cst_316 [1] : vector<8x128xf32> to vector<8xf32>
    %978 = vector.shape_cast %977 : vector<8xf32> to vector<8x1xf32>
    %cst_317 = arith.constant 7.812500e-03 : f32
    %979 = vector.broadcast %cst_317 : f32 to vector<8x1xf32>
    %980 = arith.mulf %975, %979 : vector<8x1xf32>
    %cst_318 = arith.constant 7.812500e-03 : f32
    %981 = vector.broadcast %cst_318 : f32 to vector<8x1xf32>
    %982 = arith.mulf %978, %981 : vector<8x1xf32>
    %983 = arith.mulf %980, %980 : vector<8x1xf32>
    %984 = arith.subf %982, %983 : vector<8x1xf32>
    %cst_319 = arith.constant 9.99999974E-6 : f32
    %985 = vector.broadcast %cst_319 : f32 to vector<8x1xf32>
    %986 = arith.addf %984, %985 : vector<8x1xf32>
    %987 = math.rsqrt %986 : vector<8x1xf32>
    %988 = arith.mulf %972, %987 : vector<8x1xf32>
    %989 = arith.mulf %980, %988 : vector<8x1xf32>
    %990 = arith.subf %973, %989 : vector<8x1xf32>
    %991 = vector.broadcast %988 : vector<8x1xf32> to vector<8x128xf32>
    %992 = arith.mulf %971, %991 : vector<8x128xf32>
    %993 = vector.broadcast %990 : vector<8x1xf32> to vector<8x128xf32>
    %994 = arith.addf %992, %993 : vector<8x128xf32>
    %cst_320 = arith.constant 0.000000e+00 : f32
    %995 = vector.broadcast %cst_320 : f32 to vector<8x128xf32>
    %996 = arith.maximumf %994, %995 : vector<8x128xf32>
    %c544 = arith.constant 544 : index
    %c0_321 = arith.constant 0 : index
    %997 = vector.load %arg3[%c544, %c0_321] : memref<672x256xf32, #tpu.memory_space<vmem>>, vector<128x256xf32>
    %cst_322 = arith.constant dense<0.000000e+00> : vector<8x256xf32>
    %998 = tpu.matmul %996, %997, %cst_322 {dimension_numbers = #tpu.dot_dimension_numbers<[1], [0], [0], [1], [0, 0, 1, 1], [], []>} : vector<8x128xf32>, vector<128x256xf32>, vector<8x256xf32> -> vector<8x256xf32>
    %999 = tpu.iota {dimensions = array<i32: 1>} : vector<1x256xi32>
    %c128_i32_323 = arith.constant 128 : i32
    %1000 = vector.broadcast %c128_i32_323 : i32 to vector<1x256xi32>
    %1001 = arith.cmpi sge, %999, %1000 : vector<1x256xi32>
    %c128_i32_324 = arith.constant 128 : i32
    %1002 = vector.broadcast %c128_i32_324 : i32 to vector<1x256xi32>
    %1003 = arith.subi %999, %1002 : vector<1x256xi32>
    %1004 = arith.select %1001, %1003, %999 : vector<1x256xi1>, vector<1x256xi32>
    %c4_i32_325 = arith.constant 4 : i32
    %1005 = tpu.dynamic_rotate %998 by %c4_i32_325 dim 1 : vector<8x256xf32>, i32 -> vector<8x256xf32>
    %c4_i32_326 = arith.constant 4 : i32
    %1006 = vector.broadcast %c4_i32_326 : i32 to vector<1x256xi32>
    %1007 = arith.cmpi sge, %1004, %1006 : vector<1x256xi32>
    %1008 = arith.extui %1007 : vector<1x256xi1> to vector<1x256xi32>
    %1009 = arith.sitofp %1008 : vector<1x256xi32> to vector<1x256xf32>
    %1010 = vector.broadcast %1009 : vector<1x256xf32> to vector<8x256xf32>
    %1011 = arith.mulf %1005, %1010 : vector<8x256xf32>
    %c3_i32_327 = arith.constant 3 : i32
    %1012 = tpu.dynamic_rotate %998 by %c3_i32_327 dim 1 : vector<8x256xf32>, i32 -> vector<8x256xf32>
    %c3_i32_328 = arith.constant 3 : i32
    %1013 = vector.broadcast %c3_i32_328 : i32 to vector<1x256xi32>
    %1014 = arith.cmpi sge, %1004, %1013 : vector<1x256xi32>
    %1015 = arith.extui %1014 : vector<1x256xi1> to vector<1x256xi32>
    %1016 = arith.sitofp %1015 : vector<1x256xi32> to vector<1x256xf32>
    %1017 = vector.broadcast %1016 : vector<1x256xf32> to vector<8x256xf32>
    %1018 = arith.mulf %1012, %1017 : vector<8x256xf32>
    %c2_i32_329 = arith.constant 2 : i32
    %1019 = tpu.dynamic_rotate %998 by %c2_i32_329 dim 1 : vector<8x256xf32>, i32 -> vector<8x256xf32>
    %c2_i32_330 = arith.constant 2 : i32
    %1020 = vector.broadcast %c2_i32_330 : i32 to vector<1x256xi32>
    %1021 = arith.cmpi sge, %1004, %1020 : vector<1x256xi32>
    %1022 = arith.extui %1021 : vector<1x256xi1> to vector<1x256xi32>
    %1023 = arith.sitofp %1022 : vector<1x256xi32> to vector<1x256xf32>
    %1024 = vector.broadcast %1023 : vector<1x256xf32> to vector<8x256xf32>
    %1025 = arith.mulf %1019, %1024 : vector<8x256xf32>
    %c1_i32_331 = arith.constant 1 : i32
    %1026 = tpu.dynamic_rotate %998 by %c1_i32_331 dim 1 : vector<8x256xf32>, i32 -> vector<8x256xf32>
    %c1_i32_332 = arith.constant 1 : i32
    %1027 = vector.broadcast %c1_i32_332 : i32 to vector<1x256xi32>
    %1028 = arith.cmpi sge, %1004, %1027 : vector<1x256xi32>
    %1029 = arith.extui %1028 : vector<1x256xi1> to vector<1x256xi32>
    %1030 = arith.sitofp %1029 : vector<1x256xi32> to vector<1x256xf32>
    %1031 = vector.broadcast %1030 : vector<1x256xf32> to vector<8x256xf32>
    %1032 = arith.mulf %1026, %1031 : vector<8x256xf32>
    %c255_i32_333 = arith.constant 255 : i32
    %1033 = tpu.dynamic_rotate %998 by %c255_i32_333 dim 1 : vector<8x256xf32>, i32 -> vector<8x256xf32>
    %c127_i32_334 = arith.constant 127 : i32
    %1034 = vector.broadcast %c127_i32_334 : i32 to vector<1x256xi32>
    %1035 = arith.cmpi slt, %1004, %1034 : vector<1x256xi32>
    %1036 = arith.extui %1035 : vector<1x256xi1> to vector<1x256xi32>
    %1037 = arith.sitofp %1036 : vector<1x256xi32> to vector<1x256xf32>
    %1038 = vector.broadcast %1037 : vector<1x256xf32> to vector<8x256xf32>
    %1039 = arith.mulf %1033, %1038 : vector<8x256xf32>
    %c254_i32_335 = arith.constant 254 : i32
    %1040 = tpu.dynamic_rotate %998 by %c254_i32_335 dim 1 : vector<8x256xf32>, i32 -> vector<8x256xf32>
    %c126_i32_336 = arith.constant 126 : i32
    %1041 = vector.broadcast %c126_i32_336 : i32 to vector<1x256xi32>
    %1042 = arith.cmpi slt, %1004, %1041 : vector<1x256xi32>
    %1043 = arith.extui %1042 : vector<1x256xi1> to vector<1x256xi32>
    %1044 = arith.sitofp %1043 : vector<1x256xi32> to vector<1x256xf32>
    %1045 = vector.broadcast %1044 : vector<1x256xf32> to vector<8x256xf32>
    %1046 = arith.mulf %1040, %1045 : vector<8x256xf32>
    %c253_i32_337 = arith.constant 253 : i32
    %1047 = tpu.dynamic_rotate %998 by %c253_i32_337 dim 1 : vector<8x256xf32>, i32 -> vector<8x256xf32>
    %c125_i32_338 = arith.constant 125 : i32
    %1048 = vector.broadcast %c125_i32_338 : i32 to vector<1x256xi32>
    %1049 = arith.cmpi slt, %1004, %1048 : vector<1x256xi32>
    %1050 = arith.extui %1049 : vector<1x256xi1> to vector<1x256xi32>
    %1051 = arith.sitofp %1050 : vector<1x256xi32> to vector<1x256xf32>
    %1052 = vector.broadcast %1051 : vector<1x256xf32> to vector<8x256xf32>
    %1053 = arith.mulf %1047, %1052 : vector<8x256xf32>
    %c252_i32_339 = arith.constant 252 : i32
    %1054 = tpu.dynamic_rotate %998 by %c252_i32_339 dim 1 : vector<8x256xf32>, i32 -> vector<8x256xf32>
    %c124_i32_340 = arith.constant 124 : i32
    %1055 = vector.broadcast %c124_i32_340 : i32 to vector<1x256xi32>
    %1056 = arith.cmpi slt, %1004, %1055 : vector<1x256xi32>
    %1057 = arith.extui %1056 : vector<1x256xi1> to vector<1x256xi32>
    %1058 = arith.sitofp %1057 : vector<1x256xi32> to vector<1x256xf32>
    %1059 = vector.broadcast %1058 : vector<1x256xf32> to vector<8x256xf32>
    %1060 = arith.mulf %1054, %1059 : vector<8x256xf32>
    %1061 = tpu.concatenate %1011, %1018, %1025, %1032, %998, %1039, %1046, %1053, %1060 in 0 : vector<8x256xf32>, vector<8x256xf32>, vector<8x256xf32>, vector<8x256xf32>, vector<8x256xf32>, vector<8x256xf32>, vector<8x256xf32>, vector<8x256xf32>, vector<8x256xf32> -> vector<72x256xf32>
    %c280 = arith.constant 280 : index
    %c0_341 = arith.constant 0 : index
    %1062 = vector.load %arg1[%c280, %c0_341] : memref<296x192xf32, #tpu.memory_space<vmem>>, vector<8x72xf32>
    %cst_342 = arith.constant dense<0.000000e+00> : vector<8x256xf32>
    %1063 = tpu.matmul %1062, %1061, %cst_342 {dimension_numbers = #tpu.dot_dimension_numbers<[1], [0], [0], [1], [0, 0, 1, 1], [], []>} : vector<8x72xf32>, vector<72x256xf32>, vector<8x256xf32> -> vector<8x256xf32>
    %c344 = arith.constant 344 : index
    %c0_343 = arith.constant 0 : index
    %1064 = vector.load %arg2[%c344, %c0_343] : memref<360x2xf32, #tpu.memory_space<vmem>>, vector<8x1xf32>
    %c344_344 = arith.constant 344 : index
    %c1_345 = arith.constant 1 : index
    %1065 = vector.load %arg2[%c344_344, %c1_345] : memref<360x2xf32, #tpu.memory_space<vmem>>, vector<8x1xf32>
    %cst_346 = arith.constant dense<0.000000e+00> : vector<8xf32>
    %1066 = vector.multi_reduction <add>, %1063, %cst_346 [1] : vector<8x256xf32> to vector<8xf32>
    %1067 = vector.shape_cast %1066 : vector<8xf32> to vector<8x1xf32>
    %1068 = arith.mulf %1063, %1063 : vector<8x256xf32>
    %cst_347 = arith.constant dense<0.000000e+00> : vector<8xf32>
    %1069 = vector.multi_reduction <add>, %1068, %cst_347 [1] : vector<8x256xf32> to vector<8xf32>
    %1070 = vector.shape_cast %1069 : vector<8xf32> to vector<8x1xf32>
    %cst_348 = arith.constant 3.906250e-03 : f32
    %1071 = vector.broadcast %cst_348 : f32 to vector<8x1xf32>
    %1072 = arith.mulf %1067, %1071 : vector<8x1xf32>
    %cst_349 = arith.constant 3.906250e-03 : f32
    %1073 = vector.broadcast %cst_349 : f32 to vector<8x1xf32>
    %1074 = arith.mulf %1070, %1073 : vector<8x1xf32>
    %1075 = arith.mulf %1072, %1072 : vector<8x1xf32>
    %1076 = arith.subf %1074, %1075 : vector<8x1xf32>
    %cst_350 = arith.constant 9.99999974E-6 : f32
    %1077 = vector.broadcast %cst_350 : f32 to vector<8x1xf32>
    %1078 = arith.addf %1076, %1077 : vector<8x1xf32>
    %1079 = math.rsqrt %1078 : vector<8x1xf32>
    %1080 = arith.mulf %1064, %1079 : vector<8x1xf32>
    %1081 = arith.mulf %1072, %1080 : vector<8x1xf32>
    %1082 = arith.subf %1065, %1081 : vector<8x1xf32>
    %1083 = vector.broadcast %1080 : vector<8x1xf32> to vector<8x256xf32>
    %1084 = arith.mulf %1063, %1083 : vector<8x256xf32>
    %1085 = vector.broadcast %1082 : vector<8x1xf32> to vector<8x256xf32>
    %1086 = arith.addf %1084, %1085 : vector<8x256xf32>
    %cst_351 = arith.constant 0.000000e+00 : f32
    %1087 = vector.broadcast %cst_351 : f32 to vector<8x256xf32>
    %1088 = arith.maximumf %1086, %1087 : vector<8x256xf32>
    %1089 = tpu.iota {dimensions = array<i32: 1>} : vector<1x256xi32>
    %c128_i32_352 = arith.constant 128 : i32
    %1090 = vector.broadcast %c128_i32_352 : i32 to vector<1x256xi32>
    %1091 = arith.cmpi sge, %1089, %1090 : vector<1x256xi32>
    %c128_i32_353 = arith.constant 128 : i32
    %1092 = vector.broadcast %c128_i32_353 : i32 to vector<1x256xi32>
    %1093 = arith.subi %1089, %1092 : vector<1x256xi32>
    %1094 = arith.select %1091, %1093, %1089 : vector<1x256xi1>, vector<1x256xi32>
    %c4_i32_354 = arith.constant 4 : i32
    %1095 = tpu.dynamic_rotate %1088 by %c4_i32_354 dim 1 : vector<8x256xf32>, i32 -> vector<8x256xf32>
    %c4_i32_355 = arith.constant 4 : i32
    %1096 = vector.broadcast %c4_i32_355 : i32 to vector<1x256xi32>
    %1097 = arith.cmpi sge, %1094, %1096 : vector<1x256xi32>
    %1098 = arith.extui %1097 : vector<1x256xi1> to vector<1x256xi32>
    %1099 = arith.sitofp %1098 : vector<1x256xi32> to vector<1x256xf32>
    %1100 = vector.broadcast %1099 : vector<1x256xf32> to vector<8x256xf32>
    %1101 = arith.mulf %1095, %1100 : vector<8x256xf32>
    %c3_i32_356 = arith.constant 3 : i32
    %1102 = tpu.dynamic_rotate %1088 by %c3_i32_356 dim 1 : vector<8x256xf32>, i32 -> vector<8x256xf32>
    %c3_i32_357 = arith.constant 3 : i32
    %1103 = vector.broadcast %c3_i32_357 : i32 to vector<1x256xi32>
    %1104 = arith.cmpi sge, %1094, %1103 : vector<1x256xi32>
    %1105 = arith.extui %1104 : vector<1x256xi1> to vector<1x256xi32>
    %1106 = arith.sitofp %1105 : vector<1x256xi32> to vector<1x256xf32>
    %1107 = vector.broadcast %1106 : vector<1x256xf32> to vector<8x256xf32>
    %1108 = arith.mulf %1102, %1107 : vector<8x256xf32>
    %c2_i32_358 = arith.constant 2 : i32
    %1109 = tpu.dynamic_rotate %1088 by %c2_i32_358 dim 1 : vector<8x256xf32>, i32 -> vector<8x256xf32>
    %c2_i32_359 = arith.constant 2 : i32
    %1110 = vector.broadcast %c2_i32_359 : i32 to vector<1x256xi32>
    %1111 = arith.cmpi sge, %1094, %1110 : vector<1x256xi32>
    %1112 = arith.extui %1111 : vector<1x256xi1> to vector<1x256xi32>
    %1113 = arith.sitofp %1112 : vector<1x256xi32> to vector<1x256xf32>
    %1114 = vector.broadcast %1113 : vector<1x256xf32> to vector<8x256xf32>
    %1115 = arith.mulf %1109, %1114 : vector<8x256xf32>
    %c1_i32_360 = arith.constant 1 : i32
    %1116 = tpu.dynamic_rotate %1088 by %c1_i32_360 dim 1 : vector<8x256xf32>, i32 -> vector<8x256xf32>
    %c1_i32_361 = arith.constant 1 : i32
    %1117 = vector.broadcast %c1_i32_361 : i32 to vector<1x256xi32>
    %1118 = arith.cmpi sge, %1094, %1117 : vector<1x256xi32>
    %1119 = arith.extui %1118 : vector<1x256xi1> to vector<1x256xi32>
    %1120 = arith.sitofp %1119 : vector<1x256xi32> to vector<1x256xf32>
    %1121 = vector.broadcast %1120 : vector<1x256xf32> to vector<8x256xf32>
    %1122 = arith.mulf %1116, %1121 : vector<8x256xf32>
    %c255_i32_362 = arith.constant 255 : i32
    %1123 = tpu.dynamic_rotate %1088 by %c255_i32_362 dim 1 : vector<8x256xf32>, i32 -> vector<8x256xf32>
    %c127_i32_363 = arith.constant 127 : i32
    %1124 = vector.broadcast %c127_i32_363 : i32 to vector<1x256xi32>
    %1125 = arith.cmpi slt, %1094, %1124 : vector<1x256xi32>
    %1126 = arith.extui %1125 : vector<1x256xi1> to vector<1x256xi32>
    %1127 = arith.sitofp %1126 : vector<1x256xi32> to vector<1x256xf32>
    %1128 = vector.broadcast %1127 : vector<1x256xf32> to vector<8x256xf32>
    %1129 = arith.mulf %1123, %1128 : vector<8x256xf32>
    %c254_i32_364 = arith.constant 254 : i32
    %1130 = tpu.dynamic_rotate %1088 by %c254_i32_364 dim 1 : vector<8x256xf32>, i32 -> vector<8x256xf32>
    %c126_i32_365 = arith.constant 126 : i32
    %1131 = vector.broadcast %c126_i32_365 : i32 to vector<1x256xi32>
    %1132 = arith.cmpi slt, %1094, %1131 : vector<1x256xi32>
    %1133 = arith.extui %1132 : vector<1x256xi1> to vector<1x256xi32>
    %1134 = arith.sitofp %1133 : vector<1x256xi32> to vector<1x256xf32>
    %1135 = vector.broadcast %1134 : vector<1x256xf32> to vector<8x256xf32>
    %1136 = arith.mulf %1130, %1135 : vector<8x256xf32>
    %c253_i32_366 = arith.constant 253 : i32
    %1137 = tpu.dynamic_rotate %1088 by %c253_i32_366 dim 1 : vector<8x256xf32>, i32 -> vector<8x256xf32>
    %c125_i32_367 = arith.constant 125 : i32
    %1138 = vector.broadcast %c125_i32_367 : i32 to vector<1x256xi32>
    %1139 = arith.cmpi slt, %1094, %1138 : vector<1x256xi32>
    %1140 = arith.extui %1139 : vector<1x256xi1> to vector<1x256xi32>
    %1141 = arith.sitofp %1140 : vector<1x256xi32> to vector<1x256xf32>
    %1142 = vector.broadcast %1141 : vector<1x256xf32> to vector<8x256xf32>
    %1143 = arith.mulf %1137, %1142 : vector<8x256xf32>
    %c252_i32_368 = arith.constant 252 : i32
    %1144 = tpu.dynamic_rotate %1088 by %c252_i32_368 dim 1 : vector<8x256xf32>, i32 -> vector<8x256xf32>
    %c124_i32_369 = arith.constant 124 : i32
    %1145 = vector.broadcast %c124_i32_369 : i32 to vector<1x256xi32>
    %1146 = arith.cmpi slt, %1094, %1145 : vector<1x256xi32>
    %1147 = arith.extui %1146 : vector<1x256xi1> to vector<1x256xi32>
    %1148 = arith.sitofp %1147 : vector<1x256xi32> to vector<1x256xf32>
    %1149 = vector.broadcast %1148 : vector<1x256xf32> to vector<8x256xf32>
    %1150 = arith.mulf %1144, %1149 : vector<8x256xf32>
    %1151 = tpu.concatenate %1101, %1108, %1115, %1122, %1088, %1129, %1136, %1143, %1150 in 0 : vector<8x256xf32>, vector<8x256xf32>, vector<8x256xf32>, vector<8x256xf32>, vector<8x256xf32>, vector<8x256xf32>, vector<8x256xf32>, vector<8x256xf32>, vector<8x256xf32> -> vector<72x256xf32>
    %c288 = arith.constant 288 : index
    %c0_370 = arith.constant 0 : index
    %1152 = vector.load %arg1[%c288, %c0_370] : memref<296x192xf32, #tpu.memory_space<vmem>>, vector<3x72xf32>
    %cst_371 = arith.constant dense<0.000000e+00> : vector<3x256xf32>
    %1153 = tpu.matmul %1152, %1151, %cst_371 {dimension_numbers = #tpu.dot_dimension_numbers<[1], [0], [0], [1], [0, 0, 1, 1], [], []>} : vector<3x72xf32>, vector<72x256xf32>, vector<3x256xf32> -> vector<3x256xf32>
    %c352 = arith.constant 352 : index
    %c0_372 = arith.constant 0 : index
    %1154 = vector.load %arg2[%c352, %c0_372] : memref<360x2xf32, #tpu.memory_space<vmem>>, vector<3x1xf32>
    %c352_373 = arith.constant 352 : index
    %c1_374 = arith.constant 1 : index
    %1155 = vector.load %arg2[%c352_373, %c1_374] : memref<360x2xf32, #tpu.memory_space<vmem>>, vector<3x1xf32>
    %cst_375 = arith.constant dense<0.000000e+00> : vector<3xf32>
    %1156 = vector.multi_reduction <add>, %1153, %cst_375 [1] : vector<3x256xf32> to vector<3xf32>
    %1157 = vector.shape_cast %1156 : vector<3xf32> to vector<3x1xf32>
    %1158 = arith.mulf %1153, %1153 : vector<3x256xf32>
    %cst_376 = arith.constant dense<0.000000e+00> : vector<3xf32>
    %1159 = vector.multi_reduction <add>, %1158, %cst_376 [1] : vector<3x256xf32> to vector<3xf32>
    %1160 = vector.shape_cast %1159 : vector<3xf32> to vector<3x1xf32>
    %cst_377 = arith.constant 3.906250e-03 : f32
    %1161 = vector.broadcast %cst_377 : f32 to vector<3x1xf32>
    %1162 = arith.mulf %1157, %1161 : vector<3x1xf32>
    %cst_378 = arith.constant 3.906250e-03 : f32
    %1163 = vector.broadcast %cst_378 : f32 to vector<3x1xf32>
    %1164 = arith.mulf %1160, %1163 : vector<3x1xf32>
    %1165 = arith.mulf %1162, %1162 : vector<3x1xf32>
    %1166 = arith.subf %1164, %1165 : vector<3x1xf32>
    %cst_379 = arith.constant 9.99999974E-6 : f32
    %1167 = vector.broadcast %cst_379 : f32 to vector<3x1xf32>
    %1168 = arith.addf %1166, %1167 : vector<3x1xf32>
    %1169 = math.rsqrt %1168 : vector<3x1xf32>
    %1170 = arith.mulf %1154, %1169 : vector<3x1xf32>
    %1171 = arith.mulf %1162, %1170 : vector<3x1xf32>
    %1172 = arith.subf %1155, %1171 : vector<3x1xf32>
    %1173 = vector.broadcast %1170 : vector<3x1xf32> to vector<3x256xf32>
    %1174 = arith.mulf %1153, %1173 : vector<3x256xf32>
    %1175 = vector.broadcast %1172 : vector<3x1xf32> to vector<3x256xf32>
    %1176 = arith.addf %1174, %1175 : vector<3x256xf32>
    %c0_380 = arith.constant 0 : index
    %c0_381 = arith.constant 0 : index
    %1177 = vector.load %arg4[%c0_380, %c0_381] : memref<3x256xf32, #tpu.memory_space<vmem>>, vector<3x256xf32>
    tpu.vector_store %arg4[%c0_380, %c0_381], %1176 {strides = array<i32>} : memref<3x256xf32, #tpu.memory_space<vmem>>, vector<3x256xf32>,
    return
  }
}

</mosaic_0001>

<bundles_post_ra>
// kernel: autoencoder_forward.1
= control target key start
LH: loop header
LB: loop body
LE: loop exit
PB: predicated region body
PF: predicated region fallthrough
CT: control target
= control target key end

     0   :  { %v10839_v1 = vmov 0.0   ;;  %s8255_s17 = smov 3   ;;  %s8256_s18 = smov 4   ;;  %v19_v3 = vlaneseq  ;;  %vm10806_vm12 = vcmask 588800   ;;  %vm575_vm13 = vcmask 457728   ;;  %s10801_s0 = inlined_call_operand.vmem [shape: f32[8,256], index: 0, kind: input, shape index: {}]   ;;  %s10802_s1 = inlined_call_operand.vmem [shape: f32[296,192], index: 1, kind: input, shape index: {}]   ;;  %s10803_s2 = inlined_call_operand.vmem [shape: f32[360,2], index: 2, kind: input, shape index: {}]   ;;  %s10804_s3 = inlined_call_operand.vmem [shape: f32[672,256], index: 3, kind: input, shape index: {}]   ;;  %s10805_s4 = inlined_call_operand.vmem [shape: f32[3,256], index: 4, kind: output, shape index: {}]  }
   0x1   :  { %v8296_v0 = vld [vmem:[%s10801_s0] sm:$0xff]  ;;  %216 = vmatprep.mubr.f32.mxu0 %v10839_v1  ;;  %393 = vmatprep.mubr.f32.mxu1 %v10839_v1  ;;  %v8307_v2 = vld [vmem:[%s10801_s0 + $0x8] sm:$0xff]  ;;  %s8257_s21 = smov 2   ;;  %s8258_s22 = smov 1  }
   0x2   :  { %42 = vrot.lane.b32.xlu1 %v8296_v0, %s8255_s17  ;;  %27 = vrot.lane.b32.xlu0 %v8296_v0, %s8256_s18  ;;  %s8259_s0 = smov 127   ;;  %s8260_s23 = smov 126   ;;  %v8338_v4 = vand.u32 127, %v19_v3 }
   0x3   :  { %s8261_s24 = smov 125   ;;  %s8262_s25 = smov 124  }
   0x4   :  { %10903 = vst [vmem:[#allocation2_spill] sm:$0xff] %v8338_v4  ;;  %vm34_vm0 = vcmp.ge.s32.totalorder %v8338_v4, 4  ;;  %vm49_vm1 = vcmp.ge.s32.totalorder %v8338_v4, 3  ;;  %vm10813_vm2 = vcmp.lt.s32.totalorder %v8338_v4, 3  ;;  %vm10814_vm3 = vcmp.lt.s32.totalorder %v8338_v4, 4 }
   0x5   :  { %v8345_v7 = vsel %vm34_vm0, 1.0, %v10839_v1  ;;  %v8348_v8 = vsel %vm49_vm1, 1.0, %v10839_v1  ;;  %vm10812_vm4 = vcmp.lt.s32.totalorder %v8338_v4, 2  ;;  %vm64_vm5 = vcmp.ge.s32.totalorder %v8338_v4, 2 }
   0x6   :  { %44 = vrot.lane.b32.xlu1 %v8307_v2, %s8255_s17  ;;  %29 = vrot.lane.b32.xlu0 %v8307_v2, %s8256_s18  ;;  %10904 = vst [vmem:[#allocation3_spill] sm:$0xff] %v8345_v7  ;;  %10905 = vst [vmem:[#allocation4_spill] sm:$0xff] %v8348_v8  ;;  %vm79_vm6 = vcmp.ge.s32.totalorder %v8338_v4, 1  ;;  %vm10811_vm7 = vcmp.lt.s32.totalorder %v8338_v4, 1  ;;  %v8367_v23 = vsel %vm64_vm5, 1.0, %v10839_v1  ;;  %vm10810_vm8 = vcmp.lt.s32.totalorder %v8338_v4, 127 }
   0x7   :  { %10906 = vst [vmem:[#allocation5_spill] sm:$0xff] %v8367_v23  ;;  %v8374_v26 = vsel %vm79_vm6, 1.0, %v10839_v1  ;;  %v8388_v35 = vsel %vm10810_vm8, 1.0, %v10839_v1  ;;  %vm10809_vm9 = vcmp.lt.s32.totalorder %v8338_v4, 126  ;;  %vm10808_vm10 = vcmp.lt.s32.totalorder %v8338_v4, 125 }
   0x8   :  { %10907 = vst [vmem:[#allocation6_spill] sm:$0xff] %v8374_v26  ;;  %10908 = vst [vmem:[#allocation7_spill] sm:$0xff] %v8388_v35  ;;  %v8403_v48 = vsel %vm10809_vm9, 1.0, %v10839_v1  ;;  %v8412_v51 = vsel %vm10808_vm10, 1.0, %v10839_v1  ;;  %vm10807_vm11 = vcmp.lt.s32.totalorder %v8338_v4, 124  ;;  %vm534_vm14 = vcmp.ge.s32.totalorder %v8338_v4, 64 }
   0x9   :  { %10909 = vst [vmem:[#allocation8_spill] sm:$0xff] %v8403_v48  ;;  %10910 = vst [vmem:[#allocation9_spill] sm:$0xff] %v8412_v51  ;;  %v8426_v60 = vsel %vm10807_vm11, 1.0, %v10839_v1 }
   0xa   :  { %59 = vrot.lane.b32.xlu1 %v8307_v2, %s8257_s21  ;;  %57 = vrot.lane.b32.xlu0 %v8296_v0, %s8257_s21  ;;  %10911 = vst [vmem:[#allocation10_spill] sm:$0xff] %v8426_v60 }
   0xe   :  { %74 = vrot.lane.b32.xlu1 %v8307_v2, %s8258_s22  ;;  %72 = vrot.lane.b32.xlu0 %v8296_v0, %s8258_s22 }
  0x12   :  { %89 = vrot.lane.b32.xlu1 %v8307_v2, %s8259_s0  ;;  %87 = vrot.lane.b32.xlu0 %v8296_v0, %s8259_s0 }
  0x16   :  { %104 = vrot.lane.b32.xlu1 %v8307_v2, %s8260_s23  ;;  %102 = vrot.lane.b32.xlu0 %v8296_v0, %s8260_s23 }
  0x1a   :  { %119 = vrot.lane.b32.xlu1 %v8307_v2, %s8261_s24  ;;  %117 = vrot.lane.b32.xlu0 %v8296_v0, %s8261_s24 }
  0x1e   :  { %134 = vrot.lane.b32.xlu1 %v8307_v2, %s8262_s25  ;;  %132 = vrot.lane.b32.xlu0 %v8296_v0, %s8262_s25 }
  0x74   :  { %v43_v5 = vpop.permute.xlu1 %42  ;;  %v28_v6 = vpop.permute.xlu0 %27 }
  0x78   :  { %v45_v9 = vpop.permute.xlu1 %44  ;;  %v30_v10 = vpop.permute.xlu0 %29 }
  0x79   :  { %v48_v11 = vsel %vm10813_vm2, %v45_v9, %v43_v5  ;;  %v33_v12 = vsel %vm10814_vm3, %v30_v10, %v28_v6  ;;  %v32_v13 = vsel %vm10814_vm3, %v28_v6, %v30_v10  ;;  %v47_v14 = vsel %vm10813_vm2, %v43_v5, %v45_v9  ;;  %v147_v10 = vld [vmem:[%s10802_s1] sm:$0xff] }
  0x7a   :  { %v41_v15 = vmul.f32 %v8345_v7, %v32_v13  ;;  %v56_v16 = vmul.f32 %v8348_v8, %v47_v14  ;;  %v40_v17 = vmul.f32 %v8345_v7, %v33_v12  ;;  %v55_v18 = vmul.f32 %v8348_v8, %v48_v11 }
  0x7c   :  { %v60_v19 = vpop.permute.xlu1 %59  ;;  %v58_v20 = vpop.permute.xlu0 %57  ;;  %v7346_v21 = vpack.c.bf16 %v56_v16, %v41_v15  ;;  %v7348_v22 = vpack.c.bf16 %v55_v18, %v40_v17  ;;  %v10843_v17 = vmov 0  }
  0x7d   :  { %v62_v24 = vsel %vm10812_vm4, %v58_v20, %v60_v19  ;;  %v63_v25 = vsel %vm10812_vm4, %v60_v19, %v58_v20  ;;  %8107 = vset.pattern.permute.xlu1 %v10843_v17 }
  0x7e   :  { %7347 = vmatprep.subr.bf16.mxu0 %v7346_v21  ;;  %v70_v31 = vmul.f32 %v8367_v23, %v63_v25  ;;  %v71_v32 = vmul.f32 %v8367_v23, %v62_v24 }
  0x7f   :  { %7349 = vmatpush1.bf16.msra.mxu0 %v7348_v22 }
  0x80   :  { %v75_v27 = vpop.permute.xlu1 %74  ;;  %v73_v28 = vpop.permute.xlu0 %72 }
  0x81   :  { %v77_v29 = vsel %vm10811_vm7, %v73_v28, %v75_v27  ;;  %v78_v30 = vsel %vm10811_vm7, %v75_v27, %v73_v28  ;;  %v10845_v27 = vmov 1   ;;  %v223_v28 = vld [vmem:[%s10803_s2] sm:$0xff] }
  0x82   :  { %v85_v33 = vmul.f32 %v8374_v26, %v78_v30  ;;  %v86_v34 = vmul.f32 %v8374_v26, %v77_v29  ;;  %8108 = vset.pattern.permute.xlu0 %v10845_v27 }
  0x84   :  { %v90_v36 = vpop.permute.xlu1 %89  ;;  %v88_v37 = vpop.permute.xlu0 %87  ;;  %v7350_v38 = vpack.c.bf16 %v86_v34, %v71_v32  ;;  %v7352_v39 = vpack.c.bf16 %v85_v33, %v70_v31 }
  0x85   :  { %v92_v40 = vsel %vm10810_vm8, %v88_v37, %v90_v36  ;;  %v93_v41 = vsel %vm10810_vm8, %v90_v36, %v88_v37 }
  0x86   :  { %v100_v42 = vmul.f32 %v8388_v35, %v92_v40  ;;  %v101_v43 = vmul.f32 %v8388_v35, %v93_v41  ;;  %7351 = vmatprep.subr.bf16.mxu0 %v7350_v38 }
  0x87   :  { %7353 = vmatpush1.bf16.msra.mxu0 %v7352_v39 }
  0x88   :  { %v105_v44 = vpop.permute.xlu1 %104  ;;  %v103_v45 = vpop.permute.xlu0 %102  ;;  %v7354_v46 = vpack.c.bf16 %v101_v43, %v8307_v2  ;;  %v7356_v47 = vpack.c.bf16 %v100_v42, %v8296_v0  ;;  %v416_v43 = vld [vmem:[%s10804_s3 + $0x100] sm:$0xff] }
  0x89   :  { %v107_v49 = vsel %vm10809_vm9, %v103_v45, %v105_v44  ;;  %v108_v50 = vsel %vm10809_vm9, %v105_v44, %v103_v45  ;;  %v417_v44 = vld [vmem:[%s10804_s3 + $0x110] sm:$0xff]  ;;  %v400_v45 = vld [vmem:[%s10804_s3] sm:$0xff] }
  0x8a   :  { %7355 = vmatprep.subr.bf16.mxu0 %v7354_v46  ;;  %v115_v56 = vmul.f32 %v8403_v48, %v107_v49  ;;  %v116_v57 = vmul.f32 %v8403_v48, %v108_v50  ;;  %v7378_v46 = vpack.c.bf16 %v417_v44, %v416_v43  ;;  %v418_v49 = vld [vmem:[%s10804_s3 + $0x120] sm:$0xff]  ;;  %v419_v50 = vld [vmem:[%s10804_s3 + $0x130] sm:$0xff] }
  0x8b   :  { %7357 = vmatpush1.bf16.msra.mxu0 %v7356_v47  ;;  %v401_v47 = vld [vmem:[%s10804_s3 + $0x10] sm:$0xff] }
  0x8c   :  { %v120_v52 = vpop.permute.xlu1 %119  ;;  %v118_v53 = vpop.permute.xlu0 %117 }
  0x8d   :  { %v122_v54 = vsel %vm10808_vm10, %v118_v53, %v120_v52  ;;  %v123_v55 = vsel %vm10808_vm10, %v120_v52, %v118_v53  ;;  %v7380_v52 = vpack.c.bf16 %v401_v47, %v400_v45  ;;  %v7382_v53 = vpack.c.bf16 %v419_v50, %v418_v49 }
  0x8e   :  { %v130_v58 = vmul.f32 %v8412_v51, %v122_v54  ;;  %v131_v59 = vmul.f32 %v8412_v51, %v123_v55  ;;  %v402_v54 = vld [vmem:[%s10804_s3 + $0x20] sm:$0xff]  ;;  %v403_v55 = vld [vmem:[%s10804_s3 + $0x30] sm:$0xff] }
  0x90   :  { %v135_v61 = vpop.permute.xlu1 %134  ;;  %v7358_v62 = vpack.c.bf16 %v131_v59, %v116_v57  ;;  %v133_v63 = vpop.permute.xlu0 %132  ;;  %v7360_v0 = vpack.c.bf16 %v130_v58, %v115_v56  ;;  %v420_v56 = vld [vmem:[%s10804_s3 + $0x140] sm:$0xff]  ;;  %v421_v57 = vld [vmem:[%s10804_s3 + $0x150] sm:$0xff]  ;;  %v7384_v58 = vpack.c.bf16 %v403_v55, %v402_v54 }
  0x91   :  { %v137_v2 = vsel %vm10807_vm11, %v133_v63, %v135_v61  ;;  %v138_v5 = vsel %vm10807_vm11, %v135_v61, %v133_v63  ;;  %v7386_v59 = vpack.c.bf16 %v421_v57, %v420_v56  ;;  %v404_v61 = vld [vmem:[%s10804_s3 + $0x40] sm:$0xff] }
  0x92   :  { %7359 = vmatprep.subr.bf16.mxu0 %v7358_v62  ;;  %v146_v6 = vmul.f32 %v8426_v60, %v138_v5  ;;  %v145_v9 = vmul.f32 %v8426_v60, %v137_v2  ;;  %v405_v62 = vld [vmem:[%s10804_s3 + $0x50] sm:$0xff]  ;;  %v422_v63 = vld [vmem:[%s10804_s3 + $0x160] sm:$0xff] }
  0x93   :  { %7361 = vmatpush1.bf16.msra.mxu0 %v7360_v0  ;;  %v423_v0 = vld [vmem:[%s10804_s3 + $0x170] sm:$0xff]  ;;  %v7388_v2 = vpack.c.bf16 %v405_v62, %v404_v61 }
  0x94   :  { %168 = vmatprep.subr.mxu0 %v146_v6  ;;  %v7390_v5 = vpack.c.bf16 %v423_v0, %v422_v63  ;;  %v406_v6 = vld [vmem:[%s10804_s3 + $0x60] sm:$0xff] }
  0x97   :  { %169 = vmatpush1.msra.mxu0 %v145_v9  ;;  %v407_v9 = vld [vmem:[%s10804_s3 + $0x70] sm:$0xff] }
  0x98   :  { %5931 = vmatmul.mubr.msk.f32.vlgmr.msra.gmra.mrb[0].mxu0 %vm10806_vm12, %v147_v10  ;;  %7379 = vmatprep.subr.bf16.mxu0 %v7378_v46  ;;  %v424_v10 = vld [vmem:[%s10804_s3 + $0x180] sm:$0xff] }
  0x99   :  { %7381 = vmatpush3.bf16.msra.mxu0 %v7380_v52 }
  0x9a   :  { %7383 = vmatprep.subr.bf16.mxu0 %v7382_v53 }
  0x9d   :  { %7385 = vmatpush3.bf16.msra.mxu0 %v7384_v58 }
  0x9e   :  { %7387 = vmatprep.subr.bf16.mxu0 %v7386_v59 }
  0xa1   :  { %7389 = vmatpush3.bf16.msra.mxu0 %v7388_v2 }
  0xa2   :  { %7391 = vmatprep.subr.bf16.mxu0 %v7390_v5 }
 0x16b   :  { %v218_v11 = vpop.f32.mrb[0].mxu0 }
 0x16c   :  { %v220_v12 = vpop.f32.mrb[1].mxu0  ;;  %v227_v13 = vmul.f32 %v218_v11, %v218_v11 }
 0x16d   :  { %v224_v14 = vadd.f32 %v220_v12, %v218_v11  ;;  %v228_v15 = vmul.f32 %v220_v12, %v220_v12 }
 0x16f   :  { %225 = vadd.xlane.f32.xlu0 %v224_v14  ;;  %v229_v16 = vadd.f32 %v228_v15, %v227_v13  ;;  %v408_v14 = vld [vmem:[%s10804_s3 + $0x80] sm:$0xff]  ;;  %v409_v15 = vld [vmem:[%s10804_s3 + $0x90] sm:$0xff] }
 0x171   :  { %230 = vadd.xlane.f32.xlu1 %v229_v16  ;;  %v426_v16 = vld [vmem:[%s10804_s3 + $0x1a0] sm:$0xff] }
 0x1fc   :  { %v226_v18 = vpop.xlane.xlu0 %225 }
 0x1fd   :  { %v232_v19 = vmul.f32 0.00390625, %v226_v18  ;;  %v427_v18 = vld [vmem:[%s10804_s3 + $0x1b0] sm:$0xff] }
 0x1fe   :  { %v231_v20 = vpop.xlane.xlu1 %230 }
 0x1ff   :  { %v234_v21 = vmul.f32 %v232_v19, %v232_v19  ;;  %v233_v22 = vmul.f32 0.00390625, %v231_v20  ;;  %v7398_v20 = vpack.c.bf16 %v427_v18, %v426_v16 }
 0x201   :  { %v235_v24 = vsub.f32 %v233_v22, %v234_v21  ;;  %v410_v21 = vld [vmem:[%s10804_s3 + $0xa0] sm:$0xff]  ;;  %v411_v22 = vld [vmem:[%s10804_s3 + $0xb0] sm:$0xff] }
 0x203   :  { %v236_v25 = vadd.f32 1e-05, %v235_v24  ;;  %v428_v24 = vld [vmem:[%s10804_s3 + $0x1c0] sm:$0xff] }
 0x205   :  { %8164 = vrsqrt.f32 %v236_v25  ;;  %v429_v25 = vld [vmem:[%s10804_s3 + $0x1d0] sm:$0xff] }
 0x20f   :  { %v8165_v29 = vpop.eup %8164 }
 0x210   :  { %v238_v30 = vmul.f32 %v8165_v29, %v223_v28  ;;  %v7402_v29 = vpack.c.bf16 %v429_v25, %v428_v24 }
 0x212   :  { %247 = vperm.xlu1 %8107, %v238_v30   ;;  %v239_v31 = vmul.f32 %v238_v30, %v232_v19  ;;  %v7396_v19 = vpack.c.bf16 %v409_v15, %v408_v14  ;;  %v412_v30 = vld [vmem:[%s10804_s3 + $0xc0] sm:$0xff] }
 0x214   :  { %241 = vrot.lane.b32.xlu0 %v239_v31, %s8258_s22  ;;  %v413_v31 = vld [vmem:[%s10804_s3 + $0xd0] sm:$0xff] }
 0x286   :  { %v242_v32 = vpop.permute.xlu0 %241 }
 0x287   :  { %v244_v33 = vsub.f32 %v223_v28, %v242_v32  ;;  %v7400_v28 = vpack.c.bf16 %v411_v22, %v410_v21  ;;  %v430_v32 = vld [vmem:[%s10804_s3 + $0x1e0] sm:$0xff] }
 0x289   :  { %254 = vperm.xlu0 %8108, %v244_v33   ;;  %v431_v33 = vld [vmem:[%s10804_s3 + $0x1f0] sm:$0xff] }
 0x291   :  { %v248_v34 = vpop.permute.xlu1 %247 }
 0x292   :  { %v250_v36 = vmul.f32 %v248_v34, %v218_v11  ;;  %v251_v38 = vmul.f32 %v248_v34, %v220_v12  ;;  %v425_v11 = vld [vmem:[%s10804_s3 + $0x190] sm:$0xff]  ;;  %v7392_v12 = vpack.c.bf16 %v407_v9, %v406_v6  ;;  %v7404_v34 = vpack.c.bf16 %v413_v31, %v412_v30 }
 0x293   :  { %v7394_v13 = vpack.c.bf16 %v425_v11, %v424_v10 }
 0x294   :  { %7393 = vmatpush3.bf16.msra.mxu0 %v7392_v12 }
 0x295   :  { %7395 = vmatprep.subr.bf16.mxu0 %v7394_v13 }
 0x298   :  { %7397 = vmatpush3.bf16.msra.mxu0 %v7396_v19 }
 0x299   :  { %7399 = vmatprep.subr.bf16.mxu0 %v7398_v20 }
 0x29c   :  { %7401 = vmatpush3.bf16.msra.mxu0 %v7400_v28 }
 0x29d   :  { %7403 = vmatprep.subr.bf16.mxu0 %v7402_v29 }
 0x2a0   :  { %7405 = vmatpush3.bf16.msra.mxu0 %v7404_v34 }
 0x308   :  { %v255_v37 = vpop.permute.xlu0 %254 }
 0x309   :  { %v257_v39 = vadd.f32 %v255_v37, %v250_v36  ;;  %v258_v40 = vadd.f32 %v255_v37, %v251_v38  ;;  %v7406_v36 = vpack.c.bf16 %v431_v33, %v430_v32 }
 0x30b   :  { %v8444_v41 = vmax.f32 %v257_v39, 0.0  ;;  %v8450_v42 = vmax.f32 %v258_v40, 0.0  ;;  %7407 = vmatprep.subr.bf16.mxu0 %v7406_v36 }
 0x30d   :  { %269 = vrot.lane.b32.xlu0 %v8444_v41, %s8255_s17  ;;  %261 = vrot.lane.b32.xlu1 %v8444_v41, %s8256_s18 }
 0x311   :  { %277 = vrot.lane.b32.xlu0 %v8444_v41, %s8257_s21  ;;  %263 = vrot.lane.b32.xlu1 %v8450_v42, %s8256_s18 }
 0x315   :  { %285 = vrot.lane.b32.xlu0 %v8444_v41, %s8258_s22  ;;  %271 = vrot.lane.b32.xlu1 %v8450_v42, %s8255_s17 }
 0x319   :  { %293 = vrot.lane.b32.xlu0 %v8444_v41, %s8259_s0  ;;  %279 = vrot.lane.b32.xlu1 %v8450_v42, %s8257_s21 }
 0x31d   :  { %301 = vrot.lane.b32.xlu0 %v8444_v41, %s8260_s23  ;;  %287 = vrot.lane.b32.xlu1 %v8450_v42, %s8258_s22 }
 0x321   :  { %309 = vrot.lane.b32.xlu0 %v8444_v41, %s8261_s24  ;;  %295 = vrot.lane.b32.xlu1 %v8450_v42, %s8259_s0 }
 0x325   :  { %317 = vrot.lane.b32.xlu0 %v8444_v41, %s8262_s25  ;;  %303 = vrot.lane.b32.xlu1 %v8450_v42, %s8260_s23 }
 0x329   :  { %311 = vrot.lane.b32.xlu1 %v8450_v42, %s8261_s24 }
 0x32d   :  { %319 = vrot.lane.b32.xlu1 %v8450_v42, %s8262_s25 }
 0x37f   :  { %v270_v37 = vpop.permute.xlu0 %269  ;;  %v262_v38 = vpop.permute.xlu1 %261 }
 0x383   :  { %v278_v39 = vpop.permute.xlu0 %277  ;;  %v264_v40 = vpop.permute.xlu1 %263 }
 0x384   :  { %v266_v43 = vsel %vm10814_vm3, %v264_v40, %v262_v38  ;;  %v265_v44 = vsel %vm10814_vm3, %v262_v38, %v264_v40 }
 0x385   :  { %v268_v50 = vmul.f32 %v8345_v7, %v265_v44  ;;  %v267_v53 = vmul.f32 %v8345_v7, %v266_v43  ;;  %v325_v44 = vld [vmem:[%s10802_s1 + $0x10] sm:$0xff] }
 0x387   :  { %v286_v45 = vpop.permute.xlu0 %285  ;;  %v272_v46 = vpop.permute.xlu1 %271 }
 0x388   :  { %v274_v47 = vsel %vm10813_vm2, %v272_v46, %v270_v37  ;;  %v273_v49 = vsel %vm10813_vm2, %v270_v37, %v272_v46  ;;  %v415_v46 = vld [vmem:[%s10804_s3 + $0xf0] sm:$0xff] }
 0x389   :  { %v276_v52 = vmul.f32 %v8348_v8, %v273_v49  ;;  %v275_v54 = vmul.f32 %v8348_v8, %v274_v47 }
 0x38b   :  { %v280_v55 = vpop.permute.xlu1 %279  ;;  %v7362_v56 = vpack.c.bf16 %v276_v52, %v268_v50  ;;  %v7364_v57 = vpack.c.bf16 %v275_v54, %v267_v53  ;;  %v294_v58 = vpop.permute.xlu0 %293 }
 0x38c   :  { %v281_v59 = vsel %vm10812_vm4, %v278_v39, %v280_v55  ;;  %v282_v61 = vsel %vm10812_vm4, %v280_v55, %v278_v39 }
 0x38d   :  { %7363 = vmatprep.subr.bf16.mxu1 %v7362_v56  ;;  %v283_v2 = vmul.f32 %v8367_v23, %v282_v61  ;;  %v284_v5 = vmul.f32 %v8367_v23, %v281_v59 }
 0x38e   :  { %7365 = vmatpush1.bf16.msra.mxu1 %v7364_v57 }
 0x38f   :  { %v288_v62 = vpop.permute.xlu1 %287  ;;  %v302_v10 = vpop.permute.xlu0 %301 }
 0x390   :  { %v289_v63 = vsel %vm10811_vm7, %v286_v45, %v288_v62  ;;  %v290_v0 = vsel %vm10811_vm7, %v288_v62, %v286_v45  ;;  %v414_v45 = vld [vmem:[%s10804_s3 + $0xe0] sm:$0xff] }
 0x391   :  { %v291_v6 = vmul.f32 %v8374_v26, %v290_v0  ;;  %v292_v9 = vmul.f32 %v8374_v26, %v289_v63  ;;  %v7408_v47 = vpack.c.bf16 %v415_v46, %v414_v45  ;;  %v502_v0 = vld [vmem:[%s10803_s2 + $0x8] sm:$0xff]  ;;  %v574_v45 = vld [vmem:[%s10802_s1 + $0x30] sm:$0xff] }
 0x393   :  { %v296_v11 = vpop.permute.xlu1 %295  ;;  %v7366_v12 = vpack.c.bf16 %v292_v9, %v284_v5  ;;  %v7368_v13 = vpack.c.bf16 %v291_v6, %v283_v2  ;;  %v310_v22 = vpop.permute.xlu0 %309  ;;  %7409 = vmatpush3.bf16.msra.mxu0 %v7408_v47 }
 0x394   :  { %v297_v14 = vsel %vm10810_vm8, %v294_v58, %v296_v11  ;;  %v298_v15 = vsel %vm10810_vm8, %v296_v11, %v294_v58 }
 0x395   :  { %v299_v16 = vmul.f32 %v8388_v35, %v297_v14  ;;  %v300_v18 = vmul.f32 %v8388_v35, %v298_v15  ;;  %7367 = vmatprep.subr.bf16.mxu1 %v7366_v12 }
 0x396   :  { %7369 = vmatpush1.bf16.msra.mxu1 %v7368_v13 }
 0x397   :  { %v304_v19 = vpop.permute.xlu1 %303  ;;  %v7370_v20 = vpack.c.bf16 %v300_v18, %v8450_v42  ;;  %v7372_v21 = vpack.c.bf16 %v299_v16, %v8444_v41  ;;  %v318_v33 = vpop.permute.xlu0 %317  ;;  %v573_v16 = vld [vmem:[%s10802_s1 + $0x20] sm:$0xff]  ;;  %v5933_v18 = vadd.s32 4294967232, %v8338_v4 }
 0x398   :  { %v305_v24 = vsel %vm10809_vm9, %v302_v10, %v304_v19  ;;  %v306_v25 = vsel %vm10809_vm9, %v304_v19, %v302_v10 }
 0x399   :  { %7371 = vmatprep.subr.bf16.mxu1 %v7370_v20  ;;  %v307_v42 = vmul.f32 %v8403_v48, %v305_v24  ;;  %v308_v41 = vmul.f32 %v8403_v48, %v306_v25  ;;  %v536_v19 = vsel %vm534_vm14, %v5933_v18, %v8338_v4 }
 0x39a   :  { %7373 = vmatpush1.bf16.msra.mxu1 %v7372_v21  ;;  %vm545_vm15 = vcmp.ge.s32.totalorder %v536_v19, 2  ;;  %vm539_vm0 = vcmp.ge.s32.totalorder %v536_v19, 3  ;;  %vm551_vm1 = vcmp.ge.s32.totalorder %v536_v19, 1  ;;  %vm557_vm5 = vcmp.lt.s32.totalorder %v536_v19, 63 }
 0x39b   :  { %v312_v28 = vpop.permute.xlu1 %311  ;;  %v8649_v20 = vsel %vm545_vm15, 1.0, %v10839_v1  ;;  %v8652_v21 = vsel %vm539_vm0, 1.0, %v10839_v1  ;;  %vm563_vm6 = vcmp.lt.s32.totalorder %v536_v19, 62  ;;  %vm569_vm14 = vcmp.lt.s32.totalorder %v536_v19, 61 }
 0x39c   :  { %v313_v29 = vsel %vm10808_vm10, %v310_v22, %v312_v28  ;;  %v314_v30 = vsel %vm10808_vm10, %v312_v28, %v310_v22  ;;  %10912 = vst [vmem:[#allocation11_spill] sm:$0xff] %v8649_v20  ;;  %vm10816_vm15 = vcmask 523264   ;;  %vm10829_vm0 = vcmp.ge.s32.totalorder %v8338_v4, 32 }
 0x39d   :  { %v315_v31 = vmul.f32 %v8412_v51, %v313_v29  ;;  %v316_v32 = vmul.f32 %v8412_v51, %v314_v30  ;;  %v8657_v29 = vsel %vm551_vm1, 1.0, %v10839_v1  ;;  %vm8826_vm1 = vmneg %vm10829_vm0 }
 0x39e   :  { %10913 = vst [vmem:[#allocation12_spill] sm:$0xff] %v8657_v29 }
 0x39f   :  { %v320_v34 = vpop.permute.xlu1 %319  ;;  %v7374_v36 = vpack.c.bf16 %v316_v32, %v308_v41  ;;  %v7376_v37 = vpack.c.bf16 %v315_v31, %v307_v42  ;;  %v8661_v32 = vsel %vm557_vm5, 1.0, %v10839_v1 }
 0x3a0   :  { %v322_v38 = vsel %vm10807_vm11, %v320_v34, %v318_v33  ;;  %v321_v39 = vsel %vm10807_vm11, %v318_v33, %v320_v34  ;;  %10914 = vst [vmem:[#allocation13_spill] sm:$0xff] %v8661_v32  ;;  %v8664_v33 = vsel %vm563_vm6, 1.0, %v10839_v1 }
 0x3a1   :  { %7375 = vmatprep.subr.bf16.mxu1 %v7374_v36  ;;  %v324_v40 = vmul.f32 %v8426_v60, %v322_v38  ;;  %v323_v43 = vmul.f32 %v8426_v60, %v321_v39  ;;  %10915 = vst [vmem:[#allocation14_spill] sm:$0xff] %v8664_v33  ;;  %v8669_v39 = vsel %vm569_vm14, 1.0, %v10839_v1 }
 0x3a2   :  { %7377 = vmatpush1.bf16.msra.mxu1 %v7376_v37  ;;  %10916 = vst [vmem:[#allocation15_spill] sm:$0xff] %v8669_v39 }
 0x3a3   :  { %345 = vmatprep.subr.mxu1 %v324_v40 }
 0x3a6   :  { %346 = vmatpush1.msra.mxu1 %v323_v43 }
 0x3a7   :  { %5932 = vmatmul.mubr.msk.f32.vlgmr.msra.gmra.mrb[0].mxu1 %vm10806_vm12, %v325_v44 }
 0x3a8   :  { %6690 = vmatprep.mubr.msk.f32.mxu1 %vm575_vm13, %v573_v16 }
 0x47a   :  { %v395_v49 = vpop.f32.mrb[0].mxu1 }
 0x47b   :  { %v397_v50 = vpop.f32.mrb[1].mxu1 }
 0x47c   :  { %496 = vmatprep.mubr.f32.mxu0 %v397_v50 }
 0x47d   :  { %497 = vmatmul.mubr.f32.vlgmr.msra.gmra.mrb[2].mxu0 %v395_v49 }
 0x550   :  { %v6311_v52 = vpop.f32.mrb[2].mxu0 }
 0x551   :  { %v6312_v53 = vpop.f32.mrb[3].mxu0 }
 0x552   :  { %v6313_v54 = vadd.f32 %v6312_v53, %v6311_v52 }
 0x554   :  { %503 = vadd.xlane.f32.xlu0 %v6313_v54  ;;  %v505_v55 = vmul.f32 %v6313_v54, %v6313_v54 }
 0x556   :  { %506 = vadd.xlane.f32.xlu1 %v505_v55 }
 0x5e1   :  { %v504_v56 = vpop.xlane.xlu0 %503 }
 0x5e2   :  { %v508_v57 = vmul.f32 0.0078125, %v504_v56 }
 0x5e3   :  { %v507_v58 = vpop.xlane.xlu1 %506 }
 0x5e4   :  { %v510_v59 = vmul.f32 %v508_v57, %v508_v57  ;;  %v509_v61 = vmul.f32 0.0078125, %v507_v58 }
 0x5e6   :  { %v511_v62 = vsub.f32 %v509_v61, %v510_v59 }
 0x5e8   :  { %v512_v63 = vadd.f32 1e-05, %v511_v62 }
 0x5ea   :  { %8166 = vrsqrt.f32 %v512_v63 }
 0x5f4   :  { %v8167_v2 = vpop.eup %8166 }
 0x5f5   :  { %v514_v5 = vmul.f32 %v8167_v2, %v502_v0 }
 0x5f7   :  { %523 = vperm.xlu1 %8107, %v514_v5   ;;  %v515_v6 = vmul.f32 %v514_v5, %v508_v57 }
 0x5f9   :  { %517 = vrot.lane.b32.xlu0 %v515_v6, %s8258_s22  ;;  %v657_v6 = vld [vmem:[%s10803_s2 + $0x10] sm:$0xff] }
 0x66b   :  { %v518_v9 = vpop.permute.xlu0 %517 }
 0x66c   :  { %v520_v10 = vsub.f32 %v502_v0, %v518_v9  ;;  %v658_v9 = vld [vmem:[%s10803_s2 + $0x18] sm:$0xff] }
 0x66e   :  { %529 = vperm.xlu0 %8108, %v520_v10  }
 0x672   :  { %8109 = vset.pattern.permute.xlu0 %v10843_v17 }
 0x676   :  { %v524_v11 = vpop.permute.xlu1 %523 }
 0x677   :  { %v526_v12 = vmul.f32 %v6313_v54, %v524_v11 }
 0x6ed   :  { %v530_v13 = vpop.permute.xlu0 %529 }
 0x6ee   :  { %v532_v14 = vadd.f32 %v530_v13, %v526_v12 }
 0x6f0   :  { %v533_v15 = vmax.f32 %v532_v14, 0.0 }
 0x6f2   :  { %543 = vrot.lane.b32.xlu0 %v533_v15, %s8257_s21  ;;  %537 = vrot.lane.b32.xlu1 %v533_v15, %s8255_s17 }
 0x6f6   :  { %555 = vrot.lane.b32.xlu0 %v533_v15, %s8259_s0  ;;  %549 = vrot.lane.b32.xlu1 %v533_v15, %s8258_s22 }
 0x6fa   :  { %567 = vrot.lane.b32.xlu0 %v533_v15, %s8261_s24  ;;  %561 = vrot.lane.b32.xlu1 %v533_v15, %s8260_s23 }
 0x764   :  { %v544_v22 = vpop.permute.xlu0 %543  ;;  %v538_v24 = vpop.permute.xlu1 %537 }
 0x765   :  { %v548_v25 = vmul.f32 %v8649_v20, %v544_v22  ;;  %v542_v28 = vmul.f32 %v8652_v21, %v538_v24 }
 0x767   :  { %v7410_v30 = vpack.c.bf16 %v548_v25, %v542_v28 }
 0x768   :  { %v556_v42 = vpop.permute.xlu0 %555  ;;  %v550_v41 = vpop.permute.xlu1 %549 }
 0x769   :  { %v554_v31 = vmul.f32 %v8657_v29, %v550_v41  ;;  %7411 = vmatprep.subr.bf16.mxu1 %v7410_v30  ;;  %v560_v37 = vmul.f32 %v8661_v32, %v556_v42 }
 0x76a   :  { %7413 = vmatpush3.bf16.msra.mxu1 %v7410_v30 }
 0x76b   :  { %v7414_v34 = vpack.c.bf16 %v533_v15, %v554_v31 }
 0x76c   :  { %v562_v36 = vpop.permute.xlu1 %561  ;;  %v568_v40 = vpop.permute.xlu0 %567 }
 0x76d   :  { %v566_v38 = vmul.f32 %v8664_v33, %v562_v36  ;;  %7415 = vmatprep.subr.bf16.mxu1 %v7414_v34  ;;  %v572_v44 = vmul.f32 %v8669_v39, %v568_v40  ;;  %v757_v40 = vld [vmem:[%s10802_s1 + $0x40] sm:$0xff] }
 0x76e   :  { %7417 = vmatpush3.bf16.msra.mxu1 %v7414_v34 }
 0x76f   :  { %v7418_v43 = vpack.c.bf16 %v566_v38, %v560_v37 }
 0x771   :  { %7419 = vmatprep.subr.bf16.mxu1 %v7418_v43 }
 0x772   :  { %7421 = vmatpush3.bf16.msra.mxu1 %v7418_v43  ;;  %v841_v43 = vld [vmem:[%s10804_s3 + $0x200] sm:$0xff] }
 0x773   :  { %6688 = vmatprep.subr.mxu1 %v572_v44 }
 0x776   :  { %6689 = vmatpush3.msra.mxu1 %v572_v44  ;;  %v842_v44 = vld [vmem:[%s10804_s3 + $0x210] sm:$0xff] }
 0x777   :  { %6691 = vmatmul.mubr.msk.f32.vlgmr.msra.gmra.mrb[2].mxu1 %vm575_vm13, %v574_v45  ;;  %vm10815_vm13 = vcmask 916480   ;;  %v843_v45 = vld [vmem:[%s10804_s3 + $0x220] sm:$0xff] }
 0x778   :  { %6721 = vmatprep.mubr.msk.f32.mxu1 %vm10815_vm13, %v757_v40 }
 0x84a   :  { %v8676_v46 = vpop.f32.mrb[2].mxu1 }
 0x84b   :  { %10917 = vst [vmem:[#allocation16_spill] sm:$0xff] %v8676_v46  ;;  %661 = vadd.xlane.f32.xlu0 %v8676_v46  ;;  %v8679_v47 = vpop.f32.mrb[3].mxu1  ;;  %v664_v50 = vmul.f32 %v8676_v46, %v8676_v46 }
 0x84c   :  { %10918 = vst [vmem:[#allocation17_spill] sm:$0xff] %v8679_v47  ;;  %659 = vadd.xlane.f32.xlu1 %v8679_v47  ;;  %v663_v49 = vmul.f32 %v8679_v47, %v8679_v47 }
 0x84f   :  { %665 = vadd.xlane.f32.xlu0 %v663_v49  ;;  %v7450_v49 = vpack.c.bf16 %v842_v44, %v841_v43 }
 0x850   :  { %667 = vadd.xlane.f32.xlu1 %v664_v50  ;;  %v844_v50 = vld [vmem:[%s10804_s3 + $0x230] sm:$0xff] }
 0x851   :  { %7451 = vmatprep.subr.bf16.mxu0 %v7450_v49 }
 0x852   :  { %7453 = vmatpush3.bf16.msra.mxu0 %v7450_v49 }
 0x8d8   :  { %v662_v52 = vpop.xlane.xlu0 %661 }
 0x8d9   :  { %v660_v53 = vpop.xlane.xlu1 %659  ;;  %v670_v54 = vmul.f32 0.0078125, %v662_v52  ;;  %v7454_v52 = vpack.c.bf16 %v844_v50, %v843_v45 }
 0x8da   :  { %v669_v55 = vmul.f32 0.0078125, %v660_v53  ;;  %v845_v53 = vld [vmem:[%s10804_s3 + $0x240] sm:$0xff] }
 0x8db   :  { %v674_v61 = vmul.f32 %v670_v54, %v670_v54  ;;  %7455 = vmatprep.subr.bf16.mxu0 %v7454_v52 }
 0x8dc   :  { %v673_v56 = vmul.f32 %v669_v55, %v669_v55  ;;  %v666_v57 = vpop.xlane.xlu0 %665  ;;  %7457 = vmatpush3.bf16.msra.mxu0 %v7454_v52 }
 0x8dd   :  { %v671_v58 = vmul.f32 0.0078125, %v666_v57  ;;  %v668_v59 = vpop.xlane.xlu1 %667  ;;  %v848_v57 = vld [vmem:[%s10804_s3 + $0x270] sm:$0xff] }
 0x8de   :  { %v672_v62 = vmul.f32 0.0078125, %v668_v59  ;;  %v849_v59 = vld [vmem:[%s10804_s3 + $0x280] sm:$0xff] }
 0x8df   :  { %v675_v63 = vsub.f32 %v671_v58, %v673_v56  ;;  %v847_v56 = vld [vmem:[%s10804_s3 + $0x260] sm:$0xff] }
 0x8e0   :  { %v676_v0 = vsub.f32 %v672_v62, %v674_v61  ;;  %v7462_v58 = vpack.c.bf16 %v848_v57, %v847_v56  ;;  %v850_v61 = vld [vmem:[%s10804_s3 + $0x290] sm:$0xff] }
 0x8e1   :  { %v677_v2 = vadd.f32 1e-05, %v675_v63  ;;  %v7466_v62 = vpack.c.bf16 %v850_v61, %v849_v59  ;;  %v851_v63 = vld [vmem:[%s10804_s3 + $0x2a0] sm:$0xff] }
 0x8e2   :  { %v678_v5 = vadd.f32 1e-05, %v676_v0  ;;  %v852_v0 = vld [vmem:[%s10804_s3 + $0x2b0] sm:$0xff] }
 0x8e3   :  { %8168 = vrsqrt.f32 %v677_v2  ;;  %v7470_v2 = vpack.c.bf16 %v852_v0, %v851_v63 }
 0x8e4   :  { %8170 = vrsqrt.f32 %v678_v5  ;;  %v853_v5 = vld [vmem:[%s10804_s3 + $0x2c0] sm:$0xff] }
 0x8ed   :  { %v8169_v10 = vpop.eup %8168 }
 0x8ee   :  { %v8171_v11 = vpop.eup %8170  ;;  %v681_v12 = vmul.f32 %v8169_v10, %v657_v6  ;;  %v855_v10 = vld [vmem:[%s10804_s3 + $0x2e0] sm:$0xff] }
 0x8ef   :  { %v682_v13 = vmul.f32 %v8171_v11, %v658_v9  ;;  %v856_v11 = vld [vmem:[%s10804_s3 + $0x2f0] sm:$0xff] }
 0x8f0   :  { %v683_v14 = vmul.f32 %v681_v12, %v669_v55 }
 0x8f1   :  { %v684_v15 = vmul.f32 %v682_v13, %v670_v54  ;;  %v846_v54 = vld [vmem:[%s10804_s3 + $0x250] sm:$0xff] }
 0x8f2   :  { %687 = vrot.lane.b32.xlu0 %v683_v14, %s8258_s22  ;;  %v7458_v55 = vpack.c.bf16 %v846_v54, %v845_v53 }
 0x8f3   :  { %689 = vrot.lane.b32.xlu1 %v684_v15, %s8258_s22 }
 0x8f4   :  { %7459 = vmatprep.subr.bf16.mxu0 %v7458_v55 }
 0x8f5   :  { %7461 = vmatpush3.bf16.msra.mxu0 %v7458_v55 }
 0x8f6   :  { %702 = vperm.xlu0 %8109, %v682_v13   ;;  %7463 = vmatprep.subr.bf16.mxu0 %v7462_v58 }
 0x8f7   :  { %697 = vperm.xlu1 %8107, %v681_v12   ;;  %v7478_v12 = vpack.c.bf16 %v856_v11, %v855_v10 }
 0x8f9   :  { %7465 = vmatpush3.bf16.msra.mxu0 %v7462_v58 }
 0x8fa   :  { %8112 = vset.pattern.permute.xlu0 %v10845_v27  ;;  %7467 = vmatprep.subr.bf16.mxu0 %v7466_v62 }
 0x8fb   :  { %8110 = vset.pattern.permute.xlu1 %v10845_v27 }
 0x8fd   :  { %7469 = vmatpush3.bf16.msra.mxu0 %v7466_v62 }
 0x8fe   :  { %7471 = vmatprep.subr.bf16.mxu0 %v7470_v2 }
 0x901   :  { %7473 = vmatpush3.bf16.msra.mxu0 %v7470_v2 }
 0x964   :  { %v688_v16 = vpop.permute.xlu0 %687 }
 0x965   :  { %v693_v18 = vsub.f32 %v657_v6, %v688_v16  ;;  %v690_v19 = vpop.permute.xlu1 %689  ;;  %v854_v6 = vld [vmem:[%s10804_s3 + $0x2d0] sm:$0xff] }
 0x966   :  { %v694_v22 = vsub.f32 %v658_v9, %v690_v19  ;;  %v7474_v9 = vpack.c.bf16 %v854_v6, %v853_v5 }
 0x967   :  { %709 = vperm.xlu1 %8110, %v693_v18  }
 0x968   :  { %7475 = vmatprep.subr.bf16.mxu0 %v7474_v9 }
 0x969   :  { %7477 = vmatpush3.bf16.msra.mxu0 %v7474_v9 }
 0x96a   :  { %7479 = vmatprep.subr.bf16.mxu0 %v7478_v12 }
 0x96b   :  { %714 = vperm.xlu1 %8110, %v694_v22  }
 0x96d   :  { %7481 = vmatpush3.bf16.msra.mxu0 %v7478_v12 }
 0x96f   :  { %8111 = vset.pattern.permute.xlu1 %v10843_v17 }
 0x975   :  { %v703_v28 = vpop.permute.xlu0 %702 }
 0x976   :  { %v698_v24 = vpop.permute.xlu1 %697  ;;  %v706_v41 = vmul.f32 %v8676_v46, %v703_v28 }
 0x977   :  { %v705_v25 = vmul.f32 %v698_v24, %v8679_v47 }
 0x9e6   :  { %v710_v30 = vpop.permute.xlu1 %709 }
 0x9e7   :  { %v717_v42 = vadd.f32 %v710_v30, %v705_v25 }
 0x9e9   :  { %v719_v31 = vmax.f32 %v717_v42, 0.0 }
 0x9ea   :  { %v715_v34 = vpop.permute.xlu1 %714 }
 0x9eb   :  { %v718_v36 = vadd.f32 %v715_v34, %v706_v41  ;;  %721 = vrot.lane.b32.xlu0 %v719_v31, %s8255_s17 }
 0x9ed   :  { %v720_v37 = vmax.f32 %v718_v36, 0.0 }
 0x9ef   :  { %727 = vrot.lane.b32.xlu0 %v719_v31, %s8257_s21  ;;  %723 = vrot.lane.b32.xlu1 %v720_v37, %s8255_s17  ;;  %v8702_v38 = vpack.c.bf16 %v720_v37, %v719_v31 }
 0x9f3   :  { %733 = vrot.lane.b32.xlu0 %v719_v31, %s8258_s22  ;;  %729 = vrot.lane.b32.xlu1 %v720_v37, %s8257_s21 }
 0x9f7   :  { %739 = vrot.lane.b32.xlu0 %v719_v31, %s8259_s0  ;;  %735 = vrot.lane.b32.xlu1 %v720_v37, %s8258_s22 }
 0x9fb   :  { %745 = vrot.lane.b32.xlu0 %v719_v31, %s8260_s23  ;;  %741 = vrot.lane.b32.xlu1 %v720_v37, %s8259_s0 }
 0x9ff   :  { %751 = vrot.lane.b32.xlu0 %v719_v31, %s8261_s24  ;;  %747 = vrot.lane.b32.xlu1 %v720_v37, %s8260_s23 }
 0xa03   :  { %753 = vrot.lane.b32.xlu1 %v720_v37, %s8261_s24 }
 0xa5d   :  { %v722_v13 = vpop.permute.xlu0 %721 }
 0xa5e   :  { %v725_v16 = vmul.f32 %v8652_v21, %v722_v13 }
 0xa61   :  { %v724_v14 = vpop.permute.xlu1 %723  ;;  %v728_v15 = vpop.permute.xlu0 %727 }
 0xa62   :  { %v726_v18 = vmul.f32 %v8652_v21, %v724_v14  ;;  %v731_v25 = vmul.f32 %v8649_v20, %v728_v15 }
 0xa64   :  { %v7422_v19 = vpack.c.bf16 %v726_v18, %v725_v16 }
 0xa65   :  { %v730_v22 = vpop.permute.xlu1 %729  ;;  %v734_v24 = vpop.permute.xlu0 %733 }
 0xa66   :  { %v732_v28 = vmul.f32 %v8649_v20, %v730_v22  ;;  %7423 = vmatprep.subr.bf16.mxu1 %v7422_v19  ;;  %v737_v31 = vmul.f32 %v8657_v29, %v734_v24 }
 0xa67   :  { %7425 = vmatpush3.bf16.msra.mxu1 %v7422_v19 }
 0xa68   :  { %v7426_v30 = vpack.c.bf16 %v732_v28, %v731_v25 }
 0xa69   :  { %v736_v42 = vpop.permute.xlu1 %735  ;;  %v740_v41 = vpop.permute.xlu0 %739 }
 0xa6a   :  { %v738_v34 = vmul.f32 %v8657_v29, %v736_v42  ;;  %7427 = vmatprep.subr.bf16.mxu1 %v7426_v30  ;;  %v743_v44 = vmul.f32 %v8661_v32, %v740_v41  ;;  %v8800_v41 = vld [vmem:[%s10803_s2 + $0x20] sm:$0xff] }
 0xa6b   :  { %7429 = vmatpush3.bf16.msra.mxu1 %v7426_v30 }
 0xa6c   :  { %v7430_v36 = vpack.c.bf16 %v738_v34, %v737_v31 }
 0xa6d   :  { %v742_v37 = vpop.permute.xlu1 %741  ;;  %v746_v43 = vpop.permute.xlu0 %745 }
 0xa6e   :  { %v744_v40 = vmul.f32 %v8661_v32, %v742_v37  ;;  %7431 = vmatprep.subr.bf16.mxu1 %v7430_v36  ;;  %v749_v52 = vmul.f32 %v8664_v33, %v746_v43 }
 0xa6f   :  { %7433 = vmatpush3.bf16.msra.mxu1 %v7430_v36  ;;  %v8806_v36 = vld [vmem:[%s10803_s2 + $0x28] sm:$0xff] }
 0xa70   :  { %7435 = vmatprep.subr.bf16.mxu1 %v8702_v38  ;;  %v7438_v49 = vpack.c.bf16 %v744_v40, %v743_v44 }
 0xa71   :  { %v748_v45 = vpop.permute.xlu1 %747  ;;  %v752_v53 = vpop.permute.xlu0 %751 }
 0xa72   :  { %v750_v50 = vmul.f32 %v8664_v33, %v748_v45  ;;  %v755_v57 = vmul.f32 %v8669_v39, %v752_v53  ;;  %v8812_v45 = vshrl.u32 %v19_v3, 7  ;;  %v10961_v53 = vmov 0 }
 0xa73   :  { %7437 = vmatpush3.bf16.msra.mxu1 %v8702_v38  ;;  %v758_v38 = vld [vmem:[%s10802_s1 + $0x50] sm:$0xff] }
 0xa74   :  { %7439 = vmatprep.subr.bf16.mxu1 %v7438_v49  ;;  %v7442_v55 = vpack.c.bf16 %v750_v50, %v749_v52  ;;  %v8817_v50 = vadd.s32 8, %v8812_v45 }
 0xa75   :  { %v754_v54 = vpop.permute.xlu1 %753 }
 0xa76   :  { %v756_v56 = vmul.f32 %v8669_v39, %v754_v54 }
 0xa77   :  { %7441 = vmatpush3.bf16.msra.mxu1 %v7438_v49  ;;  %v5951_v49 = vadd.s32 4294967264, %v8338_v4 }
 0xa78   :  { %7443 = vmatprep.subr.bf16.mxu1 %v7442_v55  ;;  %v7446_v58 = vpack.c.bf16 %v756_v56, %v755_v57  ;;  %v8847_v56 = vadd.s32 24, %v8812_v45  ;;  %v10921_v57 = vmov 0 }
 0xa79   :  { %v8822_v52 = vsel %vm10829_vm0, %v5951_v49, %v8338_v4 }
 0xa7a   :  { %v1053_v3 = vadd.s32 4294967294, %v8822_v52  ;;  %v8832_v54 = vadd.s32 1, %v8822_v52 }
 0xa7b   :  { %7445 = vmatpush3.bf16.msra.mxu1 %v7442_v55  ;;  %v8838_v55 = vadd.s32 16, %v8812_v45 }
 0xa7c   :  { %7447 = vmatprep.subr.bf16.mxu1 %v7446_v58  ;;  %vm1054_vm5 = vcmp.eq.s32.totalorder %v8812_v45, %v1053_v3  ;;  %vm1055_vm6 = vcmp.eq.s32.totalorder %v8817_v50, %v1053_v3  ;;  %vm1276_vm12 = vcmp.eq.s32.totalorder %v8812_v45, %v8832_v54  ;;  %vm1277_vm10 = vcmp.eq.s32.totalorder %v8817_v50, %v8832_v54 }
 0xa7d   :  { %vm1062_vm14 = vmand %vm8826_vm1, %vm1054_vm5  ;;  %vm1056_vm8 = vcmp.eq.s32.totalorder %v8838_v55, %v1053_v3  ;;  %vm1278_vm2 = vcmp.eq.s32.totalorder %v8838_v55, %v8832_v54 }
 0xa7e   :  { %vm1063_vm11 = vmand %vm8826_vm1, %vm1055_vm6 }
 0xa7f   :  { %7449 = vmatpush3.bf16.msra.mxu1 %v7446_v58  ;;  %vm8853_vm9 = vmpackc.low %vm1063_vm11, %vm1062_vm14  ;;  %v1007_v58 = vadd.s32 40, %v8812_v45  ;;  %vm1057_vm14 = vcmp.eq.s32.totalorder %v8847_v56, %v1053_v3 }
 0xa80   :  { %v10922_v57 = vsel %vm8853_vm9, 4294967295, %v10921_v57  ;;  %vm1284_vm6 = vmand %vm8826_vm1, %vm1276_vm12 }
 0xa81   :  { %vm1285_vm11 = vmand %vm8826_vm1, %vm1277_vm10 }
 0xa82   :  { %6722 = vmatmul.mubr.msk.f32.vlgmr.msra.gmra.mrb[4].mxu1 %vm10815_vm13, %v758_v38  ;;  %v10841_v38 = vmov 1.0|1.0   ;;  %vm8873_vm7 = vmpackc.low %vm1285_vm11, %vm1284_vm6  ;;  %vm1279_vm6 = vcmp.eq.s32.totalorder %v8847_v56, %v8832_v54 }
 0xa83   :  { %7483 = vmatprep.subr.msk.bf16.mxu1 %vm8853_vm9, %v10841_v38  ;;  %7515 = vmatprep.subr.msk.bf16.mxu0 %vm8873_vm7, %v10841_v38  ;;  %vm1064_vm4 = vmand %vm8826_vm1, %vm1056_vm8 }
 0xa84   :  { %7485 = vmatpush3.bf16.msk.msra.mxu1 %vm8853_vm9, %v10841_v38  ;;  %vm1065_vm10 = vmand %vm8826_vm1, %vm1057_vm14 }
 0xa85   :  { %vm8893_vm11 = vmpackc.low %vm1065_vm10, %vm1064_vm4 }
 0xa86   :  { %7487 = vmatprep.subr.msk.bf16.mxu1 %vm8893_vm11, %v10841_v38  ;;  %vm1286_vm8 = vmand %vm8826_vm1, %vm1278_vm2 }
 0xa87   :  { %vm1287_vm14 = vmand %vm8826_vm1, %vm1279_vm6 }
 0xa88   :  { %7489 = vmatpush3.bf16.msk.msra.mxu1 %vm8893_vm11, %v10841_v38  ;;  %vm8908_vm4 = vmpackc.low %vm1287_vm14, %vm1286_vm8 }
 0xa89   :  { %vm1066_vm2 = vmand %vm10829_vm0, %vm1054_vm5 }
 0xa8a   :  { %vm1288_vm5 = vmand %vm10829_vm0, %vm1276_vm12 }
 0xb55   :  { %v6723_v59 = vpop.f32.mrb[4].mxu1 }
 0xb56   :  { %v832_v61 = vpop.f32.mrb[5].mxu1 }
 0xb57   :  { %6756 = vmatprep.mubr.f32.mxu0 %v832_v61  ;;  %v8884_v61 = vadd.s32 4294967264, %v1007_v58 }
 0xb58   :  { %6757 = vmatmul.mubr.f32.vlgmr.msra.gmra.mrb[4].mxu0 %v6723_v59  ;;  %v10923_v59 = vmov 0 }
 0xb59   :  { %v10924_v59 = vsel %vm8873_vm7, 4294967295, %v10923_v59  ;;  %7517 = vmatpush3.bf16.msk.msra.mxu0 %vm8873_vm7, %v10841_v38  ;;  %vm1059_vm3 = vcmp.eq.s32.totalorder %v8884_v61, %v1053_v3 }
 0xb5a   :  { %7519 = vmatprep.subr.msk.bf16.mxu0 %vm8908_vm4, %v10841_v38  ;;  %vm1067_vm10 = vmand %vm10829_vm0, %vm1059_vm3  ;;  %vm1281_vm3 = vcmp.eq.s32.totalorder %v8884_v61, %v8832_v54 }
 0xb5b   :  { %vm8924_vm6 = vmpackc.low %vm1067_vm10, %vm1066_vm2 }
 0xb5c   :  { %7491 = vmatprep.subr.msk.bf16.mxu1 %vm8924_vm6, %v10841_v38  ;;  %vm1289_vm8 = vmand %vm10829_vm0, %vm1281_vm3 }
 0xb5d   :  { %7521 = vmatpush3.bf16.msk.msra.mxu0 %vm8908_vm4, %v10841_v38  ;;  %7493 = vmatpush3.bf16.msk.msra.mxu1 %vm8924_vm6, %v10841_v38  ;;  %vm8946_vm14 = vmpackc.low %vm1289_vm8, %vm1288_vm5 }
 0xb5e   :  { %7523 = vmatprep.subr.msk.bf16.mxu0 %vm8946_vm14, %v10841_v38 }
 0xb61   :  { %7525 = vmatpush3.bf16.msk.msra.mxu0 %vm8946_vm14, %v10841_v38 }
 0xc2b   :  { %v8783_v62 = vpop.f32.mrb[4].mxu0 }
 0xc2c   :  { %v8785_v63 = vpop.f32.mrb[5].mxu0  ;;  %v938_v0 = vsel %vm10816_vm15, %v8783_v62, 0.0  ;;  %v942_v9 = vmul.f32 %v8783_v62, %v8783_v62 }
 0xc2d   :  { %939 = vadd.xlane.f32.xlu1 %v938_v0  ;;  %v935_v2 = vsel %vm10816_vm15, %v8785_v63, 0.0  ;;  %v941_v5 = vmul.f32 %v8785_v63, %v8785_v63  ;;  %v10925_v0 = vmov 0 }
 0xc2e   :  { %936 = vadd.xlane.f32.xlu0 %v935_v2  ;;  %v946_v10 = vsel %vm10816_vm15, %v942_v9, 0.0  ;;  %v10926_v0 = vsel %vm8893_vm11, 4294967295, %v10925_v0  ;;  %v10927_v2 = vmov 0  ;;  %v1009_v9 = vadd.s32 56, %v8812_v45 }
 0xc2f   :  { %v943_v6 = vsel %vm10816_vm15, %v941_v5, 0.0  ;;  %v10928_v2 = vsel %vm8908_vm4, 4294967295, %v10927_v2  ;;  %v10929_v5 = vmov 0 }
 0xc30   :  { %v10930_v5 = vsel %vm8924_vm6, 4294967295, %v10929_v5 }
 0xc32   :  { %944 = vadd.xlane.f32.xlu0 %v943_v6  ;;  %v1008_v6 = vadd.s32 48, %v8812_v45 }
 0xc36   :  { %947 = vadd.xlane.f32.xlu0 %v946_v10 }
 0xcba   :  { %v940_v13 = vpop.xlane.xlu1 %939 }
 0xcbb   :  { %v937_v11 = vpop.xlane.xlu0 %936  ;;  %v950_v15 = vmul.f32 0.015625, %v940_v13  ;;  %v5950_v13 = vadd.s32 4294967264, %v1009_v9 }
 0xcbc   :  { %v949_v12 = vmul.f32 0.015625, %v937_v11 }
 0xcbd   :  { %v954_v24 = vmul.f32 %v950_v15, %v950_v15  ;;  %vm1061_vm10 = vcmp.eq.s32.totalorder %v5950_v13, %v1053_v3  ;;  %vm1283_vm5 = vcmp.eq.s32.totalorder %v5950_v13, %v8832_v54 }
 0xcbe   :  { %v953_v16 = vmul.f32 %v949_v12, %v949_v12  ;;  %vm1069_vm3 = vmand %vm10829_vm0, %vm1061_vm10 }
 0xcbf   :  { %v945_v14 = vpop.xlane.xlu0 %944  ;;  %vm1291_vm10 = vmand %vm10829_vm0, %vm1283_vm5 }
 0xcc0   :  { %v951_v18 = vmul.f32 0.015625, %v945_v14  ;;  %v10931_v14 = vmov 0 }
 0xcc1   :  { %v10932_v14 = vsel %vm8946_vm14, 4294967295, %v10931_v14 }
 0xcc2   :  { %v955_v19 = vsub.f32 %v951_v18, %v953_v16  ;;  %v1167_v18 = vadd.s32 4294967295, %v8822_v52 }
 0xcc3   :  { %v948_v22 = vpop.xlane.xlu0 %947 }
 0xcc4   :  { %v957_v25 = vadd.f32 1e-05, %v955_v19  ;;  %v952_v28 = vmul.f32 0.015625, %v948_v22  ;;  %v10933_v19 = vmov 0  ;;  %vm1168_vm15 = vcmp.eq.s32.totalorder %v8812_v45, %v1167_v18 }
 0xcc5   :  { %v10935_v22 = vmov 0  ;;  %vm1180_vm14 = vmand %vm10829_vm0, %vm1168_vm15 }
 0xcc6   :  { %8172 = vrsqrt.f32 %v957_v25  ;;  %v956_v30 = vsub.f32 %v952_v28, %v954_v24  ;;  %v10937_v24 = vmov 0  ;;  %v10939_v25 = vmov 0 }
 0xcc7   :  { %v10941_v28 = vmov 0 }
 0xcc8   :  { %v958_v42 = vadd.f32 1e-05, %v956_v30  ;;  %v1383_v30 = vadd.s32 2, %v8822_v52  ;;  %v10947_v52 = vmov 0 }
 0xcca   :  { %8174 = vrsqrt.f32 %v958_v42  ;;  %v10943_v42 = vmov 0 }
 0xcd0   :  { %v8173_v31 = vpop.eup %8172 }
 0xcd1   :  { %v961_v34 = vmul.f32 %v8173_v31, %v8800_v41 }
 0xcd3   :  { %v963_v37 = vmul.f32 %v961_v34, %v949_v12  ;;  %v5949_v12 = vadd.s32 4294967264, %v1008_v6 }
 0xcd4   :  { %v8175_v40 = vpop.eup %8174 }
 0xcd5   :  { %967 = vrot.lane.b32.xlu1 %v963_v37, %s8258_s22  ;;  %v962_v43 = vmul.f32 %v8175_v40, %v8806_v36  ;;  %vm1060_vm2 = vcmp.eq.s32.totalorder %v5949_v12, %v1053_v3  ;;  %vm1282_vm13 = vcmp.eq.s32.totalorder %v5949_v12, %v8832_v54  ;;  %v10952_v3 = vmov 0 }
 0xcd6   :  { %vm1068_vm12 = vmand %vm10829_vm0, %vm1060_vm2  ;;  %v10954_v54 = vmov 0 }
 0xcd7   :  { %v964_v44 = vmul.f32 %v962_v43, %v950_v15  ;;  %vm8964_vm8 = vmpackc.low %vm1069_vm3, %vm1068_vm12  ;;  %vm1169_vm12 = vcmp.eq.s32.totalorder %v8817_v50, %v1167_v18 }
 0xcd8   :  { %v10934_v19 = vsel %vm8964_vm8, 4294967295, %v10933_v19  ;;  %7495 = vmatprep.subr.msk.bf16.mxu1 %vm8964_vm8, %v10841_v38  ;;  %vm1290_vm2 = vmand %vm10829_vm0, %vm1282_vm13 }
 0xcd9   :  { %977 = vperm.xlu1 %8111, %v961_v34   ;;  %969 = vrot.lane.b32.xlu0 %v964_v44, %s8258_s22  ;;  %vm8981_vm3 = vmpackc.low %vm1291_vm10, %vm1290_vm2  ;;  %vm1173_vm10 = vcmp.eq.s32.totalorder %v8884_v61, %v1167_v18 }
 0xcda   :  { %7497 = vmatpush3.bf16.msk.msra.mxu1 %vm8964_vm8, %v10841_v38  ;;  %v10936_v22 = vsel %vm8981_vm3, 4294967295, %v10935_v22  ;;  %7527 = vmatprep.subr.msk.bf16.mxu0 %vm8981_vm3, %v10841_v38  ;;  %vm1176_vm13 = vmand %vm8826_vm1, %vm1168_vm15  ;;  %vm1390_vm15 = vcmp.eq.s32.totalorder %v5949_v12, %v1383_v30 }
 0xcdb   :  { %7529 = vmatpush3.bf16.msk.msra.mxu0 %vm8981_vm3, %v10841_v38  ;;  %vm1177_vm5 = vmand %vm8826_vm1, %vm1169_vm12  ;;  %vm1174_vm12 = vcmp.eq.s32.totalorder %v5949_v12, %v1167_v18 }
 0xcdc   :  { %vm8996_vm2 = vmpackc.low %vm1177_vm5, %vm1176_vm13  ;;  %vm1175_vm13 = vcmp.eq.s32.totalorder %v5950_v13, %v1167_v18 }
 0xcdd   :  { %982 = vperm.xlu1 %8111, %v962_v43   ;;  %v10938_v24 = vsel %vm8996_vm2, 4294967295, %v10937_v24  ;;  %7499 = vmatprep.subr.msk.bf16.mxu1 %vm8996_vm2, %v10841_v38  ;;  %vm1181_vm3 = vmand %vm10829_vm0, %vm1173_vm10  ;;  %vm1391_vm10 = vcmp.eq.s32.totalorder %v5950_v13, %v1383_v30 }
 0xcde   :  { %vm9008_vm4 = vmpackc.low %vm1181_vm3, %vm1180_vm14 }
 0xcdf   :  { %v10940_v25 = vsel %vm9008_vm4, 4294967295, %v10939_v25  ;;  %vm1182_vm5 = vmand %vm10829_vm0, %vm1174_vm12  ;;  %vm1171_vm12 = vcmp.eq.s32.totalorder %v8847_v56, %v1167_v18 }
 0xce0   :  { %vm1183_vm7 = vmand %vm10829_vm0, %vm1175_vm13 }
 0xce1   :  { %8113 = vset.pattern.permute.xlu1 %v10845_v27  ;;  %vm9016_vm8 = vmpackc.low %vm1183_vm7, %vm1182_vm5  ;;  %vm1170_vm7 = vcmp.eq.s32.totalorder %v8838_v55, %v1167_v18  ;;  %vm10945_vm5 = vcmask 523264  }
 0xce2   :  { %v10942_v28 = vsel %vm9016_vm8, 4294967295, %v10941_v28  ;;  %vm1398_vm14 = vmand %vm10829_vm0, %vm1390_vm15 }
 0xce3   :  { %vm1399_vm3 = vmand %vm10829_vm0, %vm1391_vm10 }
 0xce4   :  { %vm9025_vm6 = vmpackc.low %vm1399_vm3, %vm1398_vm14 }
 0xce5   :  { %v10944_v42 = vsel %vm9025_vm6, 4294967295, %v10943_v42  ;;  %vm1178_vm13 = vmand %vm8826_vm1, %vm1170_vm7 }
 0xce6   :  { %vm10946_vm15 = vmmov %vm10945_vm5 }
 0xce7   :  { %vm1179_vm10 = vmand %vm8826_vm1, %vm1171_vm12  ;;  %vm10830_vm12 = vcmp.eq.s32.totalorder %v8812_v45, %v1383_v30 }
 0xce8   :  { %vm9039_vm14 = vmpackc.low %vm1179_vm10, %vm1178_vm13  ;;  %vm1385_vm13 = vcmp.eq.s32.totalorder %v8817_v50, %v1383_v30  ;;  %vm1387_vm10 = vcmp.eq.s32.totalorder %v8847_v56, %v1383_v30 }
 0xce9   :  { %v10948_v52 = vsel %vm9039_vm14, 4294967295, %v10947_v52  ;;  %vm10949_vm3 = vmmov %vm10945_vm5 }
 0xcea   :  { %vm10950_vm0 = vmmov %vm10949_vm3 }
 0xceb   :  { %vm10951_vm7 = vmmov %vm10950_vm0 }
 0xd47   :  { %v968_v10 = vpop.permute.xlu1 %967 }
 0xd48   :  { %v973_v11 = vsub.f32 %v8800_v41, %v968_v10 }
 0xd4a   :  { %989 = vperm.xlu0 %8112, %v973_v11  }
 0xd4b   :  { %v970_v15 = vpop.permute.xlu0 %969 }
 0xd4c   :  { %v974_v16 = vsub.f32 %v8806_v36, %v970_v15 }
 0xd4e   :  { %994 = vperm.xlu1 %8113, %v974_v16   ;;  %8115 = vset.pattern.permute.xlu0 %v10843_v17 }
 0xd52   :  { %8114 = vset.pattern.permute.xlu1 %v10843_v17 }
 0xd58   :  { %v978_v41 = vpop.permute.xlu1 %977 }
 0xd59   :  { %v985_v31 = vmul.f32 %v978_v41, %v8785_v63  ;;  %v1492_v41 = vld [vmem:[%s10802_s1 + $0x70] sm:$0xff] }
 0xd5c   :  { %v983_v34 = vpop.permute.xlu1 %982 }
 0xd5d   :  { %v986_v40 = vmul.f32 %v8783_v62, %v983_v34  ;;  %v1494_v34 = vld [vmem:[%s10802_s1 + $0x90] sm:$0xff] }
 0xdc9   :  { %v990_v36 = vpop.permute.xlu0 %989 }
 0xdca   :  { %v997_v37 = vadd.f32 %v990_v36, %v985_v31  ;;  %v1493_v31 = vld [vmem:[%s10802_s1 + $0x80] sm:$0xff] }
 0xdcc   :  { %v999_v43 = vmax.f32 %v997_v37, 0.0 }
 0xdcd   :  { %v995_v44 = vpop.permute.xlu1 %994 }
 0xdce   :  { %v998_v49 = vadd.f32 %v995_v44, %v986_v40  ;;  %6775 = vmatprep.mubr.msk.f32.mxu1 %vm10945_vm5, %v999_v43  ;;  %6813 = vmatprep.mubr.msk.f32.mxu0 %vm10946_vm15, %v999_v43  ;;  %vm1393_vm5 = vmand %vm8826_vm1, %vm1385_vm13  ;;  %vm1386_vm15 = vcmp.eq.s32.totalorder %v8838_v55, %v1383_v30  ;;  %v1491_v55 = vld [vmem:[%s10802_s1 + $0x60] sm:$0xff] }
 0xdcf   :  { %vm1395_vm13 = vmand %vm8826_vm1, %vm1387_vm10 }
 0xdd0   :  { %v1000_v63 = vmax.f32 %v998_v49, 0.0 }
 0xdd2   :  { %6776 = vmatmul.mubr.msk.f32.vlgmr.msra.gmra.mrb[6].mxu1 %vm10949_vm3, %v1000_v63  ;;  %6814 = vmatmul.mubr.msk.f32.vlgmr.msra.gmra.mrb[6].mxu0 %vm10950_vm0, %v1000_v63  ;;  %v7554_v62 = vpack.c.bf16 %v1000_v63, %v999_v43  ;;  %vm1392_vm0 = vmand %vm8826_vm1, %vm10830_vm12  ;;  %vm1389_vm12 = vcmp.eq.s32.totalorder %v8884_v61, %v1383_v30 }
 0xdd3   :  { %7501 = vmatpush3.bf16.msk.msra.mxu1 %vm8996_vm2, %v10841_v38  ;;  %6794 = vmatprep.mubr.msk.f32.mxu1 %vm10951_vm7, %v999_v43  ;;  %vm9071_vm3 = vmpackc.low %vm1393_vm5, %vm1392_vm0  ;;  %vm10956_vm5 = vcmp.eq.s32.totalorder %v8812_v45, %v1383_v30 }
 0xdd4   :  { %7503 = vmatprep.subr.msk.bf16.mxu1 %vm9039_vm14, %v10841_v38  ;;  %v10953_v3 = vsel %vm9071_vm3, 4294967295, %v10952_v3  ;;  %vm1394_vm7 = vmand %vm8826_vm1, %vm1386_vm15  ;;  %vm10957_vm15 = vcmp.ge.s32.totalorder %v8338_v4, 32  ;;  %vm10958_vm1 = vcmask 523264  }
 0xdd5   :  { %vm9089_vm0 = vmpackc.low %vm1395_vm13, %vm1394_vm7  ;;  %vm1495_vm13 = vcmask 654336  }
 0xdd6   :  { %v10955_v54 = vsel %vm9089_vm0, 4294967295, %v10954_v54  ;;  %vm10959_vm10 = vmmov %vm10957_vm15  ;;  %6855 = vmatprep.mubr.msk.f32.mxu0 %vm1495_vm13, %v1491_v55 }
 0xdd7   :  { %7505 = vmatpush3.bf16.msk.msra.mxu1 %vm9039_vm14, %v10841_v38  ;;  %vm10960_vm14 = vmmov %vm10958_vm1 }
 0xdd8   :  { %7507 = vmatprep.subr.msk.bf16.mxu1 %vm9008_vm4, %v10841_v38 }
 0xddb   :  { %7509 = vmatpush3.bf16.msk.msra.mxu1 %vm9008_vm4, %v10841_v38  ;;  %vm1396_vm4 = vmand %vm10957_vm15, %vm10956_vm5  ;;  %vm10967_vm5 = vnez %v10948_v52  ;;  %vm10968_vm15 = vnez %v10940_v25 }
 0xddc   :  { %7511 = vmatprep.subr.msk.bf16.mxu1 %vm9016_vm8, %v10841_v38 }
 0xddf   :  { %7513 = vmatpush3.bf16.msk.msra.mxu1 %vm9016_vm8, %v10841_v38  ;;  %vm1397_vm8 = vmand %vm10959_vm10, %vm1389_vm12  ;;  %vm10966_vm12 = vnez %v10924_v59  ;;  %v4879_v59 = vld [vmem:[%s10802_s1 + $0x1e8] sm:$0xff] }
 0xde0   :  { %7531 = vmatprep.subr.msk.bf16.mxu1 %vm9071_vm3, %v10841_v38  ;;  %vm9107_vm7 = vmpackc.low %vm1397_vm8, %vm1396_vm4  ;;  %vm10964_vm8 = vnez %v10930_v5 }
 0xde1   :  { %v10962_v53 = vsel %vm9107_vm7, 4294967295, %v10961_v53  ;;  %vm10963_vm4 = vmmov %vm10958_vm1 }
 0xde2   :  { %6795 = vmatmul.mubr.msk.f32.vlgmr.msra.gmra.mrb[8].mxu1 %vm10958_vm1, %v1000_v63  ;;  %vm10969_vm1 = vnez %v10942_v28  ;;  %vm10970_vm10 = vmmov %vm10963_vm4 }
 0xde3   :  { %7533 = vmatpush3.bf16.msk.msra.mxu1 %vm9071_vm3, %v10841_v38  ;;  %6832 = vmatprep.mubr.msk.f32.mxu1 %vm10960_vm14, %v999_v43  ;;  %vm10965_vm14 = vnez %v10934_v19 }
 0xde4   :  { %7535 = vmatprep.subr.msk.bf16.mxu1 %vm9089_vm0, %v10841_v38 }
 0xde7   :  { %7537 = vmatpush3.bf16.msk.msra.mxu1 %vm9089_vm0, %v10841_v38 }
 0xde8   :  { %7539 = vmatprep.subr.msk.bf16.mxu1 %vm9107_vm7, %v10841_v38 }
 0xdeb   :  { %7541 = vmatpush3.bf16.msk.msra.mxu1 %vm9107_vm7, %v10841_v38 }
 0xdec   :  { %7543 = vmatprep.subr.msk.bf16.mxu1 %vm9025_vm6, %v10841_v38 }
 0xdef   :  { %7545 = vmatpush3.bf16.msk.msra.mxu1 %vm9025_vm6, %v10841_v38 }
 0xdf0   :  { %7567 = vmatprep.subr.msk.bf16.mxu1 %vm8853_vm9, %v10841_v38 }
 0xdf2   :  { %6833 = vmatmul.mubr.msk.f32.vlgmr.msra.gmra.mrb[10].mxu1 %vm10963_vm4, %v1000_v63 }
 0xdf3   :  { %7569 = vmatpush3.bf16.msk.msra.mxu1 %vm8853_vm9, %v10841_v38 }
 0xdf4   :  { %7571 = vmatprep.subr.msk.bf16.mxu1 %vm8893_vm11, %v10841_v38 }
 0xdf7   :  { %7573 = vmatpush3.bf16.msk.msra.mxu1 %vm8893_vm11, %v10841_v38 }
 0xdf8   :  { %7575 = vmatprep.subr.msk.bf16.mxu1 %vm10964_vm8, %v10841_v38 }
 0xdfb   :  { %7577 = vmatpush3.bf16.msk.msra.mxu1 %vm10964_vm8, %v10841_v38 }
 0xdfc   :  { %7579 = vmatprep.subr.msk.bf16.mxu1 %vm10965_vm14, %v10841_v38 }
 0xdff   :  { %7581 = vmatpush3.bf16.msk.msra.mxu1 %vm10965_vm14, %v10841_v38 }
 0xe00   :  { %7599 = vmatprep.subr.msk.bf16.mxu1 %vm10966_vm12, %v10841_v38 }
 0xea5   :  { %v6777_v58 = vpop.f32.mrb[6].mxu1  ;;  %v6815_v61 = vpop.f32.mrb[6].mxu0 }
 0xea6   :  { %v1158_v6 = vpop.f32.mrb[7].mxu1  ;;  %v1374_v9 = vpop.f32.mrb[7].mxu0 }
 0xea7   :  { %v7546_v10 = vpack.c.bf16 %v6777_v58, %v1158_v6  ;;  %v7558_v11 = vpack.c.bf16 %v6815_v61, %v1374_v9 }
 0xea9   :  { %7547 = vmatprep.subr.bf16.mxu0 %v7546_v10 }
 0xeaa   :  { %7549 = vmatpush3.bf16.msra.mxu0 %v7546_v10 }
 0xeb5   :  { %v6796_v12 = vpop.f32.mrb[8].mxu1 }
 0xeb6   :  { %v1266_v13 = vpop.f32.mrb[9].mxu1 }
 0xeb7   :  { %v7550_v15 = vpack.c.bf16 %v6796_v12, %v1266_v13 }
 0xeb9   :  { %7551 = vmatprep.subr.bf16.mxu0 %v7550_v15 }
 0xeba   :  { %7553 = vmatpush3.bf16.msra.mxu0 %v7550_v15 }
 0xebb   :  { %7555 = vmatprep.subr.bf16.mxu0 %v7554_v62 }
 0xebe   :  { %7557 = vmatpush3.bf16.msra.mxu0 %v7554_v62 }
 0xebf   :  { %7559 = vmatprep.subr.bf16.mxu0 %v7558_v11 }
 0xec2   :  { %7561 = vmatpush3.bf16.msra.mxu0 %v7558_v11 }
 0xec5   :  { %v6834_v16 = vpop.f32.mrb[10].mxu1 }
 0xec6   :  { %v1482_v18 = vpop.f32.mrb[11].mxu1 }
 0xec7   :  { %v7562_v30 = vpack.c.bf16 %v6834_v16, %v1482_v18 }
 0xec9   :  { %7563 = vmatprep.subr.bf16.mxu0 %v7562_v30 }
 0xeca   :  { %7565 = vmatpush3.bf16.msra.mxu0 %v7562_v30 }
 0xecb   :  { %7583 = vmatprep.subr.msk.bf16.mxu0 %vm8996_vm2, %v10841_v38 }
 0xecd   :  { %6856 = vmatmul.mubr.msk.f32.vlgmr.msra.gmra.mrb[8].mxu0 %vm1495_vm13, %v1492_v41 }
 0xece   :  { %6858 = vmatprep.mubr.msk.f32.mxu0 %vm1495_vm13, %v1493_v31  ;;  %7585 = vmatpush3.bf16.msk.msra.mxu0 %vm8996_vm2, %v10841_v38  ;;  %vm11005_vm2 = vcmp.ge.s32.totalorder %v8338_v4, 16 }
 0xecf   :  { %7587 = vmatprep.subr.msk.bf16.mxu0 %vm10967_vm5, %v10841_v38  ;;  %vm11006_vm14 = vmmov %vm11005_vm2 }
 0xed1   :  { %6859 = vmatmul.mubr.msk.f32.gmra.mrb[10].mxu0 %vm1495_vm13, %v1494_v34  ;;  %vm10971_vm13 = vmmov %vm10963_vm4 }
 0xed2   :  { %7589 = vmatpush3.bf16.msk.msra.mxu0 %vm10967_vm5, %v10841_v38 }
 0xed3   :  { %7591 = vmatprep.subr.msk.bf16.mxu0 %vm10968_vm15, %v10841_v38 }
 0xed6   :  { %7593 = vmatpush3.bf16.msk.msra.mxu0 %vm10968_vm15, %v10841_v38 }
 0xed7   :  { %7595 = vmatprep.subr.msk.bf16.mxu0 %vm10969_vm1, %v10841_v38 }
 0xeda   :  { %7597 = vmatpush3.bf16.msk.msra.mxu0 %vm10969_vm1, %v10841_v38  ;;  %vm10972_vm1 = vmmov %vm10963_vm4 }
 0xedb   :  { %7615 = vmatprep.subr.msk.bf16.mxu0 %vm9071_vm3, %v10841_v38  ;;  %vm10976_vm15 = vmmov %vm10972_vm1 }
 0xfa0   :  { %v9197_v36 = vpop.f32.mrb[8].mxu0 }
 0xfa1   :  { %v9199_v37 = vpop.f32.mrb[9].mxu0  ;;  %v1600_v40 = vsel %vm10970_vm10, %v9197_v36, 0.0  ;;  %v1610_v49 = vmul.f32 %v9197_v36, %v9197_v36  ;;  %vm10973_vm10 = vmmov %vm10972_vm1 }
 0xfa2   :  { %1601 = vadd.xlane.f32.xlu0 %v1600_v40  ;;  %v1597_v43 = vsel %vm10963_vm4, %v9199_v37, 0.0  ;;  %v1609_v44 = vmul.f32 %v9199_v37, %v9199_v37  ;;  %vm10974_vm4 = vmmov %vm10972_vm1 }
 0xfa3   :  { %1598 = vadd.xlane.f32.xlu1 %v1597_v43  ;;  %v1616_v58 = vsel %vm10972_vm1, %v1610_v49, 0.0 }
 0xfa4   :  { %v1613_v63 = vsel %vm10971_vm13, %v1609_v44, 0.0  ;;  %v9210_v62 = vpop.f32.mrb[10].mxu0  ;;  %vm10975_vm13 = vmmov %vm10972_vm1 }
 0xfa5   :  { %v9212_v55 = vpop.f32.mrb[11].mxu0  ;;  %v1606_v9 = vsel %vm10974_vm4, %v9210_v62, 0.0  ;;  %v1612_v10 = vmul.f32 %v9210_v62, %v9210_v62  ;;  %vm10981_vm4 = vmmov %vm10972_vm1 }
 0xfa6   :  { %1614 = vadd.xlane.f32.xlu0 %v1613_v63  ;;  %v1603_v61 = vsel %vm10973_vm10, %v9212_v55, 0.0  ;;  %v1611_v6 = vmul.f32 %v9212_v55, %v9212_v55  ;;  %vm10980_vm10 = vmmov %vm10972_vm1 }
 0xfa7   :  { %1617 = vadd.xlane.f32.xlu1 %v1616_v58  ;;  %v1622_v12 = vsel %vm10976_vm15, %v1612_v10, 0.0  ;;  %vm10979_vm15 = vmmov %vm10972_vm1 }
 0xfa8   :  { %v1619_v11 = vsel %vm10975_vm13, %v1611_v6, 0.0  ;;  %vm10983_vm13 = vmmov %vm10972_vm1 }
 0xfaa   :  { %1604 = vadd.xlane.f32.xlu0 %v1603_v61 }
 0xfab   :  { %1607 = vadd.xlane.f32.xlu1 %v1606_v9 }
 0xfae   :  { %1620 = vadd.xlane.f32.xlu0 %v1619_v11 }
 0xfaf   :  { %1623 = vadd.xlane.f32.xlu1 %v1622_v12 }
0x102f   :  { %v1602_v13 = vpop.xlane.xlu0 %1601 }
0x1030   :  { %v1599_v15 = vpop.xlane.xlu1 %1598  ;;  %v1626_v16 = vmul.f32 0.015625, %v1602_v13 }
0x1031   :  { %v1625_v18 = vmul.f32 0.015625, %v1599_v15 }
0x1032   :  { %v1634_v40 = vmul.f32 %v1626_v16, %v1626_v16 }
0x1033   :  { %v1633_v30 = vmul.f32 %v1625_v18, %v1625_v18  ;;  %v1615_v41 = vpop.xlane.xlu0 %1614 }
0x1034   :  { %v1629_v31 = vmul.f32 0.015625, %v1615_v41  ;;  %v1618_v34 = vpop.xlane.xlu1 %1617 }
0x1035   :  { %v1630_v43 = vmul.f32 0.015625, %v1618_v34 }
0x1036   :  { %v1637_v44 = vsub.f32 %v1629_v31, %v1633_v30  ;;  %v1593_v30 = vld [vmem:[%s10803_s2 + $0x30] sm:$0xff]  ;;  %v1594_v31 = vld [vmem:[%s10803_s2 + $0x38] sm:$0xff] }
0x1037   :  { %v1638_v49 = vsub.f32 %v1630_v43, %v1634_v40  ;;  %v1605_v63 = vpop.xlane.xlu0 %1604 }
0x1038   :  { %v1641_v58 = vadd.f32 1e-05, %v1637_v44  ;;  %v1627_v61 = vmul.f32 0.015625, %v1605_v63  ;;  %v1608_v6 = vpop.xlane.xlu1 %1607 }
0x1039   :  { %v1642_v9 = vadd.f32 1e-05, %v1638_v49  ;;  %v1628_v10 = vmul.f32 0.015625, %v1608_v6 }
0x103a   :  { %8176 = vrsqrt.f32 %v1641_v58  ;;  %v1635_v11 = vmul.f32 %v1627_v61, %v1627_v61 }
0x103b   :  { %8178 = vrsqrt.f32 %v1642_v9  ;;  %v1636_v12 = vmul.f32 %v1628_v10, %v1628_v10  ;;  %v1621_v13 = vpop.xlane.xlu0 %1620 }
0x103c   :  { %v1631_v15 = vmul.f32 0.015625, %v1621_v13  ;;  %v1624_v1 = vpop.xlane.xlu1 %1623 }
0x103d   :  { %v1632_v38 = vmul.f32 0.015625, %v1624_v1 }
0x103e   :  { %v1639_v41 = vsub.f32 %v1631_v15, %v1635_v11 }
0x103f   :  { %v1640_v17 = vsub.f32 %v1632_v38, %v1636_v12 }
0x1040   :  { %v1643_v27 = vadd.f32 1e-05, %v1639_v41 }
0x1041   :  { %v1644_v34 = vadd.f32 1e-05, %v1640_v17  ;;  %v1595_v17 = vld [vmem:[%s10803_s2 + $0x40] sm:$0xff] }
0x1042   :  { %8180 = vrsqrt.f32 %v1643_v27  ;;  %v1596_v27 = vld [vmem:[%s10803_s2 + $0x48] sm:$0xff] }
0x1043   :  { %8182 = vrsqrt.f32 %v1644_v34 }
0x1044   :  { %v8177_v40 = vpop.eup %8176 }
0x1045   :  { %v8179_v43 = vpop.eup %8178  ;;  %v1649_v44 = vmul.f32 %v8177_v40, %v1593_v30 }
0x1046   :  { %v1650_v49 = vmul.f32 %v8179_v43, %v1594_v31 }
0x1047   :  { %v1653_v63 = vmul.f32 %v1649_v44, %v1625_v18 }
0x1048   :  { %v1654_v1 = vmul.f32 %v1650_v49, %v1626_v16  ;;  %v10977_v16 = vmov 1  }
0x1049   :  { %1661 = vrot.lane.b32.xlu0 %v1653_v63, %s8258_s22 }
0x104a   :  { %1663 = vrot.lane.b32.xlu1 %v1654_v1, %s8258_s22 }
0x104c   :  { %v8181_v38 = vpop.eup %8180 }
0x104d   :  { %v8183_v58 = vpop.eup %8182  ;;  %v1651_v6 = vmul.f32 %v8181_v38, %v1595_v17 }
0x104e   :  { %v1652_v9 = vmul.f32 %v8183_v58, %v1596_v27 }
0x104f   :  { %v1655_v11 = vmul.f32 %v1651_v6, %v1627_v61 }
0x1050   :  { %v1656_v12 = vmul.f32 %v1652_v9, %v1628_v10  ;;  %v10978_v10 = vmov 0  }
0x1051   :  { %1665 = vrot.lane.b32.xlu1 %v1655_v11, %s8258_s22 }
0x1052   :  { %1667 = vrot.lane.b32.xlu0 %v1656_v12, %s8258_s22 }
0x1055   :  { %1679 = vperm.xlu1 %8114, %v1649_v44  }
0x1056   :  { %1684 = vperm.xlu0 %8115, %v1650_v49  }
0x1059   :  { %8116 = vset.pattern.permute.xlu1 %v10977_v16 }
0x105a   :  { %1689 = vperm.xlu0 %8115, %v1651_v6  }
0x105e   :  { %8118 = vset.pattern.permute.xlu0 %v10977_v16 }
0x10bb   :  { %v1662_v15 = vpop.permute.xlu0 %1661 }
0x10bc   :  { %v1664_v18 = vpop.permute.xlu1 %1663  ;;  %v1673_v41 = vsub.f32 %v1593_v30, %v1662_v15 }
0x10bd   :  { %v1674_v13 = vsub.f32 %v1594_v31, %v1664_v18 }
0x10bf   :  { %1708 = vperm.xlu1 %8116, %v1674_v13  }
0x10c3   :  { %v1666_v34 = vpop.permute.xlu1 %1665  ;;  %1703 = vperm.xlu1 %8116, %v1673_v41   ;;  %v10982_v41 = vmov 1.0|1.0  }
0x10c4   :  { %v1675_v61 = vsub.f32 %v1595_v17, %v1666_v34  ;;  %v1668_v40 = vpop.permute.xlu0 %1667 }
0x10c5   :  { %v1676_v43 = vsub.f32 %v1596_v27, %v1668_v40 }
0x10c6   :  { %1713 = vperm.xlu0 %8118, %v1675_v61  }
0x10c7   :  { %8117 = vset.pattern.permute.xlu1 %v10978_v10 }
0x10c8   :  { %1694 = vperm.xlu1 %8117, %v1652_v9  }
0x10ca   :  { %8121 = vset.pattern.permute.xlu0 %v10978_v10 }
0x10cc   :  { %8119 = vset.pattern.permute.xlu1 %v10977_v16 }
0x10cd   :  { %1718 = vperm.xlu1 %8119, %v1676_v43  }
0x10d1   :  { %8120 = vset.pattern.permute.xlu1 %v10978_v10 }
0x10d4   :  { %v1680_v31 = vpop.permute.xlu1 %1679 }
0x10d5   :  { %v1685_v44 = vpop.permute.xlu0 %1684  ;;  %v1697_v63 = vmul.f32 %v1680_v31, %v9199_v37 }
0x10d6   :  { %v1698_v30 = vmul.f32 %v9197_v36, %v1685_v44  ;;  %v10860_v44 = vmov 0.0|0.0  }
0x10d9   :  { %v1690_v1 = vpop.permute.xlu0 %1689 }
0x10da   :  { %v1699_v6 = vmul.f32 %v1690_v1, %v9212_v55  ;;  %v2189_v1 = vld [vmem:[%s10804_s3 + $0x320] sm:$0xff] }
0x113e   :  { %v1709_v49 = vpop.permute.xlu1 %1708 }
0x113f   :  { %v1722_v17 = vadd.f32 %v1709_v49, %v1698_v30  ;;  %v2082_v49 = vld [vmem:[%s10802_s1 + $0xa8] sm:$0xff]  ;;  %v2187_v30 = vld [vmem:[%s10804_s3 + $0x300] sm:$0xff] }
0x1141   :  { %v9250_v9 = vmax.f32 %v1722_v17, 0.0 }
0x1142   :  { %v1704_v38 = vpop.permute.xlu1 %1703 }
0x1143   :  { %v1721_v58 = vadd.f32 %v1704_v38, %v1697_v63  ;;  %v2188_v63 = vld [vmem:[%s10804_s3 + $0x310] sm:$0xff] }
0x1144   :  { %v7660_v17 = vpack.c.bf16 %v2188_v63, %v2187_v30  ;;  %v2190_v38 = vld [vmem:[%s10804_s3 + $0x330] sm:$0xff] }
0x1145   :  { %v9252_v27 = vmax.f32 %v1721_v58, 0.0  ;;  %v1714_v11 = vpop.permute.xlu0 %1713  ;;  %v7664_v58 = vpack.c.bf16 %v2190_v38, %v2189_v1 }
0x1146   :  { %v1723_v12 = vadd.f32 %v1714_v11, %v1699_v6  ;;  %v2191_v6 = vld [vmem:[%s10804_s3 + $0x340] sm:$0xff]  ;;  %v2192_v11 = vld [vmem:[%s10804_s3 + $0x350] sm:$0xff] }
0x1147   :  { %6877 = vmatprep.mubr.msk.f32.mxu1 %vm10979_vm15, %v9252_v27  ;;  %6899 = vmatprep.mubr.msk.f32.mxu0 %vm10972_vm1, %v9252_v27  ;;  %v1695_v18 = vpop.permute.xlu1 %1694  ;;  %vm10984_vm15 = vmmov %vm10972_vm1  ;;  %vm10985_vm1 = vnez %v10928_v2 }
0x1148   :  { %v9260_v15 = vmax.f32 %v1723_v12, 0.0  ;;  %6878 = vmatmul.mubr.msk.f32.vlgmr.msra.gmra.mrb[12].mxu1 %vm10980_vm10, %v9250_v9  ;;  %6900 = vmatmul.mubr.msk.f32.vlgmr.msra.gmra.mrb[12].mxu0 %vm10981_vm4, %v9250_v9  ;;  %v1700_v34 = vmul.f32 %v9210_v62, %v1695_v18  ;;  %vm10986_vm10 = vnez %v10932_v14  ;;  %v7668_v12 = vpack.c.bf16 %v2192_v11, %v2191_v6 }
0x1149   :  { %7601 = vmatpush3.bf16.msk.msra.mxu1 %vm10966_vm12, %v10982_v41  ;;  %7617 = vmatpush3.bf16.msk.msra.mxu0 %vm9071_vm3, %v10982_v41  ;;  %vm10990_vm3 = vnez %v10936_v22 }
0x114a   :  { %6880 = vmatprep.mubr.msk.f32.mxu1 %vm10983_vm13, %v9260_v15  ;;  %6902 = vmatprep.mubr.msk.f32.mxu0 %vm10984_vm15, %v9260_v15  ;;  %vm10987_vm13 = vmmov %vm10981_vm4 }
0x114b   :  { %7603 = vmatprep.subr.msk.bf16.mxu1 %vm10985_vm1, %v10982_v41  ;;  %7619 = vmatprep.subr.msk.bf16.mxu0 %vm9089_vm0, %v10982_v41  ;;  %vm10988_vm15 = vmmov %vm10981_vm4 }
0x114c   :  { %v1719_v61 = vpop.permute.xlu1 %1718 }
0x114d   :  { %v1724_v40 = vadd.f32 %v1719_v61, %v1700_v34  ;;  %7605 = vmatpush3.bf16.msk.msra.mxu1 %vm10985_vm1, %v10982_v41  ;;  %7621 = vmatpush3.bf16.msk.msra.mxu0 %vm9089_vm0, %v10982_v41  ;;  %vm10989_vm0 = vmmov %vm10981_vm4 }
0x114e   :  { %7607 = vmatprep.subr.msk.bf16.mxu1 %vm10986_vm10, %v10982_v41  ;;  %7623 = vmatprep.subr.msk.bf16.mxu0 %vm9107_vm7, %v10982_v41  ;;  %vm10995_vm5 = vmmov %vm10989_vm0 }
0x114f   :  { %v9295_v43 = vmax.f32 %v1724_v40, 0.0 }
0x1151   :  { %7609 = vmatpush3.bf16.msk.msra.mxu1 %vm10986_vm10, %v10982_v41  ;;  %7625 = vmatpush3.bf16.msk.msra.mxu0 %vm9107_vm7, %v10982_v41  ;;  %vm10994_vm7 = vmmov %vm10989_vm0 }
0x1152   :  { %6881 = vmatmul.mubr.msk.f32.gmra.mrb[14].mxu1 %vm10981_vm4, %v9295_v43  ;;  %6903 = vmatmul.mubr.msk.f32.gmra.mrb[14].mxu0 %vm10987_vm13, %v9295_v43  ;;  %vm10991_vm4 = vmmov %vm10989_vm0 }
0x1153   :  { %6921 = vmatprep.mubr.msk.f32.mxu1 %vm10988_vm15, %v9252_v27  ;;  %6943 = vmatprep.mubr.msk.f32.mxu0 %vm10989_vm0, %v9252_v27  ;;  %vm10992_vm13 = vmmov %vm10989_vm0 }
0x1154   :  { %7611 = vmatprep.subr.msk.bf16.mxu1 %vm10990_vm3, %v10982_v41  ;;  %7627 = vmatprep.subr.msk.bf16.mxu0 %vm9025_vm6, %v10982_v41  ;;  %vm10993_vm15 = vmmov %vm10989_vm0 }
0x1155   :  { %7613 = vmatpush3.bf16.msk.msra.mxu1 %vm10990_vm3, %v10982_v41  ;;  %7629 = vmatpush3.bf16.msk.msra.mxu0 %vm9025_vm6, %v10982_v41 }
0x1156   :  { %7630 = vmatprep.subr.bf16.mxu1 %v10860_v44  ;;  %7661 = vmatprep.subr.bf16.mxu0 %v7660_v17 }
0x1158   :  { %6922 = vmatmul.mubr.msk.f32.vlgmr.msra.gmra.mrb[16].mxu1 %vm10991_vm4, %v9250_v9  ;;  %6944 = vmatmul.mubr.msk.f32.vlgmr.msra.gmra.mrb[16].mxu0 %vm10989_vm0, %v9250_v9  ;;  %vm10870_vm4 = vcmask 261120  }
0x1159   :  { %6924 = vmatprep.mubr.msk.f32.mxu1 %vm10992_vm13, %v9260_v15  ;;  %6946 = vmatprep.mubr.msk.f32.mxu0 %vm10993_vm15, %v9260_v15  ;;  %vm11000_vm13 = vmmov %vm10989_vm0  ;;  %vm10873_vm15 = vcmp.ge.s32.totalorder %v8338_v4, 16 }
0x115a   :  { %7663 = vmatpush3.bf16.msra.mxu0 %v7660_v17 }
0x115b   :  { %7665 = vmatprep.subr.bf16.mxu0 %v7664_v58 }
0x115c   :  { %6925 = vmatmul.mubr.msk.f32.gmra.mrb[18].mxu1 %vm10994_vm7, %v9295_v43  ;;  %6947 = vmatmul.mubr.msk.f32.gmra.mrb[18].mxu0 %vm10995_vm5, %v9295_v43  ;;  %vm10998_vm7 = vmmov %vm10989_vm0 }
0x115d   :  { %6084 = vmatprep.mubr.msk.f32.mxu1 %vm10870_vm4, %v2082_v49  ;;  %vm10999_vm5 = vmmov %vm10989_vm0 }
0x115e   :  { %7667 = vmatpush3.bf16.msra.mxu0 %v7664_v58 }
0x115f   :  { %7669 = vmatprep.subr.bf16.mxu0 %v7668_v12 }
0x1162   :  { %7671 = vmatpush3.bf16.msra.mxu0 %v7668_v12 }
0x121b   :  { %v6879_v18 = vpop.f32.mrb[12].mxu1  ;;  %v6901_v34 = vpop.f32.mrb[12].mxu0 }
0x121c   :  { %v1807_v61 = vpop.f32.mrb[13].mxu1  ;;  %v1892_v40 = vpop.f32.mrb[13].mxu0 }
0x121d   :  { %v7631_v49 = vpack.c.bf16 %v6879_v18, %v1807_v61  ;;  %v7637_v30 = vpack.c.bf16 %v6901_v34, %v1892_v40 }
0x121f   :  { %7632 = vmatpush1.bf16.msra.mxu1 %v7631_v49 }
0x1220   :  { %7633 = vmatprep.subr.bf16.mxu1 %v10860_v44 }
0x1225   :  { %v6882_v63 = vpop.f32.mrb[14].mxu1  ;;  %v6904_v1 = vpop.f32.mrb[14].mxu0 }
0x1226   :  { %v1817_v38 = vpop.f32.mrb[15].mxu1  ;;  %v1902_v31 = vpop.f32.mrb[15].mxu0 }
0x1227   :  { %v7634_v13 = vpack.c.bf16 %v6882_v63, %v1817_v38  ;;  %v7640_v17 = vpack.c.bf16 %v6904_v1, %v1902_v31  ;;  %v10997_v31 = vpack.c.bf16 %v9295_v43, %v9260_v15  ;;  %v2088_v15 = vld [vmem:[%s10802_s1 + $0xd8] sm:$0xff]  ;;  %v2087_v43 = vld [vmem:[%s10802_s1 + $0xd0] sm:$0xff] }
0x1228   :  { %v2194_v63 = vld [vmem:[%s10804_s3 + $0x370] sm:$0xff] }
0x1229   :  { %7635 = vmatpush1.bf16.msra.mxu1 %v7634_v13  ;;  %v10996_v13 = vpack.c.bf16 %v9250_v9, %v9252_v27  ;;  %v2081_v9 = vld [vmem:[%s10802_s1 + $0xa0] sm:$0xff]  ;;  %v2084_v27 = vld [vmem:[%s10802_s1 + $0xb8] sm:$0xff] }
0x122a   :  { %7636 = vmatprep.subr.bf16.mxu1 %v10860_v44 }
0x122b   :  { %v6923_v58 = vpop.f32.mrb[16].mxu1  ;;  %v6945_v6 = vpop.f32.mrb[16].mxu0 }
0x122c   :  { %v1977_v11 = vpop.f32.mrb[17].mxu1  ;;  %v2062_v12 = vpop.f32.mrb[17].mxu0 }
0x122d   :  { %v7649_v60 = vpack.c.bf16 %v6923_v58, %v1977_v11  ;;  %v7655_v51 = vpack.c.bf16 %v6945_v6, %v2062_v12  ;;  %7638 = vmatpush1.bf16.msra.mxu1 %v7637_v30  ;;  %v2193_v30 = vld [vmem:[%s10804_s3 + $0x360] sm:$0xff] }
0x122e   :  { %7639 = vmatprep.subr.bf16.mxu1 %v10860_v44  ;;  %v7672_v1 = vpack.c.bf16 %v2194_v63, %v2193_v30 }
0x122f   :  { %v6926_v18 = vpop.f32.mrb[18].mxu1  ;;  %v6948_v34 = vpop.f32.mrb[18].mxu0 }
0x1230   :  { %v1987_v61 = vpop.f32.mrb[19].mxu1  ;;  %v2072_v40 = vpop.f32.mrb[19].mxu0  ;;  %7673 = vmatprep.subr.bf16.mxu0 %v7672_v1 }
0x1231   :  { %v7652_v49 = vpack.c.bf16 %v6926_v18, %v1987_v61  ;;  %v7658_v48 = vpack.c.bf16 %v6948_v34, %v2072_v40  ;;  %7641 = vmatpush1.bf16.msra.mxu1 %v7640_v17  ;;  %7675 = vmatpush3.bf16.msra.mxu0 %v7672_v1 }
0x1232   :  { %7642 = vmatprep.subr.bf16.mxu1 %v10860_v44 }
0x1235   :  { %7644 = vmatpush1.bf16.msra.mxu1 %v10996_v13 }
0x1236   :  { %7645 = vmatprep.subr.bf16.mxu1 %v10860_v44 }
0x1239   :  { %7647 = vmatpush1.bf16.msra.mxu1 %v10997_v31 }
0x123a   :  { %7648 = vmatprep.subr.bf16.mxu1 %v10860_v44 }
0x123d   :  { %7650 = vmatpush1.bf16.msra.mxu1 %v7649_v60  ;;  %v2083_v60 = vld [vmem:[%s10802_s1 + $0xb0] sm:$0xff] }
0x123e   :  { %7651 = vmatprep.subr.bf16.mxu1 %v10860_v44 }
0x1241   :  { %7653 = vmatpush1.bf16.msra.mxu1 %v7652_v49 }
0x1242   :  { %7654 = vmatprep.subr.bf16.mxu1 %v10860_v44 }
0x1245   :  { %7656 = vmatpush1.bf16.msra.mxu1 %v7655_v51  ;;  %v2086_v51 = vld [vmem:[%s10802_s1 + $0xc8] sm:$0xff] }
0x1246   :  { %7657 = vmatprep.subr.bf16.mxu1 %v10860_v44 }
0x1249   :  { %7659 = vmatpush1.bf16.msra.mxu1 %v7658_v48  ;;  %v2085_v48 = vld [vmem:[%s10802_s1 + $0xc0] sm:$0xff] }
0x124c   :  { %2167 = vmatmul.mubr.f32.vlgmr.msra.gmra.mrb[20].mxu1 %v2081_v9 }
0x124d   :  { %6085 = vmatprep.mubr.msk.f32.mxu1 %vm10870_vm4, %v2084_v27 }
0x1250   :  { %2172 = vmatmul.mubr.f32.gmra.mrb[22].mxu1 %v2083_v60 }
0x1251   :  { %6086 = vmatprep.mubr.msk.f32.mxu1 %vm10870_vm4, %v2086_v51 }
0x1254   :  { %2177 = vmatmul.mubr.f32.gmra.mrb[24].mxu1 %v2085_v48 }
0x1255   :  { %6087 = vmatprep.mubr.msk.f32.mxu1 %vm10870_vm4, %v2088_v15 }
0x1258   :  { %2182 = vmatmul.mubr.f32.gmra.mrb[26].mxu1 %v2087_v43 }
0x131f   :  { %v2168_v38 = vpop.f32.mrb[20].mxu1 }
0x1320   :  { %v2170_v17 = vpop.f32.mrb[21].mxu1  ;;  %6965 = vmatprep.mubr.msk.f32.mxu0 %vm10998_vm7, %v2168_v38  ;;  %vm9462_vm7 = vmneg %vm10873_vm15 }
0x1323   :  { %v2173_v58 = vpop.f32.mrb[22].mxu1 }
0x1324   :  { %v2175_v6 = vpop.f32.mrb[23].mxu1  ;;  %6966 = vmatmul.mubr.msk.f32.vlgmr.msra.gmra.mrb[20].mxu0 %vm10999_vm5, %v2173_v58 }
0x1327   :  { %v2178_v11 = vpop.f32.mrb[24].mxu1 }
0x1328   :  { %v2180_v12 = vpop.f32.mrb[25].mxu1  ;;  %6968 = vmatprep.mubr.msk.f32.mxu0 %vm10989_vm0, %v2178_v11 }
0x132b   :  { %v2183_v18 = vpop.f32.mrb[26].mxu1 }
0x132c   :  { %6969 = vmatmul.mubr.msk.f32.gmra.mrb[22].mxu0 %vm11000_vm13, %v2183_v18  ;;  %v2185_v34 = vpop.f32.mrb[27].mxu1 }
0x13f7   :  { %v9409_v61 = vpop.f32.mrb[20].mxu0 }
0x13f8   :  { %v9411_v40 = vpop.f32.mrb[21].mxu0  ;;  %v2299_v49 = vsel %vm10870_vm4, %v9409_v61, 0.0  ;;  %v2309_v13 = vmul.f32 %v9409_v61, %v9409_v61 }
0x13f9   :  { %v2308_v31 = vmul.f32 %v9411_v40, %v9411_v40  ;;  %2300 = vadd.xlane.f32.xlu0 %v2299_v49  ;;  %v2296_v9 = vsel %vm10870_vm4, %v9411_v40, 0.0 }
0x13fa   :  { %2297 = vadd.xlane.f32.xlu1 %v2296_v9  ;;  %v2315_v60 = vsel %vm10870_vm4, %v2309_v13, 0.0 }
0x13fb   :  { %v2312_v27 = vsel %vm10870_vm4, %v2308_v31, 0.0 }
0x13fd   :  { %2313 = vadd.xlane.f32.xlu0 %v2312_v27 }
0x13fe   :  { %2316 = vadd.xlane.f32.xlu1 %v2315_v60 }
0x13ff   :  { %v9423_v51 = vpop.f32.mrb[22].mxu0 }
0x1400   :  { %v2311_v48 = vmul.f32 %v9423_v51, %v9423_v51  ;;  %v9427_v15 = vpop.f32.mrb[23].mxu0  ;;  %v2305_v43 = vsel %vm10870_vm4, %v9423_v51, 0.0 }
0x1401   :  { %v2310_v30 = vmul.f32 %v9427_v15, %v9427_v15  ;;  %v2302_v63 = vsel %vm10870_vm4, %v9427_v15, 0.0 }
0x1402   :  { %2306 = vadd.xlane.f32.xlu1 %v2305_v43  ;;  %2303 = vadd.xlane.f32.xlu0 %v2302_v63  ;;  %v2321_v1 = vsel %vm10870_vm4, %v2311_v48, 0.0 }
0x1403   :  { %v2318_v38 = vsel %vm10870_vm4, %v2310_v30, 0.0 }
0x1406   :  { %2322 = vadd.xlane.f32.xlu1 %v2321_v1  ;;  %2319 = vadd.xlane.f32.xlu0 %v2318_v38 }
0x1486   :  { %v2301_v17 = vpop.xlane.xlu0 %2300 }
0x1487   :  { %v2298_v58 = vpop.xlane.xlu1 %2297  ;;  %v2325_v6 = vmul.f32 0.03125, %v2301_v17 }
0x1488   :  { %v2324_v11 = vmul.f32 0.03125, %v2298_v58 }
0x1489   :  { %v2333_v13 = vmul.f32 %v2325_v6, %v2325_v6 }
0x148a   :  { %v2332_v12 = vmul.f32 %v2324_v11, %v2324_v11  ;;  %v2314_v18 = vpop.xlane.xlu0 %2313 }
0x148b   :  { %v2328_v34 = vmul.f32 0.03125, %v2314_v18  ;;  %v2317_v49 = vpop.xlane.xlu1 %2316 }
0x148c   :  { %v2329_v31 = vmul.f32 0.03125, %v2317_v49 }
0x148d   :  { %v2336_v9 = vsub.f32 %v2328_v34, %v2332_v12  ;;  %v2292_v12 = vld [vmem:[%s10803_s2 + $0x50] sm:$0xff]  ;;  %v2293_v34 = vld [vmem:[%s10803_s2 + $0x58] sm:$0xff] }
0x148e   :  { %v2337_v27 = vsub.f32 %v2329_v31, %v2333_v13 }
0x148f   :  { %v2340_v60 = vadd.f32 1e-05, %v2336_v9  ;;  %v2307_v43 = vpop.xlane.xlu1 %2306  ;;  %v2304_v63 = vpop.xlane.xlu0 %2303 }
0x1490   :  { %v2341_v48 = vadd.f32 1e-05, %v2337_v27  ;;  %v2327_v44 = vmul.f32 0.03125, %v2307_v43  ;;  %v2326_v30 = vmul.f32 0.03125, %v2304_v63 }
0x1491   :  { %8184 = vrsqrt.f32 %v2340_v60 }
0x1492   :  { %8186 = vrsqrt.f32 %v2341_v48  ;;  %v2335_v1 = vmul.f32 %v2327_v44, %v2327_v44  ;;  %v2334_v38 = vmul.f32 %v2326_v30, %v2326_v30 }
0x1493   :  { %v2323_v17 = vpop.xlane.xlu1 %2322  ;;  %v2320_v58 = vpop.xlane.xlu0 %2319 }
0x1494   :  { %v2331_v35 = vmul.f32 0.03125, %v2323_v17  ;;  %v2330_v26 = vmul.f32 0.03125, %v2320_v58 }
0x1496   :  { %v2339_v18 = vsub.f32 %v2331_v35, %v2335_v1  ;;  %v2338_v23 = vsub.f32 %v2330_v26, %v2334_v38 }
0x1498   :  { %v2343_v8 = vadd.f32 1e-05, %v2339_v18  ;;  %v2342_v49 = vadd.f32 1e-05, %v2338_v23  ;;  %v2295_v23 = vld [vmem:[%s10803_s2 + $0x68] sm:$0xff] }
0x149a   :  { %8188 = vrsqrt.f32 %v2343_v8  ;;  %v2294_v8 = vld [vmem:[%s10803_s2 + $0x60] sm:$0xff] }
0x149b   :  { %v8185_v13 = vpop.eup %8184  ;;  %8190 = vrsqrt.f32 %v2342_v49  ;;  %v6094_v49 = vadd.s32 4294967280, %v8847_v56 }
0x149c   :  { %v8187_v31 = vpop.eup %8186  ;;  %v2348_v9 = vmul.f32 %v8185_v13, %v2292_v12 }
0x149d   :  { %v2349_v27 = vmul.f32 %v8187_v31, %v2293_v34 }
0x149e   :  { %v2352_v60 = vmul.f32 %v2348_v9, %v2324_v11 }
0x149f   :  { %v2353_v43 = vmul.f32 %v2349_v27, %v2325_v6  ;;  %v6095_v6 = vadd.s32 4294967280, %v8338_v4 }
0x14a0   :  { %2360 = vrot.lane.b32.xlu0 %v2352_v60, %s8258_s22 }
0x14a1   :  { %2362 = vrot.lane.b32.xlu1 %v2353_v43, %s8258_s22 }
0x14a4   :  { %v8189_v26 = vpop.eup %8188 }
0x14a5   :  { %v8191_v35 = vpop.eup %8190  ;;  %v2351_v63 = vmul.f32 %v8189_v26, %v2295_v23 }
0x14a6   :  { %v2350_v48 = vmul.f32 %v8191_v35, %v2294_v8 }
0x14a7   :  { %v2355_v1 = vmul.f32 %v2351_v63, %v2327_v44  ;;  %v2446_v44 = vsel %vm10873_vm15, %v6095_v6, %v8338_v4 }
0x14a8   :  { %v2354_v38 = vmul.f32 %v2350_v48, %v2326_v30  ;;  %v2451_v30 = vadd.s32 4294967295, %v2446_v44 }
0x14a9   :  { %2366 = vrot.lane.b32.xlu0 %v2355_v1, %s8258_s22 }
0x14aa   :  { %2364 = vrot.lane.b32.xlu1 %v2354_v38, %s8258_s22  ;;  %vm2452_vm5 = vcmp.eq.s32.totalorder %v8812_v45, %v2451_v30  ;;  %vm2453_vm0 = vcmp.eq.s32.totalorder %v8817_v50, %v2451_v30  ;;  %vm2455_vm15 = vcmp.eq.s32.totalorder %v6094_v49, %v2451_v30 }
0x14ab   :  { %vm2456_vm13 = vmand %vm9462_vm7, %vm2452_vm5 }
0x14ac   :  { %vm2457_vm4 = vmand %vm9462_vm7, %vm2453_vm0 }
0x14ad   :  { %2383 = vperm.xlu0 %8121, %v2349_v27   ;;  %vm9473_vm6 = vmpackc.low %vm2457_vm4, %vm2456_vm13  ;;  %v2565_v27 = vadd.s32 1, %v2446_v44 }
0x14ae   :  { %2378 = vperm.xlu1 %8120, %v2348_v9   ;;  %7677 = vmatprep.subr.msk.bf16.mxu0 %vm9473_vm6, %v10982_v41  ;;  %vm2458_vm0 = vmand %vm11005_vm2, %vm2452_vm5 }
0x14af   :  { %7679 = vmatpush3.bf16.msk.msra.mxu0 %vm9473_vm6, %v10982_v41  ;;  %vm2459_vm8 = vmand %vm11006_vm14, %vm2455_vm15  ;;  %vm2566_vm2 = vcmp.eq.s32.totalorder %v8812_v45, %v2565_v27  ;;  %vm2569_vm13 = vcmp.eq.s32.totalorder %v6094_v49, %v2565_v27 }
0x14b0   :  { %vm9487_vm4 = vmpackc.low %vm2459_vm8, %vm2458_vm0  ;;  %vm2567_vm8 = vcmp.eq.s32.totalorder %v8817_v50, %v2565_v27  ;;  %vm11011_vm0 = vcmp.ge.s32.totalorder %v8338_v4, 16 }
0x14b1   :  { %2388 = vperm.xlu0 %8121, %v2350_v48   ;;  %7681 = vmatprep.subr.msk.bf16.mxu0 %vm9487_vm4, %v10982_v41  ;;  %vm2570_vm14 = vmand %vm9462_vm7, %vm2566_vm2 }
0x14b2   :  { %8122 = vset.pattern.permute.xlu1 %v10977_v16  ;;  %vm2571_vm15 = vmand %vm9462_vm7, %vm2567_vm8 }
0x14b3   :  { %7683 = vmatpush3.bf16.msk.msra.mxu0 %vm9487_vm4, %v10982_v41  ;;  %vm9506_vm5 = vmpackc.low %vm2571_vm15, %vm2570_vm14 }
0x14b4   :  { %7685 = vmatprep.subr.msk.bf16.mxu0 %vm9506_vm5, %v10982_v41  ;;  %vm2572_vm11 = vmand %vm11011_vm0, %vm2566_vm2 }
0x14b5   :  { %8124 = vset.pattern.permute.xlu0 %v10977_v16  ;;  %vm11012_vm9 = vmmov %vm11011_vm0 }
0x14b6   :  { %vm2573_vm3 = vmand %vm11012_vm9, %vm2569_vm13  ;;  %vm11015_vm9 = vcmask 261120   ;;  %vm2675_vm13 = vcmask 785408  }
0x14b7   :  { %vm9518_vm10 = vmpackc.low %vm2573_vm3, %vm2572_vm11 }
0x14b8   :  { %vm11016_vm11 = vmmov %vm11015_vm9 }
0x14b9   :  { %vm11017_vm3 = vmmov %vm11015_vm9 }
0x14ba   :  { %vm11018_vm7 = vmmov %vm11017_vm3 }
0x14bb   :  { %vm11019_vm2 = vmmov %vm11017_vm3 }
0x14bc   :  { %vm11020_vm8 = vmmov %vm11019_vm2 }
0x14bd   :  { %vm11021_vm14 = vmmov %vm11019_vm2 }
0x14be   :  { %vm11022_vm15 = vmmov %vm11019_vm2 }
0x14bf   :  { %vm11026_vm0 = vmmov %vm11019_vm2 }
0x1512   :  { %v2361_v58 = vpop.permute.xlu0 %2360 }
0x1513   :  { %v2363_v11 = vpop.permute.xlu1 %2362 }
0x1514   :  { %v2373_v17 = vsub.f32 %v2293_v34, %v2363_v11  ;;  %v2372_v34 = vsub.f32 %v2292_v12, %v2361_v58 }
0x1516   :  { %2407 = vperm.xlu1 %8122, %v2373_v17  }
0x151a   :  { %2402 = vperm.xlu1 %8122, %v2372_v34  }
0x151b   :  { %v2367_v9 = vpop.permute.xlu0 %2366 }
0x151c   :  { %v2365_v56 = vpop.permute.xlu1 %2364  ;;  %v2375_v60 = vsub.f32 %v2295_v23, %v2367_v9 }
0x151d   :  { %v2374_v31 = vsub.f32 %v2294_v8, %v2365_v56 }
0x151e   :  { %8123 = vset.pattern.permute.xlu1 %v10978_v10 }
0x151f   :  { %2412 = vperm.xlu0 %8124, %v2374_v31   ;;  %2393 = vperm.xlu1 %8123, %v2351_v63  }
0x1523   :  { %8125 = vset.pattern.permute.xlu1 %v10977_v16  ;;  %8127 = vset.pattern.permute.xlu0 %v10978_v10 }
0x1524   :  { %2417 = vperm.xlu1 %8125, %v2375_v60  }
0x1528   :  { %8126 = vset.pattern.permute.xlu1 %v10978_v10 }
0x152c   :  { %v2384_v23 = vpop.permute.xlu0 %2383 }
0x152d   :  { %v2379_v50 = vpop.permute.xlu1 %2378  ;;  %v2397_v26 = vmul.f32 %v9409_v61, %v2384_v23 }
0x152e   :  { %v2396_v35 = vmul.f32 %v2379_v50, %v9411_v40 }
0x1530   :  { %v2389_v1 = vpop.permute.xlu0 %2388 }
0x1531   :  { %v2398_v11 = vmul.f32 %v2389_v1, %v9427_v15  ;;  %v2669_v1 = vld [vmem:[%s10802_s1 + $0x100] sm:$0xff] }
0x1595   :  { %v2408_v8 = vpop.permute.xlu1 %2407 }
0x1596   :  { %v2421_v63 = vadd.f32 %v2408_v8, %v2397_v26 }
0x1598   :  { %v2425_v6 = vmax.f32 %v2421_v63, 0.0 }
0x1599   :  { %v2403_v48 = vpop.permute.xlu1 %2402 }
0x159a   :  { %v2420_v38 = vadd.f32 %v2403_v48, %v2396_v35  ;;  %v2668_v48 = vld [vmem:[%s10802_s1 + $0xf0] sm:$0xff] }
0x159c   :  { %v2424_v44 = vmax.f32 %v2420_v38, 0.0  ;;  %v11023_v38 = vmov 0.0|0.0  }
0x159e   :  { %v2413_v30 = vpop.permute.xlu0 %2412  ;;  %6979 = vmatprep.mubr.msk.f32.mxu0 %vm11015_vm9, %v2424_v44  ;;  %v2394_v17 = vpop.permute.xlu1 %2393  ;;  %v7700_v58 = vpack.c.bf16 %v2425_v6, %v2424_v44  ;;  %vm11027_vm9 = vmmov %vm11026_vm0 }
0x159f   :  { %v2422_v18 = vadd.f32 %v2413_v30, %v2398_v11  ;;  %6980 = vmatmul.mubr.msk.f32.vlgmr.msra.gmra.mrb[24].mxu0 %vm11016_vm11, %v2425_v6  ;;  %v2399_v40 = vmul.f32 %v9423_v51, %v2394_v17  ;;  %v2667_v51 = vld [vmem:[%s10802_s1 + $0xe0] sm:$0xff]  ;;  %v2672_v11 = vld [vmem:[%s10802_s1 + $0x130] sm:$0xff]  ;;  %vm11028_vm11 = vmmov %vm11026_vm0 }
0x15a0   :  { %7687 = vmatpush3.bf16.msk.msra.mxu0 %vm9506_vm5, %v10982_v41  ;;  %7023 = vmatprep.mubr.msk.f32.mxu1 %vm2675_vm13, %v2667_v51  ;;  %v2673_v30 = vld [vmem:[%s10802_s1 + $0x140] sm:$0xff]  ;;  %v2674_v17 = vld [vmem:[%s10802_s1 + $0x150] sm:$0xff] }
0x15a1   :  { %v2426_v61 = vmax.f32 %v2422_v18, 0.0  ;;  %7689 = vmatprep.subr.msk.bf16.mxu0 %vm9518_vm10, %v10982_v41 }
0x15a3   :  { %6982 = vmatprep.mubr.msk.f32.mxu0 %vm11017_vm3, %v2426_v61  ;;  %v2418_v15 = vpop.permute.xlu1 %2417  ;;  %vm11029_vm3 = vmmov %vm11026_vm0 }
0x15a4   :  { %v2423_v49 = vadd.f32 %v2418_v15, %v2399_v40  ;;  %7691 = vmatpush3.bf16.msk.msra.mxu0 %vm9518_vm10, %v10982_v41 }
0x15a5   :  { %7717 = vmatprep.subr.msk.bf16.mxu0 %vm9473_vm6, %v10982_v41 }
0x15a6   :  { %v2427_v34 = vmax.f32 %v2423_v49, 0.0 }
0x15a8   :  { %6983 = vmatmul.mubr.msk.f32.gmra.mrb[26].mxu0 %vm11018_vm7, %v2427_v34  ;;  %v7704_v56 = vpack.c.bf16 %v2427_v34, %v2426_v61  ;;  %vm11030_vm7 = vmmov %vm11026_vm0 }
0x15a9   :  { %6993 = vmatprep.mubr.msk.f32.mxu0 %vm11019_vm2, %v2424_v44  ;;  %v2671_v44 = vld [vmem:[%s10802_s1 + $0x120] sm:$0xff] }
0x15ac   :  { %6994 = vmatmul.mubr.msk.f32.vlgmr.msra.gmra.mrb[28].mxu0 %vm11020_vm8, %v2425_v6  ;;  %v2670_v6 = vld [vmem:[%s10802_s1 + $0x110] sm:$0xff]  ;;  %vm11032_vm8 = vmmov %vm11026_vm0 }
0x15ad   :  { %6996 = vmatprep.mubr.msk.f32.mxu0 %vm11021_vm14, %v2426_v61  ;;  %7719 = vmatpush3.bf16.msk.msra.mxu0 %vm9473_vm6, %v10982_v41  ;;  %vm11024_vm6 = vmmov %vm11019_vm2 }
0x15ae   :  { %7721 = vmatprep.subr.msk.bf16.mxu0 %vm9487_vm4, %v10982_v41  ;;  %vm11033_vm14 = vmmov %vm11026_vm0 }
0x15b0   :  { %6997 = vmatmul.mubr.msk.f32.gmra.mrb[30].mxu0 %vm11022_vm15, %v2427_v34  ;;  %vm11034_vm15 = vmmov %vm11026_vm0 }
0x15b1   :  { %7723 = vmatpush3.bf16.msk.msra.mxu0 %vm9487_vm4, %v10982_v41  ;;  %vm11025_vm4 = vmmov %vm11019_vm2 }
0x15b2   :  { %7725 = vmatprep.subr.msk.bf16.mxu0 %vm9506_vm5, %v10982_v41  ;;  %vm11031_vm2 = vmmov %vm11026_vm0 }
0x1672   :  { %v6981_v13 = vpop.f32.mrb[24].mxu0 }
0x1673   :  { %v2546_v31 = vpop.f32.mrb[25].mxu0 }
0x1674   :  { %v7692_v9 = vpack.c.bf16 %v6981_v13, %v2546_v31 }
0x1676   :  { %7693 = vmatprep.subr.bf16.mxu1 %v7692_v9 }
0x1677   :  { %7695 = vmatpush3.bf16.msra.mxu1 %v7692_v9 }
0x167b   :  { %v6984_v27 = vpop.f32.mrb[26].mxu0 }
0x167c   :  { %v2556_v60 = vpop.f32.mrb[27].mxu0 }
0x167d   :  { %v7696_v12 = vpack.c.bf16 %v6984_v27, %v2556_v60 }
0x167f   :  { %v6995_v50 = vpop.f32.mrb[28].mxu0  ;;  %7697 = vmatprep.subr.bf16.mxu1 %v7696_v12 }
0x1680   :  { %v2648_v23 = vpop.f32.mrb[29].mxu0  ;;  %7699 = vmatpush3.bf16.msra.mxu1 %v7696_v12 }
0x1681   :  { %v7708_v8 = vpack.c.bf16 %v6995_v50, %v2648_v23  ;;  %7701 = vmatprep.subr.bf16.mxu1 %v7700_v58 }
0x1683   :  { %v6998_v26 = vpop.f32.mrb[30].mxu0 }
0x1684   :  { %v2658_v35 = vpop.f32.mrb[31].mxu0  ;;  %7703 = vmatpush3.bf16.msra.mxu1 %v7700_v58 }
0x1685   :  { %v7712_v63 = vpack.c.bf16 %v6998_v26, %v2658_v35  ;;  %7705 = vmatprep.subr.bf16.mxu1 %v7704_v56 }
0x1688   :  { %7707 = vmatpush3.bf16.msra.mxu1 %v7704_v56 }
0x1689   :  { %7709 = vmatprep.subr.bf16.mxu1 %v7708_v8 }
0x168c   :  { %7711 = vmatpush3.bf16.msra.mxu1 %v7708_v8 }
0x168d   :  { %7713 = vmatprep.subr.bf16.mxu1 %v7712_v63 }
0x1690   :  { %7715 = vmatpush3.bf16.msra.mxu1 %v7712_v63 }
0x1691   :  { %7732 = vmatprep.subr.bf16.mxu1 %v11023_v38 }
0x1693   :  { %7024 = vmatmul.mubr.msk.f32.vlgmr.msra.gmra.mrb[28].mxu1 %vm2675_vm13, %v2668_v48 }
0x1694   :  { %7026 = vmatprep.mubr.msk.f32.mxu1 %vm2675_vm13, %v2669_v1 }
0x1697   :  { %7027 = vmatmul.mubr.msk.f32.gmra.mrb[30].mxu1 %vm2675_vm13, %v2670_v6 }
0x1698   :  { %7029 = vmatprep.mubr.msk.f32.mxu1 %vm2675_vm13, %v2671_v44 }
0x169b   :  { %7030 = vmatmul.mubr.msk.f32.gmra.mrb[32].mxu1 %vm2675_vm13, %v2672_v11 }
0x169c   :  { %7032 = vmatprep.mubr.msk.f32.mxu1 %vm2675_vm13, %v2673_v30 }
0x169f   :  { %7033 = vmatmul.mubr.msk.f32.gmra.mrb[34].mxu1 %vm2675_vm13, %v2674_v17  ;;  %vm11035_vm13 = vmmov %vm11026_vm0 }
0x1766   :  { %v9591_v58 = vpop.f32.mrb[28].mxu1 }
0x1767   :  { %v9593_v18 = vpop.f32.mrb[29].mxu1  ;;  %v2816_v61 = vsel %vm11024_vm6, %v9591_v58, 0.0  ;;  %v2838_v49 = vmul.f32 %v9591_v58, %v9591_v58  ;;  %vm11036_vm6 = vmmov %vm11026_vm0 }
0x1768   :  { %2817 = vadd.xlane.f32.xlu0 %v2816_v61  ;;  %v2813_v40 = vsel %vm11025_vm4, %v9593_v18, 0.0  ;;  %v2837_v15 = vmul.f32 %v9593_v18, %v9593_v18  ;;  %vm11037_vm4 = vmmov %vm11026_vm0 }
0x1769   :  { %2814 = vadd.xlane.f32.xlu1 %v2813_v40  ;;  %v2848_v13 = vsel %vm11027_vm9, %v2838_v49, 0.0  ;;  %vm11038_vm9 = vmmov %vm11026_vm0 }
0x176a   :  { %v2845_v34 = vsel %vm11026_vm0, %v2837_v15, 0.0  ;;  %v9604_v56 = vpop.f32.mrb[30].mxu1 }
0x176b   :  { %v9606_v51 = vpop.f32.mrb[31].mxu1  ;;  %v2822_v27 = vsel %vm11029_vm3, %v9604_v56, 0.0  ;;  %v2840_v60 = vmul.f32 %v9604_v56, %v9604_v56  ;;  %vm11040_vm3 = vmmov %vm11026_vm0 }
0x176c   :  { %2846 = vadd.xlane.f32.xlu0 %v2845_v34  ;;  %v2819_v31 = vsel %vm11028_vm11, %v9606_v51, 0.0  ;;  %v2839_v9 = vmul.f32 %v9606_v51, %v9606_v51  ;;  %vm11039_vm11 = vmmov %vm11026_vm0 }
0x176d   :  { %2849 = vadd.xlane.f32.xlu1 %v2848_v13  ;;  %v2854_v8 = vsel %vm11031_vm2, %v2840_v60, 0.0  ;;  %vm11042_vm2 = vmmov %vm11026_vm0 }
0x176e   :  { %v9617_v12 = vpop.f32.mrb[32].mxu1  ;;  %v2851_v23 = vsel %vm11030_vm7, %v2839_v9, 0.0  ;;  %vm11041_vm7 = vmmov %vm11026_vm0 }
0x176f   :  { %v9619_v50 = vpop.f32.mrb[33].mxu1  ;;  %v2828_v1 = vsel %vm11033_vm14, %v9617_v12, 0.0  ;;  %v2842_v6 = vmul.f32 %v9617_v12, %v9617_v12  ;;  %vm11044_vm14 = vmmov %vm11026_vm0 }
0x1770   :  { %2820 = vadd.xlane.f32.xlu0 %v2819_v31  ;;  %v2825_v63 = vsel %vm11032_vm8, %v9619_v50, 0.0  ;;  %v2841_v48 = vmul.f32 %v9619_v50, %v9619_v50  ;;  %vm11043_vm8 = vmmov %vm11026_vm0 }
0x1771   :  { %2823 = vadd.xlane.f32.xlu1 %v2822_v27  ;;  %v2860_v11 = vsel %vm11035_vm13, %v2842_v6, 0.0  ;;  %vm11046_vm13 = vmmov %vm11026_vm0 }
0x1772   :  { %v9623_v26 = vpop.f32.mrb[34].mxu1  ;;  %v2857_v44 = vsel %vm11034_vm15, %v2841_v48, 0.0  ;;  %vm11045_vm15 = vmmov %vm11026_vm0 }
0x1773   :  { %v9625_v35 = vpop.f32.mrb[35].mxu1  ;;  %v2834_v61 = vsel %vm11037_vm4, %v9623_v26, 0.0  ;;  %v2844_v40 = vmul.f32 %v9623_v26, %v9623_v26  ;;  %vm11048_vm4 = vmmov %vm11026_vm0 }
0x1774   :  { %2852 = vadd.xlane.f32.xlu0 %v2851_v23  ;;  %v2831_v30 = vsel %vm11036_vm6, %v9625_v35, 0.0  ;;  %v2843_v17 = vmul.f32 %v9625_v35, %v9625_v35  ;;  %vm11047_vm6 = vmmov %vm11026_vm0 }
0x1775   :  { %2855 = vadd.xlane.f32.xlu1 %v2854_v8  ;;  %v2866_v49 = vsel %vm11038_vm9, %v2844_v40, 0.0  ;;  %vm11049_vm9 = vmmov %vm11026_vm0 }
0x1776   :  { %v2863_v15 = vsel %vm11026_vm0, %v2843_v17, 0.0 }
0x1778   :  { %2826 = vadd.xlane.f32.xlu0 %v2825_v63 }
0x1779   :  { %2829 = vadd.xlane.f32.xlu1 %v2828_v1 }
0x177c   :  { %2858 = vadd.xlane.f32.xlu0 %v2857_v44 }
0x177d   :  { %2861 = vadd.xlane.f32.xlu1 %v2860_v11 }
0x1780   :  { %2832 = vadd.xlane.f32.xlu0 %v2831_v30 }
0x1781   :  { %2835 = vadd.xlane.f32.xlu1 %v2834_v61 }
0x1784   :  { %2864 = vadd.xlane.f32.xlu0 %v2863_v15 }
0x1785   :  { %2867 = vadd.xlane.f32.xlu1 %v2866_v49 }
0x17f5   :  { %v2818_v34 = vpop.xlane.xlu0 %2817 }
0x17f6   :  { %v2815_v13 = vpop.xlane.xlu1 %2814  ;;  %v2870_v31 = vmul.f32 0.03125, %v2818_v34 }
0x17f7   :  { %v2869_v9 = vmul.f32 0.03125, %v2815_v13 }
0x17f8   :  { %v2886_v63 = vmul.f32 %v2870_v31, %v2870_v31 }
0x17f9   :  { %v2885_v27 = vmul.f32 %v2869_v9, %v2869_v9  ;;  %v2847_v60 = vpop.xlane.xlu0 %2846 }
0x17fa   :  { %v2877_v23 = vmul.f32 0.03125, %v2847_v60  ;;  %v2850_v8 = vpop.xlane.xlu1 %2849 }
0x17fb   :  { %v2878_v48 = vmul.f32 0.03125, %v2850_v8 }
0x17fc   :  { %v2893_v1 = vsub.f32 %v2877_v23, %v2885_v27 }
0x17fd   :  { %v2894_v6 = vsub.f32 %v2878_v48, %v2886_v63  ;;  %v2821_v44 = vpop.xlane.xlu0 %2820 }
0x17fe   :  { %v2901_v11 = vadd.f32 1e-05, %v2893_v1  ;;  %v2871_v30 = vmul.f32 0.03125, %v2821_v44  ;;  %v2824_v17 = vpop.xlane.xlu1 %2823 }
0x17ff   :  { %v2902_v61 = vadd.f32 1e-05, %v2894_v6  ;;  %v2872_v40 = vmul.f32 0.03125, %v2824_v17  ;;  %v9650_v6 = vld [vmem:[%s10803_s2 + $0x70] sm:$0xff] }
0x1800   :  { %8192 = vrsqrt.f32 %v2901_v11  ;;  %v2887_v15 = vmul.f32 %v2871_v30, %v2871_v30 }
0x1801   :  { %8194 = vrsqrt.f32 %v2902_v61  ;;  %v2888_v49 = vmul.f32 %v2872_v40, %v2872_v40  ;;  %v2853_v34 = vpop.xlane.xlu0 %2852 }
0x1802   :  { %v2879_v13 = vmul.f32 0.03125, %v2853_v34  ;;  %v2856_v7 = vpop.xlane.xlu1 %2855 }
0x1803   :  { %v2880_v4 = vmul.f32 0.03125, %v2856_v7 }
0x1804   :  { %v2895_v60 = vsub.f32 %v2879_v13, %v2887_v15 }
0x1805   :  { %v2896_v47 = vsub.f32 %v2880_v4, %v2888_v49  ;;  %v2827_v46 = vpop.xlane.xlu0 %2826  ;;  %v9655_v4 = vld [vmem:[%s10803_s2 + $0x78] sm:$0xff] }
0x1806   :  { %v2903_v8 = vadd.f32 1e-05, %v2895_v60  ;;  %v2873_v27 = vmul.f32 0.03125, %v2827_v46  ;;  %v2830_v23 = vpop.xlane.xlu1 %2829 }
0x1807   :  { %v2904_v63 = vadd.f32 1e-05, %v2896_v47  ;;  %v2874_v48 = vmul.f32 0.03125, %v2830_v23 }
0x1808   :  { %8196 = vrsqrt.f32 %v2903_v8  ;;  %v2889_v1 = vmul.f32 %v2873_v27, %v2873_v27 }
0x1809   :  { %8198 = vrsqrt.f32 %v2904_v63  ;;  %v2890_v44 = vmul.f32 %v2874_v48, %v2874_v48  ;;  %v2859_v11 = vpop.xlane.xlu0 %2858 }
0x180a   :  { %v8193_v7 = vpop.eup %8192  ;;  %v2881_v46 = vmul.f32 0.03125, %v2859_v11  ;;  %v2862_v17 = vpop.xlane.xlu1 %2861 }
0x180b   :  { %v8195_v47 = vpop.eup %8194  ;;  %v2882_v61 = vmul.f32 0.03125, %v2862_v17  ;;  %v2917_v15 = vmul.f32 %v8193_v7, %v9650_v6 }
0x180c   :  { %v2897_v49 = vsub.f32 %v2881_v46, %v2889_v1  ;;  %v2918_v34 = vmul.f32 %v8195_v47, %v9655_v4  ;;  %v2807_v1 = vld [vmem:[%s10803_s2 + $0x80] sm:$0xff] }
0x180d   :  { %v2898_v13 = vsub.f32 %v2882_v61, %v2890_v44  ;;  %v2833_v60 = vpop.xlane.xlu0 %2832  ;;  %v2925_v8 = vmul.f32 %v2917_v15, %v2869_v9  ;;  %v2808_v9 = vld [vmem:[%s10803_s2 + $0x88] sm:$0xff] }
0x180e   :  { %v2905_v23 = vadd.f32 1e-05, %v2897_v49  ;;  %v2875_v63 = vmul.f32 0.03125, %v2833_v60  ;;  %v2836_v39 = vpop.xlane.xlu1 %2835  ;;  %v2926_v33 = vmul.f32 %v2918_v34, %v2870_v31 }
0x180f   :  { %v2906_v32 = vadd.f32 1e-05, %v2898_v13  ;;  %v2876_v29 = vmul.f32 0.03125, %v2836_v39  ;;  %2941 = vrot.lane.b32.xlu0 %v2925_v8, %s8258_s22 }
0x1810   :  { %8200 = vrsqrt.f32 %v2905_v23  ;;  %v2891_v11 = vmul.f32 %v2875_v63, %v2875_v63  ;;  %2943 = vrot.lane.b32.xlu1 %v2926_v33, %s8258_s22 }
0x1811   :  { %8202 = vrsqrt.f32 %v2906_v32  ;;  %v2892_v44 = vmul.f32 %v2876_v29, %v2876_v29  ;;  %v2865_v7 = vpop.xlane.xlu0 %2864  ;;  %v2809_v32 = vld [vmem:[%s10803_s2 + $0x90] sm:$0xff] }
0x1812   :  { %v8197_v31 = vpop.eup %8196  ;;  %v2883_v46 = vmul.f32 0.03125, %v2865_v7  ;;  %v2868_v39 = vpop.xlane.xlu1 %2867 }
0x1813   :  { %v8199_v17 = vpop.eup %8198  ;;  %v2884_v47 = vmul.f32 0.03125, %v2868_v39  ;;  %v2919_v61 = vmul.f32 %v8197_v31, %v2807_v1  ;;  %v2811_v39 = vld [vmem:[%s10803_s2 + $0xa0] sm:$0xff] }
0x1814   :  { %v2899_v49 = vsub.f32 %v2883_v46, %v2891_v11  ;;  %v2920_v13 = vmul.f32 %v8199_v17, %v2808_v9  ;;  %v2810_v11 = vld [vmem:[%s10803_s2 + $0x98] sm:$0xff] }
0x1815   :  { %v2900_v33 = vsub.f32 %v2884_v47, %v2892_v44  ;;  %v2927_v60 = vmul.f32 %v2919_v61, %v2871_v30 }
0x1816   :  { %v2907_v8 = vadd.f32 1e-05, %v2899_v49  ;;  %v2928_v23 = vmul.f32 %v2920_v13, %v2872_v40 }
0x1817   :  { %v2908_v20 = vadd.f32 1e-05, %v2900_v33  ;;  %2945 = vrot.lane.b32.xlu1 %v2927_v60, %s8258_s22 }
0x1818   :  { %8204 = vrsqrt.f32 %v2907_v8  ;;  %2947 = vrot.lane.b32.xlu0 %v2928_v23, %s8258_s22 }
0x1819   :  { %8206 = vrsqrt.f32 %v2908_v20  ;;  %v2812_v20 = vld [vmem:[%s10803_s2 + $0xa8] sm:$0xff] }
0x181a   :  { %v8201_v7 = vpop.eup %8200 }
0x181b   :  { %v8203_v44 = vpop.eup %8202  ;;  %v2921_v30 = vmul.f32 %v8201_v7, %v2809_v32 }
0x181c   :  { %v2922_v31 = vmul.f32 %v8203_v44, %v2810_v11 }
0x181d   :  { %v2929_v40 = vmul.f32 %v2921_v30, %v2873_v27 }
0x181e   :  { %v2930_v46 = vmul.f32 %v2922_v31, %v2874_v48 }
0x181f   :  { %2949 = vrot.lane.b32.xlu1 %v2929_v40, %s8258_s22 }
0x1820   :  { %2951 = vrot.lane.b32.xlu0 %v2930_v46, %s8258_s22 }
0x1822   :  { %v8205_v17 = vpop.eup %8204 }
0x1823   :  { %v8207_v47 = vpop.eup %8206  ;;  %v2923_v49 = vmul.f32 %v8205_v17, %v2811_v39 }
0x1824   :  { %v2924_v33 = vmul.f32 %v8207_v47, %v2812_v20 }
0x1825   :  { %v2931_v60 = vmul.f32 %v2923_v49, %v2875_v63 }
0x1826   :  { %v2932_v8 = vmul.f32 %v2924_v33, %v2876_v29 }
0x1827   :  { %2953 = vrot.lane.b32.xlu1 %v2931_v60, %s8258_s22 }
0x1828   :  { %2955 = vrot.lane.b32.xlu0 %v2932_v8, %s8258_s22 }
0x182b   :  { %2975 = vperm.xlu1 %8126, %v2917_v15  }
0x182c   :  { %2980 = vperm.xlu0 %8127, %v2918_v34  }
0x182f   :  { %2990 = vperm.xlu1 %8126, %v2920_v13  }
0x1830   :  { %2985 = vperm.xlu0 %8127, %v2919_v61  }
0x1833   :  { %2995 = vperm.xlu1 %8126, %v2921_v30  }
0x1834   :  { %3000 = vperm.xlu0 %8127, %v2922_v31  }
0x1837   :  { %8128 = vset.pattern.permute.xlu1 %v10977_v16 }
0x1838   :  { %8129 = vset.pattern.permute.xlu0 %v10977_v16 }
0x1881   :  { %v2942_v23 = vpop.permute.xlu0 %2941 }
0x1882   :  { %v2944_v27 = vpop.permute.xlu1 %2943  ;;  %v2965_v29 = vsub.f32 %v9650_v6, %v2942_v23 }
0x1883   :  { %v2966_v48 = vsub.f32 %v9655_v4, %v2944_v27 }
0x1885   :  { %3028 = vperm.xlu1 %8128, %v2966_v48  }
0x1889   :  { %v2946_v63 = vpop.permute.xlu1 %2945  ;;  %3023 = vperm.xlu1 %8128, %v2965_v29  }
0x188a   :  { %v2967_v7 = vsub.f32 %v2807_v1, %v2946_v63  ;;  %v2948_v15 = vpop.permute.xlu0 %2947 }
0x188b   :  { %v2968_v34 = vsub.f32 %v2808_v9, %v2948_v15 }
0x188c   :  { %3033 = vperm.xlu0 %8129, %v2967_v7  }
0x188d   :  { %3038 = vperm.xlu1 %8128, %v2968_v34  }
0x1890   :  { %8130 = vset.pattern.permute.xlu0 %v10978_v10 }
0x1891   :  { %3005 = vperm.xlu0 %8130, %v2923_v49   ;;  %v2950_v44 = vpop.permute.xlu1 %2949 }
0x1892   :  { %v2952_v61 = vpop.permute.xlu0 %2951  ;;  %v2969_v4 = vsub.f32 %v2809_v32, %v2950_v44 }
0x1893   :  { %v2970_v13 = vsub.f32 %v2810_v11, %v2952_v61 }
0x1895   :  { %3048 = vperm.xlu1 %8128, %v2970_v13   ;;  %8132 = vset.pattern.permute.xlu0 %v10977_v16 }
0x1899   :  { %v2954_v30 = vpop.permute.xlu1 %2953  ;;  %3043 = vperm.xlu1 %8128, %v2969_v4  }
0x189a   :  { %v2971_v6 = vsub.f32 %v2811_v39, %v2954_v30  ;;  %v2956_v1 = vpop.permute.xlu0 %2955 }
0x189b   :  { %v2972_v9 = vsub.f32 %v2812_v20, %v2956_v1 }
0x189c   :  { %3053 = vperm.xlu0 %8132, %v2971_v6  }
0x189d   :  { %8131 = vset.pattern.permute.xlu1 %v10978_v10 }
0x189e   :  { %3010 = vperm.xlu1 %8131, %v2924_v33  }
0x18a0   :  { %8135 = vset.pattern.permute.xlu0 %v10978_v10 }
0x18a2   :  { %8133 = vset.pattern.permute.xlu1 %v10977_v16 }
0x18a3   :  { %3058 = vperm.xlu1 %8133, %v2972_v9  }
0x18a7   :  { %8134 = vset.pattern.permute.xlu1 %v10978_v10 }
0x18aa   :  { %v2976_v11 = vpop.permute.xlu1 %2975 }
0x18ab   :  { %v2981_v40 = vpop.permute.xlu0 %2980  ;;  %v3013_v49 = vmul.f32 %v2976_v11, %v9593_v18 }
0x18ac   :  { %v3014_v39 = vmul.f32 %v9591_v58, %v2981_v40 }
0x18ae   :  { %v2991_v31 = vpop.permute.xlu1 %2990 }
0x18af   :  { %v2986_v46 = vpop.permute.xlu0 %2985  ;;  %v3016_v23 = vmul.f32 %v9604_v56, %v2991_v31 }
0x18b0   :  { %v3015_v48 = vmul.f32 %v2986_v46, %v9606_v51 }
0x18b2   :  { %v2996_v32 = vpop.permute.xlu1 %2995 }
0x18b3   :  { %v3001_v33 = vpop.permute.xlu0 %3000 }
0x1904   :  { %v3029_v17 = vpop.permute.xlu1 %3028 }
0x1905   :  { %v3062_v47 = vadd.f32 %v3029_v17, %v3014_v39  ;;  %v3017_v17 = vmul.f32 %v2996_v32, %v9619_v50 }
0x1907   :  { %v3070_v60 = vmax.f32 %v3062_v47, 0.0 }
0x1908   :  { %v3024_v8 = vpop.permute.xlu1 %3023 }
0x1909   :  { %v9698_v20 = vadd.f32 %v9591_v58, %v3070_v60  ;;  %v3061_v27 = vadd.f32 %v3024_v8, %v3013_v49 }
0x190b   :  { %v3069_v29 = vmax.f32 %v3061_v27, 0.0  ;;  %v3034_v63 = vpop.permute.xlu0 %3033  ;;  %v3096_v7 = vsel %vm11039_vm11, %v9698_v20, 0.0  ;;  %v3118_v6 = vmul.f32 %v9698_v20, %v9698_v20  ;;  %vm11050_vm11 = vmmov %vm11026_vm0 }
0x190c   :  { %v3063_v15 = vadd.f32 %v3034_v63, %v3015_v48  ;;  %v3039_v34 = vpop.permute.xlu1 %3038  ;;  %3097 = vadd.xlane.f32.xlu0 %v3096_v7 }
0x190d   :  { %v9705_v61 = vadd.f32 %v3069_v29, %v9593_v18  ;;  %v3064_v13 = vadd.f32 %v3039_v34, %v3016_v23  ;;  %v3018_v18 = vmul.f32 %v9617_v12, %v3001_v33  ;;  %v3128_v31 = vsel %vm11042_vm2, %v3118_v6, 0.0  ;;  %vm11053_vm2 = vmmov %vm11026_vm0 }
0x190e   :  { %v3071_v44 = vmax.f32 %v3063_v15, 0.0 }
0x190f   :  { %v3072_v58 = vmax.f32 %v3064_v13, 0.0  ;;  %v3093_v4 = vsel %vm11040_vm3, %v9705_v61, 0.0  ;;  %v3117_v30 = vmul.f32 %v9705_v61, %v9705_v61  ;;  %vm11051_vm3 = vmmov %vm11026_vm0 }
0x1910   :  { %3094 = vadd.xlane.f32.xlu1 %v3093_v4  ;;  %v9714_v1 = vadd.f32 %v3071_v44, %v9606_v51  ;;  %v3006_v47 = vpop.permute.xlu0 %3005 }
0x1911   :  { %v3125_v9 = vsel %vm11041_vm7, %v3117_v30, 0.0  ;;  %v9719_v11 = vadd.f32 %v9604_v56, %v3072_v58  ;;  %v3019_v48 = vmul.f32 %v3006_v47, %v9625_v35  ;;  %vm11052_vm7 = vmmov %vm11026_vm0 }
0x1912   :  { %3126 = vadd.xlane.f32.xlu0 %v3125_v9  ;;  %v3099_v39 = vsel %vm11043_vm8, %v9714_v1, 0.0  ;;  %v3119_v51 = vmul.f32 %v9714_v1, %v9714_v1  ;;  %vm11054_vm8 = vmmov %vm11026_vm0 }
0x1913   :  { %v3102_v56 = vsel %vm11044_vm14, %v9719_v11, 0.0  ;;  %v3120_v33 = vmul.f32 %v9719_v11, %v9719_v11  ;;  %vm11055_vm14 = vmmov %vm11026_vm0 }
0x1914   :  { %v3049_v40 = vpop.permute.xlu1 %3048  ;;  %3129 = vadd.xlane.f32.xlu1 %v3128_v31  ;;  %v3131_v27 = vsel %vm11045_vm15, %v3119_v51, 0.0  ;;  %vm11056_vm15 = vmmov %vm11026_vm0 }
0x1915   :  { %v3066_v46 = vadd.f32 %v3049_v40, %v3018_v18  ;;  %v3134_v63 = vsel %vm11046_vm13, %v3120_v33, 0.0  ;;  %vm11057_vm13 = vmmov %vm11026_vm0 }
0x1916   :  { %3100 = vadd.xlane.f32.xlu0 %v3099_v39 }
0x1917   :  { %v3074_v49 = vmax.f32 %v3066_v46, 0.0 }
0x1918   :  { %v3044_v60 = vpop.permute.xlu1 %3043  ;;  %3103 = vadd.xlane.f32.xlu1 %v3102_v56 }
0x1919   :  { %v3065_v8 = vadd.f32 %v3044_v60, %v3017_v17  ;;  %v9734_v23 = vadd.f32 %v9617_v12, %v3074_v49 }
0x191a   :  { %3132 = vadd.xlane.f32.xlu0 %v3131_v27 }
0x191b   :  { %v3073_v32 = vmax.f32 %v3065_v8, 0.0  ;;  %v3054_v29 = vpop.permute.xlu0 %3053  ;;  %v3108_v13 = vsel %vm11047_vm6, %v9734_v23, 0.0  ;;  %v3122_v12 = vmul.f32 %v9734_v23, %v9734_v23  ;;  %vm11060_vm6 = vmmov %vm11026_vm0 }
0x191c   :  { %v3067_v7 = vadd.f32 %v3054_v29, %v3019_v48  ;;  %3135 = vadd.xlane.f32.xlu1 %v3134_v63 }
0x191d   :  { %v9738_v15 = vadd.f32 %v3073_v32, %v9619_v50  ;;  %v3011_v34 = vpop.permute.xlu1 %3010  ;;  %v3140_v18 = vsel %vm11026_vm0, %v3122_v12, 0.0 }
0x191e   :  { %v3075_v44 = vmax.f32 %v3067_v7, 0.0  ;;  %v3020_v30 = vmul.f32 %v9623_v26, %v3011_v34 }
0x191f   :  { %v3105_v58 = vsel %vm11048_vm4, %v9738_v15, 0.0  ;;  %v3121_v4 = vmul.f32 %v9738_v15, %v9738_v15  ;;  %vm11061_vm4 = vmmov %vm11026_vm0 }
0x1920   :  { %3109 = vadd.xlane.f32.xlu1 %v3108_v13  ;;  %3106 = vadd.xlane.f32.xlu0 %v3105_v58  ;;  %v9750_v6 = vadd.f32 %v3075_v44, %v9625_v35 }
0x1921   :  { %v3137_v31 = vsel %vm11049_vm9, %v3121_v4, 0.0  ;;  %vm11062_vm9 = vmmov %vm11026_vm0 }
0x1922   :  { %v3059_v50 = vpop.permute.xlu1 %3058  ;;  %v3111_v39 = vsel %vm11050_vm11, %v9750_v6, 0.0  ;;  %v3123_v51 = vmul.f32 %v9750_v6, %v9750_v6  ;;  %vm11063_vm11 = vmmov %vm11026_vm0 }
0x1923   :  { %v3068_v9 = vadd.f32 %v3059_v50, %v3020_v30 }
0x1924   :  { %3141 = vadd.xlane.f32.xlu1 %v3140_v18  ;;  %3138 = vadd.xlane.f32.xlu0 %v3137_v31  ;;  %v3143_v47 = vsel %vm11052_vm7, %v3123_v51, 0.0  ;;  %vm11065_vm7 = vmmov %vm11026_vm0 }
0x1925   :  { %v3076_v40 = vmax.f32 %v3068_v9, 0.0 }
0x1927   :  { %v9755_v46 = vadd.f32 %v9623_v26, %v3076_v40 }
0x1928   :  { %3112 = vadd.xlane.f32.xlu0 %v3111_v39 }
0x1929   :  { %v3114_v35 = vsel %vm11051_vm3, %v9755_v46, 0.0  ;;  %v3124_v17 = vmul.f32 %v9755_v46, %v9755_v46  ;;  %vm11064_vm3 = vmmov %vm11026_vm0 }
0x192a   :  { %3115 = vadd.xlane.f32.xlu1 %v3114_v35 }
0x192b   :  { %v3146_v26 = vsel %vm11053_vm2, %v3124_v17, 0.0  ;;  %vm11066_vm2 = vmmov %vm11026_vm0 }
0x192c   :  { %3144 = vadd.xlane.f32.xlu0 %v3143_v47 }
0x192e   :  { %3147 = vadd.xlane.f32.xlu1 %v3146_v26 }
0x1999   :  { %v3098_v49 = vpop.xlane.xlu0 %3097 }
0x199a   :  { %v3150_v33 = vmul.f32 0.03125, %v3098_v49 }
0x199c   :  { %v3166_v29 = vmul.f32 %v3150_v33, %v3150_v33 }
0x199d   :  { %v3095_v56 = vpop.xlane.xlu1 %3094 }
0x199e   :  { %v3149_v60 = vmul.f32 0.03125, %v3095_v56 }
0x199f   :  { %v3127_v8 = vpop.xlane.xlu0 %3126 }
0x19a0   :  { %v3165_v27 = vmul.f32 %v3149_v60, %v3149_v60  ;;  %v3157_v48 = vmul.f32 0.03125, %v3127_v8 }
0x19a1   :  { %v3130_v32 = vpop.xlane.xlu1 %3129 }
0x19a2   :  { %v3173_v63 = vsub.f32 %v3157_v48, %v3165_v27  ;;  %v3158_v7 = vmul.f32 0.03125, %v3130_v32  ;;  %v9770_v27 = vld [vmem:[%s10803_s2 + $0xb0] sm:$0xff]  ;;  %v9775_v32 = vld [vmem:[%s10803_s2 + $0xb8] sm:$0xff] }
0x19a3   :  { %v3101_v34 = vpop.xlane.xlu0 %3100 }
0x19a4   :  { %v3181_v13 = vadd.f32 1e-05, %v3173_v63  ;;  %v3174_v44 = vsub.f32 %v3158_v7, %v3166_v29  ;;  %v3151_v58 = vmul.f32 0.03125, %v3101_v34 }
0x19a5   :  { %v3104_v12 = vpop.xlane.xlu1 %3103 }
0x19a6   :  { %8208 = vrsqrt.f32 %v3181_v13  ;;  %v3182_v4 = vadd.f32 1e-05, %v3174_v44  ;;  %v3152_v30 = vmul.f32 0.03125, %v3104_v12  ;;  %v3167_v9 = vmul.f32 %v3151_v58, %v3151_v58 }
0x19a7   :  { %v3133_v50 = vpop.xlane.xlu0 %3132 }
0x19a8   :  { %8210 = vrsqrt.f32 %v3182_v4  ;;  %v3159_v18 = vmul.f32 0.03125, %v3133_v50  ;;  %v3168_v40 = vmul.f32 %v3152_v30, %v3152_v30 }
0x19a9   :  { %v3136_v31 = vpop.xlane.xlu1 %3135 }
0x19aa   :  { %v3175_v39 = vsub.f32 %v3159_v18, %v3167_v9  ;;  %v3160_v51 = vmul.f32 0.03125, %v3136_v31 }
0x19ac   :  { %v3183_v35 = vadd.f32 1e-05, %v3175_v39  ;;  %v3176_v17 = vsub.f32 %v3160_v51, %v3168_v40 }
0x19ad   :  { %v3110_v47 = vpop.xlane.xlu1 %3109  ;;  %v3107_v26 = vpop.xlane.xlu0 %3106 }
0x19ae   :  { %8212 = vrsqrt.f32 %v3183_v35  ;;  %v3184_v49 = vadd.f32 1e-05, %v3176_v17  ;;  %v3154_v56 = vmul.f32 0.03125, %v3110_v47  ;;  %v3153_v8 = vmul.f32 0.03125, %v3107_v26  ;;  %v9783_v47 = vld [vmem:[%s10803_s2 + $0xc0] sm:$0xff] }
0x19b0   :  { %v8209_v48 = vpop.eup %8208  ;;  %8214 = vrsqrt.f32 %v3184_v49  ;;  %v3170_v13 = vmul.f32 %v3154_v56, %v3154_v56  ;;  %v3169_v44 = vmul.f32 %v3153_v8, %v3153_v8 }
0x19b1   :  { %v3142_v29 = vpop.xlane.xlu1 %3141  ;;  %v3139_v63 = vpop.xlane.xlu0 %3138  ;;  %v3197_v7 = vmul.f32 %v8209_v48, %v9770_v27  ;;  %v3088_v48 = vld [vmem:[%s10803_s2 + $0xc8] sm:$0xff] }
0x19b2   :  { %v8211_v34 = vpop.eup %8210  ;;  %v3162_v12 = vmul.f32 0.03125, %v3142_v29  ;;  %v3161_v4 = vmul.f32 0.03125, %v3139_v63 }
0x19b3   :  { %v3205_v50 = vmul.f32 %v3197_v7, %v3149_v60  ;;  %v3198_v9 = vmul.f32 %v8211_v34, %v9775_v32 }
0x19b4   :  { %v3178_v18 = vsub.f32 %v3162_v12, %v3170_v13  ;;  %v3177_v31 = vsub.f32 %v3161_v4, %v3169_v44 }
0x19b5   :  { %3221 = vrot.lane.b32.xlu0 %v3205_v50, %s8258_s22  ;;  %v3113_v40 = vpop.xlane.xlu0 %3112  ;;  %v3206_v39 = vmul.f32 %v3198_v9, %v3150_v33 }
0x19b6   :  { %v3186_v51 = vadd.f32 1e-05, %v3178_v18  ;;  %v3185_v35 = vadd.f32 1e-05, %v3177_v31  ;;  %v3155_v17 = vmul.f32 0.03125, %v3113_v40 }
0x19b7   :  { %v3116_v26 = vpop.xlane.xlu1 %3115  ;;  %3223 = vrot.lane.b32.xlu1 %v3206_v39, %s8258_s22 }
0x19b8   :  { %v8213_v60 = vpop.eup %8212  ;;  %8216 = vrsqrt.f32 %v3186_v51  ;;  %v3156_v49 = vmul.f32 0.03125, %v3116_v26  ;;  %v3171_v34 = vmul.f32 %v3155_v17, %v3155_v17  ;;  %v3090_v26 = vld [vmem:[%s10803_s2 + $0xd8] sm:$0xff] }
0x19b9   :  { %8218 = vrsqrt.f32 %v3185_v35  ;;  %v3145_v33 = vpop.xlane.xlu0 %3144  ;;  %v3199_v29 = vmul.f32 %v8213_v60, %v9783_v47 }
0x19ba   :  { %v8215_v63 = vpop.eup %8214  ;;  %v3163_v13 = vmul.f32 0.03125, %v3145_v33  ;;  %v3172_v50 = vmul.f32 %v3156_v49, %v3156_v49 }
0x19bb   :  { %v3148_v44 = vpop.xlane.xlu1 %3147  ;;  %v3207_v12 = vmul.f32 %v3199_v29, %v3151_v58  ;;  %v3200_v4 = vmul.f32 %v8215_v63, %v3088_v48  ;;  %v3089_v58 = vld [vmem:[%s10803_s2 + $0xd0] sm:$0xff] }
0x19bc   :  { %v3179_v18 = vsub.f32 %v3163_v13, %v3171_v34  ;;  %v3164_v31 = vmul.f32 0.03125, %v3148_v44  ;;  %v3091_v44 = vld [vmem:[%s10803_s2 + $0xe0] sm:$0xff] }
0x19bd   :  { %3225 = vrot.lane.b32.xlu1 %v3207_v12, %s8258_s22  ;;  %v3208_v40 = vmul.f32 %v3200_v4, %v3152_v30 }
0x19be   :  { %v3187_v39 = vadd.f32 1e-05, %v3179_v18  ;;  %v3180_v51 = vsub.f32 %v3164_v31, %v3172_v50  ;;  %v3092_v50 = vld [vmem:[%s10803_s2 + $0xe8] sm:$0xff] }
0x19bf   :  { %3227 = vrot.lane.b32.xlu0 %v3208_v40, %s8258_s22 }
0x19c0   :  { %8220 = vrsqrt.f32 %v3187_v39  ;;  %v3188_v35 = vadd.f32 1e-05, %v3180_v51 }
0x19c2   :  { %v8217_v60 = vpop.eup %8216  ;;  %8222 = vrsqrt.f32 %v3188_v35 }
0x19c3   :  { %v8219_v33 = vpop.eup %8218  ;;  %v3202_v63 = vmul.f32 %v8217_v60, %v3090_v26 }
0x19c4   :  { %v3201_v34 = vmul.f32 %v8219_v33, %v3089_v58 }
0x19c5   :  { %v3210_v30 = vmul.f32 %v3202_v63, %v3154_v56 }
0x19c6   :  { %v3209_v13 = vmul.f32 %v3201_v34, %v3153_v8 }
0x19c7   :  { %3231 = vrot.lane.b32.xlu0 %v3210_v30, %s8258_s22 }
0x19c8   :  { %3229 = vrot.lane.b32.xlu1 %v3209_v13, %s8258_s22 }
0x19ca   :  { %v8221_v12 = vpop.eup %8220 }
0x19cb   :  { %v3203_v18 = vmul.f32 %v8221_v12, %v3091_v44 }
0x19cc   :  { %v8223_v31 = vpop.eup %8222 }
0x19cd   :  { %v3211_v40 = vmul.f32 %v3203_v18, %v3155_v17  ;;  %v3204_v39 = vmul.f32 %v8223_v31, %v3092_v50 }
0x19cf   :  { %3233 = vrot.lane.b32.xlu1 %v3211_v40, %s8258_s22  ;;  %v3212_v56 = vmul.f32 %v3204_v39, %v3156_v49 }
0x19d1   :  { %3235 = vrot.lane.b32.xlu0 %v3212_v56, %s8258_s22 }
0x19d3   :  { %3255 = vperm.xlu1 %8134, %v3197_v7  }
0x19d5   :  { %3260 = vperm.xlu0 %8135, %v3198_v9  }
0x19d7   :  { %3270 = vperm.xlu1 %8134, %v3200_v4  }
0x19d9   :  { %3265 = vperm.xlu0 %8135, %v3199_v29  }
0x19db   :  { %3275 = vperm.xlu1 %8134, %v3201_v34  }
0x19dd   :  { %3280 = vperm.xlu0 %8135, %v3202_v63  }
0x19df   :  { %8136 = vset.pattern.permute.xlu1 %v10977_v16 }
0x19e1   :  { %8137 = vset.pattern.permute.xlu0 %v10977_v16 }
0x1a27   :  { %v3222_v17 = vpop.permute.xlu0 %3221 }
0x1a28   :  { %v3245_v35 = vsub.f32 %v9770_v27, %v3222_v17 }
0x1a29   :  { %v3224_v8 = vpop.permute.xlu1 %3223 }
0x1a2a   :  { %v3246_v51 = vsub.f32 %v9775_v32, %v3224_v8 }
0x1a2c   :  { %3308 = vperm.xlu1 %8136, %v3246_v51  }
0x1a2f   :  { %v3226_v49 = vpop.permute.xlu1 %3225 }
0x1a30   :  { %v3247_v60 = vsub.f32 %v9783_v47, %v3226_v49  ;;  %3303 = vperm.xlu1 %8136, %v3245_v35  }
0x1a31   :  { %v3228_v7 = vpop.permute.xlu0 %3227 }
0x1a32   :  { %v3248_v9 = vsub.f32 %v3088_v48, %v3228_v7  ;;  %3313 = vperm.xlu0 %8137, %v3247_v60  }
0x1a34   :  { %3318 = vperm.xlu1 %8136, %v3248_v9  }
0x1a36   :  { %8138 = vset.pattern.permute.xlu0 %v10978_v10 }
0x1a37   :  { %3285 = vperm.xlu0 %8138, %v3203_v18  }
0x1a39   :  { %v3232_v29 = vpop.permute.xlu0 %3231 }
0x1a3a   :  { %v3250_v4 = vsub.f32 %v3090_v26, %v3232_v29  ;;  %v3230_v33 = vpop.permute.xlu1 %3229 }
0x1a3b   :  { %8140 = vset.pattern.permute.xlu0 %v10977_v16  ;;  %v3249_v32 = vsub.f32 %v3089_v58, %v3230_v33 }
0x1a3c   :  { %3328 = vperm.xlu1 %8136, %v3250_v4  }
0x1a40   :  { %3323 = vperm.xlu1 %8136, %v3249_v32  }
0x1a41   :  { %v3234_v27 = vpop.permute.xlu1 %3233 }
0x1a42   :  { %v3251_v63 = vsub.f32 %v3091_v44, %v3234_v27 }
0x1a43   :  { %v3236_v47 = vpop.permute.xlu0 %3235 }
0x1a44   :  { %3333 = vperm.xlu0 %8140, %v3251_v63   ;;  %8139 = vset.pattern.permute.xlu1 %v10978_v10  ;;  %v3252_v48 = vsub.f32 %v3092_v50, %v3236_v47 }
0x1a45   :  { %3290 = vperm.xlu1 %8139, %v3204_v39  }
0x1a48   :  { %8143 = vset.pattern.permute.xlu0 %v10978_v10 }
0x1a49   :  { %8141 = vset.pattern.permute.xlu1 %v10977_v16 }
0x1a4a   :  { %3338 = vperm.xlu1 %8141, %v3252_v48  }
0x1a4e   :  { %8142 = vset.pattern.permute.xlu1 %v10978_v10 }
0x1a52   :  { %v3256_v26 = vpop.permute.xlu1 %3255 }
0x1a53   :  { %v3293_v31 = vmul.f32 %v3256_v26, %v9705_v61 }
0x1a54   :  { %v3261_v34 = vpop.permute.xlu0 %3260 }
0x1a55   :  { %v3294_v44 = vmul.f32 %v3261_v34, %v9698_v20 }
0x1a56   :  { %v3271_v30 = vpop.permute.xlu1 %3270 }
0x1a57   :  { %v3296_v51 = vmul.f32 %v3271_v30, %v9719_v11 }
0x1a58   :  { %v3266_v58 = vpop.permute.xlu0 %3265 }
0x1a59   :  { %v3295_v39 = vmul.f32 %v3266_v58, %v9714_v1 }
0x1a5a   :  { %v3276_v13 = vpop.permute.xlu1 %3275 }
0x1a5b   :  { %v3297_v43 = vmul.f32 %v3276_v13, %v9738_v15 }
0x1a5c   :  { %v3281_v18 = vpop.permute.xlu0 %3280 }
0x1a5d   :  { %v3298_v29 = vmul.f32 %v3281_v18, %v9734_v23 }
0x1aab   :  { %v3309_v12 = vpop.permute.xlu1 %3308 }
0x1aac   :  { %v3342_v40 = vadd.f32 %v3309_v12, %v3294_v44 }
0x1aae   :  { %v9823_v17 = vmax.f32 %v3342_v40, 0.0 }
0x1aaf   :  { %v3304_v50 = vpop.permute.xlu1 %3303 }
0x1ab0   :  { %v3341_v56 = vadd.f32 %v3304_v50, %v3293_v31 }
0x1ab1   :  { %v3314_v8 = vpop.permute.xlu0 %3313 }
0x1ab2   :  { %v9825_v35 = vmax.f32 %v3341_v56, 0.0  ;;  %v3343_v49 = vadd.f32 %v3314_v8, %v3295_v39 }
0x1ab3   :  { %v3319_v60 = vpop.permute.xlu1 %3318 }
0x1ab4   :  { %v7745_v20 = vpack.c.bf16 %v9823_v17, %v9825_v35  ;;  %v9829_v7 = vmax.f32 %v3343_v49, 0.0  ;;  %v3344_v61 = vadd.f32 %v3319_v60, %v3296_v51  ;;  %7043 = vmatprep.mubr.msk.f32.mxu0 %vm11054_vm8, %v9825_v35  ;;  %vm11067_vm8 = vmmov %vm11026_vm0 }
0x1ab5   :  { %7044 = vmatmul.mubr.msk.f32.vlgmr.msra.gmra.mrb[32].mxu0 %vm11055_vm14, %v9823_v17  ;;  %vm11068_vm14 = vmmov %vm11026_vm0 }
0x1ab6   :  { %v9835_v1 = vmax.f32 %v3344_v61, 0.0  ;;  %7046 = vmatprep.mubr.msk.f32.mxu0 %vm11056_vm15, %v9829_v7  ;;  %7727 = vmatpush3.bf16.msk.msra.mxu0 %vm9506_vm5, %v10982_v41  ;;  %v3286_v33 = vpop.permute.xlu0 %3285  ;;  %vm11058_vm5 = vmmov %vm11026_vm0  ;;  %vm11069_vm15 = vcmask 523264  }
0x1ab7   :  { %7729 = vmatprep.subr.msk.bf16.mxu0 %vm9518_vm10, %v10982_v41  ;;  %v3299_v63 = vmul.f32 %v3286_v33, %v9750_v6  ;;  %v3592_v6 = vld [vmem:[%s10802_s1 + $0x168] sm:$0xff] }
0x1ab8   :  { %v7748_v11 = vpack.c.bf16 %v9835_v1, %v9829_v7  ;;  %6156 = vmatprep.mubr.msk.f32.mxu1 %vm11069_vm15, %v3592_v6 }
0x1ab9   :  { %7047 = vmatmul.mubr.msk.f32.gmra.mrb[34].mxu0 %vm11057_vm13, %v9835_v1  ;;  %vm11070_vm13 = vmmov %vm11069_vm15  ;;  %vm11082_vm15 = vnez %v10922_v57  ;;  %v4286_v57 = vld [vmem:[%s10802_s1 + $0x1a8] sm:$0xff] }
0x1aba   :  { %7731 = vmatpush3.bf16.msk.msra.mxu0 %vm9518_vm10, %v10982_v41  ;;  %vm11059_vm10 = vmmov %vm11026_vm0 }
0x1abb   :  { %v3329_v9 = vpop.permute.xlu1 %3328 }
0x1abc   :  { %v3346_v4 = vadd.f32 %v3329_v9, %v3298_v29 }
0x1abe   :  { %v3354_v47 = vmax.f32 %v3346_v4, 0.0 }
0x1abf   :  { %v3324_v32 = vpop.permute.xlu1 %3323 }
0x1ac0   :  { %v3345_v27 = vadd.f32 %v3324_v32, %v3297_v43 }
0x1ac2   :  { %v3353_v48 = vmax.f32 %v3345_v27, 0.0 }
0x1ac3   :  { %v3334_v26 = vpop.permute.xlu0 %3333 }
0x1ac4   :  { %v7751_v34 = vpack.c.bf16 %v3354_v47, %v3353_v48  ;;  %v3347_v30 = vadd.f32 %v3334_v26, %v3299_v63  ;;  %v3291_v58 = vpop.permute.xlu1 %3290  ;;  %7049 = vmatprep.mubr.msk.f32.mxu0 %vm11058_vm5, %v3353_v48  ;;  %vm11071_vm5 = vmmov %vm11070_vm13 }
0x1ac5   :  { %7050 = vmatmul.mubr.msk.f32.gmra.mrb[36].mxu0 %vm11059_vm10, %v3354_v47  ;;  %v3300_v23 = vmul.f32 %v3291_v58, %v9755_v46  ;;  %vm11072_vm10 = vnez %v10932_v14 }
0x1ac6   :  { %v3355_v45 = vmax.f32 %v3347_v30, 0.0  ;;  %v3597_v30 = vld [vmem:[%s10802_s1 + $0x190] sm:$0xff] }
0x1ac8   :  { %7052 = vmatprep.mubr.msk.f32.mxu0 %vm11060_vm6, %v3355_v45  ;;  %vm11073_vm6 = vmmov %vm11071_vm5 }
0x1ac9   :  { %v3339_v15 = vpop.permute.xlu1 %3338 }
0x1aca   :  { %v3348_v13 = vadd.f32 %v3339_v15, %v3300_v23 }
0x1acc   :  { %v3356_v12 = vmax.f32 %v3348_v13, 0.0 }
0x1ace   :  { %v7754_v44 = vpack.c.bf16 %v3356_v12, %v3355_v45  ;;  %7053 = vmatmul.mubr.msk.f32.gmra.mrb[38].mxu0 %vm11061_vm4, %v3356_v12  ;;  %vm11074_vm4 = vnez %v10936_v22 }
0x1acf   :  { %7063 = vmatprep.mubr.msk.f32.mxu0 %vm11026_vm0, %v9825_v35  ;;  %v3591_v35 = vld [vmem:[%s10802_s1 + $0x160] sm:$0xff] }
0x1ad2   :  { %7064 = vmatmul.mubr.msk.f32.vlgmr.msra.gmra.mrb[40].mxu0 %vm11062_vm9, %v9823_v17  ;;  %vm11075_vm9 = vmmov %vm11026_vm0 }
0x1ad3   :  { %7066 = vmatprep.mubr.msk.f32.mxu0 %vm11063_vm11, %v9829_v7  ;;  %v3593_v7 = vld [vmem:[%s10802_s1 + $0x170] sm:$0xff]  ;;  %vm11076_vm11 = vmmov %vm11026_vm0 }
0x1ad6   :  { %7067 = vmatmul.mubr.msk.f32.gmra.mrb[42].mxu0 %vm11064_vm3, %v9835_v1  ;;  %v3596_v1 = vld [vmem:[%s10802_s1 + $0x188] sm:$0xff]  ;;  %vm11077_vm3 = vmmov %vm11026_vm0 }
0x1ad7   :  { %7069 = vmatprep.mubr.msk.f32.mxu0 %vm11065_vm7, %v3353_v48  ;;  %vm11078_vm7 = vmmov %vm11026_vm0 }
0x1ada   :  { %7070 = vmatmul.mubr.msk.f32.gmra.mrb[44].mxu0 %vm11066_vm2, %v3354_v47  ;;  %vm11079_vm2 = vmmov %vm11026_vm0 }
0x1adb   :  { %7072 = vmatprep.mubr.msk.f32.mxu0 %vm11067_vm8, %v3355_v45  ;;  %vm11080_vm8 = vmmov %vm11026_vm0 }
0x1ade   :  { %7073 = vmatmul.mubr.msk.f32.gmra.mrb[46].mxu0 %vm11068_vm14, %v3356_v12  ;;  %vm11081_vm14 = vmmov %vm11026_vm0 }
0x1b88   :  { %v7045_v46 = vpop.f32.mrb[32].mxu0 }
0x1b89   :  { %v3447_v18 = vpop.f32.mrb[33].mxu0 }
0x1b8a   :  { %v7733_v31 = vpack.c.bf16 %v7045_v46, %v3447_v18 }
0x1b8c   :  { %v7048_v40 = vpop.f32.mrb[34].mxu0  ;;  %7734 = vmatpush1.bf16.msra.mxu1 %v7733_v31 }
0x1b8d   :  { %v3457_v50 = vpop.f32.mrb[35].mxu0  ;;  %7735 = vmatprep.subr.bf16.mxu1 %v11023_v38 }
0x1b8e   :  { %v7736_v39 = vpack.c.bf16 %v7048_v40, %v3457_v50 }
0x1b90   :  { %7737 = vmatpush1.bf16.msra.mxu1 %v7736_v39 }
0x1b91   :  { %7738 = vmatprep.subr.bf16.mxu1 %v11023_v38 }
0x1b98   :  { %v7051_v56 = vpop.f32.mrb[36].mxu0 }
0x1b99   :  { %v3467_v8 = vpop.f32.mrb[37].mxu0 }
0x1b9a   :  { %v7739_v51 = vpack.c.bf16 %v7051_v56, %v3467_v8 }
0x1b9c   :  { %7740 = vmatpush1.bf16.msra.mxu1 %v7739_v51 }
0x1b9d   :  { %7741 = vmatprep.subr.bf16.mxu1 %v11023_v38 }
0x1ba1   :  { %v7054_v49 = vpop.f32.mrb[38].mxu0 }
0x1ba2   :  { %v3477_v60 = vpop.f32.mrb[39].mxu0 }
0x1ba3   :  { %v7742_v61 = vpack.c.bf16 %v7054_v49, %v3477_v60 }
0x1ba5   :  { %v7065_v9 = vpop.f32.mrb[40].mxu0  ;;  %7743 = vmatpush1.bf16.msra.mxu1 %v7742_v61 }
0x1ba6   :  { %v3552_v29 = vpop.f32.mrb[41].mxu0  ;;  %7744 = vmatprep.subr.bf16.mxu1 %v11023_v38 }
0x1ba7   :  { %v7757_v43 = vpack.c.bf16 %v7065_v9, %v3552_v29 }
0x1ba9   :  { %v7068_v4 = vpop.f32.mrb[42].mxu0  ;;  %7746 = vmatpush1.bf16.msra.mxu1 %v7745_v20  ;;  %v3594_v20 = vld [vmem:[%s10802_s1 + $0x178] sm:$0xff] }
0x1baa   :  { %v3562_v33 = vpop.f32.mrb[43].mxu0  ;;  %7747 = vmatprep.subr.bf16.mxu1 %v11023_v38 }
0x1bab   :  { %v7760_v32 = vpack.c.bf16 %v7068_v4, %v3562_v33 }
0x1bad   :  { %v7071_v27 = vpop.f32.mrb[44].mxu0  ;;  %7749 = vmatpush1.bf16.msra.mxu1 %v7748_v11  ;;  %v3595_v11 = vld [vmem:[%s10802_s1 + $0x180] sm:$0xff] }
0x1bae   :  { %v3572_v63 = vpop.f32.mrb[45].mxu0  ;;  %7750 = vmatprep.subr.bf16.mxu1 %v11023_v38 }
0x1baf   :  { %v7763_v47 = vpack.c.bf16 %v7071_v27, %v3572_v63 }
0x1bb1   :  { %v7074_v48 = vpop.f32.mrb[46].mxu0  ;;  %7752 = vmatpush1.bf16.msra.mxu1 %v7751_v34  ;;  %v3598_v34 = vld [vmem:[%s10802_s1 + $0x198] sm:$0xff] }
0x1bb2   :  { %v3582_v26 = vpop.f32.mrb[47].mxu0  ;;  %7753 = vmatprep.subr.bf16.mxu1 %v11023_v38 }
0x1bb3   :  { %v7766_v17 = vpack.c.bf16 %v7074_v48, %v3582_v26 }
0x1bb5   :  { %7755 = vmatpush1.bf16.msra.mxu1 %v7754_v44 }
0x1bb6   :  { %7756 = vmatprep.subr.bf16.mxu1 %v11023_v38 }
0x1bb9   :  { %7758 = vmatpush1.bf16.msra.mxu1 %v7757_v43 }
0x1bba   :  { %7759 = vmatprep.subr.bf16.mxu1 %v11023_v38 }
0x1bbd   :  { %7761 = vmatpush1.bf16.msra.mxu1 %v7760_v32 }
0x1bbe   :  { %7762 = vmatprep.subr.bf16.mxu1 %v11023_v38 }
0x1bc1   :  { %7764 = vmatpush1.bf16.msra.mxu1 %v7763_v47 }
0x1bc2   :  { %7765 = vmatprep.subr.bf16.mxu1 %v11023_v38 }
0x1bc5   :  { %7767 = vmatpush1.bf16.msra.mxu1 %v7766_v17 }
0x1bc6   :  { %7809 = vmatprep.subr.msk.bf16.mxu1 %vm10966_vm12, %v10982_v41 }
0x1bc8   :  { %3676 = vmatmul.mubr.f32.vlgmr.msra.gmra.mrb[36].mxu1 %v3591_v35 }
0x1bc9   :  { %6157 = vmatprep.mubr.msk.f32.mxu1 %vm11070_vm13, %v3594_v20  ;;  %7811 = vmatpush3.bf16.msk.msra.mxu1 %vm10966_vm12, %v10982_v41  ;;  %vm11083_vm13 = vmmov %vm11026_vm0 }
0x1bca   :  { %7813 = vmatprep.subr.msk.bf16.mxu1 %vm10985_vm1, %v10982_v41 }
0x1bcc   :  { %3681 = vmatmul.mubr.f32.gmra.mrb[38].mxu1 %v3593_v7 }
0x1bcd   :  { %6158 = vmatprep.mubr.msk.f32.mxu1 %vm11071_vm5, %v3596_v1  ;;  %7815 = vmatpush3.bf16.msk.msra.mxu1 %vm10985_vm1, %v10982_v41  ;;  %vm11084_vm5 = vmmov %vm11026_vm0 }
0x1bce   :  { %7817 = vmatprep.subr.msk.bf16.mxu1 %vm11072_vm10, %v10982_v41 }
0x1bd0   :  { %3686 = vmatmul.mubr.f32.gmra.mrb[40].mxu1 %v3595_v11 }
0x1bd1   :  { %6159 = vmatprep.mubr.msk.f32.mxu1 %vm11073_vm6, %v3598_v34  ;;  %7819 = vmatpush3.bf16.msk.msra.mxu1 %vm11072_vm10, %v10982_v41  ;;  %vm11085_vm6 = vnez %v10926_v0  ;;  %vm11106_vm10 = vnez %v10944_v42 }
0x1bd2   :  { %7821 = vmatprep.subr.msk.bf16.mxu1 %vm11074_vm4, %v10982_v41 }
0x1bd4   :  { %3691 = vmatmul.mubr.f32.gmra.mrb[42].mxu1 %v3597_v30 }
0x1bd5   :  { %7823 = vmatpush3.bf16.msk.msra.mxu1 %vm11074_vm4, %v10982_v41 }
0x1bd6   :  { %7840 = vmatprep.subr.bf16.mxu1 %v11023_v38 }
0x1c9b   :  { %v9942_v58 = vpop.f32.mrb[36].mxu1 }
0x1c9c   :  { %v3679_v45 = vpop.f32.mrb[37].mxu1  ;;  %v3700_v23 = vsel %vm11026_vm0, %v9942_v58, 0.0  ;;  %v3712_v13 = vmul.f32 %v9942_v58, %v9942_v58 }
0x1c9d   :  { %3701 = vadd.xlane.f32.xlu1 %v3700_v23 }
0x1c9e   :  { %v3716_v31 = vsel %vm11077_vm3, %v3712_v13, 0.0  ;;  %vm11088_vm3 = vnez %v10934_v19 }
0x1c9f   :  { %v9946_v15 = vpop.f32.mrb[38].mxu1 }
0x1ca0   :  { %v3713_v12 = vmul.f32 %v9946_v15, %v9946_v15  ;;  %v3684_v44 = vpop.f32.mrb[39].mxu1  ;;  %v3703_v6 = vsel %vm11075_vm9, %v9946_v15, 0.0  ;;  %vm11086_vm9 = vnez %v10930_v5 }
0x1ca1   :  { %3704 = vadd.xlane.f32.xlu0 %v3703_v6 }
0x1ca2   :  { %v3719_v46 = vsel %vm11076_vm11, %v3713_v12, 0.0  ;;  %vm11087_vm11 = vmmov %vm11026_vm0 }
0x1ca3   :  { %3720 = vadd.xlane.f32.xlu1 %v3719_v46  ;;  %v9955_v18 = vpop.f32.mrb[40].mxu1 }
0x1ca4   :  { %v3689_v40 = vpop.f32.mrb[41].mxu1  ;;  %v3714_v50 = vmul.f32 %v9955_v18, %v9955_v18  ;;  %v3706_v39 = vsel %vm11078_vm7, %v9955_v18, 0.0  ;;  %vm11089_vm7 = vnez %v10938_v24 }
0x1ca5   :  { %3717 = vadd.xlane.f32.xlu0 %v3716_v31 }
0x1ca6   :  { %v3722_v60 = vsel %vm11080_vm8, %v3714_v50, 0.0  ;;  %v3697_v50 = vld [vmem:[%s10803_s2 + $0xf8] sm:$0xff] }
0x1ca7   :  { %v9962_v56 = vpop.f32.mrb[42].mxu1 }
0x1ca8   :  { %v3715_v8 = vmul.f32 %v9962_v56, %v9962_v56  ;;  %v3709_v51 = vsel %vm11079_vm2, %v9962_v56, 0.0  ;;  %v3694_v49 = vpop.f32.mrb[43].mxu1  ;;  %vm11090_vm2 = vcmask 523264  }
0x1ca9   :  { %3707 = vadd.xlane.f32.xlu0 %v3706_v39  ;;  %3710 = vadd.xlane.f32.xlu1 %v3709_v51  ;;  %vm11091_vm8 = vmmov %vm11090_vm2 }
0x1caa   :  { %v3725_v61 = vsel %vm11081_vm14, %v3715_v8, 0.0  ;;  %v3696_v8 = vld [vmem:[%s10803_s2 + $0xf0] sm:$0xff]  ;;  %vm11092_vm14 = vmmov %vm11090_vm2 }
0x1cab   :  { %vm11100_vm4 = vmmov %vm11090_vm2 }
0x1cac   :  { %vm11108_vm1 = vmmov %vm11090_vm2 }
0x1cad   :  { %3723 = vadd.xlane.f32.xlu0 %v3722_v60  ;;  %3726 = vadd.xlane.f32.xlu1 %v3725_v61 }
0x1d2a   :  { %v3702_v9 = vpop.xlane.xlu1 %3701 }
0x1d2b   :  { %v3728_v43 = vmul.f32 0.03125, %v3702_v9 }
0x1d2d   :  { %v3736_v47 = vmul.f32 %v3728_v43, %v3728_v43 }
0x1d2e   :  { %v3705_v29 = vpop.xlane.xlu0 %3704 }
0x1d2f   :  { %v3729_v4 = vmul.f32 0.03125, %v3705_v29  ;;  %v3698_v29 = vld [vmem:[%s10803_s2 + $0x100] sm:$0xff] }
0x1d30   :  { %v3721_v33 = vpop.xlane.xlu1 %3720 }
0x1d31   :  { %v3737_v32 = vmul.f32 %v3729_v4, %v3729_v4  ;;  %v3733_v27 = vmul.f32 0.03125, %v3721_v33  ;;  %v3699_v33 = vld [vmem:[%s10803_s2 + $0x108] sm:$0xff] }
0x1d32   :  { %v3718_v63 = vpop.xlane.xlu0 %3717 }
0x1d33   :  { %v3741_v48 = vsub.f32 %v3733_v27, %v3737_v32  ;;  %v3732_v26 = vmul.f32 0.03125, %v3718_v63 }
0x1d35   :  { %v3745_v17 = vadd.f32 1e-05, %v3741_v48  ;;  %v3740_v35 = vsub.f32 %v3732_v26, %v3736_v47  ;;  %v3833_v26 = vld [vmem:[%s10804_s3 + $0x390] sm:$0xff] }
0x1d36   :  { %v3708_v20 = vpop.xlane.xlu0 %3707  ;;  %v3711_v7 = vpop.xlane.xlu1 %3710 }
0x1d37   :  { %8224 = vrsqrt.f32 %v3745_v17  ;;  %v3744_v1 = vadd.f32 1e-05, %v3740_v35  ;;  %v3730_v11 = vmul.f32 0.03125, %v3708_v20  ;;  %v3731_v34 = vmul.f32 0.03125, %v3711_v7  ;;  %v3834_v17 = vld [vmem:[%s10804_s3 + $0x3a0] sm:$0xff]  ;;  %v3835_v20 = vld [vmem:[%s10804_s3 + $0x3b0] sm:$0xff] }
0x1d38   :  { %v7772_v7 = vpack.c.bf16 %v3835_v20, %v3834_v17 }
0x1d39   :  { %8226 = vrsqrt.f32 %v3744_v1  ;;  %v3738_v30 = vmul.f32 %v3730_v11, %v3730_v11  ;;  %v3739_v45 = vmul.f32 %v3731_v34, %v3731_v34 }
0x1d3a   :  { %v3724_v23 = vpop.xlane.xlu0 %3723  ;;  %v3727_v13 = vpop.xlane.xlu1 %3726 }
0x1d3b   :  { %v3734_v12 = vmul.f32 0.03125, %v3724_v23  ;;  %v3735_v44 = vmul.f32 0.03125, %v3727_v13 }
0x1d3d   :  { %v3742_v6 = vsub.f32 %v3734_v12, %v3738_v30  ;;  %v3743_v46 = vsub.f32 %v3735_v44, %v3739_v45 }
0x1d3f   :  { %v3746_v31 = vadd.f32 1e-05, %v3742_v6  ;;  %v3747_v40 = vadd.f32 1e-05, %v3743_v46 }
0x1d41   :  { %v8225_v39 = vpop.eup %8224  ;;  %8228 = vrsqrt.f32 %v3746_v31 }
0x1d42   :  { %8230 = vrsqrt.f32 %v3747_v40  ;;  %v3753_v51 = vmul.f32 %v8225_v39, %v3697_v50 }
0x1d43   :  { %v8227_v49 = vpop.eup %8226 }
0x1d44   :  { %v3757_v60 = vmul.f32 %v3753_v51, %v3729_v4  ;;  %v3752_v61 = vmul.f32 %v8227_v49, %v3696_v8 }
0x1d46   :  { %3766 = vrot.lane.b32.xlu1 %v3757_v60, %s8258_s22  ;;  %v3756_v9 = vmul.f32 %v3752_v61, %v3728_v43  ;;  %v3832_v43 = vld [vmem:[%s10804_s3 + $0x380] sm:$0xff] }
0x1d47   :  { %v7768_v35 = vpack.c.bf16 %v3833_v26, %v3832_v43 }
0x1d48   :  { %3764 = vrot.lane.b32.xlu0 %v3756_v9, %s8258_s22 }
0x1d49   :  { %7769 = vmatprep.subr.bf16.mxu0 %v7768_v35 }
0x1d4a   :  { %7771 = vmatpush3.bf16.msra.mxu0 %v7768_v35 }
0x1d4b   :  { %v8229_v32 = vpop.eup %8228  ;;  %7773 = vmatprep.subr.bf16.mxu0 %v7772_v7 }
0x1d4c   :  { %v8231_v27 = vpop.eup %8230  ;;  %v3754_v63 = vmul.f32 %v8229_v32, %v3698_v29 }
0x1d4d   :  { %v3755_v47 = vmul.f32 %v8231_v27, %v3699_v33 }
0x1d4e   :  { %v3758_v48 = vmul.f32 %v3754_v63, %v3730_v11  ;;  %7775 = vmatpush3.bf16.msra.mxu0 %v7772_v7 }
0x1d4f   :  { %v3759_v4 = vmul.f32 %v3755_v47, %v3731_v34  ;;  %7777 = vmatprep.subr.msk.bf16.mxu0 %vm11082_vm15, %v10982_v41 }
0x1d50   :  { %3768 = vrot.lane.b32.xlu1 %v3758_v48, %s8258_s22 }
0x1d51   :  { %3770 = vrot.lane.b32.xlu0 %v3759_v4, %s8258_s22 }
0x1d54   :  { %3782 = vperm.xlu1 %8142, %v3752_v61  }
0x1d55   :  { %3787 = vperm.xlu0 %8143, %v3753_v51  }
0x1d58   :  { %8144 = vset.pattern.permute.xlu1 %v10977_v16 }
0x1d59   :  { %3792 = vperm.xlu0 %8143, %v3754_v63  }
0x1d5d   :  { %8146 = vset.pattern.permute.xlu0 %v10977_v16 }
0x1db8   :  { %v3767_v34 = vpop.permute.xlu1 %3766 }
0x1db9   :  { %v3777_v30 = vsub.f32 %v3697_v50, %v3767_v34 }
0x1dba   :  { %v3765_v1 = vpop.permute.xlu0 %3764 }
0x1dbb   :  { %v3776_v11 = vsub.f32 %v3696_v8, %v3765_v1 }
0x1dbd   :  { %3806 = vperm.xlu1 %8144, %v3776_v11  }
0x1dc1   :  { %3811 = vperm.xlu1 %8144, %v3777_v30  }
0x1dc2   :  { %v3769_v45 = vpop.permute.xlu1 %3768 }
0x1dc3   :  { %v3778_v23 = vsub.f32 %v3698_v29, %v3769_v45  ;;  %v3771_v13 = vpop.permute.xlu0 %3770 }
0x1dc4   :  { %v3779_v12 = vsub.f32 %v3699_v33, %v3771_v13 }
0x1dc5   :  { %8145 = vset.pattern.permute.xlu1 %v10978_v10  ;;  %3816 = vperm.xlu0 %8146, %v3778_v23  }
0x1dc6   :  { %3797 = vperm.xlu1 %8145, %v3755_v47  }
0x1dc9   :  { %8149 = vset.pattern.permute.xlu0 %v10978_v10 }
0x1dca   :  { %8147 = vset.pattern.permute.xlu1 %v10977_v16 }
0x1dcb   :  { %3821 = vperm.xlu1 %8147, %v3779_v12  }
0x1dcf   :  { %8148 = vset.pattern.permute.xlu1 %v10978_v10 }
0x1dd3   :  { %v3783_v44 = vpop.permute.xlu1 %3782 }
0x1dd4   :  { %v3788_v6 = vpop.permute.xlu0 %3787  ;;  %v3800_v46 = vmul.f32 %v3783_v44, %v9942_v58 }
0x1dd5   :  { %v3801_v50 = vmul.f32 %v3788_v6, %v9946_v15 }
0x1dd8   :  { %v3793_v8 = vpop.permute.xlu0 %3792 }
0x1dd9   :  { %v3802_v60 = vmul.f32 %v3793_v8, %v9955_v18 }
0x1e3c   :  { %v3807_v31 = vpop.permute.xlu1 %3806 }
0x1e3d   :  { %v3824_v40 = vadd.f32 %v3807_v31, %v3800_v46 }
0x1e3f   :  { %v3828_v39 = vmax.f32 %v3824_v40, 0.0 }
0x1e40   :  { %v3812_v51 = vpop.permute.xlu1 %3811 }
0x1e41   :  { %v3825_v49 = vadd.f32 %v3812_v51, %v3801_v50  ;;  %7083 = vmatprep.mubr.msk.f32.mxu0 %vm11083_vm13, %v3828_v39  ;;  %vm11093_vm13 = vmmov %vm11090_vm2  ;;  %v4285_v51 = vld [vmem:[%s10802_s1 + $0x1a0] sm:$0xff] }
0x1e43   :  { %v3829_v61 = vmax.f32 %v3825_v49, 0.0  ;;  %v4288_v49 = vld [vmem:[%s10802_s1 + $0x1b8] sm:$0xff] }
0x1e44   :  { %v3817_v9 = vpop.permute.xlu0 %3816 }
0x1e45   :  { %v3826_v29 = vadd.f32 %v3817_v9, %v3802_v60  ;;  %7084 = vmatmul.mubr.msk.f32.vlgmr.msra.gmra.mrb[48].mxu0 %vm11084_vm5, %v3829_v61  ;;  %v3798_v33 = vpop.permute.xlu1 %3797  ;;  %vm11094_vm5 = vnez %v10948_v52  ;;  %v4287_v60 = vld [vmem:[%s10802_s1 + $0x1b0] sm:$0xff]  ;;  %v4290_v61 = vld [vmem:[%s10802_s1 + $0x1c8] sm:$0xff]  ;;  %v4289_v9 = vld [vmem:[%s10802_s1 + $0x1c0] sm:$0xff] }
0x1e46   :  { %7779 = vmatpush3.bf16.msk.msra.mxu0 %vm11082_vm15, %v10982_v41  ;;  %v3803_v15 = vmul.f32 %v3798_v33, %v9962_v56 }
0x1e47   :  { %v3830_v58 = vmax.f32 %v3826_v29, 0.0  ;;  %7781 = vmatprep.subr.msk.bf16.mxu0 %vm11085_vm6, %v10982_v41  ;;  %v4291_v29 = vld [vmem:[%s10802_s1 + $0x1d0] sm:$0xff] }
0x1e49   :  { %7086 = vmatprep.mubr.msk.f32.mxu0 %vm11026_vm0, %v3830_v58  ;;  %vm11095_vm0 = vnez %v10940_v25 }
0x1e4a   :  { %v3822_v18 = vpop.permute.xlu1 %3821  ;;  %7783 = vmatpush3.bf16.msk.msra.mxu0 %vm11085_vm6, %v10982_v41 }
0x1e4b   :  { %v3827_v32 = vadd.f32 %v3822_v18, %v3803_v15  ;;  %7785 = vmatprep.subr.msk.bf16.mxu0 %vm11086_vm9, %v10982_v41 }
0x1e4d   :  { %v3831_v27 = vmax.f32 %v3827_v32, 0.0 }
0x1e4e   :  { %7787 = vmatpush3.bf16.msk.msra.mxu0 %vm11086_vm9, %v10982_v41 }
0x1e4f   :  { %7087 = vmatmul.mubr.msk.f32.gmra.mrb[50].mxu0 %vm11087_vm11, %v3831_v27  ;;  %7789 = vmatprep.subr.msk.bf16.mxu0 %vm11088_vm3, %v10982_v41  ;;  %vm11096_vm11 = vmmov %vm11090_vm2 }
0x1e52   :  { %7791 = vmatpush3.bf16.msk.msra.mxu0 %vm11088_vm3, %v10982_v41 }
0x1e53   :  { %7793 = vmatprep.subr.msk.bf16.mxu0 %vm11089_vm7, %v10982_v41 }
0x1f18   :  { %v10039_v56 = vpop.f32.mrb[48].mxu0 }
0x1f19   :  { %v10041_v63 = vpop.f32.mrb[49].mxu0 }
0x1f1a   :  { %7105 = vmatprep.mubr.msk.f32.mxu0 %vm11090_vm2, %v10041_v63  ;;  %7149 = vmatprep.mubr.msk.f32.mxu1 %vm11091_vm8, %v10041_v63  ;;  %v7853_v47 = vpack.c.bf16 %v10039_v56, %v10041_v63  ;;  %vm11097_vm8 = vmmov %vm11090_vm2 }
0x1f1b   :  { %7106 = vmatmul.mubr.msk.f32.vlgmr.msra.gmra.mrb[52].mxu0 %vm11092_vm14, %v10039_v56  ;;  %7150 = vmatmul.mubr.msk.f32.vlgmr.msra.gmra.mrb[44].mxu1 %vm11093_vm13, %v10039_v56  ;;  %vm11098_vm14 = vmmov %vm11090_vm2  ;;  %vm11099_vm13 = vnez %v10942_v28 }
0x1f1c   :  { %7795 = vmatpush3.bf16.msk.msra.mxu0 %vm11089_vm7, %v10982_v41 }
0x1f1d   :  { %7797 = vmatprep.subr.msk.bf16.mxu0 %vm11094_vm5, %v10982_v41 }
0x1f20   :  { %7799 = vmatpush3.bf16.msk.msra.mxu0 %vm11094_vm5, %v10982_v41 }
0x1f21   :  { %7801 = vmatprep.subr.msk.bf16.mxu0 %vm11095_vm0, %v10982_v41 }
0x1f22   :  { %v10065_v48 = vpop.f32.mrb[50].mxu0 }
0x1f23   :  { %v10067_v4 = vpop.f32.mrb[51].mxu0 }
0x1f24   :  { %7803 = vmatpush3.bf16.msk.msra.mxu0 %vm11095_vm0, %v10982_v41  ;;  %7108 = vmatprep.mubr.msk.f32.mxu0 %vm11096_vm11, %v10067_v4  ;;  %v7856_v43 = vpack.c.bf16 %v10065_v48, %v10067_v4  ;;  %vm11101_vm11 = vnez %v10953_v3  ;;  %v4292_v3 = vld [vmem:[%s10802_s1 + $0x1d8] sm:$0xff] }
0x1f25   :  { %7152 = vmatprep.mubr.msk.f32.mxu1 %vm11090_vm2, %v10067_v4  ;;  %7109 = vmatmul.mubr.msk.f32.gmra.mrb[54].mxu0 %vm11097_vm8, %v10065_v48  ;;  %vm11102_vm8 = vmmov %vm11090_vm2 }
0x1f26   :  { %7153 = vmatmul.mubr.msk.f32.gmra.mrb[46].mxu1 %vm11098_vm14, %v10065_v48  ;;  %7805 = vmatprep.subr.msk.bf16.mxu0 %vm11099_vm13, %v10982_v41  ;;  %vm11104_vm14 = vmmov %vm11090_vm2 }
0x1f27   :  { %7127 = vmatprep.mubr.msk.f32.mxu0 %vm11100_vm4, %v10041_v63  ;;  %vm11103_vm4 = vnez %v10955_v54 }
0x1f28   :  { %7807 = vmatpush3.bf16.msk.msra.mxu0 %vm11099_vm13, %v10982_v41 }
0x1f29   :  { %7825 = vmatprep.subr.msk.bf16.mxu0 %vm11101_vm11, %v10982_v41 }
0x1f2b   :  { %7128 = vmatmul.mubr.msk.f32.vlgmr.msra.gmra.mrb[56].mxu0 %vm11090_vm2, %v10039_v56 }
0x1f2c   :  { %7130 = vmatprep.mubr.msk.f32.mxu0 %vm11102_vm8, %v10067_v4  ;;  %7827 = vmatpush3.bf16.msk.msra.mxu0 %vm11101_vm11, %v10982_v41  ;;  %vm11105_vm8 = vnez %v10962_v53 }
0x1f2d   :  { %7829 = vmatprep.subr.msk.bf16.mxu0 %vm11103_vm4, %v10982_v41 }
0x1f2f   :  { %7131 = vmatmul.mubr.msk.f32.gmra.mrb[58].mxu0 %vm11104_vm14, %v10065_v48  ;;  %vm11107_vm14 = vmmov %vm11090_vm2 }
0x1f30   :  { %7831 = vmatpush3.bf16.msk.msra.mxu0 %vm11103_vm4, %v10982_v41  ;;  %7171 = vmatprep.mubr.msk.f32.mxu0 %vm11090_vm2, %v10041_v63 }
0x1f31   :  { %7833 = vmatprep.subr.msk.bf16.mxu0 %vm11105_vm8, %v10982_v41 }
0x1f34   :  { %7835 = vmatpush3.bf16.msk.msra.mxu0 %vm11105_vm8, %v10982_v41 }
0x1f35   :  { %7837 = vmatprep.subr.msk.bf16.mxu0 %vm11106_vm10, %v10982_v41 }
0x1f38   :  { %7839 = vmatpush3.bf16.msk.msra.mxu0 %vm11106_vm10, %v10982_v41 }
0x1f39   :  { %7871 = vmatprep.subr.msk.bf16.mxu0 %vm11082_vm15, %v10982_v41 }
0x1f3b   :  { %7172 = vmatmul.mubr.msk.f32.vlgmr.msra.gmra.mrb[60].mxu0 %vm11107_vm14, %v10039_v56  ;;  %vm11118_vm14 = vmmov %vm11090_vm2 }
0x1f3c   :  { %7174 = vmatprep.mubr.msk.f32.mxu0 %vm11090_vm2, %v10067_v4  ;;  %7873 = vmatpush3.bf16.msk.msra.mxu0 %vm11082_vm15, %v10982_v41 }
0x1f3d   :  { %7875 = vmatprep.subr.msk.bf16.mxu0 %vm11085_vm6, %v10982_v41 }
0x1f3f   :  { %7175 = vmatmul.mubr.msk.f32.gmra.mrb[62].mxu0 %vm11108_vm1, %v10065_v48  ;;  %vm11109_vm1 = vcmask 261120  }
0x1f40   :  { %7877 = vmatpush3.bf16.msk.msra.mxu0 %vm11085_vm6, %v10982_v41  ;;  %6212 = vmatprep.mubr.msk.f32.mxu1 %vm11109_vm1, %v4286_v57  ;;  %vm11110_vm15 = vmmov %vm11109_vm1 }
0x1f41   :  { %7879 = vmatprep.subr.msk.bf16.mxu0 %vm11086_vm9, %v10982_v41  ;;  %vm11111_vm6 = vmmov %vm11109_vm1 }
0x1f44   :  { %7881 = vmatpush3.bf16.msk.msra.mxu0 %vm11086_vm9, %v10982_v41  ;;  %vm11112_vm9 = vmmov %vm11109_vm1 }
0x1f45   :  { %7883 = vmatprep.subr.msk.bf16.mxu0 %vm11088_vm3, %v10982_v41  ;;  %vm11119_vm1 = vmmov %vm11090_vm2 }
0x1f48   :  { %7885 = vmatpush3.bf16.msk.msra.mxu0 %vm11088_vm3, %v10982_v41  ;;  %vm11113_vm3 = vmmov %vm11090_vm2 }
0x1f49   :  { %7887 = vmatprep.subr.msk.bf16.mxu0 %vm11089_vm7, %v10982_v41 }
0x1fee   :  { %v7107_v0 = vpop.f32.mrb[52].mxu0  ;;  %v7151_v5 = vpop.f32.mrb[44].mxu1 }
0x1fef   :  { %v4011_v26 = vpop.f32.mrb[53].mxu0  ;;  %v4181_v17 = vpop.f32.mrb[45].mxu1 }
0x1ff0   :  { %v7841_v35 = vpack.c.bf16 %v7107_v0, %v4011_v26  ;;  %v7859_v20 = vpack.c.bf16 %v7151_v5, %v4181_v17 }
0x1ff2   :  { %7842 = vmatpush1.bf16.msra.mxu1 %v7841_v35 }
0x1ff3   :  { %7843 = vmatprep.subr.bf16.mxu1 %v11023_v38 }
0x1ff8   :  { %v7110_v19 = vpop.f32.mrb[54].mxu0 }
0x1ff9   :  { %v7154_v7 = vpop.f32.mrb[46].mxu1  ;;  %v4021_v1 = vpop.f32.mrb[55].mxu0 }
0x1ffa   :  { %v7844_v11 = vpack.c.bf16 %v7110_v19, %v4021_v1  ;;  %v4191_v34 = vpop.f32.mrb[47].mxu1 }
0x1ffb   :  { %v7862_v30 = vpack.c.bf16 %v7154_v7, %v4191_v34 }
0x1ffc   :  { %7845 = vmatpush1.bf16.msra.mxu1 %v7844_v11 }
0x1ffd   :  { %7846 = vmatprep.subr.bf16.mxu1 %v11023_v38 }
0x1ffe   :  { %v7129_v45 = vpop.f32.mrb[56].mxu0 }
0x1fff   :  { %v4096_v23 = vpop.f32.mrb[57].mxu0 }
0x2000   :  { %v7847_v13 = vpack.c.bf16 %v7129_v45, %v4096_v23 }
0x2002   :  { %v7132_v12 = vpop.f32.mrb[58].mxu0  ;;  %7848 = vmatpush1.bf16.msra.mxu1 %v7847_v13 }
0x2003   :  { %v4106_v44 = vpop.f32.mrb[59].mxu0  ;;  %7849 = vmatprep.subr.bf16.mxu1 %v11023_v38 }
0x2004   :  { %v7850_v6 = vpack.c.bf16 %v7132_v12, %v4106_v44 }
0x2006   :  { %7851 = vmatpush1.bf16.msra.mxu1 %v7850_v6 }
0x2007   :  { %7852 = vmatprep.subr.bf16.mxu1 %v11023_v38 }
0x200a   :  { %7854 = vmatpush1.bf16.msra.mxu1 %v7853_v47 }
0x200b   :  { %7855 = vmatprep.subr.bf16.mxu1 %v11023_v38 }
0x200e   :  { %v7173_v46 = vpop.f32.mrb[60].mxu0  ;;  %7857 = vmatpush1.bf16.msra.mxu1 %v7856_v43 }
0x200f   :  { %v4266_v31 = vpop.f32.mrb[61].mxu0  ;;  %7858 = vmatprep.subr.bf16.mxu1 %v11023_v38 }
0x2010   :  { %v7865_v40 = vpack.c.bf16 %v7173_v46, %v4266_v31 }
0x2012   :  { %v7176_v50 = vpop.f32.mrb[62].mxu0  ;;  %7860 = vmatpush1.bf16.msra.mxu1 %v7859_v20 }
0x2013   :  { %v4276_v39 = vpop.f32.mrb[63].mxu0  ;;  %7861 = vmatprep.subr.bf16.mxu1 %v11023_v38 }
0x2014   :  { %v7868_v8 = vpack.c.bf16 %v7176_v50, %v4276_v39 }
0x2016   :  { %7863 = vmatpush1.bf16.msra.mxu1 %v7862_v30 }
0x2017   :  { %7864 = vmatprep.subr.bf16.mxu1 %v11023_v38 }
0x201a   :  { %7866 = vmatpush1.bf16.msra.mxu1 %v7865_v40 }
0x201b   :  { %7867 = vmatprep.subr.bf16.mxu1 %v11023_v38 }
0x201e   :  { %7869 = vmatpush1.bf16.msra.mxu1 %v7868_v8 }
0x201f   :  { %7919 = vmatprep.subr.msk.bf16.mxu1 %vm11101_vm11, %v10982_v41 }
0x2021   :  { %4370 = vmatmul.mubr.f32.vlgmr.msra.gmra.mrb[48].mxu1 %v4285_v51 }
0x2022   :  { %6213 = vmatprep.mubr.msk.f32.mxu1 %vm11110_vm15, %v4288_v49  ;;  %7921 = vmatpush3.bf16.msk.msra.mxu1 %vm11101_vm11, %v10982_v41  ;;  %vm11114_vm11 = vmmov %vm11090_vm2 }
0x2023   :  { %7923 = vmatprep.subr.msk.bf16.mxu1 %vm11103_vm4, %v10982_v41  ;;  %vm11120_vm15 = vmmov %vm11119_vm1 }
0x2025   :  { %4375 = vmatmul.mubr.f32.gmra.mrb[50].mxu1 %v4287_v60 }
0x2026   :  { %6214 = vmatprep.mubr.msk.f32.mxu1 %vm11111_vm6, %v4290_v61  ;;  %7925 = vmatpush3.bf16.msk.msra.mxu1 %vm11103_vm4, %v10982_v41  ;;  %vm11116_vm4 = vmmov %vm11090_vm2 }
0x2027   :  { %7927 = vmatprep.subr.msk.bf16.mxu1 %vm11105_vm8, %v10982_v41  ;;  %vm11121_vm6 = vmmov %vm11119_vm1 }
0x2029   :  { %4380 = vmatmul.mubr.f32.gmra.mrb[52].mxu1 %v4289_v9 }
0x202a   :  { %6215 = vmatprep.mubr.msk.f32.mxu1 %vm11112_vm9, %v4292_v3  ;;  %7929 = vmatpush3.bf16.msk.msra.mxu1 %vm11105_vm8, %v10982_v41  ;;  %vm11117_vm8 = vmmov %vm11090_vm2 }
0x202b   :  { %7931 = vmatprep.subr.msk.bf16.mxu1 %vm11106_vm10, %v10982_v41  ;;  %vm11122_vm9 = vmmov %vm11119_vm1 }
0x202d   :  { %4385 = vmatmul.mubr.f32.gmra.mrb[54].mxu1 %v4291_v29 }
0x202e   :  { %7933 = vmatpush3.bf16.msk.msra.mxu1 %vm11106_vm10, %v10982_v41  ;;  %vm11115_vm10 = vmmov %vm11090_vm2 }
0x20f4   :  { %v4371_v54 = vpop.f32.mrb[48].mxu1 }
0x20f5   :  { %v10220_v33 = vadd.f32 %v4371_v54, %v9199_v37  ;;  %v4373_v58 = vpop.f32.mrb[49].mxu1 }
0x20f6   :  { %v4391_v58 = vld [vmem:[%s10803_s2 + $0x118] sm:$0xff] }
0x20f7   :  { %v4394_v15 = vsel %vm11113_vm3, %v10220_v33, 0.0  ;;  %v4406_v37 = vmul.f32 %v10220_v33, %v10220_v33  ;;  %vm11123_vm3 = vmmov %vm11119_vm1 }
0x20f8   :  { %v4376_v18 = vpop.f32.mrb[50].mxu1  ;;  %4395 = vadd.xlane.f32.xlu1 %v4394_v15 }
0x20f9   :  { %v10225_v53 = vadd.f32 %v9197_v36, %v4376_v18  ;;  %v4378_v32 = vpop.f32.mrb[51].mxu1  ;;  %v4410_v36 = vsel %vm11116_vm4, %v4406_v37, 0.0  ;;  %v4390_v18 = vld [vmem:[%s10803_s2 + $0x110] sm:$0xff]  ;;  %vm11127_vm4 = vmmov %vm11119_vm1 }
0x20fb   :  { %v4397_v27 = vsel %vm11114_vm11, %v10225_v53, 0.0  ;;  %v4407_v42 = vmul.f32 %v10225_v53, %v10225_v53  ;;  %vm11124_vm11 = vmmov %vm11119_vm1 }
0x20fc   :  { %v4381_v56 = vpop.f32.mrb[52].mxu1  ;;  %4398 = vadd.xlane.f32.xlu0 %v4397_v27 }
0x20fd   :  { %v10234_v63 = vadd.f32 %v4381_v56, %v9212_v55  ;;  %v4413_v47 = vsel %vm11115_vm10, %v4407_v42, 0.0  ;;  %v4383_v48 = vpop.f32.mrb[53].mxu1  ;;  %vm11125_vm10 = vmmov %vm11119_vm1 }
0x20fe   :  { %4414 = vadd.xlane.f32.xlu1 %v4413_v47  ;;  %v4392_v47 = vld [vmem:[%s10803_s2 + $0x120] sm:$0xff]  ;;  %v4393_v48 = vld [vmem:[%s10803_s2 + $0x128] sm:$0xff] }
0x20ff   :  { %v4400_v0 = vsel %vm11117_vm8, %v10234_v63, 0.0  ;;  %v4408_v55 = vmul.f32 %v10234_v63, %v10234_v63 }
0x2100   :  { %v4386_v4 = vpop.f32.mrb[54].mxu1  ;;  %4411 = vadd.xlane.f32.xlu0 %v4410_v36 }
0x2101   :  { %v10239_v43 = vadd.f32 %v9210_v62, %v4386_v4  ;;  %v4388_v57 = vpop.f32.mrb[55].mxu1  ;;  %v4416_v17 = vsel %vm11090_vm2, %v4408_v55, 0.0 }
0x2103   :  { %v4403_v5 = vsel %vm11118_vm14, %v10239_v43, 0.0  ;;  %v4409_v26 = vmul.f32 %v10239_v43, %v10239_v43  ;;  %vm11131_vm14 = vnez %v10928_v2 }
0x2104   :  { %4401 = vadd.xlane.f32.xlu0 %v4400_v0  ;;  %4404 = vadd.xlane.f32.xlu1 %v4403_v5 }
0x2105   :  { %v4419_v62 = vsel %vm11119_vm1, %v4409_v26, 0.0 }
0x2108   :  { %4417 = vadd.xlane.f32.xlu0 %v4416_v17  ;;  %4420 = vadd.xlane.f32.xlu1 %v4419_v62 }
0x2185   :  { %v4396_v35 = vpop.xlane.xlu1 %4395 }
0x2186   :  { %v4422_v19 = vmul.f32 0.015625, %v4396_v35 }
0x2188   :  { %v4430_v45 = vmul.f32 %v4422_v19, %v4422_v19 }
0x2189   :  { %v4399_v20 = vpop.xlane.xlu0 %4398 }
0x218a   :  { %v4423_v7 = vmul.f32 0.015625, %v4399_v20 }
0x218b   :  { %v4415_v1 = vpop.xlane.xlu1 %4414 }
0x218c   :  { %v4431_v11 = vmul.f32 %v4423_v7, %v4423_v7  ;;  %v4427_v34 = vmul.f32 0.015625, %v4415_v1 }
0x218d   :  { %v4412_v30 = vpop.xlane.xlu0 %4411 }
0x218e   :  { %v4435_v23 = vsub.f32 %v4427_v34, %v4431_v11  ;;  %v4426_v13 = vmul.f32 0.015625, %v4412_v30 }
0x2190   :  { %v4439_v12 = vadd.f32 1e-05, %v4435_v23  ;;  %v4434_v44 = vsub.f32 %v4426_v13, %v4430_v45 }
0x2191   :  { %v4402_v6 = vpop.xlane.xlu0 %4401  ;;  %v4405_v46 = vpop.xlane.xlu1 %4404 }
0x2192   :  { %8232 = vrsqrt.f32 %v4439_v12  ;;  %v4438_v31 = vadd.f32 1e-05, %v4434_v44  ;;  %v4424_v40 = vmul.f32 0.015625, %v4402_v6  ;;  %v4425_v50 = vmul.f32 0.015625, %v4405_v46 }
0x2194   :  { %8234 = vrsqrt.f32 %v4438_v31  ;;  %v4432_v51 = vmul.f32 %v4424_v40, %v4424_v40  ;;  %v4433_v49 = vmul.f32 %v4425_v50, %v4425_v50 }
0x2195   :  { %v4418_v39 = vpop.xlane.xlu0 %4417  ;;  %v4421_v8 = vpop.xlane.xlu1 %4420 }
0x2196   :  { %v4428_v60 = vmul.f32 0.015625, %v4418_v39  ;;  %v4429_v61 = vmul.f32 0.015625, %v4421_v8 }
0x2198   :  { %v4436_v9 = vsub.f32 %v4428_v60, %v4432_v51  ;;  %v4437_v3 = vsub.f32 %v4429_v61, %v4433_v49 }
0x219a   :  { %v4440_v29 = vadd.f32 1e-05, %v4436_v9  ;;  %v4441_v54 = vadd.f32 1e-05, %v4437_v3 }
0x219c   :  { %v8233_v15 = vpop.eup %8232  ;;  %8236 = vrsqrt.f32 %v4440_v29 }
0x219d   :  { %8238 = vrsqrt.f32 %v4441_v54  ;;  %v4447_v32 = vmul.f32 %v8233_v15, %v4391_v58 }
0x219e   :  { %v8235_v27 = vpop.eup %8234 }
0x219f   :  { %v4451_v42 = vmul.f32 %v4447_v32, %v4423_v7  ;;  %v4446_v37 = vmul.f32 %v8235_v27, %v4390_v18 }
0x21a1   :  { %4460 = vrot.lane.b32.xlu1 %v4451_v42, %s8258_s22  ;;  %v4450_v56 = vmul.f32 %v4446_v37, %v4422_v19 }
0x21a3   :  { %4458 = vrot.lane.b32.xlu0 %v4450_v56, %s8258_s22 }
0x21a6   :  { %v8237_v36 = vpop.eup %8236 }
0x21a7   :  { %v8239_v4 = vpop.eup %8238  ;;  %v4448_v57 = vmul.f32 %v8237_v36, %v4392_v47 }
0x21a8   :  { %v4449_v0 = vmul.f32 %v8239_v4, %v4393_v48  ;;  %v4878_v4 = vld [vmem:[%s10802_s1 + $0x1e0] sm:$0xff] }
0x21a9   :  { %v4452_v5 = vmul.f32 %v4448_v57, %v4424_v40 }
0x21aa   :  { %v4453_v55 = vmul.f32 %v4449_v0, %v4425_v50 }
0x21ab   :  { %4462 = vrot.lane.b32.xlu1 %v4452_v5, %s8258_s22 }
0x21ac   :  { %4464 = vrot.lane.b32.xlu0 %v4453_v55, %s8258_s22 }
0x21af   :  { %4476 = vperm.xlu1 %8148, %v4446_v37  }
0x21b0   :  { %4481 = vperm.xlu0 %8149, %v4447_v32  }
0x21b3   :  { %8150 = vset.pattern.permute.xlu1 %v10977_v16 }
0x21b4   :  { %4486 = vperm.xlu0 %8149, %v4448_v57   ;;  %v4881_v57 = vld [vmem:[%s10802_s1 + $0x1f8] sm:$0xff] }
0x21b8   :  { %8152 = vset.pattern.permute.xlu0 %v10977_v16 }
0x2213   :  { %v4461_v62 = vpop.permute.xlu1 %4460 }
0x2214   :  { %v4471_v35 = vsub.f32 %v4391_v58, %v4461_v62 }
0x2215   :  { %v4459_v26 = vpop.permute.xlu0 %4458 }
0x2216   :  { %v4470_v17 = vsub.f32 %v4390_v18, %v4459_v26 }
0x2218   :  { %4500 = vperm.xlu1 %8150, %v4470_v17  }
0x221c   :  { %4505 = vperm.xlu1 %8150, %v4471_v35  }
0x221d   :  { %v4463_v20 = vpop.permute.xlu1 %4462 }
0x221e   :  { %v4472_v19 = vsub.f32 %v4392_v47, %v4463_v20  ;;  %v4465_v7 = vpop.permute.xlu0 %4464 }
0x221f   :  { %v4473_v1 = vsub.f32 %v4393_v48, %v4465_v7 }
0x2220   :  { %8151 = vset.pattern.permute.xlu1 %v10978_v10  ;;  %4510 = vperm.xlu0 %8152, %v4472_v19  }
0x2221   :  { %4491 = vperm.xlu1 %8151, %v4449_v0   ;;  %v4880_v0 = vld [vmem:[%s10802_s1 + $0x1f0] sm:$0xff] }
0x2224   :  { %8155 = vset.pattern.permute.xlu0 %v10978_v10 }
0x2225   :  { %8153 = vset.pattern.permute.xlu1 %v10977_v16 }
0x2226   :  { %4515 = vperm.xlu1 %8153, %v4473_v1  }
0x222a   :  { %8154 = vset.pattern.permute.xlu1 %v10978_v10 }
0x222e   :  { %v4477_v11 = vpop.permute.xlu1 %4476 }
0x222f   :  { %v4482_v34 = vpop.permute.xlu0 %4481  ;;  %v4494_v30 = vmul.f32 %v4477_v11, %v10220_v33 }
0x2230   :  { %v4495_v13 = vmul.f32 %v4482_v34, %v10225_v53 }
0x2233   :  { %v4487_v44 = vpop.permute.xlu0 %4486 }
0x2234   :  { %v4496_v31 = vmul.f32 %v4487_v44, %v10234_v63 }
0x2297   :  { %v4501_v45 = vpop.permute.xlu1 %4500 }
0x2298   :  { %v4518_v23 = vadd.f32 %v4501_v45, %v4494_v30 }
0x229a   :  { %v10275_v12 = vmax.f32 %v4518_v23, 0.0 }
0x229b   :  { %v4506_v6 = vpop.permute.xlu1 %4505 }
0x229c   :  { %v4519_v46 = vadd.f32 %v4506_v6, %v4495_v13  ;;  %7193 = vmatprep.mubr.msk.f32.mxu0 %vm11120_vm15, %v10275_v12  ;;  %7259 = vmatprep.mubr.msk.f32.mxu1 %vm11121_vm6, %v10275_v12 }
0x229e   :  { %v10282_v40 = vmax.f32 %v4519_v46, 0.0 }
0x229f   :  { %v4511_v33 = vpop.permute.xlu0 %4510 }
0x22a0   :  { %v4520_v50 = vadd.f32 %v4511_v33, %v4496_v31  ;;  %7194 = vmatmul.mubr.msk.f32.vlgmr.msra.gmra.mrb[64].mxu0 %vm11122_vm9, %v10282_v40  ;;  %7260 = vmatmul.mubr.msk.f32.vlgmr.msra.gmra.mrb[56].mxu1 %vm11123_vm3, %v10282_v40  ;;  %v4492_v53 = vpop.permute.xlu1 %4491  ;;  %v7947_v39 = vpack.c.bf16 %v10282_v40, %v10275_v12  ;;  %vm11139_vm3 = vcmask 261120  }
0x22a1   :  { %7889 = vmatpush3.bf16.msk.msra.mxu0 %vm11089_vm7, %v10982_v41  ;;  %v4497_v63 = vmul.f32 %v4492_v53, %v10239_v43  ;;  %vm11126_vm7 = vmmov %vm11119_vm1  ;;  %v4964_v53 = vld [vmem:[%s10803_s2 + $0x138] sm:$0xff] }
0x22a2   :  { %v10293_v8 = vmax.f32 %v4520_v50, 0.0  ;;  %7891 = vmatprep.subr.msk.bf16.mxu0 %vm11094_vm5, %v10982_v41 }
0x22a4   :  { %7196 = vmatprep.mubr.msk.f32.mxu0 %vm11124_vm11, %v10293_v8  ;;  %7262 = vmatprep.mubr.msk.f32.mxu1 %vm11125_vm10, %v10293_v8  ;;  %vm11140_vm11 = vmmov %vm11139_vm3 }
0x22a5   :  { %7893 = vmatpush3.bf16.msk.msra.mxu0 %vm11094_vm5, %v10982_v41  ;;  %v4516_v24 = vpop.permute.xlu1 %4515  ;;  %vm11128_vm5 = vmmov %vm11119_vm1 }
0x22a6   :  { %v4521_v51 = vadd.f32 %v4516_v24, %v4497_v63  ;;  %7895 = vmatprep.subr.msk.bf16.mxu0 %vm11095_vm0, %v10982_v41 }
0x22a8   :  { %v4525_v49 = vmax.f32 %v4521_v51, 0.0 }
0x22a9   :  { %7897 = vmatpush3.bf16.msk.msra.mxu0 %vm11095_vm0, %v10982_v41  ;;  %vm11129_vm0 = vmmov %vm11119_vm1  ;;  %vm11134_vm1 = vnez %v10932_v14 }
0x22aa   :  { %7197 = vmatmul.mubr.msk.f32.gmra.mrb[66].mxu0 %vm11126_vm7, %v4525_v49  ;;  %7263 = vmatmul.mubr.msk.f32.gmra.mrb[58].mxu1 %vm11127_vm4, %v4525_v49  ;;  %v7950_v43 = vpack.c.bf16 %v4525_v49, %v10293_v8  ;;  %vm11130_vm8 = vmmov %vm11129_vm0 }
0x22ab   :  { %7899 = vmatprep.subr.msk.bf16.mxu0 %vm11099_vm13, %v10982_v41  ;;  %7215 = vmatprep.mubr.msk.f32.mxu0 %vm11128_vm5, %v10275_v12  ;;  %vm11132_vm2 = vmmov %vm11129_vm0 }
0x22ac   :  { %vm11136_vm15 = vmmov %vm11129_vm0 }
0x22ad   :  { %7901 = vmatpush3.bf16.msk.msra.mxu0 %vm11099_vm13, %v10982_v41  ;;  %vm11133_vm13 = vmmov %vm11129_vm0 }
0x22ae   :  { %7903 = vmatprep.subr.msk.bf16.mxu0 %vm10966_vm12, %v10982_v41  ;;  %vm11137_vm6 = vmmov %vm11129_vm0 }
0x22af   :  { %vm11138_vm9 = vmmov %vm11129_vm0 }
0x22b0   :  { %7216 = vmatmul.mubr.msk.f32.vlgmr.msra.gmra.mrb[68].mxu0 %vm11129_vm0, %v10282_v40  ;;  %vm11141_vm10 = vmmov %vm11129_vm0 }
0x22b1   :  { %7218 = vmatprep.mubr.msk.f32.mxu0 %vm11130_vm8, %v10293_v8  ;;  %7905 = vmatpush3.bf16.msk.msra.mxu0 %vm10966_vm12, %v10982_v41  ;;  %vm11135_vm12 = vnez %v10936_v22  ;;  %vm11142_vm7 = vmmov %vm11129_vm0 }
0x22b2   :  { %7907 = vmatprep.subr.msk.bf16.mxu0 %vm11131_vm14, %v10982_v41  ;;  %vm11143_vm4 = vmmov %vm11129_vm0 }
0x22b3   :  { %vm11144_vm5 = vmmov %vm11129_vm0 }
0x22b4   :  { %7219 = vmatmul.mubr.msk.f32.gmra.mrb[70].mxu0 %vm11132_vm2, %v4525_v49  ;;  %vm11145_vm8 = vmmov %vm11129_vm0 }
0x22b5   :  { %7909 = vmatpush3.bf16.msk.msra.mxu0 %vm11131_vm14, %v10982_v41  ;;  %7237 = vmatprep.mubr.msk.f32.mxu0 %vm11133_vm13, %v10275_v12  ;;  %vm11146_vm14 = vcmask 916480   ;;  %vm8267_vm13 = vmmov 0  }
0x22b6   :  { %7911 = vmatprep.subr.msk.bf16.mxu0 %vm11134_vm1, %v10982_v41  ;;  %vm11152_vm2 = vmmov %vm11146_vm14 }
0x22b9   :  { %7913 = vmatpush3.bf16.msk.msra.mxu0 %vm11134_vm1, %v10982_v41  ;;  %vm11156_vm1 = vmmov %vm11152_vm2 }
0x22ba   :  { %7915 = vmatprep.subr.msk.bf16.mxu0 %vm11135_vm12, %v10982_v41 }
0x22bd   :  { %7917 = vmatpush3.bf16.msk.msra.mxu0 %vm11135_vm12, %v10982_v41 }
0x22be   :  { %7934 = vmatprep.subr.bf16.mxu0 %v11023_v38 }
0x22c0   :  { %7238 = vmatmul.mubr.msk.f32.vlgmr.msra.gmra.mrb[72].mxu0 %vm11136_vm15, %v10282_v40 }
0x22c1   :  { %7240 = vmatprep.mubr.msk.f32.mxu0 %vm11137_vm6, %v10293_v8  ;;  %v4963_v8 = vld [vmem:[%s10803_s2 + $0x130] sm:$0xff] }
0x22c4   :  { %7241 = vmatmul.mubr.msk.f32.gmra.mrb[74].mxu0 %vm11138_vm9, %v4525_v49 }
0x22c5   :  { %6264 = vmatprep.mubr.msk.f32.mxu0 %vm11139_vm3, %v4879_v59  ;;  %v5031_v59 = vld [vmem:[%s10804_s3 + $0x3c0] sm:$0xff] }
0x2373   :  { %v7195_v2 = vpop.f32.mrb[64].mxu0  ;;  %v7261_v14 = vpop.f32.mrb[56].mxu1 }
0x2374   :  { %v4604_v22 = vpop.f32.mrb[65].mxu0  ;;  %v4859_v25 = vpop.f32.mrb[57].mxu1 }
0x2375   :  { %v7935_v28 = vpack.c.bf16 %v7195_v2, %v4604_v22  ;;  %v7959_v52 = vpack.c.bf16 %v7261_v14, %v4859_v25  ;;  %v5032_v2 = vld [vmem:[%s10804_s3 + $0x3d0] sm:$0xff]  ;;  %v5033_v14 = vld [vmem:[%s10804_s3 + $0x3e0] sm:$0xff] }
0x2376   :  { %v7964_v22 = vpack.c.bf16 %v5032_v2, %v5031_v59  ;;  %v5034_v25 = vld [vmem:[%s10804_s3 + $0x3f0] sm:$0xff]  ;;  %v11151_v2 = vld [vmem:[#allocation15_spill] sm:$0xff] }
0x2377   :  { %7936 = vmatpush1.bf16.msra.mxu0 %v7935_v28  ;;  %v7968_v28 = vpack.c.bf16 %v5034_v25, %v5033_v14 }
0x2378   :  { %7937 = vmatprep.subr.bf16.mxu0 %v11023_v38  ;;  %7965 = vmatprep.subr.bf16.mxu1 %v7964_v22 }
0x2379   :  { %7967 = vmatpush3.bf16.msra.mxu1 %v7964_v22 }
0x237a   :  { %7969 = vmatprep.subr.bf16.mxu1 %v7968_v28 }
0x237d   :  { %v7198_v41 = vpop.f32.mrb[66].mxu0  ;;  %v7264_v60 = vpop.f32.mrb[58].mxu1  ;;  %7971 = vmatpush3.bf16.msra.mxu1 %v7968_v28  ;;  %v5157_v28 = vld [vmem:[%s10802_s1 + $0x210] sm:$0xff] }
0x237e   :  { %v4614_v61 = vpop.f32.mrb[67].mxu0  ;;  %v4869_v9 = vpop.f32.mrb[59].mxu1 }
0x237f   :  { %v7938_v3 = vpack.c.bf16 %v7198_v41, %v4614_v61  ;;  %v7962_v29 = vpack.c.bf16 %v7264_v60, %v4869_v9  ;;  %v5035_v41 = vld [vmem:[%s10804_s3 + $0x400] sm:$0xff]  ;;  %v5036_v60 = vld [vmem:[%s10804_s3 + $0x410] sm:$0xff] }
0x2380   :  { %v7972_v9 = vpack.c.bf16 %v5036_v60, %v5035_v41  ;;  %v11154_v60 = vld [vmem:[#allocation16_spill] sm:$0xff] }
0x2381   :  { %7939 = vmatpush1.bf16.msra.mxu0 %v7938_v3 }
0x2382   :  { %7940 = vmatprep.subr.bf16.mxu0 %v11023_v38  ;;  %7973 = vmatprep.subr.bf16.mxu1 %v7972_v9 }
0x2383   :  { %v7217_v54 = vpop.f32.mrb[68].mxu0  ;;  %7975 = vmatpush3.bf16.msra.mxu1 %v7972_v9 }
0x2384   :  { %v4689_v58 = vpop.f32.mrb[69].mxu0 }
0x2385   :  { %v7941_v15 = vpack.c.bf16 %v7217_v54, %v4689_v58  ;;  %v5038_v54 = vld [vmem:[%s10804_s3 + $0x430] sm:$0xff] }
0x2387   :  { %v7220_v18 = vpop.f32.mrb[70].mxu0  ;;  %7942 = vmatpush1.bf16.msra.mxu0 %v7941_v15 }
0x2388   :  { %v4699_v32 = vpop.f32.mrb[71].mxu0  ;;  %7943 = vmatprep.subr.bf16.mxu0 %v11023_v38 }
0x2389   :  { %v7944_v27 = vpack.c.bf16 %v7220_v18, %v4699_v32 }
0x238b   :  { %7945 = vmatpush1.bf16.msra.mxu0 %v7944_v27 }
0x238c   :  { %7946 = vmatprep.subr.bf16.mxu0 %v11023_v38 }
0x238f   :  { %7948 = vmatpush1.bf16.msra.mxu0 %v7947_v39 }
0x2390   :  { %7949 = vmatprep.subr.bf16.mxu0 %v11023_v38 }
0x2393   :  { %v7239_v42 = vpop.f32.mrb[72].mxu0  ;;  %7951 = vmatpush1.bf16.msra.mxu0 %v7950_v43 }
0x2394   :  { %v4774_v37 = vpop.f32.mrb[73].mxu0  ;;  %7952 = vmatprep.subr.bf16.mxu0 %v11023_v38 }
0x2395   :  { %v7953_v56 = vpack.c.bf16 %v7239_v42, %v4774_v37 }
0x2397   :  { %v7242_v47 = vpop.f32.mrb[74].mxu0  ;;  %7954 = vmatpush1.bf16.msra.mxu0 %v7953_v56 }
0x2398   :  { %v4784_v48 = vpop.f32.mrb[75].mxu0  ;;  %7955 = vmatprep.subr.bf16.mxu0 %v11023_v38 }
0x2399   :  { %v7956_v36 = vpack.c.bf16 %v7242_v47, %v4784_v48 }
0x239b   :  { %7957 = vmatpush1.bf16.msra.mxu0 %v7956_v36 }
0x239c   :  { %7958 = vmatprep.subr.bf16.mxu0 %v11023_v38 }
0x239f   :  { %7960 = vmatpush1.bf16.msra.mxu0 %v7959_v52 }
0x23a0   :  { %7961 = vmatprep.subr.bf16.mxu0 %v11023_v38 }
0x23a3   :  { %7963 = vmatpush1.bf16.msra.mxu0 %v7962_v29  ;;  %v5037_v29 = vld [vmem:[%s10804_s3 + $0x420] sm:$0xff] }
0x23a4   :  { %8008 = vmatprep.subr.bf16.mxu0 %v11023_v38  ;;  %v7976_v15 = vpack.c.bf16 %v5038_v54, %v5037_v29 }
0x23a6   :  { %4953 = vmatmul.mubr.f32.vlgmr.msra.gmra.mrb[76].mxu0 %v4878_v4  ;;  %7977 = vmatprep.subr.bf16.mxu1 %v7976_v15 }
0x23a7   :  { %6265 = vmatprep.mubr.msk.f32.mxu0 %vm11140_vm11, %v4881_v57  ;;  %7979 = vmatpush3.bf16.msra.mxu1 %v7976_v15 }
0x23aa   :  { %4958 = vmatmul.mubr.f32.gmra.mrb[78].mxu0 %v4880_v0 }
0x2479   :  { %v10384_v5 = vpop.f32.mrb[76].mxu0 }
0x247a   :  { %v4956_v55 = vpop.f32.mrb[77].mxu0  ;;  %v4965_v26 = vsel %vm11141_vm10, %v10384_v5, 0.0  ;;  %v4971_v62 = vmul.f32 %v10384_v5, %v10384_v5 }
0x247b   :  { %4966 = vadd.xlane.f32.xlu1 %v4965_v26  ;;  %v5156_v55 = vld [vmem:[%s10802_s1 + $0x200] sm:$0xff] }
0x247c   :  { %v4973_v1 = vsel %vm11144_vm5, %v4971_v62, 0.0 }
0x247d   :  { %v10388_v17 = vpop.f32.mrb[78].mxu0 }
0x247e   :  { %v4972_v35 = vmul.f32 %v10388_v17, %v10388_v17  ;;  %v4961_v20 = vpop.f32.mrb[79].mxu0  ;;  %v4968_v19 = vsel %vm11142_vm7, %v10388_v17, 0.0 }
0x247f   :  { %4969 = vadd.xlane.f32.xlu0 %v4968_v19 }
0x2480   :  { %v4976_v7 = vsel %vm11143_vm4, %v4972_v35, 0.0 }
0x2481   :  { %4977 = vadd.xlane.f32.xlu1 %v4976_v7  ;;  %v11147_v7 = vld [vmem:[#allocation11_spill] sm:$0xff] }
0x2483   :  { %4974 = vadd.xlane.f32.xlu0 %v4973_v1 }
0x2508   :  { %v4967_v11 = vpop.xlane.xlu1 %4966 }
0x2509   :  { %v4979_v30 = vmul.f32 0.015625, %v4967_v11 }
0x250b   :  { %v4983_v6 = vmul.f32 %v4979_v30, %v4979_v30 }
0x250c   :  { %v4970_v34 = vpop.xlane.xlu0 %4969 }
0x250d   :  { %v4980_v45 = vmul.f32 0.015625, %v4970_v34 }
0x250e   :  { %v4978_v23 = vpop.xlane.xlu1 %4977 }
0x250f   :  { %v4984_v13 = vmul.f32 %v4980_v45, %v4980_v45  ;;  %v4982_v12 = vmul.f32 0.015625, %v4978_v23  ;;  %v11148_v23 = vld [vmem:[#allocation12_spill] sm:$0xff] }
0x2510   :  { %v4975_v44 = vpop.xlane.xlu0 %4974 }
0x2511   :  { %v4986_v46 = vsub.f32 %v4982_v12, %v4984_v13  ;;  %v4981_v31 = vmul.f32 0.015625, %v4975_v44 }
0x2513   :  { %v4988_v40 = vadd.f32 1e-05, %v4986_v46  ;;  %v4985_v33 = vsub.f32 %v4981_v31, %v4983_v6 }
0x2515   :  { %8240 = vrsqrt.f32 %v4988_v40  ;;  %v4987_v50 = vadd.f32 1e-05, %v4985_v33  ;;  %v11149_v40 = vld [vmem:[#allocation13_spill] sm:$0xff] }
0x2517   :  { %8242 = vrsqrt.f32 %v4987_v50 }
0x251f   :  { %v8241_v39 = vpop.eup %8240 }
0x2520   :  { %v4992_v63 = vmul.f32 %v8241_v39, %v4964_v53 }
0x2521   :  { %v8243_v24 = vpop.eup %8242 }
0x2522   :  { %v4994_v51 = vmul.f32 %v4992_v63, %v4980_v45  ;;  %v4991_v49 = vmul.f32 %v8243_v24, %v4963_v8 }
0x2524   :  { %4999 = vrot.lane.b32.xlu1 %v4994_v51, %s8258_s22  ;;  %v4993_v43 = vmul.f32 %v4991_v49, %v4979_v30 }
0x2526   :  { %4997 = vrot.lane.b32.xlu0 %v4993_v43, %s8258_s22 }
0x2528   :  { %5007 = vperm.xlu1 %8154, %v4991_v49  }
0x252a   :  { %5012 = vperm.xlu0 %8155, %v4992_v63   ;;  %v11150_v63 = vld [vmem:[#allocation14_spill] sm:$0xff] }
0x252c   :  { %8156 = vset.pattern.permute.xlu1 %v10977_v16 }
0x252e   :  { %8158 = vset.pattern.permute.xlu0 %v10977_v16 }
0x2596   :  { %v5000_v3 = vpop.permute.xlu1 %4999 }
0x2597   :  { %v5004_v58 = vsub.f32 %v4964_v53, %v5000_v3  ;;  %v11155_v3 = vld [vmem:[#allocation17_spill] sm:$0xff] }
0x2598   :  { %v4998_v52 = vpop.permute.xlu0 %4997 }
0x2599   :  { %v5003_v61 = vsub.f32 %v4963_v8, %v4998_v52  ;;  %v11153_v52 = vmov 0.0  }
0x259a   :  { %7343 = vmatprep.mubr.msk.f32.mxu0 %vm8267_vm13, %v11153_v52 }
0x259b   :  { %5019 = vperm.xlu1 %8156, %v5003_v61  }
0x259f   :  { %5024 = vperm.xlu1 %8156, %v5004_v58  }
0x25a3   :  { %8157 = vset.pattern.permute.xlu1 %v10978_v10 }
0x25a7   :  { %v5008_v18 = vpop.permute.xlu1 %5007 }
0x25a8   :  { %v5015_v32 = vmul.f32 %v5008_v18, %v10384_v5 }
0x25a9   :  { %v5013_v27 = vpop.permute.xlu0 %5012 }
0x25aa   :  { %v5016_v56 = vmul.f32 %v5013_v27, %v10388_v17 }
0x261a   :  { %v5020_v42 = vpop.permute.xlu1 %5019 }
0x261b   :  { %v5027_v37 = vadd.f32 %v5020_v42, %v5015_v32 }
0x261d   :  { %v5029_v47 = vmax.f32 %v5027_v37, 0.0 }
0x261e   :  { %v5025_v48 = vpop.permute.xlu1 %5024 }
0x261f   :  { %v5028_v36 = vadd.f32 %v5025_v48, %v5016_v56  ;;  %7281 = vmatprep.mubr.msk.f32.mxu1 %vm11129_vm0, %v5029_v47 }
0x2621   :  { %v5030_v4 = vmax.f32 %v5028_v36, 0.0 }
0x2623   :  { %7282 = vmatmul.mubr.msk.f32.vlgmr.msra.gmra.mrb[60].mxu1 %vm11145_vm8, %v5030_v4 }
0x2624   :  { %7312 = vmatprep.mubr.msk.f32.mxu1 %vm11146_vm14, %v5156_v55  ;;  %v5239_v55 = vld [vmem:[%s10803_s2 + $0x140] sm:$0xff] }
0x26f6   :  { %v7283_v57 = vpop.f32.mrb[60].mxu1 }
0x26f7   :  { %5122 = vrot.lane.b32.xlu1 %v7283_v57, %s8255_s17  ;;  %v5111_v0 = vpop.f32.mrb[61].mxu1 }
0x26f8   :  { %5120 = vrot.lane.b32.xlu0 %v5111_v0, %s8255_s17  ;;  %v7992_v5 = vpack.c.bf16 %v7283_v57, %v5111_v0 }
0x26fb   :  { %5128 = vrot.lane.b32.xlu1 %v7283_v57, %s8257_s21 }
0x26fc   :  { %5126 = vrot.lane.b32.xlu0 %v5111_v0, %s8257_s21 }
0x26ff   :  { %5134 = vrot.lane.b32.xlu1 %v7283_v57, %s8258_s22 }
0x2700   :  { %5132 = vrot.lane.b32.xlu0 %v5111_v0, %s8258_s22 }
0x2703   :  { %5140 = vrot.lane.b32.xlu1 %v7283_v57, %s8259_s0 }
0x2704   :  { %5138 = vrot.lane.b32.xlu0 %v5111_v0, %s8259_s0 }
0x2707   :  { %5146 = vrot.lane.b32.xlu1 %v7283_v57, %s8260_s23 }
0x2708   :  { %5144 = vrot.lane.b32.xlu0 %v5111_v0, %s8260_s23 }
0x270b   :  { %5152 = vrot.lane.b32.xlu1 %v7283_v57, %s8261_s24 }
0x270c   :  { %5150 = vrot.lane.b32.xlu0 %v5111_v0, %s8261_s24 }
0x2769   :  { %v5123_v26 = vpop.permute.xlu1 %5122 }
0x276a   :  { %v5125_v17 = vmul.f32 %v8652_v21, %v5123_v26  ;;  %v5121_v62 = vpop.permute.xlu0 %5120 }
0x276b   :  { %v5124_v35 = vmul.f32 %v8652_v21, %v5121_v62  ;;  %v5240_v62 = vld [vmem:[%s10803_s2 + $0x148] sm:$0xff] }
0x276d   :  { %v7980_v20 = vpack.c.bf16 %v5125_v17, %v5124_v35  ;;  %v5129_v19 = vpop.permute.xlu1 %5128 }
0x276e   :  { %v5131_v1 = vmul.f32 %v11147_v7, %v5129_v19  ;;  %v5127_v11 = vpop.permute.xlu0 %5126 }
0x276f   :  { %v5130_v34 = vmul.f32 %v11147_v7, %v5127_v11  ;;  %7981 = vmatprep.subr.bf16.mxu1 %v7980_v20 }
0x2770   :  { %7983 = vmatpush3.bf16.msra.mxu1 %v7980_v20 }
0x2771   :  { %v7984_v30 = vpack.c.bf16 %v5131_v1, %v5130_v34  ;;  %v5135_v45 = vpop.permute.xlu1 %5134 }
0x2772   :  { %v5137_v13 = vmul.f32 %v11148_v23, %v5135_v45  ;;  %v5133_v12 = vpop.permute.xlu0 %5132 }
0x2773   :  { %v5136_v44 = vmul.f32 %v11148_v23, %v5133_v12  ;;  %7985 = vmatprep.subr.bf16.mxu1 %v7984_v30 }
0x2774   :  { %7987 = vmatpush3.bf16.msra.mxu1 %v7984_v30 }
0x2775   :  { %v7988_v6 = vpack.c.bf16 %v5137_v13, %v5136_v44  ;;  %v5141_v46 = vpop.permute.xlu1 %5140 }
0x2776   :  { %v5139_v31 = vpop.permute.xlu0 %5138  ;;  %v5143_v33 = vmul.f32 %v11149_v40, %v5141_v46 }
0x2777   :  { %v5142_v50 = vmul.f32 %v11149_v40, %v5139_v31  ;;  %7989 = vmatprep.subr.bf16.mxu1 %v7988_v6 }
0x2778   :  { %7991 = vmatpush3.bf16.msra.mxu1 %v7988_v6 }
0x2779   :  { %v5147_v53 = vpop.permute.xlu1 %5146  ;;  %7993 = vmatprep.subr.bf16.mxu1 %v7992_v5  ;;  %v7996_v8 = vpack.c.bf16 %v5143_v33, %v5142_v50 }
0x277a   :  { %v5145_v39 = vpop.permute.xlu0 %5144  ;;  %v5149_v24 = vmul.f32 %v11150_v63, %v5147_v53 }
0x277b   :  { %v5148_v51 = vmul.f32 %v11150_v63, %v5145_v39 }
0x277c   :  { %7995 = vmatpush3.bf16.msra.mxu1 %v7992_v5 }
0x277d   :  { %v5153_v49 = vpop.permute.xlu1 %5152  ;;  %7997 = vmatprep.subr.bf16.mxu1 %v7996_v8  ;;  %v8000_v59 = vpack.c.bf16 %v5149_v24, %v5148_v51 }
0x277e   :  { %v5151_v43 = vpop.permute.xlu0 %5150  ;;  %v5155_v14 = vmul.f32 %v11151_v2, %v5153_v49 }
0x277f   :  { %v5154_v22 = vmul.f32 %v11151_v2, %v5151_v43 }
0x2780   :  { %7999 = vmatpush3.bf16.msra.mxu1 %v7996_v8 }
0x2781   :  { %8001 = vmatprep.subr.bf16.mxu1 %v8000_v59  ;;  %v8004_v25 = vpack.c.bf16 %v5155_v14, %v5154_v22 }
0x2784   :  { %8003 = vmatpush3.bf16.msra.mxu1 %v8000_v59 }
0x2785   :  { %8005 = vmatprep.subr.bf16.mxu1 %v8004_v25 }
0x2788   :  { %8007 = vmatpush3.bf16.msra.mxu1 %v8004_v25 }
0x278b   :  { %7313 = vmatmul.mubr.msk.f32.vlgmr.msra.gmra.mrb[62].mxu1 %vm11152_vm2, %v5157_v28 }
0x278c   :  { %5541 = vmatprep.mubr.f32.mxu1 %v11153_v52 }
0x285e   :  { %v7314_v41 = vpop.f32.mrb[62].mxu1 }
0x285f   :  { %v5236_v61 = vadd.f32 %v7314_v41, %v11154_v60  ;;  %v5230_v9 = vpop.f32.mrb[63].mxu1 }
0x2860   :  { %v5231_v29 = vadd.f32 %v5230_v9, %v11155_v3 }
0x2861   :  { %5243 = vadd.xlane.f32.xlu1 %v5236_v61  ;;  %v5246_v58 = vmul.f32 %v5236_v61, %v5236_v61 }
0x2862   :  { %5241 = vadd.xlane.f32.xlu0 %v5231_v29  ;;  %v5245_v54 = vmul.f32 %v5231_v29, %v5231_v29 }
0x2866   :  { %5247 = vadd.xlane.f32.xlu0 %v5245_v54 }
0x286a   :  { %5249 = vadd.xlane.f32.xlu0 %v5246_v58 }
0x28ee   :  { %v5244_v32 = vpop.xlane.xlu1 %5243 }
0x28ef   :  { %v5242_v15 = vpop.xlane.xlu0 %5241  ;;  %v5252_v42 = vmul.f32 0.0078125, %v5244_v32 }
0x28f0   :  { %v5251_v18 = vmul.f32 0.0078125, %v5242_v15 }
0x28f1   :  { %v5256_v36 = vmul.f32 %v5252_v42, %v5252_v42 }
0x28f2   :  { %v5255_v37 = vmul.f32 %v5251_v18, %v5251_v18 }
0x28f3   :  { %v5248_v27 = vpop.xlane.xlu0 %5247 }
0x28f4   :  { %v5253_v56 = vmul.f32 0.0078125, %v5248_v27 }
0x28f6   :  { %v5257_v47 = vsub.f32 %v5253_v56, %v5255_v37 }
0x28f7   :  { %v5250_v48 = vpop.xlane.xlu0 %5249 }
0x28f8   :  { %v5259_v4 = vadd.f32 1e-05, %v5257_v47  ;;  %v5254_v57 = vmul.f32 0.0078125, %v5250_v48 }
0x28fa   :  { %8244 = vrsqrt.f32 %v5259_v4  ;;  %v5258_v0 = vsub.f32 %v5254_v57, %v5256_v36  ;;  %v5339_v36 = vld [vmem:[%s10802_s1 + $0x220] sm:$0xff] }
0x28fc   :  { %v5260_v5 = vadd.f32 1e-05, %v5258_v0 }
0x28fe   :  { %8246 = vrsqrt.f32 %v5260_v5 }
0x2904   :  { %v8245_v26 = vpop.eup %8244 }
0x2905   :  { %v5263_v17 = vmul.f32 %v8245_v26, %v5239_v55 }
0x2907   :  { %v5265_v35 = vmul.f32 %v5263_v17, %v5251_v18 }
0x2908   :  { %v8247_v20 = vpop.eup %8246 }
0x2909   :  { %5269 = vrot.lane.b32.xlu1 %v5265_v35, %s8258_s22  ;;  %v5264_v19 = vmul.f32 %v8247_v20, %v5240_v62 }
0x290b   :  { %v5266_v1 = vmul.f32 %v5264_v19, %v5252_v42 }
0x290d   :  { %5279 = vperm.xlu1 %8157, %v5263_v17   ;;  %5271 = vrot.lane.b32.xlu0 %v5266_v1, %s8258_s22  ;;  %v5446_v1 = vld [vmem:[%s10804_s3 + $0x448] sm:$0xff] }
0x2911   :  { %5284 = vperm.xlu1 %8157, %v5264_v19  }
0x2915   :  { %8159 = vset.pattern.permute.xlu1 %v10977_v16 }
0x297b   :  { %v5270_v11 = vpop.permute.xlu1 %5269 }
0x297c   :  { %v5275_v34 = vsub.f32 %v5239_v55, %v5270_v11  ;;  %v5448_v11 = vld [vmem:[%s10804_s3 + $0x458] sm:$0xff] }
0x297e   :  { %5291 = vperm.xlu0 %8158, %v5275_v34   ;;  %v5445_v34 = vld [vmem:[%s10804_s3 + $0x440] sm:$0xff] }
0x297f   :  { %v5272_v30 = vpop.permute.xlu0 %5271 }
0x2980   :  { %v5276_v45 = vsub.f32 %v5240_v62, %v5272_v30  ;;  %v10526_v62 = vld [vmem:[%s10803_s2 + $0x150] sm:$0xff]  ;;  %v8029_v30 = vpack.c.bf16 %v5448_v11, %v5446_v1 }
0x2982   :  { %5296 = vperm.xlu1 %8159, %v5276_v45   ;;  %v5447_v45 = vld [vmem:[%s10804_s3 + $0x450] sm:$0xff]  ;;  %8030 = vmatprep.subr.bf16.mxu1 %v8029_v30  ;;  %v11162_v30 = vld [vmem:[#allocation3_spill] sm:$0xff] }
0x2986   :  { %8160 = vset.pattern.permute.xlu1 %v10978_v10 }
0x298c   :  { %v5280_v13 = vpop.permute.xlu1 %5279 }
0x298d   :  { %v5287_v12 = vmul.f32 %v5280_v13, %v5231_v29  ;;  %v5450_v13 = vld [vmem:[%s10804_s3 + $0x468] sm:$0xff] }
0x2990   :  { %v5285_v44 = vpop.permute.xlu1 %5284 }
0x2991   :  { %v5288_v31 = vmul.f32 %v5285_v44, %v5236_v61  ;;  %v8031_v44 = vpack.c.bf16 %v5447_v45, %v5445_v34 }
0x2993   :  { %8032 = vmatpush1.bf16.msra.mxu1 %v8031_v44 }
0x29fd   :  { %v5292_v6 = vpop.permute.xlu0 %5291 }
0x29fe   :  { %v5299_v46 = vadd.f32 %v5292_v6, %v5287_v12  ;;  %v5452_v12 = vld [vmem:[%s10804_s3 + $0x478] sm:$0xff] }
0x29ff   :  { %v8033_v6 = vpack.c.bf16 %v5452_v12, %v5450_v13  ;;  %v11163_v12 = vld [vmem:[#allocation4_spill] sm:$0xff] }
0x2a00   :  { %v5301_v33 = vmax.f32 %v5299_v46, 0.0  ;;  %v5449_v46 = vld [vmem:[%s10804_s3 + $0x460] sm:$0xff] }
0x2a01   :  { %v5297_v50 = vpop.permute.xlu1 %5296  ;;  %8034 = vmatprep.subr.bf16.mxu1 %v8033_v6 }
0x2a02   :  { %v5300_v53 = vadd.f32 %v5297_v50, %v5288_v31  ;;  %5303 = vrot.lane.b32.xlu1 %v5301_v33, %s8255_s17  ;;  %v5451_v31 = vld [vmem:[%s10804_s3 + $0x470] sm:$0xff]  ;;  %v5456_v50 = vld [vmem:[%s10804_s3 + $0x498] sm:$0xff] }
0x2a04   :  { %v5302_v39 = vmax.f32 %v5300_v53, 0.0  ;;  %v8035_v53 = vpack.c.bf16 %v5451_v31, %v5449_v46 }
0x2a06   :  { %5305 = vrot.lane.b32.xlu0 %v5302_v39, %s8255_s17  ;;  %5309 = vrot.lane.b32.xlu1 %v5301_v33, %s8257_s21  ;;  %v8018_v8 = vpack.c.bf16 %v5302_v39, %v5301_v33 }
0x2a07   :  { %8036 = vmatpush1.bf16.msra.mxu1 %v8035_v53 }
0x2a0a   :  { %5311 = vrot.lane.b32.xlu0 %v5302_v39, %s8257_s21  ;;  %5315 = vrot.lane.b32.xlu1 %v5301_v33, %s8258_s22 }
0x2a0e   :  { %5317 = vrot.lane.b32.xlu0 %v5302_v39, %s8258_s22  ;;  %5321 = vrot.lane.b32.xlu1 %v5301_v33, %s8259_s0 }
0x2a12   :  { %5323 = vrot.lane.b32.xlu0 %v5302_v39, %s8259_s0  ;;  %5327 = vrot.lane.b32.xlu1 %v5301_v33, %s8260_s23 }
0x2a16   :  { %5329 = vrot.lane.b32.xlu0 %v5302_v39, %s8260_s23  ;;  %5333 = vrot.lane.b32.xlu1 %v5301_v33, %s8261_s24  ;;  %v5454_v33 = vld [vmem:[%s10804_s3 + $0x488] sm:$0xff] }
0x2a1a   :  { %5335 = vrot.lane.b32.xlu0 %v5302_v39, %s8261_s24  ;;  %v8037_v39 = vpack.c.bf16 %v5456_v50, %v5454_v33 }
0x2a1c   :  { %8038 = vmatprep.subr.bf16.mxu1 %v8037_v39 }
0x2a74   :  { %v5304_v24 = vpop.permute.xlu1 %5303 }
0x2a75   :  { %v5307_v43 = vmul.f32 %v8652_v21, %v5304_v24  ;;  %v5455_v24 = vld [vmem:[%s10804_s3 + $0x490] sm:$0xff] }
0x2a78   :  { %v5310_v51 = vpop.permute.xlu1 %5309  ;;  %v5306_v49 = vpop.permute.xlu0 %5305 }
0x2a79   :  { %v5308_v59 = vmul.f32 %v8652_v21, %v5306_v49  ;;  %v5313_v28 = vmul.f32 %v11147_v7, %v5310_v51  ;;  %v5458_v51 = vld [vmem:[%s10804_s3 + $0x4a8] sm:$0xff]  ;;  %v5460_v49 = vld [vmem:[%s10804_s3 + $0x4b8] sm:$0xff] }
0x2a7b   :  { %v8009_v14 = vpack.c.bf16 %v5308_v59, %v5307_v43  ;;  %v8041_v59 = vpack.c.bf16 %v5460_v49, %v5458_v51 }
0x2a7c   :  { %v5316_v22 = vpop.permute.xlu1 %5315  ;;  %v5312_v25 = vpop.permute.xlu0 %5311 }
0x2a7d   :  { %v5314_v41 = vmul.f32 %v11147_v7, %v5312_v25  ;;  %8010 = vmatpush3.bf16.msra.mxu0 %v8009_v14  ;;  %v5319_v9 = vmul.f32 %v11148_v23, %v5316_v22  ;;  %v5457_v14 = vld [vmem:[%s10804_s3 + $0x4a0] sm:$0xff]  ;;  %v5459_v22 = vld [vmem:[%s10804_s3 + $0x4b0] sm:$0xff]  ;;  %v5462_v25 = vld [vmem:[%s10804_s3 + $0x4c8] sm:$0xff] }
0x2a7e   :  { %8011 = vmatprep.subr.bf16.mxu0 %v11023_v38 }
0x2a7f   :  { %v8012_v60 = vpack.c.bf16 %v5314_v41, %v5313_v28  ;;  %v5464_v28 = vld [vmem:[%s10804_s3 + $0x4d8] sm:$0xff]  ;;  %v8043_v41 = vpack.c.bf16 %v5459_v22, %v5457_v14  ;;  %v11169_v22 = vld [vmem:[#allocation6_spill] sm:$0xff] }
0x2a80   :  { %v5318_v61 = vpop.permute.xlu0 %5317  ;;  %v5322_v29 = vpop.permute.xlu1 %5321 }
0x2a81   :  { %v5320_v3 = vmul.f32 %v11148_v23, %v5318_v61  ;;  %8013 = vmatpush3.bf16.msra.mxu0 %v8012_v60  ;;  %v5325_v18 = vmul.f32 %v11149_v40, %v5322_v29  ;;  %v8045_v60 = vpack.c.bf16 %v5464_v28, %v5462_v25  ;;  %v5461_v61 = vld [vmem:[%s10804_s3 + $0x4c0] sm:$0xff]  ;;  %v5468_v29 = vld [vmem:[%s10804_s3 + $0x4f8] sm:$0xff] }
0x2a82   :  { %8014 = vmatprep.subr.bf16.mxu0 %v11023_v38 }
0x2a83   :  { %v8015_v21 = vpack.c.bf16 %v5320_v3, %v5319_v9  ;;  %v5463_v9 = vld [vmem:[%s10804_s3 + $0x4d0] sm:$0xff]  ;;  %v5466_v3 = vld [vmem:[%s10804_s3 + $0x4e8] sm:$0xff] }
0x2a84   :  { %v5324_v54 = vpop.permute.xlu0 %5323  ;;  %v5328_v58 = vpop.permute.xlu1 %5327 }
0x2a85   :  { %8016 = vmatpush3.bf16.msra.mxu0 %v8015_v21  ;;  %v5326_v7 = vmul.f32 %v11149_v40, %v5324_v54  ;;  %v5331_v42 = vmul.f32 %v11150_v63, %v5328_v58  ;;  %v8047_v21 = vpack.c.bf16 %v5463_v9, %v5461_v61  ;;  %v8049_v54 = vpack.c.bf16 %v5468_v29, %v5466_v3  ;;  %v5467_v58 = vld [vmem:[%s10804_s3 + $0x4f0] sm:$0xff] }
0x2a86   :  { %8017 = vmatprep.subr.bf16.mxu0 %v11023_v38 }
0x2a87   :  { %v8021_v32 = vpack.c.bf16 %v5326_v7, %v5325_v18  ;;  %v5465_v7 = vld [vmem:[%s10804_s3 + $0x4e0] sm:$0xff]  ;;  %v5472_v18 = vld [vmem:[%s10804_s3 + $0x518] sm:$0xff] }
0x2a88   :  { %v5330_v15 = vpop.permute.xlu0 %5329  ;;  %v5334_v37 = vpop.permute.xlu1 %5333 }
0x2a89   :  { %8019 = vmatpush3.bf16.msra.mxu0 %v8018_v8  ;;  %v5332_v23 = vmul.f32 %v11150_v63, %v5330_v15  ;;  %v5337_v48 = vmul.f32 %v11151_v2, %v5334_v37  ;;  %v5453_v8 = vld [vmem:[%s10804_s3 + $0x480] sm:$0xff]  ;;  %v5470_v15 = vld [vmem:[%s10804_s3 + $0x508] sm:$0xff] }
0x2a8a   :  { %8020 = vmatprep.subr.bf16.mxu0 %v11023_v38  ;;  %v8039_v43 = vpack.c.bf16 %v5455_v24, %v5453_v8 }
0x2a8b   :  { %v8024_v56 = vpack.c.bf16 %v5332_v23, %v5331_v42  ;;  %v8053_v23 = vpack.c.bf16 %v5472_v18, %v5470_v15  ;;  %v5471_v42 = vld [vmem:[%s10804_s3 + $0x510] sm:$0xff] }
0x2a8c   :  { %v5336_v27 = vpop.permute.xlu0 %5335  ;;  %8040 = vmatpush1.bf16.msra.mxu1 %v8039_v43  ;;  %v11168_v43 = vld [vmem:[#allocation5_spill] sm:$0xff] }
0x2a8d   :  { %8022 = vmatpush3.bf16.msra.mxu0 %v8021_v32  ;;  %v5338_v47 = vmul.f32 %v11151_v2, %v5336_v27  ;;  %8042 = vmatprep.subr.bf16.mxu1 %v8041_v59  ;;  %v8051_v32 = vpack.c.bf16 %v5467_v58, %v5465_v7  ;;  %v5469_v27 = vld [vmem:[%s10804_s3 + $0x500] sm:$0xff] }
0x2a8e   :  { %8023 = vmatprep.subr.bf16.mxu0 %v11023_v38  ;;  %v8055_v37 = vpack.c.bf16 %v5471_v42, %v5469_v27 }
0x2a8f   :  { %v8027_v40 = vpack.c.bf16 %v5338_v47, %v5337_v48  ;;  %v5474_v47 = vld [vmem:[%s10804_s3 + $0x528] sm:$0xff]  ;;  %v5476_v48 = vld [vmem:[%s10804_s3 + $0x538] sm:$0xff] }
0x2a90   :  { %8044 = vmatpush1.bf16.msra.mxu1 %v8043_v41 }
0x2a91   :  { %8025 = vmatpush3.bf16.msra.mxu0 %v8024_v56  ;;  %8046 = vmatprep.subr.bf16.mxu1 %v8045_v60 }
0x2a92   :  { %8026 = vmatprep.subr.bf16.mxu0 %v11023_v38 }
0x2a94   :  { %8048 = vmatpush1.bf16.msra.mxu1 %v8047_v21  ;;  %v11172_v21 = vld [vmem:[#allocation7_spill] sm:$0xff] }
0x2a95   :  { %8028 = vmatpush3.bf16.msra.mxu0 %v8027_v40  ;;  %8050 = vmatprep.subr.bf16.mxu1 %v8049_v54 }
0x2a98   :  { %7344 = vmatmul.mubr.msk.f32.vlgmr.msra.gmra.mrb[80].mxu0 %vm11156_vm1, %v5339_v36  ;;  %8052 = vmatpush1.bf16.msra.mxu1 %v8051_v32  ;;  %v8057_v36 = vpack.c.bf16 %v5476_v48, %v5474_v47  ;;  %v11177_v48 = vld [vmem:[#allocation8_spill] sm:$0xff] }
0x2a99   :  { %5680 = vmatprep.mubr.f32.mxu0 %v11153_v52  ;;  %8054 = vmatprep.subr.bf16.mxu1 %v8053_v23 }
0x2a9c   :  { %8056 = vmatpush1.bf16.msra.mxu1 %v8055_v37 }
0x2a9d   :  { %8058 = vmatprep.subr.bf16.mxu1 %v8057_v36 }
0x2b6b   :  { %v10518_v63 = vpop.f32.mrb[80].mxu0 }
0x2b6c   :  { %v5416_v4 = vmul.f32 %v10518_v63, %v10518_v63  ;;  %5414 = vadd.xlane.f32.xlu1 %v10518_v63  ;;  %v7345_v2 = vpop.f32.mrb[81].mxu0 }
0x2b6d   :  { %v5475_v2 = vld [vmem:[%s10804_s3 + $0x530] sm:$0xff] }
0x2b6e   :  { %5417 = vadd.xlane.f32.xlu0 %v5416_v4  ;;  %v5473_v4 = vld [vmem:[%s10804_s3 + $0x520] sm:$0xff] }
0x2bf9   :  { %v5415_v38 = vpop.xlane.xlu1 %5414 }
0x2bfa   :  { %v5419_v57 = vmul.f32 0.0078125, %v5415_v38  ;;  %v8059_v38 = vpack.c.bf16 %v5475_v2, %v5473_v4  ;;  %v11178_v4 = vld [vmem:[#allocation9_spill] sm:$0xff] }
0x2bfb   :  { %v5418_v0 = vpop.xlane.xlu0 %5417 }
0x2bfc   :  { %v5421_v5 = vmul.f32 %v5419_v57, %v5419_v57  ;;  %v5420_v55 = vmul.f32 0.0078125, %v5418_v0  ;;  %8060 = vmatpush1.bf16.msra.mxu1 %v8059_v38 }
0x2bfe   :  { %v5422_v26 = vsub.f32 %v5420_v55, %v5421_v5 }
0x2c00   :  { %v5423_v17 = vadd.f32 1e-05, %v5422_v26 }
0x2c02   :  { %8248 = vrsqrt.f32 %v5423_v17 }
0x2c0c   :  { %v8249_v35 = vpop.eup %8248 }
0x2c0d   :  { %v5425_v20 = vmul.f32 %v8249_v35, %v10526_v62 }
0x2c0f   :  { %5434 = vperm.xlu1 %8160, %v5425_v20   ;;  %v5426_v19 = vmul.f32 %v5425_v20, %v5419_v57 }
0x2c11   :  { %5428 = vrot.lane.b32.xlu0 %v5426_v19, %s8258_s22 }
0x2c13   :  { %8161 = vset.pattern.permute.xlu1 %v10977_v16 }
0x2c83   :  { %v5429_v56 = vpop.permute.xlu0 %5428 }
0x2c84   :  { %v5431_v40 = vsub.f32 %v10526_v62, %v5429_v56 }
0x2c86   :  { %5440 = vperm.xlu1 %8161, %v5431_v40  }
0x2c8a   :  { %8162 = vset.pattern.permute.xlu1 %v10978_v10 }
0x2c8e   :  { %v5435_v57 = vpop.permute.xlu1 %5434 }
0x2c8f   :  { %v5437_v0 = vmul.f32 %v5435_v57, %v10518_v63  ;;  %v11157_v63 = vld [vmem:[#allocation2_spill] sm:$0xff] }
0x2c90   :  { %vm11158_vm12 = vcmp.lt.s32.totalorder %v11157_v63, 4  ;;  %vm11160_vm6 = vcmp.lt.s32.totalorder %v11157_v63, 3  ;;  %vm11164_vm3 = vcmp.lt.s32.totalorder %v11157_v63, 2  ;;  %vm11166_vm10 = vcmp.lt.s32.totalorder %v11157_v63, 1 }
0x2c91   :  { %vm11159_vm15 = vmmov %vm11158_vm12  ;;  %vm11170_vm4 = vcmp.lt.s32.totalorder %v11157_v63, 127  ;;  %vm11173_vm0 = vcmp.lt.s32.totalorder %v11157_v63, 126  ;;  %vm11175_vm14 = vcmp.lt.s32.totalorder %v11157_v63, 125  ;;  %vm11179_vm13 = vcmp.lt.s32.totalorder %v11157_v63, 124 }
0x2c92   :  { %vm11161_vm9 = vmmov %vm11160_vm6 }
0x2c93   :  { %vm11165_vm11 = vmmov %vm11164_vm3 }
0x2c94   :  { %vm11167_vm7 = vmmov %vm11166_vm10 }
0x2c95   :  { %vm11171_vm5 = vmmov %vm11170_vm4 }
0x2c96   :  { %vm11174_vm8 = vmmov %vm11173_vm0 }
0x2c97   :  { %vm11176_vm2 = vmmov %vm11175_vm14 }
0x2c98   :  { %vm11180_vm1 = vmmov %vm11179_vm13 }
0x2d05   :  { %v5441_v5 = vpop.permute.xlu1 %5440 }
0x2d06   :  { %v5443_v55 = vadd.f32 %v5441_v5, %v5437_v0 }
0x2d08   :  { %v5444_v26 = vmax.f32 %v5443_v55, 0.0 }
0x2d0a   :  { %5542 = vmatmul.mubr.f32.vlgmr.msra.gmra.mrb[64].mxu1 %v5444_v26 }
0x2d0b   :  { %5857 = vmatprep.mubr.f32.mxu1 %v11153_v52 }
0x2ddd   :  { %v10631_v17 = vpop.f32.mrb[64].mxu1 }
0x2dde   :  { %5548 = vrot.lane.b32.xlu0 %v10631_v17, %s8256_s18  ;;  %v5545_v62 = vpop.f32.mrb[65].mxu1 }
0x2ddf   :  { %5550 = vrot.lane.b32.xlu1 %v5545_v62, %s8256_s18 }
0x2de2   :  { %5556 = vrot.lane.b32.xlu0 %v10631_v17, %s8255_s17 }
0x2de3   :  { %5558 = vrot.lane.b32.xlu1 %v5545_v62, %s8255_s17 }
0x2de6   :  { %5564 = vrot.lane.b32.xlu0 %v10631_v17, %s8257_s21 }
0x2de7   :  { %5566 = vrot.lane.b32.xlu1 %v5545_v62, %s8257_s21 }
0x2dea   :  { %5572 = vrot.lane.b32.xlu0 %v10631_v17, %s8258_s22 }
0x2deb   :  { %5574 = vrot.lane.b32.xlu1 %v5545_v62, %s8258_s22 }
0x2dee   :  { %5580 = vrot.lane.b32.xlu0 %v10631_v17, %s8259_s0 }
0x2def   :  { %5582 = vrot.lane.b32.xlu1 %v5545_v62, %s8259_s0 }
0x2df2   :  { %5588 = vrot.lane.b32.xlu0 %v10631_v17, %s8260_s23 }
0x2df3   :  { %5590 = vrot.lane.b32.xlu1 %v5545_v62, %s8260_s23 }
0x2df6   :  { %5596 = vrot.lane.b32.xlu0 %v10631_v17, %s8261_s24 }
0x2df7   :  { %5598 = vrot.lane.b32.xlu1 %v5545_v62, %s8261_s24 }
0x2dfa   :  { %5604 = vrot.lane.b32.xlu0 %v10631_v17, %s8262_s25 }
0x2dfb   :  { %5606 = vrot.lane.b32.xlu1 %v5545_v62, %s8262_s25 }
0x2e50   :  { %v5549_v10 = vpop.permute.xlu0 %5548 }
0x2e51   :  { %v5551_v52 = vpop.permute.xlu1 %5550 }
0x2e52   :  { %v5552_v35 = vsel %vm11158_vm12, %v5549_v10, %v5551_v52  ;;  %v5553_v20 = vsel %vm11159_vm15, %v5551_v52, %v5549_v10  ;;  %vm11182_vm12 = vcmask 588800  }
0x2e53   :  { %v5554_v45 = vmul.f32 %v11162_v30, %v5553_v20  ;;  %v5555_v13 = vmul.f32 %v11162_v30, %v5552_v35  ;;  %v5612_v35 = vld [vmem:[%s10802_s1 + $0x230] sm:$0xff] }
0x2e54   :  { %v5557_v19 = vpop.permute.xlu0 %5556 }
0x2e55   :  { %v5559_v1 = vpop.permute.xlu1 %5558 }
0x2e56   :  { %v5560_v11 = vsel %vm11160_vm6, %v5557_v19, %v5559_v1  ;;  %v5561_v34 = vsel %vm11161_vm9, %v5559_v1, %v5557_v19  ;;  %vm11183_vm6 = vmmov %vm11159_vm15 }
0x2e57   :  { %v5562_v44 = vmul.f32 %v11163_v12, %v5561_v34  ;;  %v5563_v6 = vmul.f32 %v11163_v12, %v5560_v11 }
0x2e58   :  { %v5565_v46 = vpop.permute.xlu0 %5564 }
0x2e59   :  { %v8063_v31 = vpack.c.bf16 %v5562_v44, %v5554_v45  ;;  %v5567_v33 = vpop.permute.xlu1 %5566  ;;  %v8061_v50 = vpack.c.bf16 %v5563_v6, %v5555_v13 }
0x2e5a   :  { %v5568_v53 = vsel %vm11164_vm3, %v5565_v46, %v5567_v33  ;;  %v5569_v39 = vsel %vm11165_vm11, %v5567_v33, %v5565_v46  ;;  %vm11184_vm3 = vmmov %vm11161_vm9 }
0x2e5b   :  { %8062 = vmatprep.subr.bf16.mxu0 %v8061_v50  ;;  %v5570_v59 = vmul.f32 %v11168_v43, %v5569_v39  ;;  %v5571_v14 = vmul.f32 %v11168_v43, %v5568_v53  ;;  %v5687_v53 = vld [vmem:[%s10803_s2 + $0x158] sm:$0xff] }
0x2e5c   :  { %v5573_v8 = vpop.permute.xlu0 %5572  ;;  %8064 = vmatpush1.bf16.msra.mxu0 %v8063_v31 }
0x2e5d   :  { %v5575_v24 = vpop.permute.xlu1 %5574 }
0x2e5e   :  { %v5576_v51 = vsel %vm11166_vm10, %v5573_v8, %v5575_v24  ;;  %v5577_v49 = vsel %vm11167_vm7, %v5575_v24, %v5573_v8  ;;  %vm11185_vm10 = vmmov %vm11165_vm11 }
0x2e5f   :  { %v5578_v25 = vmul.f32 %v11169_v22, %v5577_v49  ;;  %v5579_v28 = vmul.f32 %v11169_v22, %v5576_v51 }
0x2e60   :  { %v5581_v41 = vpop.permute.xlu0 %5580 }
0x2e61   :  { %v8067_v60 = vpack.c.bf16 %v5578_v25, %v5570_v59  ;;  %v5583_v61 = vpop.permute.xlu1 %5582  ;;  %v8065_v9 = vpack.c.bf16 %v5579_v28, %v5571_v14 }
0x2e62   :  { %v5584_v3 = vsel %vm11170_vm4, %v5581_v41, %v5583_v61  ;;  %v5585_v29 = vsel %vm11171_vm5, %v5583_v61, %v5581_v41  ;;  %vm11186_vm4 = vmmov %vm11167_vm7 }
0x2e63   :  { %v5586_v54 = vmul.f32 %v11172_v21, %v5584_v3  ;;  %v5587_v7 = vmul.f32 %v11172_v21, %v5585_v29  ;;  %8066 = vmatprep.subr.bf16.mxu0 %v8065_v9 }
0x2e64   :  { %v5589_v58 = vpop.permute.xlu0 %5588  ;;  %8068 = vmatpush1.bf16.msra.mxu0 %v8067_v60 }
0x2e65   :  { %v8071_v15 = vpack.c.bf16 %v5586_v54, %v10631_v17  ;;  %v5591_v18 = vpop.permute.xlu1 %5590  ;;  %v8069_v32 = vpack.c.bf16 %v5587_v7, %v5545_v62  ;;  %v11181_v62 = vld [vmem:[#allocation10_spill] sm:$0xff] }
0x2e66   :  { %v5592_v23 = vsel %vm11173_vm0, %v5589_v58, %v5591_v18  ;;  %v5593_v27 = vsel %vm11174_vm8, %v5591_v18, %v5589_v58  ;;  %vm11187_vm0 = vmmov %vm11171_vm5 }
0x2e67   :  { %8070 = vmatprep.subr.bf16.mxu0 %v8069_v32  ;;  %v5594_v40 = vmul.f32 %v11177_v48, %v5592_v23  ;;  %v5595_v36 = vmul.f32 %v11177_v48, %v5593_v27 }
0x2e68   :  { %v5597_v42 = vpop.permute.xlu0 %5596  ;;  %8072 = vmatpush1.bf16.msra.mxu0 %v8071_v15 }
0x2e69   :  { %v5599_v37 = vpop.permute.xlu1 %5598 }
0x2e6a   :  { %v5600_v56 = vsel %vm11175_vm14, %v5597_v42, %v5599_v37  ;;  %v5601_v47 = vsel %vm11176_vm2, %v5599_v37, %v5597_v42  ;;  %vm11188_vm14 = vmmov %vm11174_vm8 }
0x2e6b   :  { %v5602_v2 = vmul.f32 %v11178_v4, %v5600_v56  ;;  %v5603_v38 = vmul.f32 %v11178_v4, %v5601_v47 }
0x2e6c   :  { %v5605_v57 = vpop.permute.xlu0 %5604 }
0x2e6d   :  { %v8075_v0 = vpack.c.bf16 %v5602_v2, %v5594_v40  ;;  %v5607_v5 = vpop.permute.xlu1 %5606  ;;  %v8073_v55 = vpack.c.bf16 %v5603_v38, %v5595_v36 }
0x2e6e   :  { %v5609_v26 = vsel %vm11179_vm13, %v5607_v5, %v5605_v57  ;;  %v5608_v17 = vsel %vm11180_vm1, %v5605_v57, %v5607_v5  ;;  %vm11189_vm13 = vmmov %vm11176_vm2 }
0x2e6f   :  { %v5611_v10 = vmul.f32 %v11181_v62, %v5609_v26  ;;  %8074 = vmatprep.subr.bf16.mxu0 %v8073_v55  ;;  %v5610_v52 = vmul.f32 %v11181_v62, %v5608_v17 }
0x2e70   :  { %8076 = vmatpush1.bf16.msra.mxu0 %v8075_v0 }
0x2e71   :  { %5632 = vmatprep.subr.mxu0 %v5611_v10 }
0x2e74   :  { %5633 = vmatpush1.msra.mxu0 %v5610_v52 }
0x2e75   :  { %6271 = vmatmul.mubr.msk.f32.vlgmr.msra.gmra.mrb[82].mxu0 %vm11182_vm12, %v5612_v35  ;;  %vm11190_vm12 = vmmov %vm11180_vm1 }
0x2f48   :  { %v5682_v20 = vpop.f32.mrb[82].mxu0 }
0x2f49   :  { %v5691_v19 = vmul.f32 %v5682_v20, %v5682_v20  ;;  %v5684_v1 = vpop.f32.mrb[83].mxu0 }
0x2f4a   :  { %v5688_v11 = vadd.f32 %v5684_v1, %v5682_v20  ;;  %v5692_v34 = vmul.f32 %v5684_v1, %v5684_v1 }
0x2f4c   :  { %v5693_v45 = vadd.f32 %v5692_v34, %v5691_v19  ;;  %5689 = vadd.xlane.f32.xlu0 %v5688_v11 }
0x2f4e   :  { %5694 = vadd.xlane.f32.xlu1 %v5693_v45 }
0x2fd9   :  { %v5690_v13 = vpop.xlane.xlu0 %5689 }
0x2fda   :  { %v5696_v44 = vmul.f32 0.00390625, %v5690_v13 }
0x2fdb   :  { %v5695_v6 = vpop.xlane.xlu1 %5694 }
0x2fdc   :  { %v5698_v46 = vmul.f32 %v5696_v44, %v5696_v44  ;;  %v5697_v31 = vmul.f32 0.00390625, %v5695_v6 }
0x2fde   :  { %v5699_v33 = vsub.f32 %v5697_v31, %v5698_v46 }
0x2fe0   :  { %v5700_v50 = vadd.f32 1e-05, %v5699_v33 }
0x2fe2   :  { %8250 = vrsqrt.f32 %v5700_v50 }
0x2fec   :  { %v8251_v39 = vpop.eup %8250 }
0x2fed   :  { %v5702_v8 = vmul.f32 %v8251_v39, %v5687_v53 }
0x2fef   :  { %5711 = vperm.xlu1 %8162, %v5702_v8   ;;  %v5703_v24 = vmul.f32 %v5702_v8, %v5696_v44 }
0x2ff1   :  { %5705 = vrot.lane.b32.xlu0 %v5703_v24, %s8258_s22 }
0x3063   :  { %v5706_v51 = vpop.permute.xlu0 %5705 }
0x3064   :  { %v5708_v49 = vsub.f32 %v5687_v53, %v5706_v51 }
0x3066   :  { %5718 = vperm.xlu0 %8158, %v5708_v49  }
0x306e   :  { %v5712_v59 = vpop.permute.xlu1 %5711 }
0x306f   :  { %v5714_v14 = vmul.f32 %v5712_v59, %v5682_v20  ;;  %v5715_v25 = vmul.f32 %v5712_v59, %v5684_v1 }
0x30e5   :  { %v5719_v28 = vpop.permute.xlu0 %5718 }
0x30e6   :  { %v5721_v41 = vadd.f32 %v5719_v28, %v5714_v14  ;;  %v5722_v60 = vadd.f32 %v5719_v28, %v5715_v25 }
0x30e8   :  { %v10714_v61 = vmax.f32 %v5721_v41, 0.0  ;;  %v5724_v9 = vmax.f32 %v5722_v60, 0.0 }
0x30ea   :  { %5727 = vrot.lane.b32.xlu0 %v5724_v9, %s8256_s18  ;;  %5725 = vrot.lane.b32.xlu1 %v10714_v61, %s8256_s18 }
0x30ee   :  { %5735 = vrot.lane.b32.xlu0 %v5724_v9, %s8255_s17  ;;  %5733 = vrot.lane.b32.xlu1 %v10714_v61, %s8255_s17 }
0x30f2   :  { %5743 = vrot.lane.b32.xlu0 %v5724_v9, %s8257_s21  ;;  %5741 = vrot.lane.b32.xlu1 %v10714_v61, %s8257_s21 }
0x30f6   :  { %5751 = vrot.lane.b32.xlu0 %v5724_v9, %s8258_s22  ;;  %5749 = vrot.lane.b32.xlu1 %v10714_v61, %s8258_s22 }
0x30fa   :  { %5759 = vrot.lane.b32.xlu0 %v5724_v9, %s8259_s0  ;;  %5757 = vrot.lane.b32.xlu1 %v10714_v61, %s8259_s0 }
0x30fe   :  { %5767 = vrot.lane.b32.xlu0 %v5724_v9, %s8260_s23  ;;  %5765 = vrot.lane.b32.xlu1 %v10714_v61, %s8260_s23 }
0x3102   :  { %5775 = vrot.lane.b32.xlu0 %v5724_v9, %s8261_s24  ;;  %5773 = vrot.lane.b32.xlu1 %v10714_v61, %s8261_s24 }
0x3106   :  { %5783 = vrot.lane.b32.xlu0 %v5724_v9, %s8262_s25  ;;  %5781 = vrot.lane.b32.xlu1 %v10714_v61, %s8262_s25 }
0x315c   :  { %v5728_v3 = vpop.permute.xlu0 %5727  ;;  %v5726_v29 = vpop.permute.xlu1 %5725 }
0x315d   :  { %v5729_v54 = vsel %vm11159_vm15, %v5726_v29, %v5728_v3  ;;  %v5730_v7 = vsel %vm11183_vm6, %v5728_v3, %v5726_v29  ;;  %vm11191_vm15 = vcmask 588800   ;;  %vm5865_vm6 = vcmask 1042432  }
0x315e   :  { %v5731_v23 = vmul.f32 %v11162_v30, %v5730_v7  ;;  %v5732_v27 = vmul.f32 %v11162_v30, %v5729_v54 }
0x3160   :  { %v5736_v58 = vpop.permute.xlu0 %5735  ;;  %v5734_v15 = vpop.permute.xlu1 %5733 }
0x3161   :  { %v5737_v18 = vsel %vm11161_vm9, %v5734_v15, %v5736_v58  ;;  %v5738_v32 = vsel %vm11184_vm3, %v5736_v58, %v5734_v15 }
0x3162   :  { %v5739_v42 = vmul.f32 %v11163_v12, %v5738_v32  ;;  %v5740_v37 = vmul.f32 %v11163_v12, %v5737_v18 }
0x3164   :  { %v8079_v56 = vpack.c.bf16 %v5739_v42, %v5731_v23  ;;  %v5744_v47 = vpop.permute.xlu0 %5743  ;;  %v5742_v40 = vpop.permute.xlu1 %5741  ;;  %v8077_v36 = vpack.c.bf16 %v5740_v37, %v5732_v27  ;;  %v5864_v37 = vld [vmem:[%s10803_s2 + $0x160] sm:$0x7] }
0x3165   :  { %v5745_v2 = vsel %vm11165_vm11, %v5742_v40, %v5744_v47  ;;  %v5746_v38 = vsel %vm11185_vm10, %v5744_v47, %v5742_v40 }
0x3166   :  { %8078 = vmatprep.subr.bf16.mxu1 %v8077_v36  ;;  %v5747_v5 = vmul.f32 %v11168_v43, %v5746_v38  ;;  %v5748_v55 = vmul.f32 %v11168_v43, %v5745_v2 }
0x3167   :  { %8080 = vmatpush1.bf16.msra.mxu1 %v8079_v56 }
0x3168   :  { %v5752_v57 = vpop.permute.xlu0 %5751  ;;  %v5750_v0 = vpop.permute.xlu1 %5749 }
0x3169   :  { %v5753_v30 = vsel %vm11167_vm7, %v5750_v0, %v5752_v57  ;;  %v5754_v12 = vsel %vm11186_vm4, %v5752_v57, %v5750_v0 }
0x316a   :  { %v5755_v26 = vmul.f32 %v11169_v22, %v5754_v12  ;;  %v5756_v17 = vmul.f32 %v11169_v22, %v5753_v30 }
0x316c   :  { %v8083_v10 = vpack.c.bf16 %v5755_v26, %v5747_v5  ;;  %v5760_v52 = vpop.permute.xlu0 %5759  ;;  %v5758_v35 = vpop.permute.xlu1 %5757  ;;  %v8081_v20 = vpack.c.bf16 %v5756_v17, %v5748_v55 }
0x316d   :  { %v5761_v19 = vsel %vm11171_vm5, %v5758_v35, %v5760_v52  ;;  %v5762_v1 = vsel %vm11187_vm0, %v5760_v52, %v5758_v35 }
0x316e   :  { %v5763_v11 = vmul.f32 %v11172_v21, %v5761_v19  ;;  %v5764_v34 = vmul.f32 %v11172_v21, %v5762_v1  ;;  %8082 = vmatprep.subr.bf16.mxu1 %v8081_v20 }
0x316f   :  { %8084 = vmatpush1.bf16.msra.mxu1 %v8083_v10 }
0x3170   :  { %v8087_v43 = vpack.c.bf16 %v5763_v11, %v10714_v61  ;;  %v5768_v45 = vpop.permute.xlu0 %5767  ;;  %v5766_v22 = vpop.permute.xlu1 %5765  ;;  %v8085_v13 = vpack.c.bf16 %v5764_v34, %v5724_v9 }
0x3171   :  { %v5769_v44 = vsel %vm11174_vm8, %v5766_v22, %v5768_v45  ;;  %v5770_v6 = vsel %vm11188_vm14, %v5768_v45, %v5766_v22 }
0x3172   :  { %8086 = vmatprep.subr.bf16.mxu1 %v8085_v13  ;;  %v5771_v50 = vmul.f32 %v11177_v48, %v5769_v44  ;;  %v5772_v53 = vmul.f32 %v11177_v48, %v5770_v6 }
0x3173   :  { %8088 = vmatpush1.bf16.msra.mxu1 %v8087_v43 }
0x3174   :  { %v5776_v46 = vpop.permute.xlu0 %5775  ;;  %v5774_v31 = vpop.permute.xlu1 %5773 }
0x3175   :  { %v5777_v21 = vsel %vm11176_vm2, %v5774_v31, %v5776_v46  ;;  %v5778_v33 = vsel %vm11189_vm13, %v5776_v46, %v5774_v31 }
0x3176   :  { %v5779_v39 = vmul.f32 %v11178_v4, %v5777_v21  ;;  %v5780_v8 = vmul.f32 %v11178_v4, %v5778_v33  ;;  %v5789_v4 = vld [vmem:[%s10802_s1 + $0x240] sm:$0x7] }
0x3178   :  { %v8091_v24 = vpack.c.bf16 %v5779_v39, %v5771_v50  ;;  %v5784_v51 = vpop.permute.xlu0 %5783  ;;  %v5782_v49 = vpop.permute.xlu1 %5781  ;;  %v8089_v59 = vpack.c.bf16 %v5780_v8, %v5772_v53 }
0x3179   :  { %v5786_v14 = vsel %vm11180_vm1, %v5784_v51, %v5782_v49  ;;  %v5785_v25 = vsel %vm11190_vm12, %v5782_v49, %v5784_v51 }
0x317a   :  { %v5788_v28 = vmul.f32 %v11181_v62, %v5786_v14  ;;  %8090 = vmatprep.subr.bf16.mxu1 %v8089_v59  ;;  %v5787_v48 = vmul.f32 %v11181_v62, %v5785_v25 }
0x317b   :  { %8092 = vmatpush1.bf16.msra.mxu1 %v8091_v24 }
0x317c   :  { %5809 = vmatprep.subr.mxu1 %v5788_v28 }
0x317f   :  { %5810 = vmatpush1.msra.mxu1 %v5787_v48 }
0x3180   :  { %6272 = vmatmul.mubr.msk.f32.vlgmr.msra.gmra.mrb[66].mxu1 %vm11191_vm15, %v5789_v4 }
0x3253   :  { %v5859_v41 = vpop.f32.mrb[66].mxu1 }
0x3254   :  { %v5866_v60 = vsel %vm5865_vm6, %v5859_v41, 0.0  ;;  %v5871_v61 = vmul.f32 %v5859_v41, %v5859_v41  ;;  %v5861_v63 = vpop.f32.mrb[67].mxu1 }
0x3255   :  { %v5867_v9 = vsel %vm5865_vm6, %v5861_v63, 0.0  ;;  %v5872_v3 = vmul.f32 %v5861_v63, %v5861_v63 }
0x3256   :  { %v5868_v29 = vadd.f32 %v5867_v9, %v5866_v60  ;;  %v5873_v54 = vsel %vm5865_vm6, %v5871_v61, 0.0 }
0x3257   :  { %v5874_v7 = vsel %vm5865_vm6, %v5872_v3, 0.0 }
0x3258   :  { %5869 = vadd.xlane.f32.xlu1 %v5868_v29  ;;  %v5875_v58 = vadd.f32 %v5874_v7, %v5873_v54 }
0x325a   :  { %5876 = vadd.xlane.f32.xlu0 %v5875_v58 }
0x32e5   :  { %v5870_v62 = vpop.xlane.xlu1 %5869 }
0x32e6   :  { %v5878_v15 = vmul.f32 0.00390625, %v5870_v62 }
0x32e7   :  { %v5877_v18 = vpop.xlane.xlu0 %5876 }
0x32e8   :  { %v5880_v32 = vmul.f32 %v5878_v15, %v5878_v15  ;;  %v5879_v23 = vmul.f32 0.00390625, %v5877_v18 }
0x32ea   :  { %v5881_v27 = vsub.f32 %v5879_v23, %v5880_v32 }
0x32ec   :  { %v5882_v42 = vadd.f32 1e-05, %v5881_v27 }
0x32ee   :  { %8252 = vrsqrt.f32 %v5882_v42 }
0x32f8   :  { %v8253_v56 = vpop.eup %8252 }
0x32f9   :  { %v5884_v47 = vmul.f32 %v8253_v56, %v5864_v37 }
0x32fb   :  { %5893 = vperm.xlu1 %8162, %v5884_v47   ;;  %v5885_v40 = vmul.f32 %v5884_v47, %v5878_v15 }
0x32fd   :  { %5887 = vrot.lane.b32.xlu0 %v5885_v40, %s8258_s22 }
0x32ff   :  { %8163 = vset.pattern.permute.xlu1 %v10977_v16 }
0x336f   :  { %v5888_v36 = vpop.permute.xlu0 %5887 }
0x3370   :  { %v5890_v2 = vsub.f32 %v5864_v37, %v5888_v36 }
0x3372   :  { %5900 = vperm.xlu1 %8163, %v5890_v2  }
0x337a   :  { %v5894_v38 = vpop.permute.xlu1 %5893 }
0x337b   :  { %v5896_v57 = vmul.f32 %v5894_v38, %v5859_v41  ;;  %v5897_v0 = vmul.f32 %v5894_v38, %v5861_v63 }
0x33f1   :  { %v5901_v30 = vpop.permute.xlu1 %5900 }
0x33f2   :  { %v5903_v12 = vadd.f32 %v5901_v30, %v5896_v57  ;;  %v5904_v5 = vadd.f32 %v5901_v30, %v5897_v0 }
0x33f4   :  { %v5907_v55 = vcombine.low %v5903_v12, %v5904_v5 }
0x33f6   :  { %5909 = vst [vmem:[%s10805_s4] sm:$0x77] %v5907_v55 }

</bundles_post_ra>
